<compile_context>
chip_gen: v6e
topology: v6e:2x2x1
jax: 0.10.0
libtpu: 0.0.40
codegen_flags: <defaults>
</compile_context>

<pallas_src>
import functools

import jax
import jax.numpy as jnp
from jax.experimental import pallas as pl
from jax.experimental.pallas import tpu as pltpu

EMBED_SIZE = 32          # stands in for 256
BASE_WIDTH = 8           # stands in for resnet50's 64
EXPANSION = 4
BLOCKS = (3, 4, 6, 3)    # resnet50 bottleneck counts
LAYER_STRIDES = (1, 2, 2, 2)

# Generation-aware default tiles (only engage once a dim exceeds the tile):
#   v6e: 128 MiB VMEM -> TM could be grown to 512-1024 with 256-wide N/K tiles.
#   v7x: keep the double-buffered footprint well under ~24-28 MiB (64 MiB VMEM / TC).
#   v5e: 128-multiples are fine (4x 128x128 MXU); these bf16 tiles stay tiny.
TM, TN, TK = 512, 256, 256
MAX_SINGLE_K = 2048      # below this, one full-extent K block: no K grid, no K zero-pad


def _round_up(x, m):
    return (x + m - 1) // m * m


# ---------------------------------------------------------------------------
# Pallas kernels
# ---------------------------------------------------------------------------

def _mm_kernel(*refs, relu, has_res, multi_k):
    """Matmul + fused per-column scale/bias (+ optional residual add, + optional ReLU)."""
    a_ref, b_ref, s_ref, c_ref = refs[:4]
    pos = 4
    r_ref = None
    if has_res:
        r_ref = refs[pos]
        pos += 1
    o_ref = refs[pos]
    acc_ref = refs[pos + 1] if multi_k else None

    def _epilogue(acc):
        y = acc * s_ref[...] + c_ref[...]              # folded eval-mode BN (f32)
        if r_ref is not None:
            y = y + r_ref[...].astype(jnp.float32)     # fused residual add
        if relu:
            y = jnp.maximum(y, 0.0)
        o_ref[...] = y.astype(o_ref.dtype)

    if not multi_k:
        # Single K block: no accumulator scratch, dot -> epilogue -> store.
        _epilogue(jnp.dot(a_ref[...], b_ref[...],
                          preferred_element_type=jnp.float32))
    else:
        @pl.when(pl.program_id(2) == 0)
        def _():
            acc_ref[...] = jnp.zeros_like(acc_ref)

        acc_ref[...] += jnp.dot(a_ref[...], b_ref[...],
                                preferred_element_type=jnp.float32)

        @pl.when(pl.program_id(2) == pl.num_programs(2) - 1)
        def _():
            _epilogue(acc_ref[...])


def _maxpool_kernel(p_ref, o_ref):
    # (rows_tile, KK, Wo*C): reduce the pooling taps (sublane-major axis) in one pass.
    o_ref[...] = jnp.max(p_ref[...].astype(jnp.float32), axis=1).astype(o_ref.dtype)


def _avgpool_kernel(x_ref, o_ref):
    # (N, H*W, C) -> mean over H*W  (AdaptiveAvgPool2d((1,1)) + flatten), f32 output.
    inv = 1.0 / float(x_ref.shape[1])
    o_ref[...] = (jnp.sum(x_ref[...].astype(jnp.float32), axis=1) * inv).astype(o_ref.dtype)


# ---------------------------------------------------------------------------
# Fused matmul wrapper
# ---------------------------------------------------------------------------

def matmul_scale_bias(a, b, scale, bias, residual=None, *, relu=False,
                      out_dtype=jnp.bfloat16, tm=TM, tn=TN, tk=TK):
    """(M,K) @ (K,N) * scale[N] + bias[N] (+ residual) (+ ReLU).

    bf16 operands / f32 accumulation.  Small dims use unpadded full-extent blocks so
    the tiny-channel layers neither zero-pad K/N to 128 nor need a post-call slice.
    """
    M, K = a.shape
    K2, N = b.shape
    assert K == K2

    a = a.astype(jnp.bfloat16)
    b = b.astype(jnp.bfloat16)
    scale = scale.astype(jnp.float32).reshape(1, N)
    bias = bias.astype(jnp.float32).reshape(1, N)

    # K: pad only to a sublane multiple (8); single full-extent block unless huge.
    K8 = _round_up(K, 8)
    if K8 <= MAX_SINGLE_K:
        Kp, bk = K8, K8
    else:
        Kp, bk = _round_up(K, tk), tk
    multi_k = (Kp // bk) > 1

    # M / N: unpadded full-extent blocks when they fit in one tile.
    if M <= tm:
        Mp, bm = M, M
    else:
        Mp, bm = _round_up(M, tm), tm
    if N <= tn:
        Np, bn = N, N
    else:
        Np, bn = _round_up(N, tn), tn

    if (Mp, Kp) != (M, K):
        a = jnp.pad(a, ((0, Mp - M), (0, Kp - K)))
    if (Kp, Np) != (K, N):
        b = jnp.pad(b, ((0, Kp - K), (0, Np - N)))
    if Np != N:
        scale = jnp.pad(scale, ((0, 0), (0, Np - N)))
        bias = jnp.pad(bias, ((0, 0), (0, Np - N)))
    if residual is not None:
        residual = residual.astype(jnp.bfloat16)
        if (Mp, Np) != (M, N):
            residual = jnp.pad(residual, ((0, Mp - M), (0, Np - N)))

    in_specs = [
        pl.BlockSpec((bm, bk), lambda i, j, k: (i, k)),
        pl.BlockSpec((bk, bn), lambda i, j, k: (k, j)),
        pl.BlockSpec((1, bn), lambda i, j, k: (0, j)),
        pl.BlockSpec((1, bn), lambda i, j, k: (0, j)),
    ]
    args = [a, b, scale, bias]
    if residual is not None:
        in_specs.append(pl.BlockSpec((bm, bn), lambda i, j, k: (i, j)))
        args.append(residual)

    scratch = [pltpu.VMEM((bm, bn), jnp.float32)] if multi_k else []

    out = pl.pallas_call(
        functools.partial(_mm_kernel, relu=relu, has_res=residual is not None,
                          multi_k=multi_k),
        out_shape=jax.ShapeDtypeStruct((Mp, Np), out_dtype),
        grid_spec=pltpu.PrefetchScalarGridSpec(
            num_scalar_prefetch=0,
            grid=(Mp // bm, Np // bn, Kp // bk),
            in_specs=in_specs,
            out_specs=pl.BlockSpec((bm, bn), lambda i, j, k: (i, j)),
            scratch_shapes=scratch,
        ),
        compiler_params=pltpu.CompilerParams(
            dimension_semantics=("parallel", "parallel", "arbitrary")),
    )(*args)
    if (Mp, Np) != (M, N):
        out = out[:M, :N]
    return out


# ---------------------------------------------------------------------------
# Glue (patch extraction / reshapes) in plain JAX
# ---------------------------------------------------------------------------

def _extract_patches(x, kh, kw, stride, padding, pad_value=0.0):
    """x: (N,H,W,C) -> (N,Ho,Wo,kh*kw,C) sliding-window patches (im2col glue)."""
    x = jnp.pad(x, ((0, 0), (padding, padding), (padding, padding), (0, 0)),
                constant_values=pad_value)
    N, H, W, C = x.shape
    Ho = (H - kh) // stride + 1
    Wo = (W - kw) // stride + 1
    cols = []
    for i in range(kh):
        for j in range(kw):
            cols.append(x[:, i:i + stride * Ho:stride, j:j + stride * Wo:stride, :])
    patches = jnp.stack(cols, axis=3)     # (N, Ho, Wo, kh*kw, C)
    return patches, Ho, Wo


def conv_bn(x, w, scale, bias, *, stride, padding, relu, residual=None,
            out_dtype=jnp.bfloat16):
    """Conv2d (no bias) + folded eval-mode BN + optional fused residual add + ReLU."""
    kh, kw, cin, cout = w.shape
    N = x.shape[0]
    if kh == 1 and kw == 1 and padding == 0:
        # 1x1 conv: a (strided) view, straight into the matmul — no patches, no padding.
        xs = x[:, ::stride, ::stride, :] if stride > 1 else x
        Ho, Wo = xs.shape[1], xs.shape[2]
        a = xs.reshape(N * Ho * Wo, cin)
    else:
        # TODO(synk): the kh*kw patch tensor is still materialized in HBM (bf16); a
        #             halo-window conv kernel would remove this extra pass entirely.
        patches, Ho, Wo = _extract_patches(x, kh, kw, stride, padding)
        a = patches.reshape(N * Ho * Wo, kh * kw * cin)
    b = w.reshape(kh * kw * cin, cout)
    r = residual.reshape(N * Ho * Wo, cout) if residual is not None else None
    y = matmul_scale_bias(a, b, scale, bias, residual=r, relu=relu,
                          out_dtype=out_dtype)
    return y.reshape(N, Ho, Wo, cout)


def maxpool(x, *, k=3, stride=2, padding=1):
    N, H, W, C = x.shape
    patches, Ho, Wo = _extract_patches(x, k, k, stride, padding, pad_value=-jnp.inf)
    KK = k * k
    # (N,Ho,Wo,KK,C) -> (N*Ho, KK, Wo*C): taps on the sublane-major axis, lanes = Wo*C.
    p = patches.transpose(0, 1, 3, 2, 4).reshape(N * Ho, KK, Wo * C)
    rows = N * Ho
    tr = 8 if rows % 8 == 0 else rows      # full-extent fallback for odd row counts
    out = pl.pallas_call(
        _maxpool_kernel,
        grid=(rows // tr,),
        in_specs=[pl.BlockSpec((tr, KK, Wo * C), lambda i: (i, 0, 0))],
        out_specs=pl.BlockSpec((tr, Wo * C), lambda i: (i, 0)),
        out_shape=jax.ShapeDtypeStruct((rows, Wo * C), x.dtype),
    )(p)
    return out.reshape(N, Ho, Wo, C)


def global_avgpool(x):
    N, H, W, C = x.shape
    xr = x.reshape(N, H * W, C)
    return pl.pallas_call(
        _avgpool_kernel,
        out_shape=jax.ShapeDtypeStruct((N, C), jnp.float32),
    )(xr)


# ---------------------------------------------------------------------------
# Parameter construction (deterministic synthetic init)
# ---------------------------------------------------------------------------

def _conv_params(key, kh, kw, cin, cout):
    kw_, kg, kb, km, kv = jax.random.split(key, 5)
    fan_in = kh * kw * cin
    w = (jax.random.normal(kw_, (kh, kw, cin, cout), jnp.float32)
         / jnp.sqrt(fan_in)).astype(jnp.bfloat16)
    gamma = 1.0 + 0.1 * jax.random.normal(kg, (cout,), jnp.float32)
    beta = 0.1 * jax.random.normal(kb, (cout,), jnp.float32)
    mean = 0.1 * jax.random.normal(km, (cout,), jnp.float32)
    var = 1.0 + 0.1 * jax.random.uniform(kv, (cout,), jnp.float32)
    scale = gamma / jnp.sqrt(var + 1e-5)          # folded BN (eval mode)
    bias = beta - mean * scale
    return {"w": w, "scale": scale, "bias": bias}


def init_encoder_params(key, embed_size=EMBED_SIZE, base=BASE_WIDTH):
    keys = iter(jax.random.split(key, 128))
    params = {"stem": _conv_params(next(keys), 7, 7, 3, base)}
    in_planes = base
    layers = []
    for li, (nblocks, stride0) in enumerate(zip(BLOCKS, LAYER_STRIDES)):
        planes = base * (2 ** li)
        blocks = []
        for bi in range(nblocks):
            s = stride0 if bi == 0 else 1
            blk = {
                "c1": _conv_params(next(keys), 1, 1, in_planes, planes),
                "c2": _conv_params(next(keys), 3, 3, planes, planes),
                "c3": _conv_params(next(keys), 1, 1, planes, planes * EXPANSION),
                "stride": s,
            }
            if s != 1 or in_planes != planes * EXPANSION:
                blk["down"] = _conv_params(next(keys), 1, 1, in_planes,
                                           planes * EXPANSION)
            blocks.append(blk)
            in_planes = planes * EXPANSION
        layers.append(blocks)
    params["layers"] = layers
    k1, k2 = jax.random.split(next(keys))
    params["embed_w"] = (jax.random.normal(k1, (in_planes, embed_size), jnp.float32)
                         / jnp.sqrt(in_planes))
    params["embed_b"] = 0.01 * jax.random.normal(k2, (embed_size,), jnp.float32)
    return params


# ---------------------------------------------------------------------------
# Forward pass (EncoderCNN.forward)
# ---------------------------------------------------------------------------

def _bottleneck(x, blk):
    s = blk["stride"]
    out = conv_bn(x, blk["c1"]["w"], blk["c1"]["scale"], blk["c1"]["bias"],
                  stride=1, padding=0, relu=True)
    out = conv_bn(out, blk["c2"]["w"], blk["c2"]["scale"], blk["c2"]["bias"],
                  stride=s, padding=1, relu=True)
    if "down" in blk:
        identity = conv_bn(x, blk["down"]["w"], blk["down"]["scale"],
                           blk["down"]["bias"], stride=s, padding=0, relu=False)
    else:
        identity = x
    # conv3 + BN + residual-add + ReLU all fused into one matmul epilogue.
    out = conv_bn(out, blk["c3"]["w"], blk["c3"]["scale"], blk["c3"]["bias"],
                  stride=1, padding=0, relu=True, residual=identity)
    return out


def encoder_cnn_forward(params, images_nchw):
    """images_nchw: (N, 3, H, W) float32 (PyTorch NCHW).  Returns (N, embed_size) f32."""
    x = jnp.transpose(images_nchw, (0, 2, 3, 1)).astype(jnp.bfloat16)   # -> NHWC bf16
    x = conv_bn(x, params["stem"]["w"], params["stem"]["scale"],
                params["stem"]["bias"], stride=2, padding=3, relu=True)
    x = maxpool(x, k=3, stride=2, padding=1)
    for blocks in params["layers"]:
        for blk in blocks:
            x = _bottleneck(x, blk)
    feat = global_avgpool(x)                     # (N, C) f32 == features.view(N, -1)
    ones = jnp.ones((params["embed_w"].shape[1],), jnp.float32)
    return matmul_scale_bias(feat, params["embed_w"], ones, params["embed_b"],
                             relu=False, out_dtype=jnp.float32)


if __name__ == "__main__":
    key = jax.random.PRNGKey(0)
    pkey, xkey = jax.random.split(key)
    params = init_encoder_params(pkey)
    images = jax.random.normal(xkey, (2, 3, 32, 32), jnp.float32)   # NCHW like PyTorch
    fwd = jax.jit(lambda imgs: encoder_cnn_forward(params, imgs))
    feats = jax.block_until_ready(fwd(images))
    assert feats.shape == (2, EMBED_SIZE), feats.shape
    assert bool(jnp.all(jnp.isfinite(feats)))
    print("KERNEL_OK")
</pallas_src>

<mosaic_0001>
module attributes {stable_mosaic.version = 11 : i64} {
  func.func @_mm_kernel(%arg0: i32, %arg1: i32, %arg2: i32, %arg3: memref<512x152xbf16, #tpu.memory_space<vmem>>, %arg4: memref<152x8xbf16, #tpu.memory_space<vmem>>, %arg5: memref<1x8xf32, #tpu.memory_space<vmem>>, %arg6: memref<1x8xf32, #tpu.memory_space<vmem>>, %arg7: memref<512x8xbf16, #tpu.memory_space<vmem>>) attributes {dimension_semantics = [#tpu.dimension_semantics<parallel>, #tpu.dimension_semantics<parallel>, #tpu.dimension_semantics<arbitrary>], iteration_bounds = array<i64: 1, 1, 1>, scalar_prefetch = 0 : i64, scratch_operands = 0 : i64, tpu.core_type = #tpu.core_type<tc>, window_params = [{transform_indices = @transform_0, window_bounds = array<i64: 512, 152>}, {transform_indices = @transform_1, window_bounds = array<i64: 152, 8>}, {transform_indices = @transform_2, window_bounds = array<i64: 1, 8>}, {transform_indices = @transform_3, window_bounds = array<i64: 1, 8>}, {transform_indices = @transform_4, window_bounds = array<i64: 512, 8>}]} {
    %c0 = arith.constant 0 : index
    %c0_0 = arith.constant 0 : index
    %0 = vector.load %arg3[%c0, %c0_0] : memref<512x152xbf16, #tpu.memory_space<vmem>>, vector<512x152xbf16>
    %c0_1 = arith.constant 0 : index
    %c0_2 = arith.constant 0 : index
    %1 = vector.load %arg4[%c0_1, %c0_2] : memref<152x8xbf16, #tpu.memory_space<vmem>>, vector<152x8xbf16>
    %cst = arith.constant dense<0.000000e+00> : vector<512x8xf32>
    %2 = tpu.matmul %0, %1, %cst {dimension_numbers = #tpu.dot_dimension_numbers<[1], [0], [0], [1], [0, 0, 1, 1], [], []>} : vector<512x152xbf16>, vector<152x8xbf16>, vector<512x8xf32> -> vector<512x8xf32>
    %c0_3 = arith.constant 0 : index
    %c0_4 = arith.constant 0 : index
    %3 = vector.load %arg5[%c0_3, %c0_4] : memref<1x8xf32, #tpu.memory_space<vmem>>, vector<1x8xf32>
    %4 = vector.broadcast %3 : vector<1x8xf32> to vector<512x8xf32>
    %5 = arith.mulf %2, %4 : vector<512x8xf32>
    %c0_5 = arith.constant 0 : index
    %c0_6 = arith.constant 0 : index
    %6 = vector.load %arg6[%c0_5, %c0_6] : memref<1x8xf32, #tpu.memory_space<vmem>>, vector<1x8xf32>
    %7 = vector.broadcast %6 : vector<1x8xf32> to vector<512x8xf32>
    %8 = arith.addf %5, %7 : vector<512x8xf32>
    %cst_7 = arith.constant 0.000000e+00 : f32
    %9 = vector.broadcast %cst_7 : f32 to vector<512x8xf32>
    %10 = arith.maximumf %8, %9 : vector<512x8xf32>
    %11 = arith.truncf %10 : vector<512x8xf32> to vector<512x8xbf16>
    %c0_8 = arith.constant 0 : index
    %c0_9 = arith.constant 0 : index
    %12 = vector.load %arg7[%c0_8, %c0_9] : memref<512x8xbf16, #tpu.memory_space<vmem>>, vector<512x8xbf16>
    tpu.vector_store %arg7[%c0_8, %c0_9], %11 {strides = array<i32>} : memref<512x8xbf16, #tpu.memory_space<vmem>>, vector<512x8xbf16>,
    return
  }
  func.func @transform_0(%arg0: i32, %arg1: i32, %arg2: i32) -> (i32, i32) {
    %c0_i32 = arith.constant 0 : i32
    return %arg0, %arg2 : i32, i32
  }
  func.func @transform_1(%arg0: i32, %arg1: i32, %arg2: i32) -> (i32, i32) {
    %c0_i32 = arith.constant 0 : i32
    return %arg2, %arg1 : i32, i32
  }
  func.func @transform_2(%arg0: i32, %arg1: i32, %arg2: i32) -> (i32, i32) {
    %c0_i32 = arith.constant 0 : i32
    %c0_i32_0 = arith.constant 0 : i32
    return %c0_i32, %arg1 : i32, i32
  }
  func.func @transform_3(%arg0: i32, %arg1: i32, %arg2: i32) -> (i32, i32) {
    %c0_i32 = arith.constant 0 : i32
    %c0_i32_0 = arith.constant 0 : i32
    return %c0_i32, %arg1 : i32, i32
  }
  func.func @transform_4(%arg0: i32, %arg1: i32, %arg2: i32) -> (i32, i32) {
    %c0_i32 = arith.constant 0 : i32
    return %arg0, %arg1 : i32, i32
  }
}

module attributes {stable_mosaic.version = 11 : i64} {
  func.func @_maxpool_kernel(%arg0: i32, %arg1: memref<8x9x64xbf16, #tpu.memory_space<vmem>>, %arg2: memref<8x64xbf16, #tpu.memory_space<vmem>>) attributes {dimension_semantics = [#tpu.dimension_semantics<arbitrary>], iteration_bounds = array<i64: 2>, scalar_prefetch = 0 : i64, scratch_operands = 0 : i64, tpu.core_type = #tpu.core_type<tc>, window_params = [{transform_indices = @transform_0, window_bounds = array<i64: 8, 9, 64>}, {transform_indices = @transform_1, window_bounds = array<i64: 8, 64>}]} {
    %c0 = arith.constant 0 : index
    %c0_0 = arith.constant 0 : index
    %c0_1 = arith.constant 0 : index
    %0 = vector.load %arg1[%c0, %c0_0, %c0_1] : memref<8x9x64xbf16, #tpu.memory_space<vmem>>, vector<8x9x64xbf16>
    %1 = arith.extf %0 : vector<8x9x64xbf16> to vector<8x9x64xf32>
    %cst = arith.constant dense<0xFF800000> : vector<8x64xf32>
    %2 = vector.multi_reduction <maximumf>, %1, %cst [1] : vector<8x9x64xf32> to vector<8x64xf32>
    %3 = arith.truncf %2 : vector<8x64xf32> to vector<8x64xbf16>
    %c0_2 = arith.constant 0 : index
    %c0_3 = arith.constant 0 : index
    %4 = vector.load %arg2[%c0_2, %c0_3] : memref<8x64xbf16, #tpu.memory_space<vmem>>, vector<8x64xbf16>
    tpu.vector_store %arg2[%c0_2, %c0_3], %3 {strides = array<i32>} : memref<8x64xbf16, #tpu.memory_space<vmem>>, vector<8x64xbf16>,
    return
  }
  func.func @transform_0(%arg0: i32) -> (i32, i32, i32) {
    %c0_i32 = arith.constant 0 : i32
    %c0_i32_0 = arith.constant 0 : i32
    %c0_i32_1 = arith.constant 0 : i32
    return %arg0, %c0_i32, %c0_i32_0 : i32, i32, i32
  }
  func.func @transform_1(%arg0: i32) -> (i32, i32) {
    %c0_i32 = arith.constant 0 : i32
    %c0_i32_0 = arith.constant 0 : i32
    return %arg0, %c0_i32 : i32, i32
  }
}

module attributes {stable_mosaic.version = 11 : i64} {
  func.func @_mm_kernel(%arg0: i32, %arg1: i32, %arg2: i32, %arg3: memref<128x8xbf16, #tpu.memory_space<vmem>>, %arg4: memref<8x8xbf16, #tpu.memory_space<vmem>>, %arg5: memref<1x8xf32, #tpu.memory_space<vmem>>, %arg6: memref<1x8xf32, #tpu.memory_space<vmem>>, %arg7: memref<128x8xbf16, #tpu.memory_space<vmem>>) attributes {dimension_semantics = [#tpu.dimension_semantics<parallel>, #tpu.dimension_semantics<parallel>, #tpu.dimension_semantics<arbitrary>], iteration_bounds = array<i64: 1, 1, 1>, scalar_prefetch = 0 : i64, scratch_operands = 0 : i64, tpu.core_type = #tpu.core_type<tc>, window_params = [{transform_indices = @transform_0, window_bounds = array<i64: 128, 8>}, {transform_indices = @transform_1, window_bounds = array<i64: 8, 8>}, {transform_indices = @transform_2, window_bounds = array<i64: 1, 8>}, {transform_indices = @transform_3, window_bounds = array<i64: 1, 8>}, {transform_indices = @transform_4, window_bounds = array<i64: 128, 8>}]} {
    %c0 = arith.constant 0 : index
    %c0_0 = arith.constant 0 : index
    %0 = vector.load %arg3[%c0, %c0_0] : memref<128x8xbf16, #tpu.memory_space<vmem>>, vector<128x8xbf16>
    %c0_1 = arith.constant 0 : index
    %c0_2 = arith.constant 0 : index
    %1 = vector.load %arg4[%c0_1, %c0_2] : memref<8x8xbf16, #tpu.memory_space<vmem>>, vector<8x8xbf16>
    %cst = arith.constant dense<0.000000e+00> : vector<128x8xf32>
    %2 = tpu.matmul %0, %1, %cst {dimension_numbers = #tpu.dot_dimension_numbers<[1], [0], [0], [1], [0, 0, 1, 1], [], []>} : vector<128x8xbf16>, vector<8x8xbf16>, vector<128x8xf32> -> vector<128x8xf32>
    %c0_3 = arith.constant 0 : index
    %c0_4 = arith.constant 0 : index
    %3 = vector.load %arg5[%c0_3, %c0_4] : memref<1x8xf32, #tpu.memory_space<vmem>>, vector<1x8xf32>
    %4 = vector.broadcast %3 : vector<1x8xf32> to vector<128x8xf32>
    %5 = arith.mulf %2, %4 : vector<128x8xf32>
    %c0_5 = arith.constant 0 : index
    %c0_6 = arith.constant 0 : index
    %6 = vector.load %arg6[%c0_5, %c0_6] : memref<1x8xf32, #tpu.memory_space<vmem>>, vector<1x8xf32>
    %7 = vector.broadcast %6 : vector<1x8xf32> to vector<128x8xf32>
    %8 = arith.addf %5, %7 : vector<128x8xf32>
    %cst_7 = arith.constant 0.000000e+00 : f32
    %9 = vector.broadcast %cst_7 : f32 to vector<128x8xf32>
    %10 = arith.maximumf %8, %9 : vector<128x8xf32>
    %11 = arith.truncf %10 : vector<128x8xf32> to vector<128x8xbf16>
    %c0_8 = arith.constant 0 : index
    %c0_9 = arith.constant 0 : index
    %12 = vector.load %arg7[%c0_8, %c0_9] : memref<128x8xbf16, #tpu.memory_space<vmem>>, vector<128x8xbf16>
    tpu.vector_store %arg7[%c0_8, %c0_9], %11 {strides = array<i32>} : memref<128x8xbf16, #tpu.memory_space<vmem>>, vector<128x8xbf16>,
    return
  }
  func.func @transform_0(%arg0: i32, %arg1: i32, %arg2: i32) -> (i32, i32) {
    %c0_i32 = arith.constant 0 : i32
    return %arg0, %arg2 : i32, i32
  }
  func.func @transform_1(%arg0: i32, %arg1: i32, %arg2: i32) -> (i32, i32) {
    %c0_i32 = arith.constant 0 : i32
    return %arg2, %arg1 : i32, i32
  }
  func.func @transform_2(%arg0: i32, %arg1: i32, %arg2: i32) -> (i32, i32) {
    %c0_i32 = arith.constant 0 : i32
    %c0_i32_0 = arith.constant 0 : i32
    return %c0_i32, %arg1 : i32, i32
  }
  func.func @transform_3(%arg0: i32, %arg1: i32, %arg2: i32) -> (i32, i32) {
    %c0_i32 = arith.constant 0 : i32
    %c0_i32_0 = arith.constant 0 : i32
    return %c0_i32, %arg1 : i32, i32
  }
  func.func @transform_4(%arg0: i32, %arg1: i32, %arg2: i32) -> (i32, i32) {
    %c0_i32 = arith.constant 0 : i32
    return %arg0, %arg1 : i32, i32
  }
}

module attributes {stable_mosaic.version = 11 : i64} {
  func.func @_mm_kernel(%arg0: i32, %arg1: i32, %arg2: i32, %arg3: memref<128x72xbf16, #tpu.memory_space<vmem>>, %arg4: memref<72x8xbf16, #tpu.memory_space<vmem>>, %arg5: memref<1x8xf32, #tpu.memory_space<vmem>>, %arg6: memref<1x8xf32, #tpu.memory_space<vmem>>, %arg7: memref<128x8xbf16, #tpu.memory_space<vmem>>) attributes {dimension_semantics = [#tpu.dimension_semantics<parallel>, #tpu.dimension_semantics<parallel>, #tpu.dimension_semantics<arbitrary>], iteration_bounds = array<i64: 1, 1, 1>, scalar_prefetch = 0 : i64, scratch_operands = 0 : i64, tpu.core_type = #tpu.core_type<tc>, window_params = [{transform_indices = @transform_0, window_bounds = array<i64: 128, 72>}, {transform_indices = @transform_1, window_bounds = array<i64: 72, 8>}, {transform_indices = @transform_2, window_bounds = array<i64: 1, 8>}, {transform_indices = @transform_3, window_bounds = array<i64: 1, 8>}, {transform_indices = @transform_4, window_bounds = array<i64: 128, 8>}]} {
    %c0 = arith.constant 0 : index
    %c0_0 = arith.constant 0 : index
    %0 = vector.load %arg3[%c0, %c0_0] : memref<128x72xbf16, #tpu.memory_space<vmem>>, vector<128x72xbf16>
    %c0_1 = arith.constant 0 : index
    %c0_2 = arith.constant 0 : index
    %1 = vector.load %arg4[%c0_1, %c0_2] : memref<72x8xbf16, #tpu.memory_space<vmem>>, vector<72x8xbf16>
    %cst = arith.constant dense<0.000000e+00> : vector<128x8xf32>
    %2 = tpu.matmul %0, %1, %cst {dimension_numbers = #tpu.dot_dimension_numbers<[1], [0], [0], [1], [0, 0, 1, 1], [], []>} : vector<128x72xbf16>, vector<72x8xbf16>, vector<128x8xf32> -> vector<128x8xf32>
    %c0_3 = arith.constant 0 : index
    %c0_4 = arith.constant 0 : index
    %3 = vector.load %arg5[%c0_3, %c0_4] : memref<1x8xf32, #tpu.memory_space<vmem>>, vector<1x8xf32>
    %4 = vector.broadcast %3 : vector<1x8xf32> to vector<128x8xf32>
    %5 = arith.mulf %2, %4 : vector<128x8xf32>
    %c0_5 = arith.constant 0 : index
    %c0_6 = arith.constant 0 : index
    %6 = vector.load %arg6[%c0_5, %c0_6] : memref<1x8xf32, #tpu.memory_space<vmem>>, vector<1x8xf32>
    %7 = vector.broadcast %6 : vector<1x8xf32> to vector<128x8xf32>
    %8 = arith.addf %5, %7 : vector<128x8xf32>
    %cst_7 = arith.constant 0.000000e+00 : f32
    %9 = vector.broadcast %cst_7 : f32 to vector<128x8xf32>
    %10 = arith.maximumf %8, %9 : vector<128x8xf32>
    %11 = arith.truncf %10 : vector<128x8xf32> to vector<128x8xbf16>
    %c0_8 = arith.constant 0 : index
    %c0_9 = arith.constant 0 : index
    %12 = vector.load %arg7[%c0_8, %c0_9] : memref<128x8xbf16, #tpu.memory_space<vmem>>, vector<128x8xbf16>
    tpu.vector_store %arg7[%c0_8, %c0_9], %11 {strides = array<i32>} : memref<128x8xbf16, #tpu.memory_space<vmem>>, vector<128x8xbf16>,
    return
  }
  func.func @transform_0(%arg0: i32, %arg1: i32, %arg2: i32) -> (i32, i32) {
    %c0_i32 = arith.constant 0 : i32
    return %arg0, %arg2 : i32, i32
  }
  func.func @transform_1(%arg0: i32, %arg1: i32, %arg2: i32) -> (i32, i32) {
    %c0_i32 = arith.constant 0 : i32
    return %arg2, %arg1 : i32, i32
  }
  func.func @transform_2(%arg0: i32, %arg1: i32, %arg2: i32) -> (i32, i32) {
    %c0_i32 = arith.constant 0 : i32
    %c0_i32_0 = arith.constant 0 : i32
    return %c0_i32, %arg1 : i32, i32
  }
  func.func @transform_3(%arg0: i32, %arg1: i32, %arg2: i32) -> (i32, i32) {
    %c0_i32 = arith.constant 0 : i32
    %c0_i32_0 = arith.constant 0 : i32
    return %c0_i32, %arg1 : i32, i32
  }
  func.func @transform_4(%arg0: i32, %arg1: i32, %arg2: i32) -> (i32, i32) {
    %c0_i32 = arith.constant 0 : i32
    return %arg0, %arg1 : i32, i32
  }
}

module attributes {stable_mosaic.version = 11 : i64} {
  func.func @_mm_kernel(%arg0: i32, %arg1: i32, %arg2: i32, %arg3: memref<128x8xbf16, #tpu.memory_space<vmem>>, %arg4: memref<8x32xbf16, #tpu.memory_space<vmem>>, %arg5: memref<1x32xf32, #tpu.memory_space<vmem>>, %arg6: memref<1x32xf32, #tpu.memory_space<vmem>>, %arg7: memref<128x32xbf16, #tpu.memory_space<vmem>>) attributes {dimension_semantics = [#tpu.dimension_semantics<parallel>, #tpu.dimension_semantics<parallel>, #tpu.dimension_semantics<arbitrary>], iteration_bounds = array<i64: 1, 1, 1>, scalar_prefetch = 0 : i64, scratch_operands = 0 : i64, tpu.core_type = #tpu.core_type<tc>, window_params = [{transform_indices = @transform_0, window_bounds = array<i64: 128, 8>}, {transform_indices = @transform_1, window_bounds = array<i64: 8, 32>}, {transform_indices = @transform_2, window_bounds = array<i64: 1, 32>}, {transform_indices = @transform_3, window_bounds = array<i64: 1, 32>}, {transform_indices = @transform_4, window_bounds = array<i64: 128, 32>}]} {
    %c0 = arith.constant 0 : index
    %c0_0 = arith.constant 0 : index
    %0 = vector.load %arg3[%c0, %c0_0] : memref<128x8xbf16, #tpu.memory_space<vmem>>, vector<128x8xbf16>
    %c0_1 = arith.constant 0 : index
    %c0_2 = arith.constant 0 : index
    %1 = vector.load %arg4[%c0_1, %c0_2] : memref<8x32xbf16, #tpu.memory_space<vmem>>, vector<8x32xbf16>
    %cst = arith.constant dense<0.000000e+00> : vector<128x32xf32>
    %2 = tpu.matmul %0, %1, %cst {dimension_numbers = #tpu.dot_dimension_numbers<[1], [0], [0], [1], [0, 0, 1, 1], [], []>} : vector<128x8xbf16>, vector<8x32xbf16>, vector<128x32xf32> -> vector<128x32xf32>
    %c0_3 = arith.constant 0 : index
    %c0_4 = arith.constant 0 : index
    %3 = vector.load %arg5[%c0_3, %c0_4] : memref<1x32xf32, #tpu.memory_space<vmem>>, vector<1x32xf32>
    %4 = vector.broadcast %3 : vector<1x32xf32> to vector<128x32xf32>
    %5 = arith.mulf %2, %4 : vector<128x32xf32>
    %c0_5 = arith.constant 0 : index
    %c0_6 = arith.constant 0 : index
    %6 = vector.load %arg6[%c0_5, %c0_6] : memref<1x32xf32, #tpu.memory_space<vmem>>, vector<1x32xf32>
    %7 = vector.broadcast %6 : vector<1x32xf32> to vector<128x32xf32>
    %8 = arith.addf %5, %7 : vector<128x32xf32>
    %9 = arith.truncf %8 : vector<128x32xf32> to vector<128x32xbf16>
    %c0_7 = arith.constant 0 : index
    %c0_8 = arith.constant 0 : index
    %10 = vector.load %arg7[%c0_7, %c0_8] : memref<128x32xbf16, #tpu.memory_space<vmem>>, vector<128x32xbf16>
    tpu.vector_store %arg7[%c0_7, %c0_8], %9 {strides = array<i32>} : memref<128x32xbf16, #tpu.memory_space<vmem>>, vector<128x32xbf16>,
    return
  }
  func.func @transform_0(%arg0: i32, %arg1: i32, %arg2: i32) -> (i32, i32) {
    %c0_i32 = arith.constant 0 : i32
    return %arg0, %arg2 : i32, i32
  }
  func.func @transform_1(%arg0: i32, %arg1: i32, %arg2: i32) -> (i32, i32) {
    %c0_i32 = arith.constant 0 : i32
    return %arg2, %arg1 : i32, i32
  }
  func.func @transform_2(%arg0: i32, %arg1: i32, %arg2: i32) -> (i32, i32) {
    %c0_i32 = arith.constant 0 : i32
    %c0_i32_0 = arith.constant 0 : i32
    return %c0_i32, %arg1 : i32, i32
  }
  func.func @transform_3(%arg0: i32, %arg1: i32, %arg2: i32) -> (i32, i32) {
    %c0_i32 = arith.constant 0 : i32
    %c0_i32_0 = arith.constant 0 : i32
    return %c0_i32, %arg1 : i32, i32
  }
  func.func @transform_4(%arg0: i32, %arg1: i32, %arg2: i32) -> (i32, i32) {
    %c0_i32 = arith.constant 0 : i32
    return %arg0, %arg1 : i32, i32
  }
}

module attributes {stable_mosaic.version = 11 : i64} {
  func.func @_mm_kernel(%arg0: i32, %arg1: i32, %arg2: i32, %arg3: memref<128x32xbf16, #tpu.memory_space<vmem>>, %arg4: memref<32x8xbf16, #tpu.memory_space<vmem>>, %arg5: memref<1x8xf32, #tpu.memory_space<vmem>>, %arg6: memref<1x8xf32, #tpu.memory_space<vmem>>, %arg7: memref<128x8xbf16, #tpu.memory_space<vmem>>) attributes {dimension_semantics = [#tpu.dimension_semantics<parallel>, #tpu.dimension_semantics<parallel>, #tpu.dimension_semantics<arbitrary>], iteration_bounds = array<i64: 1, 1, 1>, scalar_prefetch = 0 : i64, scratch_operands = 0 : i64, tpu.core_type = #tpu.core_type<tc>, window_params = [{transform_indices = @transform_0, window_bounds = array<i64: 128, 32>}, {transform_indices = @transform_1, window_bounds = array<i64: 32, 8>}, {transform_indices = @transform_2, window_bounds = array<i64: 1, 8>}, {transform_indices = @transform_3, window_bounds = array<i64: 1, 8>}, {transform_indices = @transform_4, window_bounds = array<i64: 128, 8>}]} {
    %c0 = arith.constant 0 : index
    %c0_0 = arith.constant 0 : index
    %0 = vector.load %arg3[%c0, %c0_0] : memref<128x32xbf16, #tpu.memory_space<vmem>>, vector<128x32xbf16>
    %c0_1 = arith.constant 0 : index
    %c0_2 = arith.constant 0 : index
    %1 = vector.load %arg4[%c0_1, %c0_2] : memref<32x8xbf16, #tpu.memory_space<vmem>>, vector<32x8xbf16>
    %cst = arith.constant dense<0.000000e+00> : vector<128x8xf32>
    %2 = tpu.matmul %0, %1, %cst {dimension_numbers = #tpu.dot_dimension_numbers<[1], [0], [0], [1], [0, 0, 1, 1], [], []>} : vector<128x32xbf16>, vector<32x8xbf16>, vector<128x8xf32> -> vector<128x8xf32>
    %c0_3 = arith.constant 0 : index
    %c0_4 = arith.constant 0 : index
    %3 = vector.load %arg5[%c0_3, %c0_4] : memref<1x8xf32, #tpu.memory_space<vmem>>, vector<1x8xf32>
    %4 = vector.broadcast %3 : vector<1x8xf32> to vector<128x8xf32>
    %5 = arith.mulf %2, %4 : vector<128x8xf32>
    %c0_5 = arith.constant 0 : index
    %c0_6 = arith.constant 0 : index
    %6 = vector.load %arg6[%c0_5, %c0_6] : memref<1x8xf32, #tpu.memory_space<vmem>>, vector<1x8xf32>
    %7 = vector.broadcast %6 : vector<1x8xf32> to vector<128x8xf32>
    %8 = arith.addf %5, %7 : vector<128x8xf32>
    %cst_7 = arith.constant 0.000000e+00 : f32
    %9 = vector.broadcast %cst_7 : f32 to vector<128x8xf32>
    %10 = arith.maximumf %8, %9 : vector<128x8xf32>
    %11 = arith.truncf %10 : vector<128x8xf32> to vector<128x8xbf16>
    %c0_8 = arith.constant 0 : index
    %c0_9 = arith.constant 0 : index
    %12 = vector.load %arg7[%c0_8, %c0_9] : memref<128x8xbf16, #tpu.memory_space<vmem>>, vector<128x8xbf16>
    tpu.vector_store %arg7[%c0_8, %c0_9], %11 {strides = array<i32>} : memref<128x8xbf16, #tpu.memory_space<vmem>>, vector<128x8xbf16>,
    return
  }
  func.func @transform_0(%arg0: i32, %arg1: i32, %arg2: i32) -> (i32, i32) {
    %c0_i32 = arith.constant 0 : i32
    return %arg0, %arg2 : i32, i32
  }
  func.func @transform_1(%arg0: i32, %arg1: i32, %arg2: i32) -> (i32, i32) {
    %c0_i32 = arith.constant 0 : i32
    return %arg2, %arg1 : i32, i32
  }
  func.func @transform_2(%arg0: i32, %arg1: i32, %arg2: i32) -> (i32, i32) {
    %c0_i32 = arith.constant 0 : i32
    %c0_i32_0 = arith.constant 0 : i32
    return %c0_i32, %arg1 : i32, i32
  }
  func.func @transform_3(%arg0: i32, %arg1: i32, %arg2: i32) -> (i32, i32) {
    %c0_i32 = arith.constant 0 : i32
    %c0_i32_0 = arith.constant 0 : i32
    return %c0_i32, %arg1 : i32, i32
  }
  func.func @transform_4(%arg0: i32, %arg1: i32, %arg2: i32) -> (i32, i32) {
    %c0_i32 = arith.constant 0 : i32
    return %arg0, %arg1 : i32, i32
  }
}

module attributes {stable_mosaic.version = 11 : i64} {
  func.func @_mm_kernel(%arg0: i32, %arg1: i32, %arg2: i32, %arg3: memref<128x8xbf16, #tpu.memory_space<vmem>>, %arg4: memref<8x32xbf16, #tpu.memory_space<vmem>>, %arg5: memref<1x32xf32, #tpu.memory_space<vmem>>, %arg6: memref<1x32xf32, #tpu.memory_space<vmem>>, %arg7: memref<128x32xbf16, #tpu.memory_space<vmem>>, %arg8: memref<128x32xbf16, #tpu.memory_space<vmem>>) attributes {dimension_semantics = [#tpu.dimension_semantics<parallel>, #tpu.dimension_semantics<parallel>, #tpu.dimension_semantics<arbitrary>], iteration_bounds = array<i64: 1, 1, 1>, scalar_prefetch = 0 : i64, scratch_operands = 0 : i64, tpu.core_type = #tpu.core_type<tc>, window_params = [{transform_indices = @transform_0, window_bounds = array<i64: 128, 8>}, {transform_indices = @transform_1, window_bounds = array<i64: 8, 32>}, {transform_indices = @transform_2, window_bounds = array<i64: 1, 32>}, {transform_indices = @transform_3, window_bounds = array<i64: 1, 32>}, {transform_indices = @transform_4, window_bounds = array<i64: 128, 32>}, {transform_indices = @transform_5, window_bounds = array<i64: 128, 32>}]} {
    %c0 = arith.constant 0 : index
    %c0_0 = arith.constant 0 : index
    %0 = vector.load %arg3[%c0, %c0_0] : memref<128x8xbf16, #tpu.memory_space<vmem>>, vector<128x8xbf16>
    %c0_1 = arith.constant 0 : index
    %c0_2 = arith.constant 0 : index
    %1 = vector.load %arg4[%c0_1, %c0_2] : memref<8x32xbf16, #tpu.memory_space<vmem>>, vector<8x32xbf16>
    %cst = arith.constant dense<0.000000e+00> : vector<128x32xf32>
    %2 = tpu.matmul %0, %1, %cst {dimension_numbers = #tpu.dot_dimension_numbers<[1], [0], [0], [1], [0, 0, 1, 1], [], []>} : vector<128x8xbf16>, vector<8x32xbf16>, vector<128x32xf32> -> vector<128x32xf32>
    %c0_3 = arith.constant 0 : index
    %c0_4 = arith.constant 0 : index
    %3 = vector.load %arg5[%c0_3, %c0_4] : memref<1x32xf32, #tpu.memory_space<vmem>>, vector<1x32xf32>
    %4 = vector.broadcast %3 : vector<1x32xf32> to vector<128x32xf32>
    %5 = arith.mulf %2, %4 : vector<128x32xf32>
    %c0_5 = arith.constant 0 : index
    %c0_6 = arith.constant 0 : index
    %6 = vector.load %arg6[%c0_5, %c0_6] : memref<1x32xf32, #tpu.memory_space<vmem>>, vector<1x32xf32>
    %7 = vector.broadcast %6 : vector<1x32xf32> to vector<128x32xf32>
    %8 = arith.addf %5, %7 : vector<128x32xf32>
    %c0_7 = arith.constant 0 : index
    %c0_8 = arith.constant 0 : index
    %9 = vector.load %arg7[%c0_7, %c0_8] : memref<128x32xbf16, #tpu.memory_space<vmem>>, vector<128x32xbf16>
    %10 = arith.extf %9 : vector<128x32xbf16> to vector<128x32xf32>
    %11 = arith.addf %8, %10 : vector<128x32xf32>
    %cst_9 = arith.constant 0.000000e+00 : f32
    %12 = vector.broadcast %cst_9 : f32 to vector<128x32xf32>
    %13 = arith.maximumf %11, %12 : vector<128x32xf32>
    %14 = arith.truncf %13 : vector<128x32xf32> to vector<128x32xbf16>
    %c0_10 = arith.constant 0 : index
    %c0_11 = arith.constant 0 : index
    %15 = vector.load %arg8[%c0_10, %c0_11] : memref<128x32xbf16, #tpu.memory_space<vmem>>, vector<128x32xbf16>
    tpu.vector_store %arg8[%c0_10, %c0_11], %14 {strides = array<i32>} : memref<128x32xbf16, #tpu.memory_space<vmem>>, vector<128x32xbf16>,
    return
  }
  func.func @transform_0(%arg0: i32, %arg1: i32, %arg2: i32) -> (i32, i32) {
    %c0_i32 = arith.constant 0 : i32
    return %arg0, %arg2 : i32, i32
  }
  func.func @transform_1(%arg0: i32, %arg1: i32, %arg2: i32) -> (i32, i32) {
    %c0_i32 = arith.constant 0 : i32
    return %arg2, %arg1 : i32, i32
  }
  func.func @transform_2(%arg0: i32, %arg1: i32, %arg2: i32) -> (i32, i32) {
    %c0_i32 = arith.constant 0 : i32
    %c0_i32_0 = arith.constant 0 : i32
    return %c0_i32, %arg1 : i32, i32
  }
  func.func @transform_3(%arg0: i32, %arg1: i32, %arg2: i32) -> (i32, i32) {
    %c0_i32 = arith.constant 0 : i32
    %c0_i32_0 = arith.constant 0 : i32
    return %c0_i32, %arg1 : i32, i32
  }
  func.func @transform_4(%arg0: i32, %arg1: i32, %arg2: i32) -> (i32, i32) {
    %c0_i32 = arith.constant 0 : i32
    return %arg0, %arg1 : i32, i32
  }
  func.func @transform_5(%arg0: i32, %arg1: i32, %arg2: i32) -> (i32, i32) {
    %c0_i32 = arith.constant 0 : i32
    return %arg0, %arg1 : i32, i32
  }
}

module attributes {stable_mosaic.version = 11 : i64} {
  func.func @_mm_kernel(%arg0: i32, %arg1: i32, %arg2: i32, %arg3: memref<128x32xbf16, #tpu.memory_space<vmem>>, %arg4: memref<32x16xbf16, #tpu.memory_space<vmem>>, %arg5: memref<1x16xf32, #tpu.memory_space<vmem>>, %arg6: memref<1x16xf32, #tpu.memory_space<vmem>>, %arg7: memref<128x16xbf16, #tpu.memory_space<vmem>>) attributes {dimension_semantics = [#tpu.dimension_semantics<parallel>, #tpu.dimension_semantics<parallel>, #tpu.dimension_semantics<arbitrary>], iteration_bounds = array<i64: 1, 1, 1>, scalar_prefetch = 0 : i64, scratch_operands = 0 : i64, tpu.core_type = #tpu.core_type<tc>, window_params = [{transform_indices = @transform_0, window_bounds = array<i64: 128, 32>}, {transform_indices = @transform_1, window_bounds = array<i64: 32, 16>}, {transform_indices = @transform_2, window_bounds = array<i64: 1, 16>}, {transform_indices = @transform_3, window_bounds = array<i64: 1, 16>}, {transform_indices = @transform_4, window_bounds = array<i64: 128, 16>}]} {
    %c0 = arith.constant 0 : index
    %c0_0 = arith.constant 0 : index
    %0 = vector.load %arg3[%c0, %c0_0] : memref<128x32xbf16, #tpu.memory_space<vmem>>, vector<128x32xbf16>
    %c0_1 = arith.constant 0 : index
    %c0_2 = arith.constant 0 : index
    %1 = vector.load %arg4[%c0_1, %c0_2] : memref<32x16xbf16, #tpu.memory_space<vmem>>, vector<32x16xbf16>
    %cst = arith.constant dense<0.000000e+00> : vector<128x16xf32>
    %2 = tpu.matmul %0, %1, %cst {dimension_numbers = #tpu.dot_dimension_numbers<[1], [0], [0], [1], [0, 0, 1, 1], [], []>} : vector<128x32xbf16>, vector<32x16xbf16>, vector<128x16xf32> -> vector<128x16xf32>
    %c0_3 = arith.constant 0 : index
    %c0_4 = arith.constant 0 : index
    %3 = vector.load %arg5[%c0_3, %c0_4] : memref<1x16xf32, #tpu.memory_space<vmem>>, vector<1x16xf32>
    %4 = vector.broadcast %3 : vector<1x16xf32> to vector<128x16xf32>
    %5 = arith.mulf %2, %4 : vector<128x16xf32>
    %c0_5 = arith.constant 0 : index
    %c0_6 = arith.constant 0 : index
    %6 = vector.load %arg6[%c0_5, %c0_6] : memref<1x16xf32, #tpu.memory_space<vmem>>, vector<1x16xf32>
    %7 = vector.broadcast %6 : vector<1x16xf32> to vector<128x16xf32>
    %8 = arith.addf %5, %7 : vector<128x16xf32>
    %cst_7 = arith.constant 0.000000e+00 : f32
    %9 = vector.broadcast %cst_7 : f32 to vector<128x16xf32>
    %10 = arith.maximumf %8, %9 : vector<128x16xf32>
    %11 = arith.truncf %10 : vector<128x16xf32> to vector<128x16xbf16>
    %c0_8 = arith.constant 0 : index
    %c0_9 = arith.constant 0 : index
    %12 = vector.load %arg7[%c0_8, %c0_9] : memref<128x16xbf16, #tpu.memory_space<vmem>>, vector<128x16xbf16>
    tpu.vector_store %arg7[%c0_8, %c0_9], %11 {strides = array<i32>} : memref<128x16xbf16, #tpu.memory_space<vmem>>, vector<128x16xbf16>,
    return
  }
  func.func @transform_0(%arg0: i32, %arg1: i32, %arg2: i32) -> (i32, i32) {
    %c0_i32 = arith.constant 0 : i32
    return %arg0, %arg2 : i32, i32
  }
  func.func @transform_1(%arg0: i32, %arg1: i32, %arg2: i32) -> (i32, i32) {
    %c0_i32 = arith.constant 0 : i32
    return %arg2, %arg1 : i32, i32
  }
  func.func @transform_2(%arg0: i32, %arg1: i32, %arg2: i32) -> (i32, i32) {
    %c0_i32 = arith.constant 0 : i32
    %c0_i32_0 = arith.constant 0 : i32
    return %c0_i32, %arg1 : i32, i32
  }
  func.func @transform_3(%arg0: i32, %arg1: i32, %arg2: i32) -> (i32, i32) {
    %c0_i32 = arith.constant 0 : i32
    %c0_i32_0 = arith.constant 0 : i32
    return %c0_i32, %arg1 : i32, i32
  }
  func.func @transform_4(%arg0: i32, %arg1: i32, %arg2: i32) -> (i32, i32) {
    %c0_i32 = arith.constant 0 : i32
    return %arg0, %arg1 : i32, i32
  }
}

module attributes {stable_mosaic.version = 11 : i64} {
  func.func @_mm_kernel(%arg0: i32, %arg1: i32, %arg2: i32, %arg3: memref<32x144xbf16, #tpu.memory_space<vmem>>, %arg4: memref<144x16xbf16, #tpu.memory_space<vmem>>, %arg5: memref<1x16xf32, #tpu.memory_space<vmem>>, %arg6: memref<1x16xf32, #tpu.memory_space<vmem>>, %arg7: memref<32x16xbf16, #tpu.memory_space<vmem>>) attributes {dimension_semantics = [#tpu.dimension_semantics<parallel>, #tpu.dimension_semantics<parallel>, #tpu.dimension_semantics<arbitrary>], iteration_bounds = array<i64: 1, 1, 1>, scalar_prefetch = 0 : i64, scratch_operands = 0 : i64, tpu.core_type = #tpu.core_type<tc>, window_params = [{transform_indices = @transform_0, window_bounds = array<i64: 32, 144>}, {transform_indices = @transform_1, window_bounds = array<i64: 144, 16>}, {transform_indices = @transform_2, window_bounds = array<i64: 1, 16>}, {transform_indices = @transform_3, window_bounds = array<i64: 1, 16>}, {transform_indices = @transform_4, window_bounds = array<i64: 32, 16>}]} {
    %c0 = arith.constant 0 : index
    %c0_0 = arith.constant 0 : index
    %0 = vector.load %arg3[%c0, %c0_0] : memref<32x144xbf16, #tpu.memory_space<vmem>>, vector<32x144xbf16>
    %c0_1 = arith.constant 0 : index
    %c0_2 = arith.constant 0 : index
    %1 = vector.load %arg4[%c0_1, %c0_2] : memref<144x16xbf16, #tpu.memory_space<vmem>>, vector<144x16xbf16>
    %cst = arith.constant dense<0.000000e+00> : vector<32x16xf32>
    %2 = tpu.matmul %0, %1, %cst {dimension_numbers = #tpu.dot_dimension_numbers<[1], [0], [0], [1], [0, 0, 1, 1], [], []>} : vector<32x144xbf16>, vector<144x16xbf16>, vector<32x16xf32> -> vector<32x16xf32>
    %c0_3 = arith.constant 0 : index
    %c0_4 = arith.constant 0 : index
    %3 = vector.load %arg5[%c0_3, %c0_4] : memref<1x16xf32, #tpu.memory_space<vmem>>, vector<1x16xf32>
    %4 = vector.broadcast %3 : vector<1x16xf32> to vector<32x16xf32>
    %5 = arith.mulf %2, %4 : vector<32x16xf32>
    %c0_5 = arith.constant 0 : index
    %c0_6 = arith.constant 0 : index
    %6 = vector.load %arg6[%c0_5, %c0_6] : memref<1x16xf32, #tpu.memory_space<vmem>>, vector<1x16xf32>
    %7 = vector.broadcast %6 : vector<1x16xf32> to vector<32x16xf32>
    %8 = arith.addf %5, %7 : vector<32x16xf32>
    %cst_7 = arith.constant 0.000000e+00 : f32
    %9 = vector.broadcast %cst_7 : f32 to vector<32x16xf32>
    %10 = arith.maximumf %8, %9 : vector<32x16xf32>
    %11 = arith.truncf %10 : vector<32x16xf32> to vector<32x16xbf16>
    %c0_8 = arith.constant 0 : index
    %c0_9 = arith.constant 0 : index
    %12 = vector.load %arg7[%c0_8, %c0_9] : memref<32x16xbf16, #tpu.memory_space<vmem>>, vector<32x16xbf16>
    tpu.vector_store %arg7[%c0_8, %c0_9], %11 {strides = array<i32>} : memref<32x16xbf16, #tpu.memory_space<vmem>>, vector<32x16xbf16>,
    return
  }
  func.func @transform_0(%arg0: i32, %arg1: i32, %arg2: i32) -> (i32, i32) {
    %c0_i32 = arith.constant 0 : i32
    return %arg0, %arg2 : i32, i32
  }
  func.func @transform_1(%arg0: i32, %arg1: i32, %arg2: i32) -> (i32, i32) {
    %c0_i32 = arith.constant 0 : i32
    return %arg2, %arg1 : i32, i32
  }
  func.func @transform_2(%arg0: i32, %arg1: i32, %arg2: i32) -> (i32, i32) {
    %c0_i32 = arith.constant 0 : i32
    %c0_i32_0 = arith.constant 0 : i32
    return %c0_i32, %arg1 : i32, i32
  }
  func.func @transform_3(%arg0: i32, %arg1: i32, %arg2: i32) -> (i32, i32) {
    %c0_i32 = arith.constant 0 : i32
    %c0_i32_0 = arith.constant 0 : i32
    return %c0_i32, %arg1 : i32, i32
  }
  func.func @transform_4(%arg0: i32, %arg1: i32, %arg2: i32) -> (i32, i32) {
    %c0_i32 = arith.constant 0 : i32
    return %arg0, %arg1 : i32, i32
  }
}

module attributes {stable_mosaic.version = 11 : i64} {
  func.func @_mm_kernel(%arg0: i32, %arg1: i32, %arg2: i32, %arg3: memref<32x16xbf16, #tpu.memory_space<vmem>>, %arg4: memref<16x64xbf16, #tpu.memory_space<vmem>>, %arg5: memref<1x64xf32, #tpu.memory_space<vmem>>, %arg6: memref<1x64xf32, #tpu.memory_space<vmem>>, %arg7: memref<32x64xbf16, #tpu.memory_space<vmem>>, %arg8: memref<32x64xbf16, #tpu.memory_space<vmem>>) attributes {dimension_semantics = [#tpu.dimension_semantics<parallel>, #tpu.dimension_semantics<parallel>, #tpu.dimension_semantics<arbitrary>], iteration_bounds = array<i64: 1, 1, 1>, scalar_prefetch = 0 : i64, scratch_operands = 0 : i64, tpu.core_type = #tpu.core_type<tc>, window_params = [{transform_indices = @transform_0, window_bounds = array<i64: 32, 16>}, {transform_indices = @transform_1, window_bounds = array<i64: 16, 64>}, {transform_indices = @transform_2, window_bounds = array<i64: 1, 64>}, {transform_indices = @transform_3, window_bounds = array<i64: 1, 64>}, {transform_indices = @transform_4, window_bounds = array<i64: 32, 64>}, {transform_indices = @transform_5, window_bounds = array<i64: 32, 64>}]} {
    %c0 = arith.constant 0 : index
    %c0_0 = arith.constant 0 : index
    %0 = vector.load %arg3[%c0, %c0_0] : memref<32x16xbf16, #tpu.memory_space<vmem>>, vector<32x16xbf16>
    %c0_1 = arith.constant 0 : index
    %c0_2 = arith.constant 0 : index
    %1 = vector.load %arg4[%c0_1, %c0_2] : memref<16x64xbf16, #tpu.memory_space<vmem>>, vector<16x64xbf16>
    %cst = arith.constant dense<0.000000e+00> : vector<32x64xf32>
    %2 = tpu.matmul %0, %1, %cst {dimension_numbers = #tpu.dot_dimension_numbers<[1], [0], [0], [1], [0, 0, 1, 1], [], []>} : vector<32x16xbf16>, vector<16x64xbf16>, vector<32x64xf32> -> vector<32x64xf32>
    %c0_3 = arith.constant 0 : index
    %c0_4 = arith.constant 0 : index
    %3 = vector.load %arg5[%c0_3, %c0_4] : memref<1x64xf32, #tpu.memory_space<vmem>>, vector<1x64xf32>
    %4 = vector.broadcast %3 : vector<1x64xf32> to vector<32x64xf32>
    %5 = arith.mulf %2, %4 : vector<32x64xf32>
    %c0_5 = arith.constant 0 : index
    %c0_6 = arith.constant 0 : index
    %6 = vector.load %arg6[%c0_5, %c0_6] : memref<1x64xf32, #tpu.memory_space<vmem>>, vector<1x64xf32>
    %7 = vector.broadcast %6 : vector<1x64xf32> to vector<32x64xf32>
    %8 = arith.addf %5, %7 : vector<32x64xf32>
    %c0_7 = arith.constant 0 : index
    %c0_8 = arith.constant 0 : index
    %9 = vector.load %arg7[%c0_7, %c0_8] : memref<32x64xbf16, #tpu.memory_space<vmem>>, vector<32x64xbf16>
    %10 = arith.extf %9 : vector<32x64xbf16> to vector<32x64xf32>
    %11 = arith.addf %8, %10 : vector<32x64xf32>
    %cst_9 = arith.constant 0.000000e+00 : f32
    %12 = vector.broadcast %cst_9 : f32 to vector<32x64xf32>
    %13 = arith.maximumf %11, %12 : vector<32x64xf32>
    %14 = arith.truncf %13 : vector<32x64xf32> to vector<32x64xbf16>
    %c0_10 = arith.constant 0 : index
    %c0_11 = arith.constant 0 : index
    %15 = vector.load %arg8[%c0_10, %c0_11] : memref<32x64xbf16, #tpu.memory_space<vmem>>, vector<32x64xbf16>
    tpu.vector_store %arg8[%c0_10, %c0_11], %14 {strides = array<i32>} : memref<32x64xbf16, #tpu.memory_space<vmem>>, vector<32x64xbf16>,
    return
  }
  func.func @transform_0(%arg0: i32, %arg1: i32, %arg2: i32) -> (i32, i32) {
    %c0_i32 = arith.constant 0 : i32
    return %arg0, %arg2 : i32, i32
  }
  func.func @transform_1(%arg0: i32, %arg1: i32, %arg2: i32) -> (i32, i32) {
    %c0_i32 = arith.constant 0 : i32
    return %arg2, %arg1 : i32, i32
  }
  func.func @transform_2(%arg0: i32, %arg1: i32, %arg2: i32) -> (i32, i32) {
    %c0_i32 = arith.constant 0 : i32
    %c0_i32_0 = arith.constant 0 : i32
    return %c0_i32, %arg1 : i32, i32
  }
  func.func @transform_3(%arg0: i32, %arg1: i32, %arg2: i32) -> (i32, i32) {
    %c0_i32 = arith.constant 0 : i32
    %c0_i32_0 = arith.constant 0 : i32
    return %c0_i32, %arg1 : i32, i32
  }
  func.func @transform_4(%arg0: i32, %arg1: i32, %arg2: i32) -> (i32, i32) {
    %c0_i32 = arith.constant 0 : i32
    return %arg0, %arg1 : i32, i32
  }
  func.func @transform_5(%arg0: i32, %arg1: i32, %arg2: i32) -> (i32, i32) {
    %c0_i32 = arith.constant 0 : i32
    return %arg0, %arg1 : i32, i32
  }
}

module attributes {stable_mosaic.version = 11 : i64} {
  func.func @_mm_kernel(%arg0: i32, %arg1: i32, %arg2: i32, %arg3: memref<32x32xbf16, #tpu.memory_space<vmem>>, %arg4: memref<32x64xbf16, #tpu.memory_space<vmem>>, %arg5: memref<1x64xf32, #tpu.memory_space<vmem>>, %arg6: memref<1x64xf32, #tpu.memory_space<vmem>>, %arg7: memref<32x64xbf16, #tpu.memory_space<vmem>>) attributes {dimension_semantics = [#tpu.dimension_semantics<parallel>, #tpu.dimension_semantics<parallel>, #tpu.dimension_semantics<arbitrary>], iteration_bounds = array<i64: 1, 1, 1>, scalar_prefetch = 0 : i64, scratch_operands = 0 : i64, tpu.core_type = #tpu.core_type<tc>, window_params = [{transform_indices = @transform_0, window_bounds = array<i64: 32, 32>}, {transform_indices = @transform_1, window_bounds = array<i64: 32, 64>}, {transform_indices = @transform_2, window_bounds = array<i64: 1, 64>}, {transform_indices = @transform_3, window_bounds = array<i64: 1, 64>}, {transform_indices = @transform_4, window_bounds = array<i64: 32, 64>}]} {
    %c0 = arith.constant 0 : index
    %c0_0 = arith.constant 0 : index
    %0 = vector.load %arg3[%c0, %c0_0] : memref<32x32xbf16, #tpu.memory_space<vmem>>, vector<32x32xbf16>
    %c0_1 = arith.constant 0 : index
    %c0_2 = arith.constant 0 : index
    %1 = vector.load %arg4[%c0_1, %c0_2] : memref<32x64xbf16, #tpu.memory_space<vmem>>, vector<32x64xbf16>
    %cst = arith.constant dense<0.000000e+00> : vector<32x64xf32>
    %2 = tpu.matmul %0, %1, %cst {dimension_numbers = #tpu.dot_dimension_numbers<[1], [0], [0], [1], [0, 0, 1, 1], [], []>} : vector<32x32xbf16>, vector<32x64xbf16>, vector<32x64xf32> -> vector<32x64xf32>
    %c0_3 = arith.constant 0 : index
    %c0_4 = arith.constant 0 : index
    %3 = vector.load %arg5[%c0_3, %c0_4] : memref<1x64xf32, #tpu.memory_space<vmem>>, vector<1x64xf32>
    %4 = vector.broadcast %3 : vector<1x64xf32> to vector<32x64xf32>
    %5 = arith.mulf %2, %4 : vector<32x64xf32>
    %c0_5 = arith.constant 0 : index
    %c0_6 = arith.constant 0 : index
    %6 = vector.load %arg6[%c0_5, %c0_6] : memref<1x64xf32, #tpu.memory_space<vmem>>, vector<1x64xf32>
    %7 = vector.broadcast %6 : vector<1x64xf32> to vector<32x64xf32>
    %8 = arith.addf %5, %7 : vector<32x64xf32>
    %9 = arith.truncf %8 : vector<32x64xf32> to vector<32x64xbf16>
    %c0_7 = arith.constant 0 : index
    %c0_8 = arith.constant 0 : index
    %10 = vector.load %arg7[%c0_7, %c0_8] : memref<32x64xbf16, #tpu.memory_space<vmem>>, vector<32x64xbf16>
    tpu.vector_store %arg7[%c0_7, %c0_8], %9 {strides = array<i32>} : memref<32x64xbf16, #tpu.memory_space<vmem>>, vector<32x64xbf16>,
    return
  }
  func.func @transform_0(%arg0: i32, %arg1: i32, %arg2: i32) -> (i32, i32) {
    %c0_i32 = arith.constant 0 : i32
    return %arg0, %arg2 : i32, i32
  }
  func.func @transform_1(%arg0: i32, %arg1: i32, %arg2: i32) -> (i32, i32) {
    %c0_i32 = arith.constant 0 : i32
    return %arg2, %arg1 : i32, i32
  }
  func.func @transform_2(%arg0: i32, %arg1: i32, %arg2: i32) -> (i32, i32) {
    %c0_i32 = arith.constant 0 : i32
    %c0_i32_0 = arith.constant 0 : i32
    return %c0_i32, %arg1 : i32, i32
  }
  func.func @transform_3(%arg0: i32, %arg1: i32, %arg2: i32) -> (i32, i32) {
    %c0_i32 = arith.constant 0 : i32
    %c0_i32_0 = arith.constant 0 : i32
    return %c0_i32, %arg1 : i32, i32
  }
  func.func @transform_4(%arg0: i32, %arg1: i32, %arg2: i32) -> (i32, i32) {
    %c0_i32 = arith.constant 0 : i32
    return %arg0, %arg1 : i32, i32
  }
}

module attributes {stable_mosaic.version = 11 : i64} {
  func.func @_mm_kernel(%arg0: i32, %arg1: i32, %arg2: i32, %arg3: memref<32x64xbf16, #tpu.memory_space<vmem>>, %arg4: memref<64x16xbf16, #tpu.memory_space<vmem>>, %arg5: memref<1x16xf32, #tpu.memory_space<vmem>>, %arg6: memref<1x16xf32, #tpu.memory_space<vmem>>, %arg7: memref<32x16xbf16, #tpu.memory_space<vmem>>) attributes {dimension_semantics = [#tpu.dimension_semantics<parallel>, #tpu.dimension_semantics<parallel>, #tpu.dimension_semantics<arbitrary>], iteration_bounds = array<i64: 1, 1, 1>, scalar_prefetch = 0 : i64, scratch_operands = 0 : i64, tpu.core_type = #tpu.core_type<tc>, window_params = [{transform_indices = @transform_0, window_bounds = array<i64: 32, 64>}, {transform_indices = @transform_1, window_bounds = array<i64: 64, 16>}, {transform_indices = @transform_2, window_bounds = array<i64: 1, 16>}, {transform_indices = @transform_3, window_bounds = array<i64: 1, 16>}, {transform_indices = @transform_4, window_bounds = array<i64: 32, 16>}]} {
    %c0 = arith.constant 0 : index
    %c0_0 = arith.constant 0 : index
    %0 = vector.load %arg3[%c0, %c0_0] : memref<32x64xbf16, #tpu.memory_space<vmem>>, vector<32x64xbf16>
    %c0_1 = arith.constant 0 : index
    %c0_2 = arith.constant 0 : index
    %1 = vector.load %arg4[%c0_1, %c0_2] : memref<64x16xbf16, #tpu.memory_space<vmem>>, vector<64x16xbf16>
    %cst = arith.constant dense<0.000000e+00> : vector<32x16xf32>
    %2 = tpu.matmul %0, %1, %cst {dimension_numbers = #tpu.dot_dimension_numbers<[1], [0], [0], [1], [0, 0, 1, 1], [], []>} : vector<32x64xbf16>, vector<64x16xbf16>, vector<32x16xf32> -> vector<32x16xf32>
    %c0_3 = arith.constant 0 : index
    %c0_4 = arith.constant 0 : index
    %3 = vector.load %arg5[%c0_3, %c0_4] : memref<1x16xf32, #tpu.memory_space<vmem>>, vector<1x16xf32>
    %4 = vector.broadcast %3 : vector<1x16xf32> to vector<32x16xf32>
    %5 = arith.mulf %2, %4 : vector<32x16xf32>
    %c0_5 = arith.constant 0 : index
    %c0_6 = arith.constant 0 : index
    %6 = vector.load %arg6[%c0_5, %c0_6] : memref<1x16xf32, #tpu.memory_space<vmem>>, vector<1x16xf32>
    %7 = vector.broadcast %6 : vector<1x16xf32> to vector<32x16xf32>
    %8 = arith.addf %5, %7 : vector<32x16xf32>
    %cst_7 = arith.constant 0.000000e+00 : f32
    %9 = vector.broadcast %cst_7 : f32 to vector<32x16xf32>
    %10 = arith.maximumf %8, %9 : vector<32x16xf32>
    %11 = arith.truncf %10 : vector<32x16xf32> to vector<32x16xbf16>
    %c0_8 = arith.constant 0 : index
    %c0_9 = arith.constant 0 : index
    %12 = vector.load %arg7[%c0_8, %c0_9] : memref<32x16xbf16, #tpu.memory_space<vmem>>, vector<32x16xbf16>
    tpu.vector_store %arg7[%c0_8, %c0_9], %11 {strides = array<i32>} : memref<32x16xbf16, #tpu.memory_space<vmem>>, vector<32x16xbf16>,
    return
  }
  func.func @transform_0(%arg0: i32, %arg1: i32, %arg2: i32) -> (i32, i32) {
    %c0_i32 = arith.constant 0 : i32
    return %arg0, %arg2 : i32, i32
  }
  func.func @transform_1(%arg0: i32, %arg1: i32, %arg2: i32) -> (i32, i32) {
    %c0_i32 = arith.constant 0 : i32
    return %arg2, %arg1 : i32, i32
  }
  func.func @transform_2(%arg0: i32, %arg1: i32, %arg2: i32) -> (i32, i32) {
    %c0_i32 = arith.constant 0 : i32
    %c0_i32_0 = arith.constant 0 : i32
    return %c0_i32, %arg1 : i32, i32
  }
  func.func @transform_3(%arg0: i32, %arg1: i32, %arg2: i32) -> (i32, i32) {
    %c0_i32 = arith.constant 0 : i32
    %c0_i32_0 = arith.constant 0 : i32
    return %c0_i32, %arg1 : i32, i32
  }
  func.func @transform_4(%arg0: i32, %arg1: i32, %arg2: i32) -> (i32, i32) {
    %c0_i32 = arith.constant 0 : i32
    return %arg0, %arg1 : i32, i32
  }
}

module attributes {stable_mosaic.version = 11 : i64} {
  func.func @_mm_kernel(%arg0: i32, %arg1: i32, %arg2: i32, %arg3: memref<32x16xbf16, #tpu.memory_space<vmem>>, %arg4: memref<16x64xbf16, #tpu.memory_space<vmem>>, %arg5: memref<1x64xf32, #tpu.memory_space<vmem>>, %arg6: memref<1x64xf32, #tpu.memory_space<vmem>>, %arg7: memref<32x64xbf16, #tpu.memory_space<vmem>>, %arg8: memref<32x64xbf16, #tpu.memory_space<vmem>>) attributes {dimension_semantics = [#tpu.dimension_semantics<parallel>, #tpu.dimension_semantics<parallel>, #tpu.dimension_semantics<arbitrary>], iteration_bounds = array<i64: 1, 1, 1>, scalar_prefetch = 0 : i64, scratch_operands = 0 : i64, tpu.core_type = #tpu.core_type<tc>, window_params = [{transform_indices = @transform_0, window_bounds = array<i64: 32, 16>}, {transform_indices = @transform_1, window_bounds = array<i64: 16, 64>}, {transform_indices = @transform_2, window_bounds = array<i64: 1, 64>}, {transform_indices = @transform_3, window_bounds = array<i64: 1, 64>}, {transform_indices = @transform_4, window_bounds = array<i64: 32, 64>}, {transform_indices = @transform_5, window_bounds = array<i64: 32, 64>}]} {
    %c0 = arith.constant 0 : index
    %c0_0 = arith.constant 0 : index
    %0 = vector.load %arg3[%c0, %c0_0] : memref<32x16xbf16, #tpu.memory_space<vmem>>, vector<32x16xbf16>
    %c0_1 = arith.constant 0 : index
    %c0_2 = arith.constant 0 : index
    %1 = vector.load %arg4[%c0_1, %c0_2] : memref<16x64xbf16, #tpu.memory_space<vmem>>, vector<16x64xbf16>
    %cst = arith.constant dense<0.000000e+00> : vector<32x64xf32>
    %2 = tpu.matmul %0, %1, %cst {dimension_numbers = #tpu.dot_dimension_numbers<[1], [0], [0], [1], [0, 0, 1, 1], [], []>} : vector<32x16xbf16>, vector<16x64xbf16>, vector<32x64xf32> -> vector<32x64xf32>
    %c0_3 = arith.constant 0 : index
    %c0_4 = arith.constant 0 : index
    %3 = vector.load %arg5[%c0_3, %c0_4] : memref<1x64xf32, #tpu.memory_space<vmem>>, vector<1x64xf32>
    %4 = vector.broadcast %3 : vector<1x64xf32> to vector<32x64xf32>
    %5 = arith.mulf %2, %4 : vector<32x64xf32>
    %c0_5 = arith.constant 0 : index
    %c0_6 = arith.constant 0 : index
    %6 = vector.load %arg6[%c0_5, %c0_6] : memref<1x64xf32, #tpu.memory_space<vmem>>, vector<1x64xf32>
    %7 = vector.broadcast %6 : vector<1x64xf32> to vector<32x64xf32>
    %8 = arith.addf %5, %7 : vector<32x64xf32>
    %c0_7 = arith.constant 0 : index
    %c0_8 = arith.constant 0 : index
    %9 = vector.load %arg7[%c0_7, %c0_8] : memref<32x64xbf16, #tpu.memory_space<vmem>>, vector<32x64xbf16>
    %10 = arith.extf %9 : vector<32x64xbf16> to vector<32x64xf32>
    %11 = arith.addf %8, %10 : vector<32x64xf32>
    %cst_9 = arith.constant 0.000000e+00 : f32
    %12 = vector.broadcast %cst_9 : f32 to vector<32x64xf32>
    %13 = arith.maximumf %11, %12 : vector<32x64xf32>
    %14 = arith.truncf %13 : vector<32x64xf32> to vector<32x64xbf16>
    %c0_10 = arith.constant 0 : index
    %c0_11 = arith.constant 0 : index
    %15 = vector.load %arg8[%c0_10, %c0_11] : memref<32x64xbf16, #tpu.memory_space<vmem>>, vector<32x64xbf16>
    tpu.vector_store %arg8[%c0_10, %c0_11], %14 {strides = array<i32>} : memref<32x64xbf16, #tpu.memory_space<vmem>>, vector<32x64xbf16>,
    return
  }
  func.func @transform_0(%arg0: i32, %arg1: i32, %arg2: i32) -> (i32, i32) {
    %c0_i32 = arith.constant 0 : i32
    return %arg0, %arg2 : i32, i32
  }
  func.func @transform_1(%arg0: i32, %arg1: i32, %arg2: i32) -> (i32, i32) {
    %c0_i32 = arith.constant 0 : i32
    return %arg2, %arg1 : i32, i32
  }
  func.func @transform_2(%arg0: i32, %arg1: i32, %arg2: i32) -> (i32, i32) {
    %c0_i32 = arith.constant 0 : i32
    %c0_i32_0 = arith.constant 0 : i32
    return %c0_i32, %arg1 : i32, i32
  }
  func.func @transform_3(%arg0: i32, %arg1: i32, %arg2: i32) -> (i32, i32) {
    %c0_i32 = arith.constant 0 : i32
    %c0_i32_0 = arith.constant 0 : i32
    return %c0_i32, %arg1 : i32, i32
  }
  func.func @transform_4(%arg0: i32, %arg1: i32, %arg2: i32) -> (i32, i32) {
    %c0_i32 = arith.constant 0 : i32
    return %arg0, %arg1 : i32, i32
  }
  func.func @transform_5(%arg0: i32, %arg1: i32, %arg2: i32) -> (i32, i32) {
    %c0_i32 = arith.constant 0 : i32
    return %arg0, %arg1 : i32, i32
  }
}

module attributes {stable_mosaic.version = 11 : i64} {
  func.func @_mm_kernel(%arg0: i32, %arg1: i32, %arg2: i32, %arg3: memref<32x64xbf16, #tpu.memory_space<vmem>>, %arg4: memref<64x32xbf16, #tpu.memory_space<vmem>>, %arg5: memref<1x32xf32, #tpu.memory_space<vmem>>, %arg6: memref<1x32xf32, #tpu.memory_space<vmem>>, %arg7: memref<32x32xbf16, #tpu.memory_space<vmem>>) attributes {dimension_semantics = [#tpu.dimension_semantics<parallel>, #tpu.dimension_semantics<parallel>, #tpu.dimension_semantics<arbitrary>], iteration_bounds = array<i64: 1, 1, 1>, scalar_prefetch = 0 : i64, scratch_operands = 0 : i64, tpu.core_type = #tpu.core_type<tc>, window_params = [{transform_indices = @transform_0, window_bounds = array<i64: 32, 64>}, {transform_indices = @transform_1, window_bounds = array<i64: 64, 32>}, {transform_indices = @transform_2, window_bounds = array<i64: 1, 32>}, {transform_indices = @transform_3, window_bounds = array<i64: 1, 32>}, {transform_indices = @transform_4, window_bounds = array<i64: 32, 32>}]} {
    %c0 = arith.constant 0 : index
    %c0_0 = arith.constant 0 : index
    %0 = vector.load %arg3[%c0, %c0_0] : memref<32x64xbf16, #tpu.memory_space<vmem>>, vector<32x64xbf16>
    %c0_1 = arith.constant 0 : index
    %c0_2 = arith.constant 0 : index
    %1 = vector.load %arg4[%c0_1, %c0_2] : memref<64x32xbf16, #tpu.memory_space<vmem>>, vector<64x32xbf16>
    %cst = arith.constant dense<0.000000e+00> : vector<32x32xf32>
    %2 = tpu.matmul %0, %1, %cst {dimension_numbers = #tpu.dot_dimension_numbers<[1], [0], [0], [1], [0, 0, 1, 1], [], []>} : vector<32x64xbf16>, vector<64x32xbf16>, vector<32x32xf32> -> vector<32x32xf32>
    %c0_3 = arith.constant 0 : index
    %c0_4 = arith.constant 0 : index
    %3 = vector.load %arg5[%c0_3, %c0_4] : memref<1x32xf32, #tpu.memory_space<vmem>>, vector<1x32xf32>
    %4 = vector.broadcast %3 : vector<1x32xf32> to vector<32x32xf32>
    %5 = arith.mulf %2, %4 : vector<32x32xf32>
    %c0_5 = arith.constant 0 : index
    %c0_6 = arith.constant 0 : index
    %6 = vector.load %arg6[%c0_5, %c0_6] : memref<1x32xf32, #tpu.memory_space<vmem>>, vector<1x32xf32>
    %7 = vector.broadcast %6 : vector<1x32xf32> to vector<32x32xf32>
    %8 = arith.addf %5, %7 : vector<32x32xf32>
    %cst_7 = arith.constant 0.000000e+00 : f32
    %9 = vector.broadcast %cst_7 : f32 to vector<32x32xf32>
    %10 = arith.maximumf %8, %9 : vector<32x32xf32>
    %11 = arith.truncf %10 : vector<32x32xf32> to vector<32x32xbf16>
    %c0_8 = arith.constant 0 : index
    %c0_9 = arith.constant 0 : index
    %12 = vector.load %arg7[%c0_8, %c0_9] : memref<32x32xbf16, #tpu.memory_space<vmem>>, vector<32x32xbf16>
    tpu.vector_store %arg7[%c0_8, %c0_9], %11 {strides = array<i32>} : memref<32x32xbf16, #tpu.memory_space<vmem>>, vector<32x32xbf16>,
    return
  }
  func.func @transform_0(%arg0: i32, %arg1: i32, %arg2: i32) -> (i32, i32) {
    %c0_i32 = arith.constant 0 : i32
    return %arg0, %arg2 : i32, i32
  }
  func.func @transform_1(%arg0: i32, %arg1: i32, %arg2: i32) -> (i32, i32) {
    %c0_i32 = arith.constant 0 : i32
    return %arg2, %arg1 : i32, i32
  }
  func.func @transform_2(%arg0: i32, %arg1: i32, %arg2: i32) -> (i32, i32) {
    %c0_i32 = arith.constant 0 : i32
    %c0_i32_0 = arith.constant 0 : i32
    return %c0_i32, %arg1 : i32, i32
  }
  func.func @transform_3(%arg0: i32, %arg1: i32, %arg2: i32) -> (i32, i32) {
    %c0_i32 = arith.constant 0 : i32
    %c0_i32_0 = arith.constant 0 : i32
    return %c0_i32, %arg1 : i32, i32
  }
  func.func @transform_4(%arg0: i32, %arg1: i32, %arg2: i32) -> (i32, i32) {
    %c0_i32 = arith.constant 0 : i32
    return %arg0, %arg1 : i32, i32
  }
}

module attributes {stable_mosaic.version = 11 : i64} {
  func.func @_mm_kernel(%arg0: i32, %arg1: i32, %arg2: i32, %arg3: memref<32x144xbf16, #tpu.memory_space<vmem>>, %arg4: memref<144x16xbf16, #tpu.memory_space<vmem>>, %arg5: memref<1x16xf32, #tpu.memory_space<vmem>>, %arg6: memref<1x16xf32, #tpu.memory_space<vmem>>, %arg7: memref<32x16xbf16, #tpu.memory_space<vmem>>) attributes {dimension_semantics = [#tpu.dimension_semantics<parallel>, #tpu.dimension_semantics<parallel>, #tpu.dimension_semantics<arbitrary>], iteration_bounds = array<i64: 1, 1, 1>, scalar_prefetch = 0 : i64, scratch_operands = 0 : i64, tpu.core_type = #tpu.core_type<tc>, window_params = [{transform_indices = @transform_0, window_bounds = array<i64: 32, 144>}, {transform_indices = @transform_1, window_bounds = array<i64: 144, 16>}, {transform_indices = @transform_2, window_bounds = array<i64: 1, 16>}, {transform_indices = @transform_3, window_bounds = array<i64: 1, 16>}, {transform_indices = @transform_4, window_bounds = array<i64: 32, 16>}]} {
    %c0 = arith.constant 0 : index
    %c0_0 = arith.constant 0 : index
    %0 = vector.load %arg3[%c0, %c0_0] : memref<32x144xbf16, #tpu.memory_space<vmem>>, vector<32x144xbf16>
    %c0_1 = arith.constant 0 : index
    %c0_2 = arith.constant 0 : index
    %1 = vector.load %arg4[%c0_1, %c0_2] : memref<144x16xbf16, #tpu.memory_space<vmem>>, vector<144x16xbf16>
    %cst = arith.constant dense<0.000000e+00> : vector<32x16xf32>
    %2 = tpu.matmul %0, %1, %cst {dimension_numbers = #tpu.dot_dimension_numbers<[1], [0], [0], [1], [0, 0, 1, 1], [], []>} : vector<32x144xbf16>, vector<144x16xbf16>, vector<32x16xf32> -> vector<32x16xf32>
    %c0_3 = arith.constant 0 : index
    %c0_4 = arith.constant 0 : index
    %3 = vector.load %arg5[%c0_3, %c0_4] : memref<1x16xf32, #tpu.memory_space<vmem>>, vector<1x16xf32>
    %4 = vector.broadcast %3 : vector<1x16xf32> to vector<32x16xf32>
    %5 = arith.mulf %2, %4 : vector<32x16xf32>
    %c0_5 = arith.constant 0 : index
    %c0_6 = arith.constant 0 : index
    %6 = vector.load %arg6[%c0_5, %c0_6] : memref<1x16xf32, #tpu.memory_space<vmem>>, vector<1x16xf32>
    %7 = vector.broadcast %6 : vector<1x16xf32> to vector<32x16xf32>
    %8 = arith.addf %5, %7 : vector<32x16xf32>
    %cst_7 = arith.constant 0.000000e+00 : f32
    %9 = vector.broadcast %cst_7 : f32 to vector<32x16xf32>
    %10 = arith.maximumf %8, %9 : vector<32x16xf32>
    %11 = arith.truncf %10 : vector<32x16xf32> to vector<32x16xbf16>
    %c0_8 = arith.constant 0 : index
    %c0_9 = arith.constant 0 : index
    %12 = vector.load %arg7[%c0_8, %c0_9] : memref<32x16xbf16, #tpu.memory_space<vmem>>, vector<32x16xbf16>
    tpu.vector_store %arg7[%c0_8, %c0_9], %11 {strides = array<i32>} : memref<32x16xbf16, #tpu.memory_space<vmem>>, vector<32x16xbf16>,
    return
  }
  func.func @transform_0(%arg0: i32, %arg1: i32, %arg2: i32) -> (i32, i32) {
    %c0_i32 = arith.constant 0 : i32
    return %arg0, %arg2 : i32, i32
  }
  func.func @transform_1(%arg0: i32, %arg1: i32, %arg2: i32) -> (i32, i32) {
    %c0_i32 = arith.constant 0 : i32
    return %arg2, %arg1 : i32, i32
  }
  func.func @transform_2(%arg0: i32, %arg1: i32, %arg2: i32) -> (i32, i32) {
    %c0_i32 = arith.constant 0 : i32
    %c0_i32_0 = arith.constant 0 : i32
    return %c0_i32, %arg1 : i32, i32
  }
  func.func @transform_3(%arg0: i32, %arg1: i32, %arg2: i32) -> (i32, i32) {
    %c0_i32 = arith.constant 0 : i32
    %c0_i32_0 = arith.constant 0 : i32
    return %c0_i32, %arg1 : i32, i32
  }
  func.func @transform_4(%arg0: i32, %arg1: i32, %arg2: i32) -> (i32, i32) {
    %c0_i32 = arith.constant 0 : i32
    return %arg0, %arg1 : i32, i32
  }
}

module attributes {stable_mosaic.version = 11 : i64} {
  func.func @_mm_kernel(%arg0: i32, %arg1: i32, %arg2: i32, %arg3: memref<8x288xbf16, #tpu.memory_space<vmem>>, %arg4: memref<288x32xbf16, #tpu.memory_space<vmem>>, %arg5: memref<1x32xf32, #tpu.memory_space<vmem>>, %arg6: memref<1x32xf32, #tpu.memory_space<vmem>>, %arg7: memref<8x32xbf16, #tpu.memory_space<vmem>>) attributes {dimension_semantics = [#tpu.dimension_semantics<parallel>, #tpu.dimension_semantics<parallel>, #tpu.dimension_semantics<arbitrary>], iteration_bounds = array<i64: 1, 1, 1>, scalar_prefetch = 0 : i64, scratch_operands = 0 : i64, tpu.core_type = #tpu.core_type<tc>, window_params = [{transform_indices = @transform_0, window_bounds = array<i64: 8, 288>}, {transform_indices = @transform_1, window_bounds = array<i64: 288, 32>}, {transform_indices = @transform_2, window_bounds = array<i64: 1, 32>}, {transform_indices = @transform_3, window_bounds = array<i64: 1, 32>}, {transform_indices = @transform_4, window_bounds = array<i64: 8, 32>}]} {
    %c0 = arith.constant 0 : index
    %c0_0 = arith.constant 0 : index
    %0 = vector.load %arg3[%c0, %c0_0] : memref<8x288xbf16, #tpu.memory_space<vmem>>, vector<8x288xbf16>
    %c0_1 = arith.constant 0 : index
    %c0_2 = arith.constant 0 : index
    %1 = vector.load %arg4[%c0_1, %c0_2] : memref<288x32xbf16, #tpu.memory_space<vmem>>, vector<288x32xbf16>
    %cst = arith.constant dense<0.000000e+00> : vector<8x32xf32>
    %2 = tpu.matmul %0, %1, %cst {dimension_numbers = #tpu.dot_dimension_numbers<[1], [0], [0], [1], [0, 0, 1, 1], [], []>} : vector<8x288xbf16>, vector<288x32xbf16>, vector<8x32xf32> -> vector<8x32xf32>
    %c0_3 = arith.constant 0 : index
    %c0_4 = arith.constant 0 : index
    %3 = vector.load %arg5[%c0_3, %c0_4] : memref<1x32xf32, #tpu.memory_space<vmem>>, vector<1x32xf32>
    %4 = vector.broadcast %3 : vector<1x32xf32> to vector<8x32xf32>
    %5 = arith.mulf %2, %4 : vector<8x32xf32>
    %c0_5 = arith.constant 0 : index
    %c0_6 = arith.constant 0 : index
    %6 = vector.load %arg6[%c0_5, %c0_6] : memref<1x32xf32, #tpu.memory_space<vmem>>, vector<1x32xf32>
    %7 = vector.broadcast %6 : vector<1x32xf32> to vector<8x32xf32>
    %8 = arith.addf %5, %7 : vector<8x32xf32>
    %cst_7 = arith.constant 0.000000e+00 : f32
    %9 = vector.broadcast %cst_7 : f32 to vector<8x32xf32>
    %10 = arith.maximumf %8, %9 : vector<8x32xf32>
    %11 = arith.truncf %10 : vector<8x32xf32> to vector<8x32xbf16>
    %c0_8 = arith.constant 0 : index
    %c0_9 = arith.constant 0 : index
    %12 = vector.load %arg7[%c0_8, %c0_9] : memref<8x32xbf16, #tpu.memory_space<vmem>>, vector<8x32xbf16>
    tpu.vector_store %arg7[%c0_8, %c0_9], %11 {strides = array<i32>} : memref<8x32xbf16, #tpu.memory_space<vmem>>, vector<8x32xbf16>,
    return
  }
  func.func @transform_0(%arg0: i32, %arg1: i32, %arg2: i32) -> (i32, i32) {
    %c0_i32 = arith.constant 0 : i32
    return %arg0, %arg2 : i32, i32
  }
  func.func @transform_1(%arg0: i32, %arg1: i32, %arg2: i32) -> (i32, i32) {
    %c0_i32 = arith.constant 0 : i32
    return %arg2, %arg1 : i32, i32
  }
  func.func @transform_2(%arg0: i32, %arg1: i32, %arg2: i32) -> (i32, i32) {
    %c0_i32 = arith.constant 0 : i32
    %c0_i32_0 = arith.constant 0 : i32
    return %c0_i32, %arg1 : i32, i32
  }
  func.func @transform_3(%arg0: i32, %arg1: i32, %arg2: i32) -> (i32, i32) {
    %c0_i32 = arith.constant 0 : i32
    %c0_i32_0 = arith.constant 0 : i32
    return %c0_i32, %arg1 : i32, i32
  }
  func.func @transform_4(%arg0: i32, %arg1: i32, %arg2: i32) -> (i32, i32) {
    %c0_i32 = arith.constant 0 : i32
    return %arg0, %arg1 : i32, i32
  }
}

module attributes {stable_mosaic.version = 11 : i64} {
  func.func @_mm_kernel(%arg0: i32, %arg1: i32, %arg2: i32, %arg3: memref<8x64xbf16, #tpu.memory_space<vmem>>, %arg4: memref<64x128xbf16, #tpu.memory_space<vmem>>, %arg5: memref<1x128xf32, #tpu.memory_space<vmem>>, %arg6: memref<1x128xf32, #tpu.memory_space<vmem>>, %arg7: memref<8x128xbf16, #tpu.memory_space<vmem>>) attributes {dimension_semantics = [#tpu.dimension_semantics<parallel>, #tpu.dimension_semantics<parallel>, #tpu.dimension_semantics<arbitrary>], iteration_bounds = array<i64: 1, 1, 1>, scalar_prefetch = 0 : i64, scratch_operands = 0 : i64, tpu.core_type = #tpu.core_type<tc>, window_params = [{transform_indices = @transform_0, window_bounds = array<i64: 8, 64>}, {transform_indices = @transform_1, window_bounds = array<i64: 64, 128>}, {transform_indices = @transform_2, window_bounds = array<i64: 1, 128>}, {transform_indices = @transform_3, window_bounds = array<i64: 1, 128>}, {transform_indices = @transform_4, window_bounds = array<i64: 8, 128>}]} {
    %c0 = arith.constant 0 : index
    %c0_0 = arith.constant 0 : index
    %0 = vector.load %arg3[%c0, %c0_0] : memref<8x64xbf16, #tpu.memory_space<vmem>>, vector<8x64xbf16>
    %c0_1 = arith.constant 0 : index
    %c0_2 = arith.constant 0 : index
    %1 = vector.load %arg4[%c0_1, %c0_2] : memref<64x128xbf16, #tpu.memory_space<vmem>>, vector<64x128xbf16>
    %cst = arith.constant dense<0.000000e+00> : vector<8x128xf32>
    %2 = tpu.matmul %0, %1, %cst {dimension_numbers = #tpu.dot_dimension_numbers<[1], [0], [0], [1], [0, 0, 1, 1], [], []>} : vector<8x64xbf16>, vector<64x128xbf16>, vector<8x128xf32> -> vector<8x128xf32>
    %c0_3 = arith.constant 0 : index
    %c0_4 = arith.constant 0 : index
    %3 = vector.load %arg5[%c0_3, %c0_4] : memref<1x128xf32, #tpu.memory_space<vmem>>, vector<1x128xf32>
    %4 = vector.broadcast %3 : vector<1x128xf32> to vector<8x128xf32>
    %5 = arith.mulf %2, %4 : vector<8x128xf32>
    %c0_5 = arith.constant 0 : index
    %c0_6 = arith.constant 0 : index
    %6 = vector.load %arg6[%c0_5, %c0_6] : memref<1x128xf32, #tpu.memory_space<vmem>>, vector<1x128xf32>
    %7 = vector.broadcast %6 : vector<1x128xf32> to vector<8x128xf32>
    %8 = arith.addf %5, %7 : vector<8x128xf32>
    %9 = arith.truncf %8 : vector<8x128xf32> to vector<8x128xbf16>
    %c0_7 = arith.constant 0 : index
    %c0_8 = arith.constant 0 : index
    %10 = vector.load %arg7[%c0_7, %c0_8] : memref<8x128xbf16, #tpu.memory_space<vmem>>, vector<8x128xbf16>
    tpu.vector_store %arg7[%c0_7, %c0_8], %9 {strides = array<i32>} : memref<8x128xbf16, #tpu.memory_space<vmem>>, vector<8x128xbf16>,
    return
  }
  func.func @transform_0(%arg0: i32, %arg1: i32, %arg2: i32) -> (i32, i32) {
    %c0_i32 = arith.constant 0 : i32
    return %arg0, %arg2 : i32, i32
  }
  func.func @transform_1(%arg0: i32, %arg1: i32, %arg2: i32) -> (i32, i32) {
    %c0_i32 = arith.constant 0 : i32
    return %arg2, %arg1 : i32, i32
  }
  func.func @transform_2(%arg0: i32, %arg1: i32, %arg2: i32) -> (i32, i32) {
    %c0_i32 = arith.constant 0 : i32
    %c0_i32_0 = arith.constant 0 : i32
    return %c0_i32, %arg1 : i32, i32
  }
  func.func @transform_3(%arg0: i32, %arg1: i32, %arg2: i32) -> (i32, i32) {
    %c0_i32 = arith.constant 0 : i32
    %c0_i32_0 = arith.constant 0 : i32
    return %c0_i32, %arg1 : i32, i32
  }
  func.func @transform_4(%arg0: i32, %arg1: i32, %arg2: i32) -> (i32, i32) {
    %c0_i32 = arith.constant 0 : i32
    return %arg0, %arg1 : i32, i32
  }
}

module attributes {stable_mosaic.version = 11 : i64} {
  func.func @_mm_kernel(%arg0: i32, %arg1: i32, %arg2: i32, %arg3: memref<8x32xbf16, #tpu.memory_space<vmem>>, %arg4: memref<32x128xbf16, #tpu.memory_space<vmem>>, %arg5: memref<1x128xf32, #tpu.memory_space<vmem>>, %arg6: memref<1x128xf32, #tpu.memory_space<vmem>>, %arg7: memref<8x128xbf16, #tpu.memory_space<vmem>>, %arg8: memref<8x128xbf16, #tpu.memory_space<vmem>>) attributes {dimension_semantics = [#tpu.dimension_semantics<parallel>, #tpu.dimension_semantics<parallel>, #tpu.dimension_semantics<arbitrary>], iteration_bounds = array<i64: 1, 1, 1>, scalar_prefetch = 0 : i64, scratch_operands = 0 : i64, tpu.core_type = #tpu.core_type<tc>, window_params = [{transform_indices = @transform_0, window_bounds = array<i64: 8, 32>}, {transform_indices = @transform_1, window_bounds = array<i64: 32, 128>}, {transform_indices = @transform_2, window_bounds = array<i64: 1, 128>}, {transform_indices = @transform_3, window_bounds = array<i64: 1, 128>}, {transform_indices = @transform_4, window_bounds = array<i64: 8, 128>}, {transform_indices = @transform_5, window_bounds = array<i64: 8, 128>}]} {
    %c0 = arith.constant 0 : index
    %c0_0 = arith.constant 0 : index
    %0 = vector.load %arg3[%c0, %c0_0] : memref<8x32xbf16, #tpu.memory_space<vmem>>, vector<8x32xbf16>
    %c0_1 = arith.constant 0 : index
    %c0_2 = arith.constant 0 : index
    %1 = vector.load %arg4[%c0_1, %c0_2] : memref<32x128xbf16, #tpu.memory_space<vmem>>, vector<32x128xbf16>
    %cst = arith.constant dense<0.000000e+00> : vector<8x128xf32>
    %2 = tpu.matmul %0, %1, %cst {dimension_numbers = #tpu.dot_dimension_numbers<[1], [0], [0], [1], [0, 0, 1, 1], [], []>} : vector<8x32xbf16>, vector<32x128xbf16>, vector<8x128xf32> -> vector<8x128xf32>
    %c0_3 = arith.constant 0 : index
    %c0_4 = arith.constant 0 : index
    %3 = vector.load %arg5[%c0_3, %c0_4] : memref<1x128xf32, #tpu.memory_space<vmem>>, vector<1x128xf32>
    %4 = vector.broadcast %3 : vector<1x128xf32> to vector<8x128xf32>
    %5 = arith.mulf %2, %4 : vector<8x128xf32>
    %c0_5 = arith.constant 0 : index
    %c0_6 = arith.constant 0 : index
    %6 = vector.load %arg6[%c0_5, %c0_6] : memref<1x128xf32, #tpu.memory_space<vmem>>, vector<1x128xf32>
    %7 = vector.broadcast %6 : vector<1x128xf32> to vector<8x128xf32>
    %8 = arith.addf %5, %7 : vector<8x128xf32>
    %c0_7 = arith.constant 0 : index
    %c0_8 = arith.constant 0 : index
    %9 = vector.load %arg7[%c0_7, %c0_8] : memref<8x128xbf16, #tpu.memory_space<vmem>>, vector<8x128xbf16>
    %10 = arith.extf %9 : vector<8x128xbf16> to vector<8x128xf32>
    %11 = arith.addf %8, %10 : vector<8x128xf32>
    %cst_9 = arith.constant 0.000000e+00 : f32
    %12 = vector.broadcast %cst_9 : f32 to vector<8x128xf32>
    %13 = arith.maximumf %11, %12 : vector<8x128xf32>
    %14 = arith.truncf %13 : vector<8x128xf32> to vector<8x128xbf16>
    %c0_10 = arith.constant 0 : index
    %c0_11 = arith.constant 0 : index
    %15 = vector.load %arg8[%c0_10, %c0_11] : memref<8x128xbf16, #tpu.memory_space<vmem>>, vector<8x128xbf16>
    tpu.vector_store %arg8[%c0_10, %c0_11], %14 {strides = array<i32>} : memref<8x128xbf16, #tpu.memory_space<vmem>>, vector<8x128xbf16>,
    return
  }
  func.func @transform_0(%arg0: i32, %arg1: i32, %arg2: i32) -> (i32, i32) {
    %c0_i32 = arith.constant 0 : i32
    return %arg0, %arg2 : i32, i32
  }
  func.func @transform_1(%arg0: i32, %arg1: i32, %arg2: i32) -> (i32, i32) {
    %c0_i32 = arith.constant 0 : i32
    return %arg2, %arg1 : i32, i32
  }
  func.func @transform_2(%arg0: i32, %arg1: i32, %arg2: i32) -> (i32, i32) {
    %c0_i32 = arith.constant 0 : i32
    %c0_i32_0 = arith.constant 0 : i32
    return %c0_i32, %arg1 : i32, i32
  }
  func.func @transform_3(%arg0: i32, %arg1: i32, %arg2: i32) -> (i32, i32) {
    %c0_i32 = arith.constant 0 : i32
    %c0_i32_0 = arith.constant 0 : i32
    return %c0_i32, %arg1 : i32, i32
  }
  func.func @transform_4(%arg0: i32, %arg1: i32, %arg2: i32) -> (i32, i32) {
    %c0_i32 = arith.constant 0 : i32
    return %arg0, %arg1 : i32, i32
  }
  func.func @transform_5(%arg0: i32, %arg1: i32, %arg2: i32) -> (i32, i32) {
    %c0_i32 = arith.constant 0 : i32
    return %arg0, %arg1 : i32, i32
  }
}

module attributes {stable_mosaic.version = 11 : i64} {
  func.func @_mm_kernel(%arg0: i32, %arg1: i32, %arg2: i32, %arg3: memref<8x128xbf16, #tpu.memory_space<vmem>>, %arg4: memref<128x32xbf16, #tpu.memory_space<vmem>>, %arg5: memref<1x32xf32, #tpu.memory_space<vmem>>, %arg6: memref<1x32xf32, #tpu.memory_space<vmem>>, %arg7: memref<8x32xbf16, #tpu.memory_space<vmem>>) attributes {dimension_semantics = [#tpu.dimension_semantics<parallel>, #tpu.dimension_semantics<parallel>, #tpu.dimension_semantics<arbitrary>], iteration_bounds = array<i64: 1, 1, 1>, scalar_prefetch = 0 : i64, scratch_operands = 0 : i64, tpu.core_type = #tpu.core_type<tc>, window_params = [{transform_indices = @transform_0, window_bounds = array<i64: 8, 128>}, {transform_indices = @transform_1, window_bounds = array<i64: 128, 32>}, {transform_indices = @transform_2, window_bounds = array<i64: 1, 32>}, {transform_indices = @transform_3, window_bounds = array<i64: 1, 32>}, {transform_indices = @transform_4, window_bounds = array<i64: 8, 32>}]} {
    %c0 = arith.constant 0 : index
    %c0_0 = arith.constant 0 : index
    %0 = vector.load %arg3[%c0, %c0_0] : memref<8x128xbf16, #tpu.memory_space<vmem>>, vector<8x128xbf16>
    %c0_1 = arith.constant 0 : index
    %c0_2 = arith.constant 0 : index
    %1 = vector.load %arg4[%c0_1, %c0_2] : memref<128x32xbf16, #tpu.memory_space<vmem>>, vector<128x32xbf16>
    %cst = arith.constant dense<0.000000e+00> : vector<8x32xf32>
    %2 = tpu.matmul %0, %1, %cst {dimension_numbers = #tpu.dot_dimension_numbers<[1], [0], [0], [1], [0, 0, 1, 1], [], []>} : vector<8x128xbf16>, vector<128x32xbf16>, vector<8x32xf32> -> vector<8x32xf32>
    %c0_3 = arith.constant 0 : index
    %c0_4 = arith.constant 0 : index
    %3 = vector.load %arg5[%c0_3, %c0_4] : memref<1x32xf32, #tpu.memory_space<vmem>>, vector<1x32xf32>
    %4 = vector.broadcast %3 : vector<1x32xf32> to vector<8x32xf32>
    %5 = arith.mulf %2, %4 : vector<8x32xf32>
    %c0_5 = arith.constant 0 : index
    %c0_6 = arith.constant 0 : index
    %6 = vector.load %arg6[%c0_5, %c0_6] : memref<1x32xf32, #tpu.memory_space<vmem>>, vector<1x32xf32>
    %7 = vector.broadcast %6 : vector<1x32xf32> to vector<8x32xf32>
    %8 = arith.addf %5, %7 : vector<8x32xf32>
    %cst_7 = arith.constant 0.000000e+00 : f32
    %9 = vector.broadcast %cst_7 : f32 to vector<8x32xf32>
    %10 = arith.maximumf %8, %9 : vector<8x32xf32>
    %11 = arith.truncf %10 : vector<8x32xf32> to vector<8x32xbf16>
    %c0_8 = arith.constant 0 : index
    %c0_9 = arith.constant 0 : index
    %12 = vector.load %arg7[%c0_8, %c0_9] : memref<8x32xbf16, #tpu.memory_space<vmem>>, vector<8x32xbf16>
    tpu.vector_store %arg7[%c0_8, %c0_9], %11 {strides = array<i32>} : memref<8x32xbf16, #tpu.memory_space<vmem>>, vector<8x32xbf16>,
    return
  }
  func.func @transform_0(%arg0: i32, %arg1: i32, %arg2: i32) -> (i32, i32) {
    %c0_i32 = arith.constant 0 : i32
    return %arg0, %arg2 : i32, i32
  }
  func.func @transform_1(%arg0: i32, %arg1: i32, %arg2: i32) -> (i32, i32) {
    %c0_i32 = arith.constant 0 : i32
    return %arg2, %arg1 : i32, i32
  }
  func.func @transform_2(%arg0: i32, %arg1: i32, %arg2: i32) -> (i32, i32) {
    %c0_i32 = arith.constant 0 : i32
    %c0_i32_0 = arith.constant 0 : i32
    return %c0_i32, %arg1 : i32, i32
  }
  func.func @transform_3(%arg0: i32, %arg1: i32, %arg2: i32) -> (i32, i32) {
    %c0_i32 = arith.constant 0 : i32
    %c0_i32_0 = arith.constant 0 : i32
    return %c0_i32, %arg1 : i32, i32
  }
  func.func @transform_4(%arg0: i32, %arg1: i32, %arg2: i32) -> (i32, i32) {
    %c0_i32 = arith.constant 0 : i32
    return %arg0, %arg1 : i32, i32
  }
}

module attributes {stable_mosaic.version = 11 : i64} {
  func.func @_mm_kernel(%arg0: i32, %arg1: i32, %arg2: i32, %arg3: memref<8x32xbf16, #tpu.memory_space<vmem>>, %arg4: memref<32x128xbf16, #tpu.memory_space<vmem>>, %arg5: memref<1x128xf32, #tpu.memory_space<vmem>>, %arg6: memref<1x128xf32, #tpu.memory_space<vmem>>, %arg7: memref<8x128xbf16, #tpu.memory_space<vmem>>, %arg8: memref<8x128xbf16, #tpu.memory_space<vmem>>) attributes {dimension_semantics = [#tpu.dimension_semantics<parallel>, #tpu.dimension_semantics<parallel>, #tpu.dimension_semantics<arbitrary>], iteration_bounds = array<i64: 1, 1, 1>, scalar_prefetch = 0 : i64, scratch_operands = 0 : i64, tpu.core_type = #tpu.core_type<tc>, window_params = [{transform_indices = @transform_0, window_bounds = array<i64: 8, 32>}, {transform_indices = @transform_1, window_bounds = array<i64: 32, 128>}, {transform_indices = @transform_2, window_bounds = array<i64: 1, 128>}, {transform_indices = @transform_3, window_bounds = array<i64: 1, 128>}, {transform_indices = @transform_4, window_bounds = array<i64: 8, 128>}, {transform_indices = @transform_5, window_bounds = array<i64: 8, 128>}]} {
    %c0 = arith.constant 0 : index
    %c0_0 = arith.constant 0 : index
    %0 = vector.load %arg3[%c0, %c0_0] : memref<8x32xbf16, #tpu.memory_space<vmem>>, vector<8x32xbf16>
    %c0_1 = arith.constant 0 : index
    %c0_2 = arith.constant 0 : index
    %1 = vector.load %arg4[%c0_1, %c0_2] : memref<32x128xbf16, #tpu.memory_space<vmem>>, vector<32x128xbf16>
    %cst = arith.constant dense<0.000000e+00> : vector<8x128xf32>
    %2 = tpu.matmul %0, %1, %cst {dimension_numbers = #tpu.dot_dimension_numbers<[1], [0], [0], [1], [0, 0, 1, 1], [], []>} : vector<8x32xbf16>, vector<32x128xbf16>, vector<8x128xf32> -> vector<8x128xf32>
    %c0_3 = arith.constant 0 : index
    %c0_4 = arith.constant 0 : index
    %3 = vector.load %arg5[%c0_3, %c0_4] : memref<1x128xf32, #tpu.memory_space<vmem>>, vector<1x128xf32>
    %4 = vector.broadcast %3 : vector<1x128xf32> to vector<8x128xf32>
    %5 = arith.mulf %2, %4 : vector<8x128xf32>
    %c0_5 = arith.constant 0 : index
    %c0_6 = arith.constant 0 : index
    %6 = vector.load %arg6[%c0_5, %c0_6] : memref<1x128xf32, #tpu.memory_space<vmem>>, vector<1x128xf32>
    %7 = vector.broadcast %6 : vector<1x128xf32> to vector<8x128xf32>
    %8 = arith.addf %5, %7 : vector<8x128xf32>
    %c0_7 = arith.constant 0 : index
    %c0_8 = arith.constant 0 : index
    %9 = vector.load %arg7[%c0_7, %c0_8] : memref<8x128xbf16, #tpu.memory_space<vmem>>, vector<8x128xbf16>
    %10 = arith.extf %9 : vector<8x128xbf16> to vector<8x128xf32>
    %11 = arith.addf %8, %10 : vector<8x128xf32>
    %cst_9 = arith.constant 0.000000e+00 : f32
    %12 = vector.broadcast %cst_9 : f32 to vector<8x128xf32>
    %13 = arith.maximumf %11, %12 : vector<8x128xf32>
    %14 = arith.truncf %13 : vector<8x128xf32> to vector<8x128xbf16>
    %c0_10 = arith.constant 0 : index
    %c0_11 = arith.constant 0 : index
    %15 = vector.load %arg8[%c0_10, %c0_11] : memref<8x128xbf16, #tpu.memory_space<vmem>>, vector<8x128xbf16>
    tpu.vector_store %arg8[%c0_10, %c0_11], %14 {strides = array<i32>} : memref<8x128xbf16, #tpu.memory_space<vmem>>, vector<8x128xbf16>,
    return
  }
  func.func @transform_0(%arg0: i32, %arg1: i32, %arg2: i32) -> (i32, i32) {
    %c0_i32 = arith.constant 0 : i32
    return %arg0, %arg2 : i32, i32
  }
  func.func @transform_1(%arg0: i32, %arg1: i32, %arg2: i32) -> (i32, i32) {
    %c0_i32 = arith.constant 0 : i32
    return %arg2, %arg1 : i32, i32
  }
  func.func @transform_2(%arg0: i32, %arg1: i32, %arg2: i32) -> (i32, i32) {
    %c0_i32 = arith.constant 0 : i32
    %c0_i32_0 = arith.constant 0 : i32
    return %c0_i32, %arg1 : i32, i32
  }
  func.func @transform_3(%arg0: i32, %arg1: i32, %arg2: i32) -> (i32, i32) {
    %c0_i32 = arith.constant 0 : i32
    %c0_i32_0 = arith.constant 0 : i32
    return %c0_i32, %arg1 : i32, i32
  }
  func.func @transform_4(%arg0: i32, %arg1: i32, %arg2: i32) -> (i32, i32) {
    %c0_i32 = arith.constant 0 : i32
    return %arg0, %arg1 : i32, i32
  }
  func.func @transform_5(%arg0: i32, %arg1: i32, %arg2: i32) -> (i32, i32) {
    %c0_i32 = arith.constant 0 : i32
    return %arg0, %arg1 : i32, i32
  }
}

module attributes {stable_mosaic.version = 11 : i64} {
  func.func @_mm_kernel(%arg0: i32, %arg1: i32, %arg2: i32, %arg3: memref<8x128xbf16, #tpu.memory_space<vmem>>, %arg4: memref<128x64xbf16, #tpu.memory_space<vmem>>, %arg5: memref<1x64xf32, #tpu.memory_space<vmem>>, %arg6: memref<1x64xf32, #tpu.memory_space<vmem>>, %arg7: memref<8x64xbf16, #tpu.memory_space<vmem>>) attributes {dimension_semantics = [#tpu.dimension_semantics<parallel>, #tpu.dimension_semantics<parallel>, #tpu.dimension_semantics<arbitrary>], iteration_bounds = array<i64: 1, 1, 1>, scalar_prefetch = 0 : i64, scratch_operands = 0 : i64, tpu.core_type = #tpu.core_type<tc>, window_params = [{transform_indices = @transform_0, window_bounds = array<i64: 8, 128>}, {transform_indices = @transform_1, window_bounds = array<i64: 128, 64>}, {transform_indices = @transform_2, window_bounds = array<i64: 1, 64>}, {transform_indices = @transform_3, window_bounds = array<i64: 1, 64>}, {transform_indices = @transform_4, window_bounds = array<i64: 8, 64>}]} {
    %c0 = arith.constant 0 : index
    %c0_0 = arith.constant 0 : index
    %0 = vector.load %arg3[%c0, %c0_0] : memref<8x128xbf16, #tpu.memory_space<vmem>>, vector<8x128xbf16>
    %c0_1 = arith.constant 0 : index
    %c0_2 = arith.constant 0 : index
    %1 = vector.load %arg4[%c0_1, %c0_2] : memref<128x64xbf16, #tpu.memory_space<vmem>>, vector<128x64xbf16>
    %cst = arith.constant dense<0.000000e+00> : vector<8x64xf32>
    %2 = tpu.matmul %0, %1, %cst {dimension_numbers = #tpu.dot_dimension_numbers<[1], [0], [0], [1], [0, 0, 1, 1], [], []>} : vector<8x128xbf16>, vector<128x64xbf16>, vector<8x64xf32> -> vector<8x64xf32>
    %c0_3 = arith.constant 0 : index
    %c0_4 = arith.constant 0 : index
    %3 = vector.load %arg5[%c0_3, %c0_4] : memref<1x64xf32, #tpu.memory_space<vmem>>, vector<1x64xf32>
    %4 = vector.broadcast %3 : vector<1x64xf32> to vector<8x64xf32>
    %5 = arith.mulf %2, %4 : vector<8x64xf32>
    %c0_5 = arith.constant 0 : index
    %c0_6 = arith.constant 0 : index
    %6 = vector.load %arg6[%c0_5, %c0_6] : memref<1x64xf32, #tpu.memory_space<vmem>>, vector<1x64xf32>
    %7 = vector.broadcast %6 : vector<1x64xf32> to vector<8x64xf32>
    %8 = arith.addf %5, %7 : vector<8x64xf32>
    %cst_7 = arith.constant 0.000000e+00 : f32
    %9 = vector.broadcast %cst_7 : f32 to vector<8x64xf32>
    %10 = arith.maximumf %8, %9 : vector<8x64xf32>
    %11 = arith.truncf %10 : vector<8x64xf32> to vector<8x64xbf16>
    %c0_8 = arith.constant 0 : index
    %c0_9 = arith.constant 0 : index
    %12 = vector.load %arg7[%c0_8, %c0_9] : memref<8x64xbf16, #tpu.memory_space<vmem>>, vector<8x64xbf16>
    tpu.vector_store %arg7[%c0_8, %c0_9], %11 {strides = array<i32>} : memref<8x64xbf16, #tpu.memory_space<vmem>>, vector<8x64xbf16>,
    return
  }
  func.func @transform_0(%arg0: i32, %arg1: i32, %arg2: i32) -> (i32, i32) {
    %c0_i32 = arith.constant 0 : i32
    return %arg0, %arg2 : i32, i32
  }
  func.func @transform_1(%arg0: i32, %arg1: i32, %arg2: i32) -> (i32, i32) {
    %c0_i32 = arith.constant 0 : i32
    return %arg2, %arg1 : i32, i32
  }
  func.func @transform_2(%arg0: i32, %arg1: i32, %arg2: i32) -> (i32, i32) {
    %c0_i32 = arith.constant 0 : i32
    %c0_i32_0 = arith.constant 0 : i32
    return %c0_i32, %arg1 : i32, i32
  }
  func.func @transform_3(%arg0: i32, %arg1: i32, %arg2: i32) -> (i32, i32) {
    %c0_i32 = arith.constant 0 : i32
    %c0_i32_0 = arith.constant 0 : i32
    return %c0_i32, %arg1 : i32, i32
  }
  func.func @transform_4(%arg0: i32, %arg1: i32, %arg2: i32) -> (i32, i32) {
    %c0_i32 = arith.constant 0 : i32
    return %arg0, %arg1 : i32, i32
  }
}

module attributes {stable_mosaic.version = 11 : i64} {
  func.func @_mm_kernel(%arg0: i32, %arg1: i32, %arg2: i32, %arg3: memref<2x576xbf16, #tpu.memory_space<vmem>>, %arg4: memref<576x64xbf16, #tpu.memory_space<vmem>>, %arg5: memref<1x64xf32, #tpu.memory_space<vmem>>, %arg6: memref<1x64xf32, #tpu.memory_space<vmem>>, %arg7: memref<2x64xbf16, #tpu.memory_space<vmem>>) attributes {dimension_semantics = [#tpu.dimension_semantics<parallel>, #tpu.dimension_semantics<parallel>, #tpu.dimension_semantics<arbitrary>], iteration_bounds = array<i64: 1, 1, 1>, scalar_prefetch = 0 : i64, scratch_operands = 0 : i64, tpu.core_type = #tpu.core_type<tc>, window_params = [{transform_indices = @transform_0, window_bounds = array<i64: 2, 576>}, {transform_indices = @transform_1, window_bounds = array<i64: 576, 64>}, {transform_indices = @transform_2, window_bounds = array<i64: 1, 64>}, {transform_indices = @transform_3, window_bounds = array<i64: 1, 64>}, {transform_indices = @transform_4, window_bounds = array<i64: 2, 64>}]} {
    %c0 = arith.constant 0 : index
    %c0_0 = arith.constant 0 : index
    %0 = vector.load %arg3[%c0, %c0_0] : memref<2x576xbf16, #tpu.memory_space<vmem>>, vector<2x576xbf16>
    %c0_1 = arith.constant 0 : index
    %c0_2 = arith.constant 0 : index
    %1 = vector.load %arg4[%c0_1, %c0_2] : memref<576x64xbf16, #tpu.memory_space<vmem>>, vector<576x64xbf16>
    %cst = arith.constant dense<0.000000e+00> : vector<2x64xf32>
    %2 = tpu.matmul %0, %1, %cst {dimension_numbers = #tpu.dot_dimension_numbers<[1], [0], [0], [1], [0, 0, 1, 1], [], []>} : vector<2x576xbf16>, vector<576x64xbf16>, vector<2x64xf32> -> vector<2x64xf32>
    %c0_3 = arith.constant 0 : index
    %c0_4 = arith.constant 0 : index
    %3 = vector.load %arg5[%c0_3, %c0_4] : memref<1x64xf32, #tpu.memory_space<vmem>>, vector<1x64xf32>
    %4 = vector.broadcast %3 : vector<1x64xf32> to vector<2x64xf32>
    %5 = arith.mulf %2, %4 : vector<2x64xf32>
    %c0_5 = arith.constant 0 : index
    %c0_6 = arith.constant 0 : index
    %6 = vector.load %arg6[%c0_5, %c0_6] : memref<1x64xf32, #tpu.memory_space<vmem>>, vector<1x64xf32>
    %7 = vector.broadcast %6 : vector<1x64xf32> to vector<2x64xf32>
    %8 = arith.addf %5, %7 : vector<2x64xf32>
    %cst_7 = arith.constant 0.000000e+00 : f32
    %9 = vector.broadcast %cst_7 : f32 to vector<2x64xf32>
    %10 = arith.maximumf %8, %9 : vector<2x64xf32>
    %11 = arith.truncf %10 : vector<2x64xf32> to vector<2x64xbf16>
    %c0_8 = arith.constant 0 : index
    %c0_9 = arith.constant 0 : index
    %12 = vector.load %arg7[%c0_8, %c0_9] : memref<2x64xbf16, #tpu.memory_space<vmem>>, vector<2x64xbf16>
    tpu.vector_store %arg7[%c0_8, %c0_9], %11 {strides = array<i32>} : memref<2x64xbf16, #tpu.memory_space<vmem>>, vector<2x64xbf16>,
    return
  }
  func.func @transform_0(%arg0: i32, %arg1: i32, %arg2: i32) -> (i32, i32) {
    %c0_i32 = arith.constant 0 : i32
    return %arg0, %arg2 : i32, i32
  }
  func.func @transform_1(%arg0: i32, %arg1: i32, %arg2: i32) -> (i32, i32) {
    %c0_i32 = arith.constant 0 : i32
    return %arg2, %arg1 : i32, i32
  }
  func.func @transform_2(%arg0: i32, %arg1: i32, %arg2: i32) -> (i32, i32) {
    %c0_i32 = arith.constant 0 : i32
    %c0_i32_0 = arith.constant 0 : i32
    return %c0_i32, %arg1 : i32, i32
  }
  func.func @transform_3(%arg0: i32, %arg1: i32, %arg2: i32) -> (i32, i32) {
    %c0_i32 = arith.constant 0 : i32
    %c0_i32_0 = arith.constant 0 : i32
    return %c0_i32, %arg1 : i32, i32
  }
  func.func @transform_4(%arg0: i32, %arg1: i32, %arg2: i32) -> (i32, i32) {
    %c0_i32 = arith.constant 0 : i32
    return %arg0, %arg1 : i32, i32
  }
}

module attributes {stable_mosaic.version = 11 : i64} {
  func.func @_mm_kernel(%arg0: i32, %arg1: i32, %arg2: i32, %arg3: memref<2x128xbf16, #tpu.memory_space<vmem>>, %arg4: memref<128x256xbf16, #tpu.memory_space<vmem>>, %arg5: memref<1x256xf32, #tpu.memory_space<vmem>>, %arg6: memref<1x256xf32, #tpu.memory_space<vmem>>, %arg7: memref<2x256xbf16, #tpu.memory_space<vmem>>) attributes {dimension_semantics = [#tpu.dimension_semantics<parallel>, #tpu.dimension_semantics<parallel>, #tpu.dimension_semantics<arbitrary>], iteration_bounds = array<i64: 1, 1, 1>, scalar_prefetch = 0 : i64, scratch_operands = 0 : i64, tpu.core_type = #tpu.core_type<tc>, window_params = [{transform_indices = @transform_0, window_bounds = array<i64: 2, 128>}, {transform_indices = @transform_1, window_bounds = array<i64: 128, 256>}, {transform_indices = @transform_2, window_bounds = array<i64: 1, 256>}, {transform_indices = @transform_3, window_bounds = array<i64: 1, 256>}, {transform_indices = @transform_4, window_bounds = array<i64: 2, 256>}]} {
    %c0 = arith.constant 0 : index
    %c0_0 = arith.constant 0 : index
    %0 = vector.load %arg3[%c0, %c0_0] : memref<2x128xbf16, #tpu.memory_space<vmem>>, vector<2x128xbf16>
    %c0_1 = arith.constant 0 : index
    %c0_2 = arith.constant 0 : index
    %1 = vector.load %arg4[%c0_1, %c0_2] : memref<128x256xbf16, #tpu.memory_space<vmem>>, vector<128x256xbf16>
    %cst = arith.constant dense<0.000000e+00> : vector<2x256xf32>
    %2 = tpu.matmul %0, %1, %cst {dimension_numbers = #tpu.dot_dimension_numbers<[1], [0], [0], [1], [0, 0, 1, 1], [], []>} : vector<2x128xbf16>, vector<128x256xbf16>, vector<2x256xf32> -> vector<2x256xf32>
    %c0_3 = arith.constant 0 : index
    %c0_4 = arith.constant 0 : index
    %3 = vector.load %arg5[%c0_3, %c0_4] : memref<1x256xf32, #tpu.memory_space<vmem>>, vector<1x256xf32>
    %4 = vector.broadcast %3 : vector<1x256xf32> to vector<2x256xf32>
    %5 = arith.mulf %2, %4 : vector<2x256xf32>
    %c0_5 = arith.constant 0 : index
    %c0_6 = arith.constant 0 : index
    %6 = vector.load %arg6[%c0_5, %c0_6] : memref<1x256xf32, #tpu.memory_space<vmem>>, vector<1x256xf32>
    %7 = vector.broadcast %6 : vector<1x256xf32> to vector<2x256xf32>
    %8 = arith.addf %5, %7 : vector<2x256xf32>
    %9 = arith.truncf %8 : vector<2x256xf32> to vector<2x256xbf16>
    %c0_7 = arith.constant 0 : index
    %c0_8 = arith.constant 0 : index
    %10 = vector.load %arg7[%c0_7, %c0_8] : memref<2x256xbf16, #tpu.memory_space<vmem>>, vector<2x256xbf16>
    tpu.vector_store %arg7[%c0_7, %c0_8], %9 {strides = array<i32>} : memref<2x256xbf16, #tpu.memory_space<vmem>>, vector<2x256xbf16>,
    return
  }
  func.func @transform_0(%arg0: i32, %arg1: i32, %arg2: i32) -> (i32, i32) {
    %c0_i32 = arith.constant 0 : i32
    return %arg0, %arg2 : i32, i32
  }
  func.func @transform_1(%arg0: i32, %arg1: i32, %arg2: i32) -> (i32, i32) {
    %c0_i32 = arith.constant 0 : i32
    return %arg2, %arg1 : i32, i32
  }
  func.func @transform_2(%arg0: i32, %arg1: i32, %arg2: i32) -> (i32, i32) {
    %c0_i32 = arith.constant 0 : i32
    %c0_i32_0 = arith.constant 0 : i32
    return %c0_i32, %arg1 : i32, i32
  }
  func.func @transform_3(%arg0: i32, %arg1: i32, %arg2: i32) -> (i32, i32) {
    %c0_i32 = arith.constant 0 : i32
    %c0_i32_0 = arith.constant 0 : i32
    return %c0_i32, %arg1 : i32, i32
  }
  func.func @transform_4(%arg0: i32, %arg1: i32, %arg2: i32) -> (i32, i32) {
    %c0_i32 = arith.constant 0 : i32
    return %arg0, %arg1 : i32, i32
  }
}

module attributes {stable_mosaic.version = 11 : i64} {
  func.func @_mm_kernel(%arg0: i32, %arg1: i32, %arg2: i32, %arg3: memref<2x64xbf16, #tpu.memory_space<vmem>>, %arg4: memref<64x256xbf16, #tpu.memory_space<vmem>>, %arg5: memref<1x256xf32, #tpu.memory_space<vmem>>, %arg6: memref<1x256xf32, #tpu.memory_space<vmem>>, %arg7: memref<2x256xbf16, #tpu.memory_space<vmem>>, %arg8: memref<2x256xbf16, #tpu.memory_space<vmem>>) attributes {dimension_semantics = [#tpu.dimension_semantics<parallel>, #tpu.dimension_semantics<parallel>, #tpu.dimension_semantics<arbitrary>], iteration_bounds = array<i64: 1, 1, 1>, scalar_prefetch = 0 : i64, scratch_operands = 0 : i64, tpu.core_type = #tpu.core_type<tc>, window_params = [{transform_indices = @transform_0, window_bounds = array<i64: 2, 64>}, {transform_indices = @transform_1, window_bounds = array<i64: 64, 256>}, {transform_indices = @transform_2, window_bounds = array<i64: 1, 256>}, {transform_indices = @transform_3, window_bounds = array<i64: 1, 256>}, {transform_indices = @transform_4, window_bounds = array<i64: 2, 256>}, {transform_indices = @transform_5, window_bounds = array<i64: 2, 256>}]} {
    %c0 = arith.constant 0 : index
    %c0_0 = arith.constant 0 : index
    %0 = vector.load %arg3[%c0, %c0_0] : memref<2x64xbf16, #tpu.memory_space<vmem>>, vector<2x64xbf16>
    %c0_1 = arith.constant 0 : index
    %c0_2 = arith.constant 0 : index
    %1 = vector.load %arg4[%c0_1, %c0_2] : memref<64x256xbf16, #tpu.memory_space<vmem>>, vector<64x256xbf16>
    %cst = arith.constant dense<0.000000e+00> : vector<2x256xf32>
    %2 = tpu.matmul %0, %1, %cst {dimension_numbers = #tpu.dot_dimension_numbers<[1], [0], [0], [1], [0, 0, 1, 1], [], []>} : vector<2x64xbf16>, vector<64x256xbf16>, vector<2x256xf32> -> vector<2x256xf32>
    %c0_3 = arith.constant 0 : index
    %c0_4 = arith.constant 0 : index
    %3 = vector.load %arg5[%c0_3, %c0_4] : memref<1x256xf32, #tpu.memory_space<vmem>>, vector<1x256xf32>
    %4 = vector.broadcast %3 : vector<1x256xf32> to vector<2x256xf32>
    %5 = arith.mulf %2, %4 : vector<2x256xf32>
    %c0_5 = arith.constant 0 : index
    %c0_6 = arith.constant 0 : index
    %6 = vector.load %arg6[%c0_5, %c0_6] : memref<1x256xf32, #tpu.memory_space<vmem>>, vector<1x256xf32>
    %7 = vector.broadcast %6 : vector<1x256xf32> to vector<2x256xf32>
    %8 = arith.addf %5, %7 : vector<2x256xf32>
    %c0_7 = arith.constant 0 : index
    %c0_8 = arith.constant 0 : index
    %9 = vector.load %arg7[%c0_7, %c0_8] : memref<2x256xbf16, #tpu.memory_space<vmem>>, vector<2x256xbf16>
    %10 = arith.extf %9 : vector<2x256xbf16> to vector<2x256xf32>
    %11 = arith.addf %8, %10 : vector<2x256xf32>
    %cst_9 = arith.constant 0.000000e+00 : f32
    %12 = vector.broadcast %cst_9 : f32 to vector<2x256xf32>
    %13 = arith.maximumf %11, %12 : vector<2x256xf32>
    %14 = arith.truncf %13 : vector<2x256xf32> to vector<2x256xbf16>
    %c0_10 = arith.constant 0 : index
    %c0_11 = arith.constant 0 : index
    %15 = vector.load %arg8[%c0_10, %c0_11] : memref<2x256xbf16, #tpu.memory_space<vmem>>, vector<2x256xbf16>
    tpu.vector_store %arg8[%c0_10, %c0_11], %14 {strides = array<i32>} : memref<2x256xbf16, #tpu.memory_space<vmem>>, vector<2x256xbf16>,
    return
  }
  func.func @transform_0(%arg0: i32, %arg1: i32, %arg2: i32) -> (i32, i32) {
    %c0_i32 = arith.constant 0 : i32
    return %arg0, %arg2 : i32, i32
  }
  func.func @transform_1(%arg0: i32, %arg1: i32, %arg2: i32) -> (i32, i32) {
    %c0_i32 = arith.constant 0 : i32
    return %arg2, %arg1 : i32, i32
  }
  func.func @transform_2(%arg0: i32, %arg1: i32, %arg2: i32) -> (i32, i32) {
    %c0_i32 = arith.constant 0 : i32
    %c0_i32_0 = arith.constant 0 : i32
    return %c0_i32, %arg1 : i32, i32
  }
  func.func @transform_3(%arg0: i32, %arg1: i32, %arg2: i32) -> (i32, i32) {
    %c0_i32 = arith.constant 0 : i32
    %c0_i32_0 = arith.constant 0 : i32
    return %c0_i32, %arg1 : i32, i32
  }
  func.func @transform_4(%arg0: i32, %arg1: i32, %arg2: i32) -> (i32, i32) {
    %c0_i32 = arith.constant 0 : i32
    return %arg0, %arg1 : i32, i32
  }
  func.func @transform_5(%arg0: i32, %arg1: i32, %arg2: i32) -> (i32, i32) {
    %c0_i32 = arith.constant 0 : i32
    return %arg0, %arg1 : i32, i32
  }
}

module attributes {stable_mosaic.version = 11 : i64} {
  func.func @_mm_kernel(%arg0: i32, %arg1: i32, %arg2: i32, %arg3: memref<2x256xbf16, #tpu.memory_space<vmem>>, %arg4: memref<256x64xbf16, #tpu.memory_space<vmem>>, %arg5: memref<1x64xf32, #tpu.memory_space<vmem>>, %arg6: memref<1x64xf32, #tpu.memory_space<vmem>>, %arg7: memref<2x64xbf16, #tpu.memory_space<vmem>>) attributes {dimension_semantics = [#tpu.dimension_semantics<parallel>, #tpu.dimension_semantics<parallel>, #tpu.dimension_semantics<arbitrary>], iteration_bounds = array<i64: 1, 1, 1>, scalar_prefetch = 0 : i64, scratch_operands = 0 : i64, tpu.core_type = #tpu.core_type<tc>, window_params = [{transform_indices = @transform_0, window_bounds = array<i64: 2, 256>}, {transform_indices = @transform_1, window_bounds = array<i64: 256, 64>}, {transform_indices = @transform_2, window_bounds = array<i64: 1, 64>}, {transform_indices = @transform_3, window_bounds = array<i64: 1, 64>}, {transform_indices = @transform_4, window_bounds = array<i64: 2, 64>}]} {
    %c0 = arith.constant 0 : index
    %c0_0 = arith.constant 0 : index
    %0 = vector.load %arg3[%c0, %c0_0] : memref<2x256xbf16, #tpu.memory_space<vmem>>, vector<2x256xbf16>
    %c0_1 = arith.constant 0 : index
    %c0_2 = arith.constant 0 : index
    %1 = vector.load %arg4[%c0_1, %c0_2] : memref<256x64xbf16, #tpu.memory_space<vmem>>, vector<256x64xbf16>
    %cst = arith.constant dense<0.000000e+00> : vector<2x64xf32>
    %2 = tpu.matmul %0, %1, %cst {dimension_numbers = #tpu.dot_dimension_numbers<[1], [0], [0], [1], [0, 0, 1, 1], [], []>} : vector<2x256xbf16>, vector<256x64xbf16>, vector<2x64xf32> -> vector<2x64xf32>
    %c0_3 = arith.constant 0 : index
    %c0_4 = arith.constant 0 : index
    %3 = vector.load %arg5[%c0_3, %c0_4] : memref<1x64xf32, #tpu.memory_space<vmem>>, vector<1x64xf32>
    %4 = vector.broadcast %3 : vector<1x64xf32> to vector<2x64xf32>
    %5 = arith.mulf %2, %4 : vector<2x64xf32>
    %c0_5 = arith.constant 0 : index
    %c0_6 = arith.constant 0 : index
    %6 = vector.load %arg6[%c0_5, %c0_6] : memref<1x64xf32, #tpu.memory_space<vmem>>, vector<1x64xf32>
    %7 = vector.broadcast %6 : vector<1x64xf32> to vector<2x64xf32>
    %8 = arith.addf %5, %7 : vector<2x64xf32>
    %cst_7 = arith.constant 0.000000e+00 : f32
    %9 = vector.broadcast %cst_7 : f32 to vector<2x64xf32>
    %10 = arith.maximumf %8, %9 : vector<2x64xf32>
    %11 = arith.truncf %10 : vector<2x64xf32> to vector<2x64xbf16>
    %c0_8 = arith.constant 0 : index
    %c0_9 = arith.constant 0 : index
    %12 = vector.load %arg7[%c0_8, %c0_9] : memref<2x64xbf16, #tpu.memory_space<vmem>>, vector<2x64xbf16>
    tpu.vector_store %arg7[%c0_8, %c0_9], %11 {strides = array<i32>} : memref<2x64xbf16, #tpu.memory_space<vmem>>, vector<2x64xbf16>,
    return
  }
  func.func @transform_0(%arg0: i32, %arg1: i32, %arg2: i32) -> (i32, i32) {
    %c0_i32 = arith.constant 0 : i32
    return %arg0, %arg2 : i32, i32
  }
  func.func @transform_1(%arg0: i32, %arg1: i32, %arg2: i32) -> (i32, i32) {
    %c0_i32 = arith.constant 0 : i32
    return %arg2, %arg1 : i32, i32
  }
  func.func @transform_2(%arg0: i32, %arg1: i32, %arg2: i32) -> (i32, i32) {
    %c0_i32 = arith.constant 0 : i32
    %c0_i32_0 = arith.constant 0 : i32
    return %c0_i32, %arg1 : i32, i32
  }
  func.func @transform_3(%arg0: i32, %arg1: i32, %arg2: i32) -> (i32, i32) {
    %c0_i32 = arith.constant 0 : i32
    %c0_i32_0 = arith.constant 0 : i32
    return %c0_i32, %arg1 : i32, i32
  }
  func.func @transform_4(%arg0: i32, %arg1: i32, %arg2: i32) -> (i32, i32) {
    %c0_i32 = arith.constant 0 : i32
    return %arg0, %arg1 : i32, i32
  }
}

module attributes {stable_mosaic.version = 11 : i64} {
  func.func @_avgpool_kernel(%arg0: memref<2x1x256xbf16, #tpu.memory_space<vmem>>, %arg1: memref<2x256xf32, #tpu.memory_space<vmem>>) attributes {dimension_semantics = [], scalar_prefetch = 0 : i64, scratch_operands = 0 : i64, tpu.core_type = #tpu.core_type<tc>} {
    %c0 = arith.constant 0 : index
    %c0_0 = arith.constant 0 : index
    %c0_1 = arith.constant 0 : index
    %0 = vector.load %arg0[%c0, %c0_0, %c0_1] : memref<2x1x256xbf16, #tpu.memory_space<vmem>>, vector<2x1x256xbf16>
    %1 = arith.extf %0 : vector<2x1x256xbf16> to vector<2x1x256xf32>
    %cst = arith.constant dense<0.000000e+00> : vector<2x256xf32>
    %2 = vector.multi_reduction <add>, %1, %cst [1] : vector<2x1x256xf32> to vector<2x256xf32>
    %cst_2 = arith.constant 1.000000e+00 : f32
    %3 = vector.broadcast %cst_2 : f32 to vector<2x256xf32>
    %4 = arith.mulf %2, %3 : vector<2x256xf32>
    %c0_3 = arith.constant 0 : index
    %c0_4 = arith.constant 0 : index
    %5 = vector.load %arg1[%c0_3, %c0_4] : memref<2x256xf32, #tpu.memory_space<vmem>>, vector<2x256xf32>
    tpu.vector_store %arg1[%c0_3, %c0_4], %4 {strides = array<i32>} : memref<2x256xf32, #tpu.memory_space<vmem>>, vector<2x256xf32>,
    return
  }
}

module attributes {stable_mosaic.version = 11 : i64} {
  func.func @_mm_kernel(%arg0: i32, %arg1: i32, %arg2: i32, %arg3: memref<2x576xbf16, #tpu.memory_space<vmem>>, %arg4: memref<576x64xbf16, #tpu.memory_space<vmem>>, %arg5: memref<1x64xf32, #tpu.memory_space<vmem>>, %arg6: memref<1x64xf32, #tpu.memory_space<vmem>>, %arg7: memref<2x64xbf16, #tpu.memory_space<vmem>>) attributes {dimension_semantics = [#tpu.dimension_semantics<parallel>, #tpu.dimension_semantics<parallel>, #tpu.dimension_semantics<arbitrary>], iteration_bounds = array<i64: 1, 1, 1>, scalar_prefetch = 0 : i64, scratch_operands = 0 : i64, tpu.core_type = #tpu.core_type<tc>, window_params = [{transform_indices = @transform_0, window_bounds = array<i64: 2, 576>}, {transform_indices = @transform_1, window_bounds = array<i64: 576, 64>}, {transform_indices = @transform_2, window_bounds = array<i64: 1, 64>}, {transform_indices = @transform_3, window_bounds = array<i64: 1, 64>}, {transform_indices = @transform_4, window_bounds = array<i64: 2, 64>}]} {
    %c0 = arith.constant 0 : index
    %c0_0 = arith.constant 0 : index
    %0 = vector.load %arg3[%c0, %c0_0] : memref<2x576xbf16, #tpu.memory_space<vmem>>, vector<2x576xbf16>
    %c0_1 = arith.constant 0 : index
    %c0_2 = arith.constant 0 : index
    %1 = vector.load %arg4[%c0_1, %c0_2] : memref<576x64xbf16, #tpu.memory_space<vmem>>, vector<576x64xbf16>
    %cst = arith.constant dense<0.000000e+00> : vector<2x64xf32>
    %2 = tpu.matmul %0, %1, %cst {dimension_numbers = #tpu.dot_dimension_numbers<[1], [0], [0], [1], [0, 0, 1, 1], [], []>} : vector<2x576xbf16>, vector<576x64xbf16>, vector<2x64xf32> -> vector<2x64xf32>
    %c0_3 = arith.constant 0 : index
    %c0_4 = arith.constant 0 : index
    %3 = vector.load %arg5[%c0_3, %c0_4] : memref<1x64xf32, #tpu.memory_space<vmem>>, vector<1x64xf32>
    %4 = vector.broadcast %3 : vector<1x64xf32> to vector<2x64xf32>
    %5 = arith.mulf %2, %4 : vector<2x64xf32>
    %c0_5 = arith.constant 0 : index
    %c0_6 = arith.constant 0 : index
    %6 = vector.load %arg6[%c0_5, %c0_6] : memref<1x64xf32, #tpu.memory_space<vmem>>, vector<1x64xf32>
    %7 = vector.broadcast %6 : vector<1x64xf32> to vector<2x64xf32>
    %8 = arith.addf %5, %7 : vector<2x64xf32>
    %cst_7 = arith.constant 0.000000e+00 : f32
    %9 = vector.broadcast %cst_7 : f32 to vector<2x64xf32>
    %10 = arith.maximumf %8, %9 : vector<2x64xf32>
    %11 = arith.truncf %10 : vector<2x64xf32> to vector<2x64xbf16>
    %c0_8 = arith.constant 0 : index
    %c0_9 = arith.constant 0 : index
    %12 = vector.load %arg7[%c0_8, %c0_9] : memref<2x64xbf16, #tpu.memory_space<vmem>>, vector<2x64xbf16>
    tpu.vector_store %arg7[%c0_8, %c0_9], %11 {strides = array<i32>} : memref<2x64xbf16, #tpu.memory_space<vmem>>, vector<2x64xbf16>,
    return
  }
  func.func @transform_0(%arg0: i32, %arg1: i32, %arg2: i32) -> (i32, i32) {
    %c0_i32 = arith.constant 0 : i32
    return %arg0, %arg2 : i32, i32
  }
  func.func @transform_1(%arg0: i32, %arg1: i32, %arg2: i32) -> (i32, i32) {
    %c0_i32 = arith.constant 0 : i32
    return %arg2, %arg1 : i32, i32
  }
  func.func @transform_2(%arg0: i32, %arg1: i32, %arg2: i32) -> (i32, i32) {
    %c0_i32 = arith.constant 0 : i32
    %c0_i32_0 = arith.constant 0 : i32
    return %c0_i32, %arg1 : i32, i32
  }
  func.func @transform_3(%arg0: i32, %arg1: i32, %arg2: i32) -> (i32, i32) {
    %c0_i32 = arith.constant 0 : i32
    %c0_i32_0 = arith.constant 0 : i32
    return %c0_i32, %arg1 : i32, i32
  }
  func.func @transform_4(%arg0: i32, %arg1: i32, %arg2: i32) -> (i32, i32) {
    %c0_i32 = arith.constant 0 : i32
    return %arg0, %arg1 : i32, i32
  }
}

module attributes {stable_mosaic.version = 11 : i64} {
  func.func @_mm_kernel(%arg0: i32, %arg1: i32, %arg2: i32, %arg3: memref<2x256xbf16, #tpu.memory_space<vmem>>, %arg4: memref<256x32xbf16, #tpu.memory_space<vmem>>, %arg5: memref<1x32xf32, #tpu.memory_space<vmem>>, %arg6: memref<1x32xf32, #tpu.memory_space<vmem>>, %arg7: memref<2x32xf32, #tpu.memory_space<vmem>>) attributes {dimension_semantics = [#tpu.dimension_semantics<parallel>, #tpu.dimension_semantics<parallel>, #tpu.dimension_semantics<arbitrary>], iteration_bounds = array<i64: 1, 1, 1>, scalar_prefetch = 0 : i64, scratch_operands = 0 : i64, tpu.core_type = #tpu.core_type<tc>, window_params = [{transform_indices = @transform_0, window_bounds = array<i64: 2, 256>}, {transform_indices = @transform_1, window_bounds = array<i64: 256, 32>}, {transform_indices = @transform_2, window_bounds = array<i64: 1, 32>}, {transform_indices = @transform_3, window_bounds = array<i64: 1, 32>}, {transform_indices = @transform_4, window_bounds = array<i64: 2, 32>}]} {
    %c0 = arith.constant 0 : index
    %c0_0 = arith.constant 0 : index
    %0 = vector.load %arg3[%c0, %c0_0] : memref<2x256xbf16, #tpu.memory_space<vmem>>, vector<2x256xbf16>
    %c0_1 = arith.constant 0 : index
    %c0_2 = arith.constant 0 : index
    %1 = vector.load %arg4[%c0_1, %c0_2] : memref<256x32xbf16, #tpu.memory_space<vmem>>, vector<256x32xbf16>
    %cst = arith.constant dense<0.000000e+00> : vector<2x32xf32>
    %2 = tpu.matmul %0, %1, %cst {dimension_numbers = #tpu.dot_dimension_numbers<[1], [0], [0], [1], [0, 0, 1, 1], [], []>} : vector<2x256xbf16>, vector<256x32xbf16>, vector<2x32xf32> -> vector<2x32xf32>
    %c0_3 = arith.constant 0 : index
    %c0_4 = arith.constant 0 : index
    %3 = vector.load %arg5[%c0_3, %c0_4] : memref<1x32xf32, #tpu.memory_space<vmem>>, vector<1x32xf32>
    %4 = vector.broadcast %3 : vector<1x32xf32> to vector<2x32xf32>
    %5 = arith.mulf %2, %4 : vector<2x32xf32>
    %c0_5 = arith.constant 0 : index
    %c0_6 = arith.constant 0 : index
    %6 = vector.load %arg6[%c0_5, %c0_6] : memref<1x32xf32, #tpu.memory_space<vmem>>, vector<1x32xf32>
    %7 = vector.broadcast %6 : vector<1x32xf32> to vector<2x32xf32>
    %8 = arith.addf %5, %7 : vector<2x32xf32>
    %c0_7 = arith.constant 0 : index
    %c0_8 = arith.constant 0 : index
    %9 = vector.load %arg7[%c0_7, %c0_8] : memref<2x32xf32, #tpu.memory_space<vmem>>, vector<2x32xf32>
    tpu.vector_store %arg7[%c0_7, %c0_8], %8 {strides = array<i32>} : memref<2x32xf32, #tpu.memory_space<vmem>>, vector<2x32xf32>,
    return
  }
  func.func @transform_0(%arg0: i32, %arg1: i32, %arg2: i32) -> (i32, i32) {
    %c0_i32 = arith.constant 0 : i32
    return %arg0, %arg2 : i32, i32
  }
  func.func @transform_1(%arg0: i32, %arg1: i32, %arg2: i32) -> (i32, i32) {
    %c0_i32 = arith.constant 0 : i32
    return %arg2, %arg1 : i32, i32
  }
  func.func @transform_2(%arg0: i32, %arg1: i32, %arg2: i32) -> (i32, i32) {
    %c0_i32 = arith.constant 0 : i32
    %c0_i32_0 = arith.constant 0 : i32
    return %c0_i32, %arg1 : i32, i32
  }
  func.func @transform_3(%arg0: i32, %arg1: i32, %arg2: i32) -> (i32, i32) {
    %c0_i32 = arith.constant 0 : i32
    %c0_i32_0 = arith.constant 0 : i32
    return %c0_i32, %arg1 : i32, i32
  }
  func.func @transform_4(%arg0: i32, %arg1: i32, %arg2: i32) -> (i32, i32) {
    %c0_i32 = arith.constant 0 : i32
    return %arg0, %arg1 : i32, i32
  }
}

</mosaic_0001>

<bundles_post_ra>
// kernel: _lambda_.58
= control target key start
LH: loop header
LB: loop body
LE: loop exit
PB: predicated region body
PF: predicated region fallthrough
CT: control target
= control target key end

     0   :  { %v1730_v0 = vmov 0   ;;  %vm446_vm0 = vcmask 195584   ;;  %vm543_vm1 = vcmask 1043456   ;;  %vm1298_vm2 = vcmask 60416   ;;  %s2404_s1 = inlined_call_operand.vmem [shape: bf16[152,8], index: 1, kind: input, shape index: {}]   ;;  %s2405_s0 = inlined_call_operand.vmem [shape: bf16[512,152], index: 0, kind: input, shape index: {}]   ;;  %s2406_s2 = inlined_call_operand.vmem [shape: f32[1,8], index: 2, kind: input, shape index: {}]   ;;  %s2407_s3 = inlined_call_operand.vmem [shape: f32[1,8], index: 3, kind: input, shape index: {}]   ;;  %s2408_s4 = inlined_call_operand.vmem [shape: bf16[512,8], index: 4, kind: output, shape index: {}]  }
   0x1   :  { %547 = vmatprep.subr.bf16.mxu0 %v1730_v0  ;;  %1603 = vmatprep.subr.bf16.mxu1 %v1730_v0  ;;  %v1624_v1 = vld [vmem:[%s2404_s1 + $0x38] sm:$0xff]   ;;  %v1625_v2 = vld [vmem:[%s2404_s1 + $0x30] sm:$0xff]   ;;  %v1626_v3 = vld [vmem:[%s2404_s1 + $0x28] sm:$0xff]  }
   0x2   :  { %548 = vmatpush1.bf16.msra.mxu0 %v1624_v1  ;;  %1613 = vmatpush1.bf16.msra.mxu1 %v1624_v1  ;;  %v1627_v4 = vld [vmem:[%s2404_s1 + $0x20] sm:$0xff]   ;;  %v1628_v7 = vld [vmem:[%s2404_s1 + $0x18] sm:$0xff]   ;;  %v1629_v8 = vld [vmem:[%s2404_s1 + $0x10] sm:$0xff]  }
   0x3   :  { %549 = vmatprep.subr.bf16.mxu0 %v1730_v0  ;;  %1604 = vmatprep.subr.bf16.mxu1 %v1730_v0  ;;  %v1636_v5 = vld [vmem:[%s2405_s0 + $0x4] ss:$8 sps:$4 sm:$0xff]   ;;  %v1632_v11 = vld [vmem:[%s2404_s1 + $0x48] ss:$0 sps:$4 sm:$0xff]   ;;  %v1640_v16 = vld [vmem:[%s2405_s0 + $0x14] ss:$8 sps:$4 sm:$0xff]  }
   0x4   :  { %1441 = vmatprep.mubr.msk.bf16.mxu0 %vm446_vm0, %v1636_v5  ;;  %v1639_v6 = vld [vmem:[%s2405_s0 + $0x104] ss:$8 sps:$4 sm:$0xff]   ;;  %v545_v12 = vsel %vm543_vm1, %v1632_v11, 0  ;;  %v1634_v14 = vld [vmem:[%s2405_s0] ss:$8 sps:$4 sm:$0xff]  }
   0x5   :  { %1457 = vmatprep.mubr.msk.bf16.mxu1 %vm446_vm0, %v1639_v6  ;;  %v1630_v9 = vld [vmem:[%s2404_s1 + $0x8] sm:$0xff]   ;;  %v1631_v10 = vld [vmem:[%s2404_s1] sm:$0xff]   ;;  %v1642_v17 = vld [vmem:[%s2405_s0 + $0x114] ss:$8 sps:$4 sm:$0xff]  }
   0x6   :  { %550 = vmatpush1.bf16.msra.mxu0 %v1625_v2  ;;  %1614 = vmatpush1.bf16.msra.mxu1 %v1625_v2  ;;  %v1633_v13 = vld [vmem:[%s2404_s1 + $0x40] sm:$0xff]   ;;  %v1644_v18 = vld [vmem:[%s2405_s0 + $0x10] ss:$8 sps:$4 sm:$0xff]   ;;  %v1652_v24 = vld [vmem:[%s2405_s0 + $0x34] ss:$8 sps:$4 sm:$0xff]  }
   0x7   :  { %551 = vmatprep.subr.bf16.mxu0 %v1730_v0  ;;  %1605 = vmatprep.subr.bf16.mxu1 %v1730_v0  ;;  %v1637_v15 = vld [vmem:[%s2405_s0 + $0x100] ss:$8 sps:$4 sm:$0xff]   ;;  %v1645_v19 = vld [vmem:[%s2405_s0 + $0x110] ss:$8 sps:$4 sm:$0xff]   ;;  %v1646_v20 = vld [vmem:[%s2405_s0 + $0x24] ss:$8 sps:$4 sm:$0xff]  }
   0x8   :  { %v1648_v21 = vld [vmem:[%s2405_s0 + $0x124] ss:$8 sps:$4 sm:$0xff]   ;;  %v1650_v22 = vld [vmem:[%s2405_s0 + $0x20] ss:$8 sps:$4 sm:$0xff]   ;;  %v1654_v25 = vld [vmem:[%s2405_s0 + $0x134] ss:$8 sps:$4 sm:$0xff]  }
   0x9   :  { %v1651_v23 = vld [vmem:[%s2405_s0 + $0x120] ss:$8 sps:$4 sm:$0xff]   ;;  %v1656_v26 = vld [vmem:[%s2405_s0 + $0x30] ss:$8 sps:$4 sm:$0xff]   ;;  %v1658_v28 = vld [vmem:[%s2405_s0 + $0x44] ss:$8 sps:$4 sm:$0xff]  }
   0xa   :  { %552 = vmatpush1.bf16.msra.mxu0 %v1626_v3  ;;  %1615 = vmatpush1.bf16.msra.mxu1 %v1626_v3  ;;  %v1657_v27 = vld [vmem:[%s2405_s0 + $0x130] ss:$8 sps:$4 sm:$0xff]   ;;  %v1660_v29 = vld [vmem:[%s2405_s0 + $0x144] ss:$8 sps:$4 sm:$0xff]   ;;  %v1662_v30 = vld [vmem:[%s2405_s0 + $0x40] ss:$8 sps:$4 sm:$0xff]  }
   0xb   :  { %553 = vmatprep.subr.bf16.mxu0 %v1730_v0  ;;  %1606 = vmatprep.subr.bf16.mxu1 %v1730_v0  ;;  %v1663_v31 = vld [vmem:[%s2405_s0 + $0x140] ss:$8 sps:$4 sm:$0xff]   ;;  %v1664_v32 = vld [vmem:[%s2405_s0 + $0x54] ss:$8 sps:$4 sm:$0xff]   ;;  %v1668_v34 = vld [vmem:[%s2405_s0 + $0x50] ss:$8 sps:$4 sm:$0xff]  }
   0xc   :  { %v1666_v33 = vld [vmem:[%s2405_s0 + $0x154] ss:$8 sps:$4 sm:$0xff]   ;;  %v1669_v35 = vld [vmem:[%s2405_s0 + $0x150] ss:$8 sps:$4 sm:$0xff]   ;;  %v1670_v36 = vld [vmem:[%s2405_s0 + $0x64] ss:$8 sps:$4 sm:$0xff]  }
   0xd   :  { %v1672_v37 = vld [vmem:[%s2405_s0 + $0x164] ss:$8 sps:$4 sm:$0xff]   ;;  %v1674_v38 = vld [vmem:[%s2405_s0 + $0x60] ss:$8 sps:$4 sm:$0xff]   ;;  %v1676_v40 = vld [vmem:[%s2405_s0 + $0x74] ss:$8 sps:$4 sm:$0xff]  }
   0xe   :  { %554 = vmatpush1.bf16.msra.mxu0 %v1627_v4  ;;  %1616 = vmatpush1.bf16.msra.mxu1 %v1627_v4  ;;  %v1675_v39 = vld [vmem:[%s2405_s0 + $0x160] ss:$8 sps:$4 sm:$0xff]   ;;  %v1678_v41 = vld [vmem:[%s2405_s0 + $0x174] ss:$8 sps:$4 sm:$0xff]   ;;  %v1680_v42 = vld [vmem:[%s2405_s0 + $0x70] ss:$8 sps:$4 sm:$0xff]  }
   0xf   :  { %555 = vmatprep.subr.bf16.mxu0 %v1730_v0  ;;  %1607 = vmatprep.subr.bf16.mxu1 %v1730_v0  ;;  %v1681_v43 = vld [vmem:[%s2405_s0 + $0x170] ss:$8 sps:$4 sm:$0xff]   ;;  %v1682_v44 = vld [vmem:[%s2405_s0 + $0x84] ss:$8 sps:$4 sm:$0xff]   ;;  %v1686_v46 = vld [vmem:[%s2405_s0 + $0x80] ss:$8 sps:$4 sm:$0xff]  }
  0x10   :  { %v1684_v45 = vld [vmem:[%s2405_s0 + $0x184] ss:$8 sps:$4 sm:$0xff]   ;;  %v1687_v47 = vld [vmem:[%s2405_s0 + $0x180] ss:$8 sps:$4 sm:$0xff]   ;;  %v1688_v48 = vld [vmem:[%s2405_s0 + $0x94] ss:$8 sps:$4 sm:$0xff]  }
  0x11   :  { %v1690_v49 = vld [vmem:[%s2405_s0 + $0x194] ss:$8 sps:$4 sm:$0xff]   ;;  %v1692_v50 = vld [vmem:[%s2405_s0 + $0x90] ss:$8 sps:$4 sm:$0xff]   ;;  %v1694_v52 = vld [vmem:[%s2405_s0 + $0xa4] ss:$8 sps:$4 sm:$0xff]  }
  0x12   :  { %556 = vmatpush1.bf16.msra.mxu0 %v1628_v7  ;;  %1617 = vmatpush1.bf16.msra.mxu1 %v1628_v7  ;;  %v1693_v51 = vld [vmem:[%s2405_s0 + $0x190] ss:$8 sps:$4 sm:$0xff]   ;;  %v1696_v53 = vld [vmem:[%s2405_s0 + $0x1a4] ss:$8 sps:$4 sm:$0xff]   ;;  %v1698_v54 = vld [vmem:[%s2405_s0 + $0xa0] ss:$8 sps:$4 sm:$0xff]  }
  0x13   :  { %557 = vmatprep.subr.bf16.mxu0 %v1730_v0  ;;  %1608 = vmatprep.subr.bf16.mxu1 %v1730_v0  ;;  %v1699_v55 = vld [vmem:[%s2405_s0 + $0x1a0] ss:$8 sps:$4 sm:$0xff]   ;;  %v1700_v56 = vld [vmem:[%s2405_s0 + $0xb4] ss:$8 sps:$4 sm:$0xff]   ;;  %v1704_v58 = vld [vmem:[%s2405_s0 + $0xb0] ss:$8 sps:$4 sm:$0xff]  }
  0x14   :  { %v1702_v57 = vld [vmem:[%s2405_s0 + $0x1b4] ss:$8 sps:$4 sm:$0xff]   ;;  %v1705_v59 = vld [vmem:[%s2405_s0 + $0x1b0] ss:$8 sps:$4 sm:$0xff]   ;;  %v1706_v60 = vld [vmem:[%s2405_s0 + $0xc4] ss:$8 sps:$4 sm:$0xff]  }
  0x15   :  { %v1708_v61 = vld [vmem:[%s2405_s0 + $0x1c4] ss:$8 sps:$4 sm:$0xff]   ;;  %v1710_v62 = vld [vmem:[%s2405_s0 + $0xc0] ss:$8 sps:$4 sm:$0xff]   ;;  %v1714_v1 = vld [vmem:[%s2405_s0 + $0x1d4] ss:$8 sps:$4 sm:$0xff]  }
  0x16   :  { %558 = vmatpush1.bf16.msra.mxu0 %v1629_v8  ;;  %1618 = vmatpush1.bf16.msra.mxu1 %v1629_v8  ;;  %v1711_v63 = vld [vmem:[%s2405_s0 + $0x1c0] ss:$8 sps:$4 sm:$0xff]   ;;  %v1716_v2 = vld [vmem:[%s2405_s0 + $0xd0] ss:$8 sps:$4 sm:$0xff]   ;;  %v1718_v4 = vld [vmem:[%s2405_s0 + $0xe4] ss:$8 sps:$4 sm:$0xff]  }
  0x17   :  { %559 = vmatprep.subr.bf16.mxu0 %v1730_v0  ;;  %1609 = vmatprep.subr.bf16.mxu1 %v1730_v0  ;;  %v1717_v3 = vld [vmem:[%s2405_s0 + $0x1d0] ss:$8 sps:$4 sm:$0xff]   ;;  %v1720_v5 = vld [vmem:[%s2405_s0 + $0x1e4] ss:$8 sps:$4 sm:$0xff]   ;;  %v1722_v6 = vld [vmem:[%s2405_s0 + $0xe0] ss:$8 sps:$4 sm:$0xff]  }
  0x18   :  { %v1723_v7 = vld [vmem:[%s2405_s0 + $0x1e0] ss:$8 sps:$4 sm:$0xff]   ;;  %v1724_v8 = vld [vmem:[%s2405_s0 + $0xf4] ss:$8 sps:$4 sm:$0xff]   ;;  %v1729_v11 = vld [vmem:[%s2405_s0 + $0x1f0] ss:$8 sps:$4 sm:$0xff]  }
  0x1a   :  { %560 = vmatpush1.bf16.msra.mxu0 %v1630_v9  ;;  %1619 = vmatpush1.bf16.msra.mxu1 %v1630_v9  ;;  %v1726_v9 = vld [vmem:[%s2405_s0 + $0x1f4] ss:$8 sps:$4 sm:$0xff]  }
  0x1b   :  { %561 = vmatprep.subr.bf16.mxu0 %v1730_v0  ;;  %1610 = vmatprep.subr.bf16.mxu1 %v1730_v0 }
  0x1e   :  { %562 = vmatpush1.bf16.msra.mxu0 %v1631_v10  ;;  %1620 = vmatpush1.bf16.msra.mxu1 %v1631_v10  ;;  %v1728_v10 = vld [vmem:[%s2405_s0 + $0xf0] ss:$8 sps:$4 sm:$0xff]  }
  0x1f   :  { %575 = vmatprep.subr.bf16.mxu0 %v1730_v0  ;;  %1611 = vmatprep.subr.bf16.mxu1 %v1730_v0 }
  0x22   :  { %576 = vmatpush2.bf16.msra.mxu0 %v545_v12  ;;  %1621 = vmatpush2.bf16.msra.mxu1 %v545_v12  ;;  %v2013_v12 = vld [vmem:[%s2406_s2] ss:$0 sm:$0xff] }
  0x23   :  { %577 = vmatprep.subr.bf16.mxu0 %v1730_v0  ;;  %1612 = vmatprep.subr.bf16.mxu1 %v1730_v0  ;;  %v1712_v0 = vld [vmem:[%s2405_s0 + $0xd4] ss:$8 sps:$4 sm:$0xff]  }
  0x26   :  { %578 = vmatpush2.bf16.msra.mxu0 %v1633_v13  ;;  %1622 = vmatpush2.bf16.msra.mxu1 %v1633_v13 }
  0x29   :  { %580 = vmatmul.mubr.bf16.vlgmr.msra.gmra.mxu0 %v1634_v14  ;;  %708 = vmatmul.mubr.bf16.vlgmr.msra.gmra.mxu1 %v1637_v15  ;;  %v2018_v14 = vld [vmem:[%s2407_s3] ss:$0 sm:$0xff] }
  0x2a   :  { %1442 = vmatprep.mubr.msk.bf16.mxu0 %vm446_vm0, %v1640_v16  ;;  %1458 = vmatprep.mubr.msk.bf16.mxu1 %vm446_vm0, %v1642_v17 }
  0x31   :  { %588 = vmatmul.mubr.bf16.gmra.mxu0 %v1644_v18  ;;  %716 = vmatmul.mubr.bf16.gmra.mxu1 %v1645_v19 }
  0x32   :  { %1443 = vmatprep.mubr.msk.bf16.mxu0 %vm446_vm0, %v1646_v20  ;;  %1459 = vmatprep.mubr.msk.bf16.mxu1 %vm446_vm0, %v1648_v21 }
  0x39   :  { %596 = vmatmul.mubr.bf16.gmra.mxu0 %v1650_v22  ;;  %724 = vmatmul.mubr.bf16.gmra.mxu1 %v1651_v23 }
  0x3a   :  { %1444 = vmatprep.mubr.msk.bf16.mxu0 %vm446_vm0, %v1652_v24  ;;  %1460 = vmatprep.mubr.msk.bf16.mxu1 %vm446_vm0, %v1654_v25 }
  0x41   :  { %604 = vmatmul.mubr.bf16.gmra.mxu0 %v1656_v26  ;;  %732 = vmatmul.mubr.bf16.gmra.mxu1 %v1657_v27 }
  0x42   :  { %1445 = vmatprep.mubr.msk.bf16.mxu0 %vm446_vm0, %v1658_v28  ;;  %1461 = vmatprep.mubr.msk.bf16.mxu1 %vm446_vm0, %v1660_v29 }
  0x49   :  { %612 = vmatmul.mubr.bf16.gmra.mxu0 %v1662_v30  ;;  %740 = vmatmul.mubr.bf16.gmra.mxu1 %v1663_v31 }
  0x4a   :  { %1446 = vmatprep.mubr.msk.bf16.mxu0 %vm446_vm0, %v1664_v32  ;;  %1462 = vmatprep.mubr.msk.bf16.mxu1 %vm446_vm0, %v1666_v33 }
  0x51   :  { %620 = vmatmul.mubr.bf16.gmra.mxu0 %v1668_v34  ;;  %748 = vmatmul.mubr.bf16.gmra.mxu1 %v1669_v35 }
  0x52   :  { %1447 = vmatprep.mubr.msk.bf16.mxu0 %vm446_vm0, %v1670_v36  ;;  %1463 = vmatprep.mubr.msk.bf16.mxu1 %vm446_vm0, %v1672_v37 }
  0x59   :  { %628 = vmatmul.mubr.bf16.gmra.mxu0 %v1674_v38  ;;  %756 = vmatmul.mubr.bf16.gmra.mxu1 %v1675_v39 }
  0x5a   :  { %1448 = vmatprep.mubr.msk.bf16.mxu0 %vm446_vm0, %v1676_v40  ;;  %1464 = vmatprep.mubr.msk.bf16.mxu1 %vm446_vm0, %v1678_v41 }
  0x61   :  { %636 = vmatmul.mubr.bf16.gmra.mxu0 %v1680_v42  ;;  %764 = vmatmul.mubr.bf16.gmra.mxu1 %v1681_v43 }
  0x62   :  { %1449 = vmatprep.mubr.msk.bf16.mxu0 %vm446_vm0, %v1682_v44  ;;  %1465 = vmatprep.mubr.msk.bf16.mxu1 %vm446_vm0, %v1684_v45 }
  0x69   :  { %644 = vmatmul.mubr.bf16.gmra.mxu0 %v1686_v46  ;;  %772 = vmatmul.mubr.bf16.gmra.mxu1 %v1687_v47 }
  0x6a   :  { %1450 = vmatprep.mubr.msk.bf16.mxu0 %vm446_vm0, %v1688_v48  ;;  %1466 = vmatprep.mubr.msk.bf16.mxu1 %vm446_vm0, %v1690_v49 }
  0x71   :  { %652 = vmatmul.mubr.bf16.gmra.mxu0 %v1692_v50  ;;  %780 = vmatmul.mubr.bf16.gmra.mxu1 %v1693_v51 }
  0x72   :  { %1451 = vmatprep.mubr.msk.bf16.mxu0 %vm446_vm0, %v1694_v52  ;;  %1467 = vmatprep.mubr.msk.bf16.mxu1 %vm446_vm0, %v1696_v53 }
  0x79   :  { %660 = vmatmul.mubr.bf16.gmra.mxu0 %v1698_v54  ;;  %788 = vmatmul.mubr.bf16.gmra.mxu1 %v1699_v55 }
  0x7a   :  { %1452 = vmatprep.mubr.msk.bf16.mxu0 %vm446_vm0, %v1700_v56  ;;  %1468 = vmatprep.mubr.msk.bf16.mxu1 %vm446_vm0, %v1702_v57 }
  0x81   :  { %668 = vmatmul.mubr.bf16.gmra.mxu0 %v1704_v58  ;;  %796 = vmatmul.mubr.bf16.gmra.mxu1 %v1705_v59 }
  0x82   :  { %1453 = vmatprep.mubr.msk.bf16.mxu0 %vm446_vm0, %v1706_v60  ;;  %1469 = vmatprep.mubr.msk.bf16.mxu1 %vm446_vm0, %v1708_v61 }
  0x89   :  { %676 = vmatmul.mubr.bf16.gmra.mxu0 %v1710_v62  ;;  %804 = vmatmul.mubr.bf16.gmra.mxu1 %v1711_v63 }
  0x8a   :  { %1454 = vmatprep.mubr.msk.bf16.mxu0 %vm446_vm0, %v1712_v0  ;;  %1470 = vmatprep.mubr.msk.bf16.mxu1 %vm446_vm0, %v1714_v1 }
  0x91   :  { %684 = vmatmul.mubr.bf16.gmra.mxu0 %v1716_v2  ;;  %812 = vmatmul.mubr.bf16.gmra.mxu1 %v1717_v3 }
  0x92   :  { %1455 = vmatprep.mubr.msk.bf16.mxu0 %vm446_vm0, %v1718_v4  ;;  %1471 = vmatprep.mubr.msk.bf16.mxu1 %vm446_vm0, %v1720_v5 }
  0x99   :  { %692 = vmatmul.mubr.bf16.gmra.mxu0 %v1722_v6  ;;  %820 = vmatmul.mubr.bf16.gmra.mxu1 %v1723_v7 }
  0x9a   :  { %1456 = vmatprep.mubr.msk.bf16.mxu0 %vm446_vm0, %v1724_v8  ;;  %1472 = vmatprep.mubr.msk.bf16.mxu1 %vm446_vm0, %v1726_v9 }
  0xa1   :  { %700 = vmatmul.mubr.bf16.gmra.mxu0 %v1728_v10  ;;  %828 = vmatmul.mubr.bf16.gmra.mxu1 %v1729_v11 }
  0xe9   :  { %v581_v13 = vpop.f32.mrf.mxu0  ;;  %v709_v15 = vpop.f32.mrf.mxu1 }
  0xea   :  { %v843_v16 = vmul.f32 %v2013_v12, %v581_v13  ;;  %v875_v17 = vmul.f32 %v2013_v12, %v709_v15 }
  0xeb   :  { %v583_v18 = vpop.f32.mrf.mxu0  ;;  %v711_v19 = vpop.f32.mrf.mxu1 }
  0xec   :  { %v914_v20 = vadd.f32 %v2018_v14, %v843_v16  ;;  %v946_v21 = vadd.f32 %v2018_v14, %v875_v17 }
  0xed   :  { %v584_v22 = vpop.f32.mrf.mxu0  ;;  %v712_v23 = vpop.f32.mrf.mxu1 }
  0xee   :  { %v978_v24 = vmax.f32 %v914_v20, 0.0  ;;  %v1010_v25 = vmax.f32 %v946_v21, 0.0  ;;  %v844_v26 = vmul.f32 %v2013_v12, %v584_v22  ;;  %v876_v27 = vmul.f32 %v2013_v12, %v712_v23 }
  0xef   :  { %v586_v28 = vpop.f32.mrf.mxu0  ;;  %v714_v29 = vpop.f32.mrf.mxu1 }
  0xf0   :  { %v1539_v30 = vpack.c.bf16 %v978_v24, %v978_v24  ;;  %v1571_v31 = vpack.c.bf16 %v1010_v25, %v1010_v25  ;;  %v915_v32 = vadd.f32 %v2018_v14, %v844_v26  ;;  %v947_v33 = vadd.f32 %v2018_v14, %v876_v27 }
  0xf1   :  { %v589_v34 = vpop.f32.mrf.mxu0  ;;  %v717_v35 = vpop.f32.mrf.mxu1 }
  0xf2   :  { %1299 = vst.msk [vmem:[%s2408_s4] sm:$0xf] %vm1298_vm2, %v1539_v30  ;;  %1331 = vst.msk [vmem:[%s2408_s4 + $0x80] sm:$0xf] %vm1298_vm2, %v1571_v31  ;;  %v979_v36 = vmax.f32 %v915_v32, 0.0  ;;  %v1011_v37 = vmax.f32 %v947_v33, 0.0  ;;  %v845_v38 = vmul.f32 %v2013_v12, %v589_v34  ;;  %v877_v39 = vmul.f32 %v2013_v12, %v717_v35 }
  0xf3   :  { %v591_v40 = vpop.f32.mrf.mxu0  ;;  %v719_v41 = vpop.f32.mrf.mxu1 }
  0xf4   :  { %v1540_v42 = vpack.c.bf16 %v979_v36, %v979_v36  ;;  %v1572_v43 = vpack.c.bf16 %v1011_v37, %v1011_v37  ;;  %v916_v44 = vadd.f32 %v2018_v14, %v845_v38  ;;  %v948_v45 = vadd.f32 %v2018_v14, %v877_v39 }
  0xf5   :  { %v592_v46 = vpop.f32.mrf.mxu0  ;;  %v720_v47 = vpop.f32.mrf.mxu1 }
  0xf6   :  { %1300 = vst.msk [vmem:[%s2408_s4 + $0x4] sm:$0xf] %vm1298_vm2, %v1540_v42  ;;  %1332 = vst.msk [vmem:[%s2408_s4 + $0x84] sm:$0xf] %vm1298_vm2, %v1572_v43  ;;  %v980_v48 = vmax.f32 %v916_v44, 0.0  ;;  %v1012_v49 = vmax.f32 %v948_v45, 0.0  ;;  %v846_v50 = vmul.f32 %v2013_v12, %v592_v46  ;;  %v878_v51 = vmul.f32 %v2013_v12, %v720_v47 }
  0xf7   :  { %v594_v52 = vpop.f32.mrf.mxu0  ;;  %v722_v53 = vpop.f32.mrf.mxu1 }
  0xf8   :  { %v1541_v54 = vpack.c.bf16 %v980_v48, %v980_v48  ;;  %v1573_v55 = vpack.c.bf16 %v1012_v49, %v1012_v49  ;;  %v917_v56 = vadd.f32 %v2018_v14, %v846_v50  ;;  %v949_v57 = vadd.f32 %v2018_v14, %v878_v51 }
  0xf9   :  { %v597_v58 = vpop.f32.mrf.mxu0  ;;  %v725_v59 = vpop.f32.mrf.mxu1 }
  0xfa   :  { %1301 = vst.msk [vmem:[%s2408_s4 + $0x8] sm:$0xf] %vm1298_vm2, %v1541_v54  ;;  %1333 = vst.msk [vmem:[%s2408_s4 + $0x88] sm:$0xf] %vm1298_vm2, %v1573_v55  ;;  %v981_v60 = vmax.f32 %v917_v56, 0.0  ;;  %v1013_v61 = vmax.f32 %v949_v57, 0.0  ;;  %v847_v62 = vmul.f32 %v2013_v12, %v597_v58  ;;  %v879_v63 = vmul.f32 %v2013_v12, %v725_v59 }
  0xfb   :  { %v599_v0 = vpop.f32.mrf.mxu0  ;;  %v727_v1 = vpop.f32.mrf.mxu1 }
  0xfc   :  { %v1542_v2 = vpack.c.bf16 %v981_v60, %v981_v60  ;;  %v1574_v3 = vpack.c.bf16 %v1013_v61, %v1013_v61  ;;  %v918_v4 = vadd.f32 %v2018_v14, %v847_v62  ;;  %v950_v5 = vadd.f32 %v2018_v14, %v879_v63 }
  0xfd   :  { %v600_v6 = vpop.f32.mrf.mxu0  ;;  %v728_v7 = vpop.f32.mrf.mxu1 }
  0xfe   :  { %1302 = vst.msk [vmem:[%s2408_s4 + $0xc] sm:$0xf] %vm1298_vm2, %v1542_v2  ;;  %1334 = vst.msk [vmem:[%s2408_s4 + $0x8c] sm:$0xf] %vm1298_vm2, %v1574_v3  ;;  %v982_v8 = vmax.f32 %v918_v4, 0.0  ;;  %v1014_v9 = vmax.f32 %v950_v5, 0.0  ;;  %v848_v10 = vmul.f32 %v2013_v12, %v600_v6  ;;  %v880_v11 = vmul.f32 %v2013_v12, %v728_v7 }
  0xff   :  { %v602_v13 = vpop.f32.mrf.mxu0  ;;  %v730_v15 = vpop.f32.mrf.mxu1 }
 0x100   :  { %v1543_v16 = vpack.c.bf16 %v982_v8, %v982_v8  ;;  %v1575_v17 = vpack.c.bf16 %v1014_v9, %v1014_v9  ;;  %v919_v18 = vadd.f32 %v2018_v14, %v848_v10  ;;  %v951_v19 = vadd.f32 %v2018_v14, %v880_v11 }
 0x101   :  { %v605_v20 = vpop.f32.mrf.mxu0  ;;  %v733_v21 = vpop.f32.mrf.mxu1 }
 0x102   :  { %1303 = vst.msk [vmem:[%s2408_s4 + $0x10] sm:$0xf] %vm1298_vm2, %v1543_v16  ;;  %1335 = vst.msk [vmem:[%s2408_s4 + $0x90] sm:$0xf] %vm1298_vm2, %v1575_v17  ;;  %v983_v22 = vmax.f32 %v919_v18, 0.0  ;;  %v1015_v23 = vmax.f32 %v951_v19, 0.0  ;;  %v849_v24 = vmul.f32 %v2013_v12, %v605_v20  ;;  %v881_v25 = vmul.f32 %v2013_v12, %v733_v21 }
 0x103   :  { %v607_v26 = vpop.f32.mrf.mxu0  ;;  %v735_v27 = vpop.f32.mrf.mxu1 }
 0x104   :  { %v1544_v28 = vpack.c.bf16 %v983_v22, %v983_v22  ;;  %v1576_v29 = vpack.c.bf16 %v1015_v23, %v1015_v23  ;;  %v920_v30 = vadd.f32 %v2018_v14, %v849_v24  ;;  %v952_v31 = vadd.f32 %v2018_v14, %v881_v25 }
 0x105   :  { %v608_v32 = vpop.f32.mrf.mxu0  ;;  %v736_v33 = vpop.f32.mrf.mxu1 }
 0x106   :  { %1304 = vst.msk [vmem:[%s2408_s4 + $0x14] sm:$0xf] %vm1298_vm2, %v1544_v28  ;;  %1336 = vst.msk [vmem:[%s2408_s4 + $0x94] sm:$0xf] %vm1298_vm2, %v1576_v29  ;;  %v984_v34 = vmax.f32 %v920_v30, 0.0  ;;  %v1016_v35 = vmax.f32 %v952_v31, 0.0  ;;  %v850_v36 = vmul.f32 %v2013_v12, %v608_v32  ;;  %v882_v37 = vmul.f32 %v2013_v12, %v736_v33 }
 0x107   :  { %v610_v38 = vpop.f32.mrf.mxu0  ;;  %v738_v39 = vpop.f32.mrf.mxu1 }
 0x108   :  { %v1545_v40 = vpack.c.bf16 %v984_v34, %v984_v34  ;;  %v1577_v41 = vpack.c.bf16 %v1016_v35, %v1016_v35  ;;  %v921_v42 = vadd.f32 %v2018_v14, %v850_v36  ;;  %v953_v43 = vadd.f32 %v2018_v14, %v882_v37 }
 0x109   :  { %v613_v44 = vpop.f32.mrf.mxu0  ;;  %v741_v45 = vpop.f32.mrf.mxu1 }
 0x10a   :  { %1305 = vst.msk [vmem:[%s2408_s4 + $0x18] sm:$0xf] %vm1298_vm2, %v1545_v40  ;;  %1337 = vst.msk [vmem:[%s2408_s4 + $0x98] sm:$0xf] %vm1298_vm2, %v1577_v41  ;;  %v985_v46 = vmax.f32 %v921_v42, 0.0  ;;  %v1017_v47 = vmax.f32 %v953_v43, 0.0  ;;  %v851_v48 = vmul.f32 %v2013_v12, %v613_v44  ;;  %v883_v49 = vmul.f32 %v2013_v12, %v741_v45 }
 0x10b   :  { %v615_v50 = vpop.f32.mrf.mxu0  ;;  %v743_v51 = vpop.f32.mrf.mxu1 }
 0x10c   :  { %v1546_v52 = vpack.c.bf16 %v985_v46, %v985_v46  ;;  %v1578_v53 = vpack.c.bf16 %v1017_v47, %v1017_v47  ;;  %v922_v54 = vadd.f32 %v2018_v14, %v851_v48  ;;  %v954_v55 = vadd.f32 %v2018_v14, %v883_v49 }
 0x10d   :  { %v616_v56 = vpop.f32.mrf.mxu0  ;;  %v744_v57 = vpop.f32.mrf.mxu1 }
 0x10e   :  { %1306 = vst.msk [vmem:[%s2408_s4 + $0x1c] sm:$0xf] %vm1298_vm2, %v1546_v52  ;;  %1338 = vst.msk [vmem:[%s2408_s4 + $0x9c] sm:$0xf] %vm1298_vm2, %v1578_v53  ;;  %v986_v58 = vmax.f32 %v922_v54, 0.0  ;;  %v1018_v59 = vmax.f32 %v954_v55, 0.0  ;;  %v852_v60 = vmul.f32 %v2013_v12, %v616_v56  ;;  %v884_v61 = vmul.f32 %v2013_v12, %v744_v57 }
 0x10f   :  { %v618_v62 = vpop.f32.mrf.mxu0  ;;  %v746_v63 = vpop.f32.mrf.mxu1 }
 0x110   :  { %v1547_v0 = vpack.c.bf16 %v986_v58, %v986_v58  ;;  %v1579_v1 = vpack.c.bf16 %v1018_v59, %v1018_v59  ;;  %v923_v2 = vadd.f32 %v2018_v14, %v852_v60  ;;  %v955_v3 = vadd.f32 %v2018_v14, %v884_v61 }
 0x111   :  { %v621_v4 = vpop.f32.mrf.mxu0  ;;  %v749_v5 = vpop.f32.mrf.mxu1 }
 0x112   :  { %1307 = vst.msk [vmem:[%s2408_s4 + $0x20] sm:$0xf] %vm1298_vm2, %v1547_v0  ;;  %1339 = vst.msk [vmem:[%s2408_s4 + $0xa0] sm:$0xf] %vm1298_vm2, %v1579_v1  ;;  %v987_v6 = vmax.f32 %v923_v2, 0.0  ;;  %v1019_v7 = vmax.f32 %v955_v3, 0.0  ;;  %v853_v8 = vmul.f32 %v2013_v12, %v621_v4  ;;  %v885_v9 = vmul.f32 %v2013_v12, %v749_v5 }
 0x113   :  { %v623_v10 = vpop.f32.mrf.mxu0  ;;  %v751_v11 = vpop.f32.mrf.mxu1 }
 0x114   :  { %v1548_v13 = vpack.c.bf16 %v987_v6, %v987_v6  ;;  %v1580_v15 = vpack.c.bf16 %v1019_v7, %v1019_v7  ;;  %v924_v16 = vadd.f32 %v2018_v14, %v853_v8  ;;  %v956_v17 = vadd.f32 %v2018_v14, %v885_v9 }
 0x115   :  { %v624_v18 = vpop.f32.mrf.mxu0  ;;  %v752_v19 = vpop.f32.mrf.mxu1 }
 0x116   :  { %1308 = vst.msk [vmem:[%s2408_s4 + $0x24] sm:$0xf] %vm1298_vm2, %v1548_v13  ;;  %1340 = vst.msk [vmem:[%s2408_s4 + $0xa4] sm:$0xf] %vm1298_vm2, %v1580_v15  ;;  %v988_v20 = vmax.f32 %v924_v16, 0.0  ;;  %v1020_v21 = vmax.f32 %v956_v17, 0.0  ;;  %v854_v22 = vmul.f32 %v2013_v12, %v624_v18  ;;  %v886_v23 = vmul.f32 %v2013_v12, %v752_v19 }
 0x117   :  { %v626_v24 = vpop.f32.mrf.mxu0  ;;  %v754_v25 = vpop.f32.mrf.mxu1 }
 0x118   :  { %v1549_v26 = vpack.c.bf16 %v988_v20, %v988_v20  ;;  %v1581_v27 = vpack.c.bf16 %v1020_v21, %v1020_v21  ;;  %v925_v28 = vadd.f32 %v2018_v14, %v854_v22  ;;  %v957_v29 = vadd.f32 %v2018_v14, %v886_v23 }
 0x119   :  { %v629_v30 = vpop.f32.mrf.mxu0  ;;  %v757_v31 = vpop.f32.mrf.mxu1 }
 0x11a   :  { %1309 = vst.msk [vmem:[%s2408_s4 + $0x28] sm:$0xf] %vm1298_vm2, %v1549_v26  ;;  %1341 = vst.msk [vmem:[%s2408_s4 + $0xa8] sm:$0xf] %vm1298_vm2, %v1581_v27  ;;  %v989_v32 = vmax.f32 %v925_v28, 0.0  ;;  %v1021_v33 = vmax.f32 %v957_v29, 0.0  ;;  %v855_v34 = vmul.f32 %v2013_v12, %v629_v30  ;;  %v887_v35 = vmul.f32 %v2013_v12, %v757_v31 }
 0x11b   :  { %v631_v36 = vpop.f32.mrf.mxu0  ;;  %v759_v37 = vpop.f32.mrf.mxu1 }
 0x11c   :  { %v1550_v38 = vpack.c.bf16 %v989_v32, %v989_v32  ;;  %v1582_v39 = vpack.c.bf16 %v1021_v33, %v1021_v33  ;;  %v926_v40 = vadd.f32 %v2018_v14, %v855_v34  ;;  %v958_v41 = vadd.f32 %v2018_v14, %v887_v35 }
 0x11d   :  { %v632_v42 = vpop.f32.mrf.mxu0  ;;  %v760_v43 = vpop.f32.mrf.mxu1 }
 0x11e   :  { %1310 = vst.msk [vmem:[%s2408_s4 + $0x2c] sm:$0xf] %vm1298_vm2, %v1550_v38  ;;  %1342 = vst.msk [vmem:[%s2408_s4 + $0xac] sm:$0xf] %vm1298_vm2, %v1582_v39  ;;  %v990_v44 = vmax.f32 %v926_v40, 0.0  ;;  %v1022_v45 = vmax.f32 %v958_v41, 0.0  ;;  %v856_v46 = vmul.f32 %v2013_v12, %v632_v42  ;;  %v888_v47 = vmul.f32 %v2013_v12, %v760_v43 }
 0x11f   :  { %v634_v48 = vpop.f32.mrf.mxu0  ;;  %v762_v49 = vpop.f32.mrf.mxu1 }
 0x120   :  { %v1551_v50 = vpack.c.bf16 %v990_v44, %v990_v44  ;;  %v1583_v51 = vpack.c.bf16 %v1022_v45, %v1022_v45  ;;  %v927_v52 = vadd.f32 %v2018_v14, %v856_v46  ;;  %v959_v53 = vadd.f32 %v2018_v14, %v888_v47 }
 0x121   :  { %v637_v54 = vpop.f32.mrf.mxu0  ;;  %v765_v55 = vpop.f32.mrf.mxu1 }
 0x122   :  { %1311 = vst.msk [vmem:[%s2408_s4 + $0x30] sm:$0xf] %vm1298_vm2, %v1551_v50  ;;  %1343 = vst.msk [vmem:[%s2408_s4 + $0xb0] sm:$0xf] %vm1298_vm2, %v1583_v51  ;;  %v991_v56 = vmax.f32 %v927_v52, 0.0  ;;  %v1023_v57 = vmax.f32 %v959_v53, 0.0  ;;  %v857_v58 = vmul.f32 %v2013_v12, %v637_v54  ;;  %v889_v59 = vmul.f32 %v2013_v12, %v765_v55 }
 0x123   :  { %v639_v60 = vpop.f32.mrf.mxu0  ;;  %v767_v61 = vpop.f32.mrf.mxu1 }
 0x124   :  { %v1552_v62 = vpack.c.bf16 %v991_v56, %v991_v56  ;;  %v1584_v63 = vpack.c.bf16 %v1023_v57, %v1023_v57  ;;  %v928_v0 = vadd.f32 %v2018_v14, %v857_v58  ;;  %v960_v1 = vadd.f32 %v2018_v14, %v889_v59 }
 0x125   :  { %v640_v2 = vpop.f32.mrf.mxu0  ;;  %v768_v3 = vpop.f32.mrf.mxu1 }
 0x126   :  { %1312 = vst.msk [vmem:[%s2408_s4 + $0x34] sm:$0xf] %vm1298_vm2, %v1552_v62  ;;  %1344 = vst.msk [vmem:[%s2408_s4 + $0xb4] sm:$0xf] %vm1298_vm2, %v1584_v63  ;;  %v992_v4 = vmax.f32 %v928_v0, 0.0  ;;  %v1024_v5 = vmax.f32 %v960_v1, 0.0  ;;  %v858_v6 = vmul.f32 %v2013_v12, %v640_v2  ;;  %v890_v7 = vmul.f32 %v2013_v12, %v768_v3 }
 0x127   :  { %v642_v8 = vpop.f32.mrf.mxu0  ;;  %v770_v9 = vpop.f32.mrf.mxu1 }
 0x128   :  { %v1553_v10 = vpack.c.bf16 %v992_v4, %v992_v4  ;;  %v1585_v11 = vpack.c.bf16 %v1024_v5, %v1024_v5  ;;  %v929_v13 = vadd.f32 %v2018_v14, %v858_v6  ;;  %v961_v15 = vadd.f32 %v2018_v14, %v890_v7 }
 0x129   :  { %v645_v16 = vpop.f32.mrf.mxu0  ;;  %v773_v17 = vpop.f32.mrf.mxu1 }
 0x12a   :  { %1313 = vst.msk [vmem:[%s2408_s4 + $0x38] sm:$0xf] %vm1298_vm2, %v1553_v10  ;;  %1345 = vst.msk [vmem:[%s2408_s4 + $0xb8] sm:$0xf] %vm1298_vm2, %v1585_v11  ;;  %v993_v18 = vmax.f32 %v929_v13, 0.0  ;;  %v1025_v19 = vmax.f32 %v961_v15, 0.0  ;;  %v859_v20 = vmul.f32 %v2013_v12, %v645_v16  ;;  %v891_v21 = vmul.f32 %v2013_v12, %v773_v17 }
 0x12b   :  { %v647_v22 = vpop.f32.mrf.mxu0  ;;  %v775_v23 = vpop.f32.mrf.mxu1 }
 0x12c   :  { %v1554_v24 = vpack.c.bf16 %v993_v18, %v993_v18  ;;  %v1586_v25 = vpack.c.bf16 %v1025_v19, %v1025_v19  ;;  %v930_v26 = vadd.f32 %v2018_v14, %v859_v20  ;;  %v962_v27 = vadd.f32 %v2018_v14, %v891_v21 }
 0x12d   :  { %v648_v28 = vpop.f32.mrf.mxu0  ;;  %v776_v29 = vpop.f32.mrf.mxu1 }
 0x12e   :  { %1314 = vst.msk [vmem:[%s2408_s4 + $0x3c] sm:$0xf] %vm1298_vm2, %v1554_v24  ;;  %1346 = vst.msk [vmem:[%s2408_s4 + $0xbc] sm:$0xf] %vm1298_vm2, %v1586_v25  ;;  %v994_v30 = vmax.f32 %v930_v26, 0.0  ;;  %v1026_v31 = vmax.f32 %v962_v27, 0.0  ;;  %v860_v32 = vmul.f32 %v2013_v12, %v648_v28  ;;  %v892_v33 = vmul.f32 %v2013_v12, %v776_v29 }
 0x12f   :  { %v650_v34 = vpop.f32.mrf.mxu0  ;;  %v778_v35 = vpop.f32.mrf.mxu1 }
 0x130   :  { %v1555_v36 = vpack.c.bf16 %v994_v30, %v994_v30  ;;  %v1587_v37 = vpack.c.bf16 %v1026_v31, %v1026_v31  ;;  %v931_v38 = vadd.f32 %v2018_v14, %v860_v32  ;;  %v963_v39 = vadd.f32 %v2018_v14, %v892_v33 }
 0x131   :  { %v653_v40 = vpop.f32.mrf.mxu0  ;;  %v781_v41 = vpop.f32.mrf.mxu1 }
 0x132   :  { %1315 = vst.msk [vmem:[%s2408_s4 + $0x40] sm:$0xf] %vm1298_vm2, %v1555_v36  ;;  %1347 = vst.msk [vmem:[%s2408_s4 + $0xc0] sm:$0xf] %vm1298_vm2, %v1587_v37  ;;  %v995_v42 = vmax.f32 %v931_v38, 0.0  ;;  %v1027_v43 = vmax.f32 %v963_v39, 0.0  ;;  %v861_v44 = vmul.f32 %v2013_v12, %v653_v40  ;;  %v893_v45 = vmul.f32 %v2013_v12, %v781_v41 }
 0x133   :  { %v655_v46 = vpop.f32.mrf.mxu0  ;;  %v783_v47 = vpop.f32.mrf.mxu1 }
 0x134   :  { %v1556_v48 = vpack.c.bf16 %v995_v42, %v995_v42  ;;  %v1588_v49 = vpack.c.bf16 %v1027_v43, %v1027_v43  ;;  %v932_v50 = vadd.f32 %v2018_v14, %v861_v44  ;;  %v964_v51 = vadd.f32 %v2018_v14, %v893_v45 }
 0x135   :  { %v656_v52 = vpop.f32.mrf.mxu0  ;;  %v784_v53 = vpop.f32.mrf.mxu1 }
 0x136   :  { %1316 = vst.msk [vmem:[%s2408_s4 + $0x44] sm:$0xf] %vm1298_vm2, %v1556_v48  ;;  %1348 = vst.msk [vmem:[%s2408_s4 + $0xc4] sm:$0xf] %vm1298_vm2, %v1588_v49  ;;  %v996_v54 = vmax.f32 %v932_v50, 0.0  ;;  %v1028_v55 = vmax.f32 %v964_v51, 0.0  ;;  %v862_v56 = vmul.f32 %v2013_v12, %v656_v52  ;;  %v894_v57 = vmul.f32 %v2013_v12, %v784_v53 }
 0x137   :  { %v658_v58 = vpop.f32.mrf.mxu0  ;;  %v786_v59 = vpop.f32.mrf.mxu1 }
 0x138   :  { %v1557_v60 = vpack.c.bf16 %v996_v54, %v996_v54  ;;  %v1589_v61 = vpack.c.bf16 %v1028_v55, %v1028_v55  ;;  %v933_v62 = vadd.f32 %v2018_v14, %v862_v56  ;;  %v965_v63 = vadd.f32 %v2018_v14, %v894_v57 }
 0x139   :  { %v661_v0 = vpop.f32.mrf.mxu0  ;;  %v789_v1 = vpop.f32.mrf.mxu1 }
 0x13a   :  { %1317 = vst.msk [vmem:[%s2408_s4 + $0x48] sm:$0xf] %vm1298_vm2, %v1557_v60  ;;  %1349 = vst.msk [vmem:[%s2408_s4 + $0xc8] sm:$0xf] %vm1298_vm2, %v1589_v61  ;;  %v997_v2 = vmax.f32 %v933_v62, 0.0  ;;  %v1029_v3 = vmax.f32 %v965_v63, 0.0  ;;  %v863_v4 = vmul.f32 %v2013_v12, %v661_v0  ;;  %v895_v5 = vmul.f32 %v2013_v12, %v789_v1 }
 0x13b   :  { %v663_v6 = vpop.f32.mrf.mxu0  ;;  %v791_v7 = vpop.f32.mrf.mxu1 }
 0x13c   :  { %v1558_v8 = vpack.c.bf16 %v997_v2, %v997_v2  ;;  %v1590_v9 = vpack.c.bf16 %v1029_v3, %v1029_v3  ;;  %v934_v10 = vadd.f32 %v2018_v14, %v863_v4  ;;  %v966_v11 = vadd.f32 %v2018_v14, %v895_v5 }
 0x13d   :  { %v664_v13 = vpop.f32.mrf.mxu0  ;;  %v792_v15 = vpop.f32.mrf.mxu1 }
 0x13e   :  { %1318 = vst.msk [vmem:[%s2408_s4 + $0x4c] sm:$0xf] %vm1298_vm2, %v1558_v8  ;;  %1350 = vst.msk [vmem:[%s2408_s4 + $0xcc] sm:$0xf] %vm1298_vm2, %v1590_v9  ;;  %v998_v16 = vmax.f32 %v934_v10, 0.0  ;;  %v1030_v17 = vmax.f32 %v966_v11, 0.0  ;;  %v864_v18 = vmul.f32 %v2013_v12, %v664_v13  ;;  %v896_v19 = vmul.f32 %v2013_v12, %v792_v15 }
 0x13f   :  { %v666_v20 = vpop.f32.mrf.mxu0  ;;  %v794_v21 = vpop.f32.mrf.mxu1 }
 0x140   :  { %v1559_v22 = vpack.c.bf16 %v998_v16, %v998_v16  ;;  %v1591_v23 = vpack.c.bf16 %v1030_v17, %v1030_v17  ;;  %v935_v24 = vadd.f32 %v2018_v14, %v864_v18  ;;  %v967_v25 = vadd.f32 %v2018_v14, %v896_v19 }
 0x141   :  { %v669_v26 = vpop.f32.mrf.mxu0  ;;  %v797_v27 = vpop.f32.mrf.mxu1 }
 0x142   :  { %1319 = vst.msk [vmem:[%s2408_s4 + $0x50] sm:$0xf] %vm1298_vm2, %v1559_v22  ;;  %1351 = vst.msk [vmem:[%s2408_s4 + $0xd0] sm:$0xf] %vm1298_vm2, %v1591_v23  ;;  %v999_v28 = vmax.f32 %v935_v24, 0.0  ;;  %v1031_v29 = vmax.f32 %v967_v25, 0.0  ;;  %v865_v30 = vmul.f32 %v2013_v12, %v669_v26  ;;  %v897_v31 = vmul.f32 %v2013_v12, %v797_v27 }
 0x143   :  { %v671_v32 = vpop.f32.mrf.mxu0  ;;  %v799_v33 = vpop.f32.mrf.mxu1 }
 0x144   :  { %v1560_v34 = vpack.c.bf16 %v999_v28, %v999_v28  ;;  %v1592_v35 = vpack.c.bf16 %v1031_v29, %v1031_v29  ;;  %v936_v36 = vadd.f32 %v2018_v14, %v865_v30  ;;  %v968_v37 = vadd.f32 %v2018_v14, %v897_v31 }
 0x145   :  { %v672_v38 = vpop.f32.mrf.mxu0  ;;  %v800_v39 = vpop.f32.mrf.mxu1 }
 0x146   :  { %1320 = vst.msk [vmem:[%s2408_s4 + $0x54] sm:$0xf] %vm1298_vm2, %v1560_v34  ;;  %1352 = vst.msk [vmem:[%s2408_s4 + $0xd4] sm:$0xf] %vm1298_vm2, %v1592_v35  ;;  %v1000_v40 = vmax.f32 %v936_v36, 0.0  ;;  %v1032_v41 = vmax.f32 %v968_v37, 0.0  ;;  %v866_v42 = vmul.f32 %v2013_v12, %v672_v38  ;;  %v898_v43 = vmul.f32 %v2013_v12, %v800_v39 }
 0x147   :  { %v674_v44 = vpop.f32.mrf.mxu0  ;;  %v802_v45 = vpop.f32.mrf.mxu1 }
 0x148   :  { %v1561_v46 = vpack.c.bf16 %v1000_v40, %v1000_v40  ;;  %v1593_v47 = vpack.c.bf16 %v1032_v41, %v1032_v41  ;;  %v937_v48 = vadd.f32 %v2018_v14, %v866_v42  ;;  %v969_v49 = vadd.f32 %v2018_v14, %v898_v43 }
 0x149   :  { %v677_v50 = vpop.f32.mrf.mxu0  ;;  %v805_v51 = vpop.f32.mrf.mxu1 }
 0x14a   :  { %1321 = vst.msk [vmem:[%s2408_s4 + $0x58] sm:$0xf] %vm1298_vm2, %v1561_v46  ;;  %1353 = vst.msk [vmem:[%s2408_s4 + $0xd8] sm:$0xf] %vm1298_vm2, %v1593_v47  ;;  %v1001_v52 = vmax.f32 %v937_v48, 0.0  ;;  %v1033_v53 = vmax.f32 %v969_v49, 0.0  ;;  %v867_v54 = vmul.f32 %v2013_v12, %v677_v50  ;;  %v899_v55 = vmul.f32 %v2013_v12, %v805_v51 }
 0x14b   :  { %v679_v56 = vpop.f32.mrf.mxu0  ;;  %v807_v57 = vpop.f32.mrf.mxu1 }
 0x14c   :  { %v1562_v58 = vpack.c.bf16 %v1001_v52, %v1001_v52  ;;  %v1594_v59 = vpack.c.bf16 %v1033_v53, %v1033_v53  ;;  %v938_v60 = vadd.f32 %v2018_v14, %v867_v54  ;;  %v970_v61 = vadd.f32 %v2018_v14, %v899_v55 }
 0x14d   :  { %v680_v62 = vpop.f32.mrf.mxu0  ;;  %v808_v63 = vpop.f32.mrf.mxu1 }
 0x14e   :  { %1322 = vst.msk [vmem:[%s2408_s4 + $0x5c] sm:$0xf] %vm1298_vm2, %v1562_v58  ;;  %1354 = vst.msk [vmem:[%s2408_s4 + $0xdc] sm:$0xf] %vm1298_vm2, %v1594_v59  ;;  %v1002_v0 = vmax.f32 %v938_v60, 0.0  ;;  %v1034_v1 = vmax.f32 %v970_v61, 0.0  ;;  %v868_v2 = vmul.f32 %v2013_v12, %v680_v62  ;;  %v900_v3 = vmul.f32 %v2013_v12, %v808_v63 }
 0x14f   :  { %v682_v4 = vpop.f32.mrf.mxu0  ;;  %v810_v5 = vpop.f32.mrf.mxu1 }
 0x150   :  { %v1563_v6 = vpack.c.bf16 %v1002_v0, %v1002_v0  ;;  %v1595_v7 = vpack.c.bf16 %v1034_v1, %v1034_v1  ;;  %v939_v8 = vadd.f32 %v2018_v14, %v868_v2  ;;  %v971_v9 = vadd.f32 %v2018_v14, %v900_v3 }
 0x151   :  { %v685_v10 = vpop.f32.mrf.mxu0  ;;  %v813_v11 = vpop.f32.mrf.mxu1 }
 0x152   :  { %1323 = vst.msk [vmem:[%s2408_s4 + $0x60] sm:$0xf] %vm1298_vm2, %v1563_v6  ;;  %1355 = vst.msk [vmem:[%s2408_s4 + $0xe0] sm:$0xf] %vm1298_vm2, %v1595_v7  ;;  %v1003_v13 = vmax.f32 %v939_v8, 0.0  ;;  %v1035_v15 = vmax.f32 %v971_v9, 0.0  ;;  %v869_v16 = vmul.f32 %v2013_v12, %v685_v10  ;;  %v901_v17 = vmul.f32 %v2013_v12, %v813_v11 }
 0x153   :  { %v687_v18 = vpop.f32.mrf.mxu0  ;;  %v815_v19 = vpop.f32.mrf.mxu1 }
 0x154   :  { %v1564_v20 = vpack.c.bf16 %v1003_v13, %v1003_v13  ;;  %v1596_v21 = vpack.c.bf16 %v1035_v15, %v1035_v15  ;;  %v940_v22 = vadd.f32 %v2018_v14, %v869_v16  ;;  %v972_v23 = vadd.f32 %v2018_v14, %v901_v17 }
 0x155   :  { %v688_v24 = vpop.f32.mrf.mxu0  ;;  %v816_v25 = vpop.f32.mrf.mxu1 }
 0x156   :  { %1324 = vst.msk [vmem:[%s2408_s4 + $0x64] sm:$0xf] %vm1298_vm2, %v1564_v20  ;;  %1356 = vst.msk [vmem:[%s2408_s4 + $0xe4] sm:$0xf] %vm1298_vm2, %v1596_v21  ;;  %v1004_v26 = vmax.f32 %v940_v22, 0.0  ;;  %v1036_v27 = vmax.f32 %v972_v23, 0.0  ;;  %v870_v28 = vmul.f32 %v2013_v12, %v688_v24  ;;  %v902_v29 = vmul.f32 %v2013_v12, %v816_v25 }
 0x157   :  { %v690_v30 = vpop.f32.mrf.mxu0  ;;  %v818_v31 = vpop.f32.mrf.mxu1 }
 0x158   :  { %v1565_v32 = vpack.c.bf16 %v1004_v26, %v1004_v26  ;;  %v1597_v33 = vpack.c.bf16 %v1036_v27, %v1036_v27  ;;  %v941_v34 = vadd.f32 %v2018_v14, %v870_v28  ;;  %v973_v35 = vadd.f32 %v2018_v14, %v902_v29 }
 0x159   :  { %v693_v36 = vpop.f32.mrf.mxu0  ;;  %v821_v37 = vpop.f32.mrf.mxu1 }
 0x15a   :  { %1325 = vst.msk [vmem:[%s2408_s4 + $0x68] sm:$0xf] %vm1298_vm2, %v1565_v32  ;;  %1357 = vst.msk [vmem:[%s2408_s4 + $0xe8] sm:$0xf] %vm1298_vm2, %v1597_v33  ;;  %v1005_v38 = vmax.f32 %v941_v34, 0.0  ;;  %v1037_v39 = vmax.f32 %v973_v35, 0.0  ;;  %v871_v40 = vmul.f32 %v2013_v12, %v693_v36  ;;  %v903_v41 = vmul.f32 %v2013_v12, %v821_v37 }
 0x15b   :  { %v695_v42 = vpop.f32.mrf.mxu0  ;;  %v823_v43 = vpop.f32.mrf.mxu1 }
 0x15c   :  { %v1566_v44 = vpack.c.bf16 %v1005_v38, %v1005_v38  ;;  %v1598_v45 = vpack.c.bf16 %v1037_v39, %v1037_v39  ;;  %v942_v46 = vadd.f32 %v2018_v14, %v871_v40  ;;  %v974_v47 = vadd.f32 %v2018_v14, %v903_v41 }
 0x15d   :  { %v696_v48 = vpop.f32.mrf.mxu0  ;;  %v824_v49 = vpop.f32.mrf.mxu1 }
 0x15e   :  { %1326 = vst.msk [vmem:[%s2408_s4 + $0x6c] sm:$0xf] %vm1298_vm2, %v1566_v44  ;;  %1358 = vst.msk [vmem:[%s2408_s4 + $0xec] sm:$0xf] %vm1298_vm2, %v1598_v45  ;;  %v1006_v50 = vmax.f32 %v942_v46, 0.0  ;;  %v1038_v51 = vmax.f32 %v974_v47, 0.0  ;;  %v872_v52 = vmul.f32 %v2013_v12, %v696_v48  ;;  %v904_v53 = vmul.f32 %v2013_v12, %v824_v49 }
 0x15f   :  { %v698_v54 = vpop.f32.mrf.mxu0  ;;  %v826_v55 = vpop.f32.mrf.mxu1 }
 0x160   :  { %v1567_v56 = vpack.c.bf16 %v1006_v50, %v1006_v50  ;;  %v1599_v57 = vpack.c.bf16 %v1038_v51, %v1038_v51  ;;  %v943_v58 = vadd.f32 %v2018_v14, %v872_v52  ;;  %v975_v59 = vadd.f32 %v2018_v14, %v904_v53 }
 0x161   :  { %v701_v60 = vpop.f32.mrf.mxu0  ;;  %v829_v61 = vpop.f32.mrf.mxu1 }
 0x162   :  { %1327 = vst.msk [vmem:[%s2408_s4 + $0x70] sm:$0xf] %vm1298_vm2, %v1567_v56  ;;  %1359 = vst.msk [vmem:[%s2408_s4 + $0xf0] sm:$0xf] %vm1298_vm2, %v1599_v57  ;;  %v1007_v62 = vmax.f32 %v943_v58, 0.0  ;;  %v1039_v63 = vmax.f32 %v975_v59, 0.0  ;;  %v873_v0 = vmul.f32 %v2013_v12, %v701_v60  ;;  %v905_v1 = vmul.f32 %v2013_v12, %v829_v61 }
 0x163   :  { %v703_v2 = vpop.f32.mrf.mxu0  ;;  %v831_v3 = vpop.f32.mrf.mxu1 }
 0x164   :  { %v1568_v4 = vpack.c.bf16 %v1007_v62, %v1007_v62  ;;  %v1600_v5 = vpack.c.bf16 %v1039_v63, %v1039_v63  ;;  %v944_v6 = vadd.f32 %v2018_v14, %v873_v0  ;;  %v976_v7 = vadd.f32 %v2018_v14, %v905_v1 }
 0x165   :  { %v704_v8 = vpop.f32.mrf.mxu0  ;;  %v832_v9 = vpop.f32.mrf.mxu1 }
 0x166   :  { %1328 = vst.msk [vmem:[%s2408_s4 + $0x74] sm:$0xf] %vm1298_vm2, %v1568_v4  ;;  %1360 = vst.msk [vmem:[%s2408_s4 + $0xf4] sm:$0xf] %vm1298_vm2, %v1600_v5  ;;  %v1008_v10 = vmax.f32 %v944_v6, 0.0  ;;  %v1040_v11 = vmax.f32 %v976_v7, 0.0  ;;  %v874_v13 = vmul.f32 %v2013_v12, %v704_v8  ;;  %v906_v15 = vmul.f32 %v2013_v12, %v832_v9 }
 0x167   :  { %v706_v16 = vpop.f32.mrf.mxu0  ;;  %v834_v17 = vpop.f32.mrf.mxu1 }
 0x168   :  { %v1569_v18 = vpack.c.bf16 %v1008_v10, %v1008_v10  ;;  %v1601_v19 = vpack.c.bf16 %v1040_v11, %v1040_v11  ;;  %v945_v20 = vadd.f32 %v2018_v14, %v874_v13  ;;  %v977_v21 = vadd.f32 %v2018_v14, %v906_v15 }
 0x16a   :  { %1329 = vst.msk [vmem:[%s2408_s4 + $0x78] sm:$0xf] %vm1298_vm2, %v1569_v18  ;;  %1361 = vst.msk [vmem:[%s2408_s4 + $0xf8] sm:$0xf] %vm1298_vm2, %v1601_v19  ;;  %v1009_v22 = vmax.f32 %v945_v20, 0.0  ;;  %v1041_v12 = vmax.f32 %v977_v21, 0.0 }
 0x16c   :  { %v1570_v23 = vpack.c.bf16 %v1009_v22, %v1009_v22  ;;  %v1602_v24 = vpack.c.bf16 %v1041_v12, %v1041_v12 }
 0x16e   :  { %1330 = vst.msk [vmem:[%s2408_s4 + $0x7c] sm:$0xf] %vm1298_vm2, %v1570_v23  ;;  %1362 = vst.msk [vmem:[%s2408_s4 + $0xfc] sm:$0xf] %vm1298_vm2, %v1602_v24 }

// kernel: _lambda_.59
= control target key start
LH: loop header
LB: loop body
LE: loop exit
PB: predicated region body
PF: predicated region fallthrough
CT: control target
= control target key end

     0   :  { %s391_s6 = smov 0   ;;  %s434_s0 = inlined_call_operand.vmem [shape: bf16[16,9,64], index: 0, kind: input, shape index: {}]   ;;  %s435_s1 = inlined_call_operand.vmem [shape: bf16[16,64], index: 1, kind: output, shape index: {}]  }
   0x1 LB: > { %s397_s7 = sadd.s32 4294967295, %s379_s6   ;;  %p341_p0 = scmp.ge.s32.totalorder %s379_s6, 1  ;;  %s379_s6 = sphi %s391_s6, %s11_s6  }
   0x2   : > { %p89_p1 = scmp.lt.s32.totalorder %s379_s6, 3 }
   0x4   : > { %p90_p2 = pnand %p341_p0, %p89_p1 }
   0x5   : > { %s342_s8 = sshll.u32 (!%p90_p2), %s397_s7, 3  ;;  %p116_p4 = scmp.lt.s32.totalorder (!%p90_p2), %s397_s7, 1 }
   0x6   : > { %93 = sbr.rel (%p90_p2) target bundleno = 53 (0x35), region = 24  ;;  %p110_p3 = scmp.lt.s32.totalorder (!%p90_p2), %s342_s8, 15 }
   0xb   : > { %s437_s8 = smov (!%p110_p3, %s342_s8), 15  ;;  %vm152_vm0 = vcmask 523264   ;;  %vm154_vm1 = vcmask 516096   ;;  %vm266_vm2 = vcmask 1041409   ;;  %vm268_vm3 = vcmask 1042434   ;;  %s439_s7 = smov (!%p116_p4, %s397_s7), 1 }
   0xc   : > { %s356_s9 = sshll.u32 %s437_s8, 3  ;;  %vm270_vm4 = vcmask 1043459   ;;  %vm272_vm5 = vcmask 1044484   ;;  %vm274_vm6 = vcmask 1045509   ;;  %vm276_vm7 = vcmask 1046534   ;;  %s345_s13 = sshll.u32 %s439_s7, 2 }
   0xd   : > { %s114_s12 = scalar_lea.vmem %s434_s0, %s356_s9  ;;  %vm278_vm8 = vcmask 1047559   ;;  %s119_s16 = scalar_lea.vmem %s435_s1, %s345_s13  ;;  %vm282_vm9 = vcmask 519168  }
   0xe   : > { %v120_v0 = vld [vmem:[%s114_s12] ss:$8 sps:$4 sm:$0xff]   ;;  %v121_v1 = vld [vmem:[%s114_s12 + $0x4] sm:$0x1]  ;;  %v123_v2 = vld [vmem:[%s114_s12 + $0xc] sm:$0x1] }
   0xf   : > { %v124_v3 = vld [vmem:[%s114_s12 + $0x10] ss:$8 sps:$4 sm:$0xff]   ;;  %v125_v4 = vld [vmem:[%s114_s12 + $0x14] sm:$0x1]  ;;  %v127_v5 = vld [vmem:[%s114_s12 + $0x1c] sm:$0x1]  ;;  %v136_v6 = vunpack.c.l.bf16 %v120_v0  ;;  %v137_v7 = vunpack.c.l.bf16 %v121_v1  ;;  %v138_v8 = vunpack.c.h.bf16 %v120_v0  ;;  %v139_v9 = vunpack.c.l.bf16 %v123_v2 }
  0x10   : > { %v128_v10 = vld [vmem:[%s114_s12 + $0x20] ss:$8 sps:$4 sm:$0xff]   ;;  %v129_v11 = vld [vmem:[%s114_s12 + $0x24] sm:$0x1]  ;;  %v131_v12 = vld [vmem:[%s114_s12 + $0x2c] sm:$0x1]  ;;  %v140_v13 = vunpack.c.l.bf16 %v124_v3  ;;  %v141_v14 = vunpack.c.l.bf16 %v125_v4  ;;  %v142_v15 = vunpack.c.h.bf16 %v124_v3  ;;  %v143_v16 = vunpack.c.l.bf16 %v127_v5 }
  0x11   : > { %v132_v17 = vld [vmem:[%s114_s12 + $0x30] ss:$8 sps:$4 sm:$0xff]   ;;  %v133_v18 = vld [vmem:[%s114_s12 + $0x34] sm:$0x1]  ;;  %v135_v19 = vld [vmem:[%s114_s12 + $0x3c] sm:$0x1]  ;;  %v144_v20 = vunpack.c.l.bf16 %v128_v10  ;;  %v145_v21 = vunpack.c.l.bf16 %v129_v11  ;;  %v146_v22 = vunpack.c.h.bf16 %v128_v10  ;;  %v147_v23 = vunpack.c.l.bf16 %v131_v12 }
  0x12   : > { %v148_v24 = vunpack.c.l.bf16 %v132_v17  ;;  %v149_v25 = vunpack.c.l.bf16 %v133_v18  ;;  %v150_v26 = vunpack.c.h.bf16 %v132_v17  ;;  %v151_v27 = vunpack.c.l.bf16 %v135_v19 }
  0x13   : > { %v153_v28 = vsel %vm152_vm0, %v136_v6, -inf  ;;  %v155_v29 = vsel %vm154_vm1, %v137_v7, -inf  ;;  %v163_v30 = vsel %vm152_vm0, %v138_v8, -inf  ;;  %v164_v31 = vsel %vm154_vm1, %v139_v9, -inf }
  0x14   : > { %v156_v32 = vmax.f32 %v153_v28, %v155_v29  ;;  %v165_v33 = vmax.f32 %v163_v30, %v164_v31  ;;  %v172_v34 = vsel %vm152_vm0, %v140_v13, -inf  ;;  %v173_v35 = vsel %vm154_vm1, %v141_v14, -inf }
  0x15   : > { %v174_v36 = vmax.f32 %v172_v34, %v173_v35  ;;  %v181_v37 = vsel %vm152_vm0, %v142_v15, -inf  ;;  %v182_v38 = vsel %vm154_vm1, %v143_v16, -inf  ;;  %v190_v39 = vsel %vm152_vm0, %v144_v20, -inf }
  0x16   : > { %v157_v40 = vrot.slane %v156_v32, 4  ;;  %v166_v41 = vrot.slane %v165_v33, 4  ;;  %v183_v42 = vmax.f32 %v181_v37, %v182_v38  ;;  %v191_v43 = vsel %vm154_vm1, %v145_v21, -inf }
  0x17   : > { %v175_v44 = vrot.slane %v174_v36, 4  ;;  %v192_v45 = vmax.f32 %v190_v39, %v191_v43  ;;  %v199_v46 = vsel %vm152_vm0, %v146_v22, -inf  ;;  %v200_v47 = vsel %vm154_vm1, %v147_v23, -inf }
  0x18   : > { %v158_v48 = vmax.f32 %v156_v32, %v157_v40  ;;  %v167_v49 = vmax.f32 %v165_v33, %v166_v41  ;;  %v184_v50 = vrot.slane %v183_v42, 4  ;;  %v201_v51 = vmax.f32 %v199_v46, %v200_v47 }
  0x19   : > { %v176_v52 = vmax.f32 %v174_v36, %v175_v44  ;;  %v193_v53 = vrot.slane %v192_v45, 4  ;;  %v208_v54 = vsel %vm152_vm0, %v148_v24, -inf  ;;  %v209_v55 = vsel %vm154_vm1, %v149_v25, -inf }
  0x1a   : > { %v159_v56 = vrot.slane %v158_v48, 2  ;;  %v168_v57 = vrot.slane %v167_v49, 2  ;;  %v185_v58 = vmax.f32 %v183_v42, %v184_v50  ;;  %v202_v59 = vrot.slane %v201_v51, 4 }
  0x1b   : > { %v177_v60 = vrot.slane %v176_v52, 2  ;;  %v194_v61 = vmax.f32 %v192_v45, %v193_v53  ;;  %v210_v62 = vmax.f32 %v208_v54, %v209_v55  ;;  %v217_v63 = vsel %vm152_vm0, %v150_v26, -inf }
  0x1c   : > { %v160_v0 = vmax.f32 %v158_v48, %v159_v56  ;;  %v169_v1 = vmax.f32 %v167_v49, %v168_v57  ;;  %v186_v2 = vrot.slane %v185_v58, 2  ;;  %v203_v3 = vmax.f32 %v201_v51, %v202_v59 }
  0x1d   : > { %v178_v4 = vmax.f32 %v176_v52, %v177_v60  ;;  %v195_v5 = vrot.slane %v194_v61, 2  ;;  %v211_v6 = vrot.slane %v210_v62, 4  ;;  %v218_v7 = vsel %vm154_vm1, %v151_v27, -inf }
  0x1e   : > { %v161_v8 = vrot.slane %v160_v0, 1  ;;  %v170_v9 = vrot.slane %v169_v1, 1  ;;  %v187_v10 = vmax.f32 %v185_v58, %v186_v2  ;;  %v204_v11 = vrot.slane %v203_v3, 2 }
  0x1f   : > { %v179_v12 = vrot.slane %v178_v4, 1  ;;  %v196_v13 = vmax.f32 %v194_v61, %v195_v5  ;;  %v212_v14 = vmax.f32 %v210_v62, %v211_v6  ;;  %v219_v15 = vmax.f32 %v217_v63, %v218_v7 }
  0x20   : > { %v162_v16 = vmax.f32 %v160_v0, %v161_v8  ;;  %v171_v17 = vmax.f32 %v169_v1, %v170_v9  ;;  %v188_v18 = vrot.slane %v187_v10, 1  ;;  %v205_v19 = vmax.f32 %v203_v3, %v204_v11 }
  0x21   : > { %v180_v20 = vmax.f32 %v178_v4, %v179_v12  ;;  %v197_v21 = vrot.slane %v196_v13, 1  ;;  %v213_v22 = vrot.slane %v212_v14, 2  ;;  %v220_v23 = vrot.slane %v219_v15, 4 }
  0x22   : > { %v189_v24 = vmax.f32 %v187_v10, %v188_v18  ;;  %v206_v25 = vrot.slane %v205_v19, 1  ;;  %v357_v26 = vpack.c.bf16 %v162_v16, %v162_v16  ;;  %v358_v27 = vpack.c.bf16 %v171_v17, %v171_v17 }
  0x23   : > { %v198_v28 = vmax.f32 %v196_v13, %v197_v21  ;;  %v214_v29 = vmax.f32 %v212_v14, %v213_v22  ;;  %v221_v30 = vmax.f32 %v219_v15, %v220_v23  ;;  %v359_v31 = vpack.c.bf16 %v180_v20, %v180_v20 }
  0x24   : > { %v207_v32 = vmax.f32 %v205_v19, %v206_v25  ;;  %v360_v33 = vpack.c.bf16 %v189_v24, %v189_v24  ;;  %v258_v34 = vunpack.c.l.b16 %v357_v26  ;;  %v259_v35 = vunpack.c.l.b16 %v358_v27 }
  0x25   : > { %v215_v36 = vrot.slane %v214_v29, 1  ;;  %v222_v37 = vrot.slane %v221_v30, 2  ;;  %v361_v38 = vpack.c.bf16 %v198_v28, %v198_v28  ;;  %v260_v39 = vunpack.c.l.b16 %v359_v31 }
  0x26   : > { %v362_v40 = vpack.c.bf16 %v207_v32, %v207_v32  ;;  %v261_v41 = vunpack.c.l.b16 %v360_v33  ;;  %v267_v42 = vsel %vm266_vm2, %v259_v35, %v258_v34 }
  0x27   : > { %v216_v43 = vmax.f32 %v214_v29, %v215_v36  ;;  %v223_v44 = vmax.f32 %v221_v30, %v222_v37  ;;  %v262_v45 = vunpack.c.l.b16 %v361_v38  ;;  %v269_v46 = vsel %vm268_vm3, %v260_v39, %v267_v42 }
  0x28   : > { %v263_v47 = vunpack.c.l.b16 %v362_v40  ;;  %v271_v48 = vsel %vm270_vm4, %v261_v41, %v269_v46 }
  0x29   : > { %v224_v49 = vrot.slane %v223_v44, 1  ;;  %v363_v50 = vpack.c.bf16 %v216_v43, %v216_v43  ;;  %v273_v51 = vsel %vm272_vm5, %v262_v45, %v271_v48 }
  0x2a   : > { %v275_v54 = vsel %vm274_vm6, %v263_v47, %v273_v51 }
  0x2b   : > { %v225_v52 = vmax.f32 %v223_v44, %v224_v49  ;;  %v264_v53 = vunpack.c.l.b16 %v363_v50 }
  0x2d   : > { %v364_v55 = vpack.c.bf16 %v225_v52, %v225_v52  ;;  %v277_v56 = vsel %vm276_vm7, %v264_v53, %v275_v54 }
  0x2f   : > { %v265_v57 = vunpack.c.l.b16 %v364_v55 }
  0x31   : > { %v279_v58 = vsel %vm278_vm8, %v265_v57, %v277_v56 }
  0x32   : > { %v280_v59 = vpack.c.b16 %v279_v58, %v279_v58 }
  0x34   : > { %283 = vst.msk [vmem:[%s119_s16] sm:$0xf] %vm282_vm9, %v280_v59 }
  0x35 PF: > { %s11_s6 = sadd.s32 1, %s379_s6  }
  0x36   : > { %p8_p5 = scmp.ge.s32.totalorder %s11_s6, 4  }
  0x38   :  { %10 = sbr.rel (!%p8_p5) target bundleno = 1 (0x1), region = 54 }

// kernel: _lambda_.60
= control target key start
LH: loop header
LB: loop body
LE: loop exit
PB: predicated region body
PF: predicated region fallthrough
CT: control target
= control target key end

     0   :  { %vm100_vm0 = vcmask 1043456   ;;  %vm75_vm1 = vcmask 64512   ;;  %vm327_vm2 = vcmask 60416   ;;  %s603_s1 = inlined_call_operand.vmem [shape: bf16[8,8], index: 1, kind: input, shape index: {}]   ;;  %s604_s0 = inlined_call_operand.vmem [shape: bf16[128,8], index: 0, kind: input, shape index: {}]   ;;  %s605_s2 = inlined_call_operand.vmem [shape: f32[1,8], index: 2, kind: input, shape index: {}]   ;;  %s606_s3 = inlined_call_operand.vmem [shape: f32[1,8], index: 3, kind: input, shape index: {}]   ;;  %s607_s4 = inlined_call_operand.vmem [shape: bf16[128,8], index: 4, kind: output, shape index: {}]  }
   0x1   :  { %v34_v0 = vld [vmem:[%s603_s1] sm:$0xf]  ;;  %v431_v4 = vld [vmem:[%s604_s0 + $0x8] sm:$0xff]   ;;  %v433_v6 = vld [vmem:[%s604_s0 + $0x10] sm:$0xff]  }
   0x2   :  { %427 = vmatprep.subr.msk.bf16.mxu0 %vm100_vm0, %v34_v0  ;;  %428 = vmatprep.subr.msk.bf16.mxu1 %vm100_vm0, %v34_v0  ;;  %v102_v1 = vsel %vm100_vm0, %v34_v0, 0  ;;  %v429_v2 = vld [vmem:[%s604_s0] sm:$0xff]   ;;  %v432_v5 = vld [vmem:[%s604_s0 + $0x28] sm:$0xff]   ;;  %v434_v7 = vld [vmem:[%s604_s0 + $0x30] sm:$0xff]  }
   0x3   :  { %408 = vmatpush3.bf16.msra.mxu0 %v102_v1  ;;  %426 = vmatpush3.bf16.msra.mxu1 %v102_v1  ;;  %v430_v3 = vld [vmem:[%s604_s0 + $0x20] sm:$0xff]   ;;  %v435_v8 = vld [vmem:[%s604_s0 + $0x18] sm:$0xff]  }
   0x4   :  { %409 = vmatprep.mubr.msk.bf16.mxu0 %vm75_vm1, %v429_v2  ;;  %417 = vmatprep.mubr.msk.bf16.mxu1 %vm75_vm1, %v430_v3  ;;  %v436_v9 = vld [vmem:[%s604_s0 + $0x38] sm:$0xff]   ;;  %v500_v10 = vld [vmem:[%s605_s2] ss:$0 sm:$0xff] }
   0x5   :  { %v505_v12 = vld [vmem:[%s606_s3] ss:$0 sm:$0xff] }
   0x6   :  { %410 = vmatmul.mubr.msk.bf16.vlgmr.msra.gmra.mxu0 %vm75_vm1, %v431_v4  ;;  %418 = vmatmul.mubr.msk.bf16.vlgmr.msra.gmra.mxu1 %vm75_vm1, %v432_v5 }
   0x7   :  { %413 = vmatprep.mubr.msk.bf16.mxu0 %vm75_vm1, %v433_v6  ;;  %421 = vmatprep.mubr.msk.bf16.mxu1 %vm75_vm1, %v434_v7 }
   0xe   :  { %414 = vmatmul.mubr.msk.bf16.gmra.mxu0 %vm75_vm1, %v435_v8  ;;  %422 = vmatmul.mubr.msk.bf16.gmra.mxu1 %vm75_vm1, %v436_v9 }
  0xc6   :  { %v411_v11 = vpop.f32.mrf.mxu0  ;;  %v419_v14 = vpop.f32.mrf.mxu1 }
  0xc7   :  { %v210_v13 = vmul.f32 %v411_v11, %v500_v10  ;;  %v218_v15 = vmul.f32 %v419_v14, %v500_v10 }
  0xc8   :  { %v138_v16 = vpop.f32.mrf.mxu0  ;;  %v170_v19 = vpop.f32.mrf.mxu1 }
  0xc9   :  { %v233_v17 = vadd.f32 %v505_v12, %v210_v13  ;;  %v208_v18 = vmul.f32 %v500_v10, %v138_v16  ;;  %v241_v20 = vadd.f32 %v505_v12, %v218_v15  ;;  %v216_v21 = vmul.f32 %v500_v10, %v170_v19 }
  0xca   :  { %v412_v22 = vpop.f32.mrf.mxu0  ;;  %v420_v26 = vpop.f32.mrf.mxu1 }
  0xcb   :  { %v249_v23 = vmax.f32 %v233_v17, 0.0  ;;  %v231_v24 = vadd.f32 %v505_v12, %v208_v18  ;;  %v211_v25 = vmul.f32 %v412_v22, %v500_v10  ;;  %v257_v27 = vmax.f32 %v241_v20, 0.0 }
  0xcc   :  { %v239_v28 = vadd.f32 %v505_v12, %v216_v21  ;;  %v219_v29 = vmul.f32 %v420_v26, %v500_v10  ;;  %v141_v30 = vpop.f32.mrf.mxu0  ;;  %v173_v35 = vpop.f32.mrf.mxu1 }
  0xcd   :  { %v384_v31 = vpack.c.bf16 %v249_v23, %v249_v23  ;;  %v247_v32 = vmax.f32 %v231_v24, 0.0  ;;  %v234_v33 = vadd.f32 %v505_v12, %v211_v25  ;;  %v209_v34 = vmul.f32 %v500_v10, %v141_v30 }
  0xce   :  { %v392_v36 = vpack.c.bf16 %v257_v27, %v257_v27  ;;  %v255_v37 = vmax.f32 %v239_v28, 0.0  ;;  %v242_v38 = vadd.f32 %v505_v12, %v219_v29  ;;  %v217_v39 = vmul.f32 %v500_v10, %v173_v35  ;;  %v415_v40 = vpop.f32.mrf.mxu0  ;;  %v423_v45 = vpop.f32.mrf.mxu1 }
  0xcf   :  { %330 = vst.msk [vmem:[%s607_s4 + $0x8] sm:$0xf] %vm327_vm2, %v384_v31  ;;  %v382_v41 = vpack.c.bf16 %v247_v32, %v247_v32  ;;  %v250_v42 = vmax.f32 %v234_v33, 0.0  ;;  %v232_v43 = vadd.f32 %v505_v12, %v209_v34  ;;  %v214_v44 = vmul.f32 %v415_v40, %v500_v10 }
  0xd0   :  { %338 = vst.msk [vmem:[%s607_s4 + $0x28] sm:$0xf] %vm327_vm2, %v392_v36  ;;  %v390_v46 = vpack.c.bf16 %v255_v37, %v255_v37  ;;  %v258_v47 = vmax.f32 %v242_v38, 0.0  ;;  %v240_v48 = vadd.f32 %v505_v12, %v217_v39  ;;  %v222_v49 = vmul.f32 %v423_v45, %v500_v10  ;;  %v154_v50 = vpop.f32.mrf.mxu0  ;;  %v186_v55 = vpop.f32.mrf.mxu1 }
  0xd1   :  { %328 = vst.msk [vmem:[%s607_s4] sm:$0xf] %vm327_vm2, %v382_v41  ;;  %v385_v51 = vpack.c.bf16 %v250_v42, %v250_v42  ;;  %v248_v52 = vmax.f32 %v232_v43, 0.0  ;;  %v237_v53 = vadd.f32 %v505_v12, %v214_v44  ;;  %v212_v54 = vmul.f32 %v500_v10, %v154_v50 }
  0xd2   :  { %336 = vst.msk [vmem:[%s607_s4 + $0x20] sm:$0xf] %vm327_vm2, %v390_v46  ;;  %v393_v56 = vpack.c.bf16 %v258_v47, %v258_v47  ;;  %v256_v57 = vmax.f32 %v240_v48, 0.0  ;;  %v245_v58 = vadd.f32 %v505_v12, %v222_v49  ;;  %v220_v59 = vmul.f32 %v500_v10, %v186_v55  ;;  %v416_v60 = vpop.f32.mrf.mxu0  ;;  %v424_v1 = vpop.f32.mrf.mxu1 }
  0xd3   :  { %331 = vst.msk [vmem:[%s607_s4 + $0xc] sm:$0xf] %vm327_vm2, %v385_v51  ;;  %v383_v61 = vpack.c.bf16 %v248_v52, %v248_v52  ;;  %v253_v62 = vmax.f32 %v237_v53, 0.0  ;;  %v235_v63 = vadd.f32 %v505_v12, %v212_v54  ;;  %v215_v0 = vmul.f32 %v416_v60, %v500_v10 }
  0xd4   :  { %339 = vst.msk [vmem:[%s607_s4 + $0x2c] sm:$0xf] %vm327_vm2, %v393_v56  ;;  %v391_v2 = vpack.c.bf16 %v256_v57, %v256_v57  ;;  %v261_v3 = vmax.f32 %v245_v58, 0.0  ;;  %v243_v4 = vadd.f32 %v505_v12, %v220_v59  ;;  %v223_v5 = vmul.f32 %v424_v1, %v500_v10  ;;  %v157_v6 = vpop.f32.mrf.mxu0  ;;  %v189_v13 = vpop.f32.mrf.mxu1 }
  0xd5   :  { %329 = vst.msk [vmem:[%s607_s4 + $0x4] sm:$0xf] %vm327_vm2, %v383_v61  ;;  %v388_v7 = vpack.c.bf16 %v253_v62, %v253_v62  ;;  %v251_v8 = vmax.f32 %v235_v63, 0.0  ;;  %v238_v9 = vadd.f32 %v505_v12, %v215_v0  ;;  %v213_v11 = vmul.f32 %v500_v10, %v157_v6 }
  0xd6   :  { %337 = vst.msk [vmem:[%s607_s4 + $0x24] sm:$0xf] %vm327_vm2, %v391_v2  ;;  %v396_v14 = vpack.c.bf16 %v261_v3, %v261_v3  ;;  %v259_v15 = vmax.f32 %v243_v4, 0.0  ;;  %v246_v16 = vadd.f32 %v505_v12, %v223_v5  ;;  %v221_v17 = vmul.f32 %v500_v10, %v189_v13 }
  0xd7   :  { %334 = vst.msk [vmem:[%s607_s4 + $0x18] sm:$0xf] %vm327_vm2, %v388_v7  ;;  %v386_v18 = vpack.c.bf16 %v251_v8, %v251_v8  ;;  %v254_v19 = vmax.f32 %v238_v9, 0.0  ;;  %v236_v20 = vadd.f32 %v505_v12, %v213_v11 }
  0xd8   :  { %342 = vst.msk [vmem:[%s607_s4 + $0x38] sm:$0xf] %vm327_vm2, %v396_v14  ;;  %v394_v21 = vpack.c.bf16 %v259_v15, %v259_v15  ;;  %v262_v22 = vmax.f32 %v246_v16, 0.0  ;;  %v244_v23 = vadd.f32 %v505_v12, %v221_v17 }
  0xd9   :  { %332 = vst.msk [vmem:[%s607_s4 + $0x10] sm:$0xf] %vm327_vm2, %v386_v18  ;;  %v389_v10 = vpack.c.bf16 %v254_v19, %v254_v19  ;;  %v252_v24 = vmax.f32 %v236_v20, 0.0 }
  0xda   :  { %340 = vst.msk [vmem:[%s607_s4 + $0x30] sm:$0xf] %vm327_vm2, %v394_v21  ;;  %v397_v25 = vpack.c.bf16 %v262_v22, %v262_v22  ;;  %v260_v26 = vmax.f32 %v244_v23, 0.0 }
  0xdb   :  { %335 = vst.msk [vmem:[%s607_s4 + $0x1c] sm:$0xf] %vm327_vm2, %v389_v10  ;;  %v387_v12 = vpack.c.bf16 %v252_v24, %v252_v24 }
  0xdc   :  { %343 = vst.msk [vmem:[%s607_s4 + $0x3c] sm:$0xf] %vm327_vm2, %v397_v25  ;;  %v395_v27 = vpack.c.bf16 %v260_v26, %v260_v26 }
  0xdd   :  { %333 = vst.msk [vmem:[%s607_s4 + $0x14] sm:$0xf] %vm327_vm2, %v387_v12 }
  0xde   :  { %341 = vst.msk [vmem:[%s607_s4 + $0x34] sm:$0xf] %vm327_vm2, %v395_v27 }

// kernel: _lambda_.61
= control target key start
LH: loop header
LB: loop body
LE: loop exit
PB: predicated region body
PF: predicated region fallthrough
CT: control target
= control target key end

     0   :  { %vm135_vm0 = vcmask 1043456   ;;  %vm110_vm1 = vcmask 588800   ;;  %vm362_vm2 = vcmask 60416   ;;  %s680_s1 = inlined_call_operand.vmem [shape: bf16[72,8], index: 1, kind: input, shape index: {}]   ;;  %s681_s0 = inlined_call_operand.vmem [shape: bf16[128,72], index: 0, kind: input, shape index: {}]   ;;  %s682_s2 = inlined_call_operand.vmem [shape: f32[1,8], index: 2, kind: input, shape index: {}]   ;;  %s683_s3 = inlined_call_operand.vmem [shape: f32[1,8], index: 3, kind: input, shape index: {}]   ;;  %s684_s4 = inlined_call_operand.vmem [shape: bf16[128,8], index: 4, kind: output, shape index: {}]  }
   0x1   :  { %v489_v0 = vld [vmem:[%s680_s1 + $0x20] ss:$0 sps:$4 sm:$0xff]   ;;  %v490_v1 = vld [vmem:[%s680_s1 + $0x18] sm:$0xff]   ;;  %v491_v3 = vld [vmem:[%s680_s1 + $0x10] sm:$0xff]  }
   0x2   :  { %487 = vmatprep.subr.msk.bf16.mxu0 %vm135_vm0, %v489_v0  ;;  %488 = vmatprep.subr.msk.bf16.mxu1 %vm135_vm0, %v489_v0  ;;  %v137_v2 = vsel %vm135_vm0, %v489_v0, 0  ;;  %v494_v4 = vld [vmem:[%s681_s0] sm:$0xff]   ;;  %v492_v6 = vld [vmem:[%s680_s1 + $0x8] sm:$0xff]   ;;  %v498_v10 = vld [vmem:[%s681_s0 + $0x10] sm:$0xff]  }
   0x3   :  { %452 = vmatpush3.bf16.msra.mxu0 %v137_v2  ;;  %482 = vmatpush3.bf16.msra.mxu1 %v137_v2  ;;  %v495_v5 = vld [vmem:[%s681_s0 + $0x20] sm:$0xff]   ;;  %v496_v8 = vld [vmem:[%s681_s0 + $0x8] sm:$0xff]   ;;  %v499_v11 = vld [vmem:[%s681_s0 + $0x30] sm:$0xff]  }
   0x4   :  { %453 = vmatprep.subr.bf16.mxu0 %v490_v1  ;;  %478 = vmatprep.subr.bf16.mxu1 %v490_v1  ;;  %v493_v7 = vld [vmem:[%s680_s1] sm:$0xff]   ;;  %v497_v9 = vld [vmem:[%s681_s0 + $0x28] sm:$0xff]   ;;  %v500_v12 = vld [vmem:[%s681_s0 + $0x18] sm:$0xff]  }
   0x5   :  { %461 = vmatprep.mubr.msk.bf16.mxu0 %vm110_vm1, %v494_v4  ;;  %469 = vmatprep.mubr.msk.bf16.mxu1 %vm110_vm1, %v495_v5  ;;  %v501_v13 = vld [vmem:[%s681_s0 + $0x38] sm:$0xff]   ;;  %v577_v14 = vld [vmem:[%s682_s2] ss:$0 sm:$0xff] }
   0x6   :  { %v582_v16 = vld [vmem:[%s683_s3] ss:$0 sm:$0xff] }
   0x7   :  { %454 = vmatpush3.bf16.msra.mxu0 %v490_v1  ;;  %483 = vmatpush3.bf16.msra.mxu1 %v490_v1 }
   0x8   :  { %455 = vmatprep.subr.bf16.mxu0 %v491_v3  ;;  %479 = vmatprep.subr.bf16.mxu1 %v491_v3 }
   0xb   :  { %456 = vmatpush3.bf16.msra.mxu0 %v491_v3  ;;  %484 = vmatpush3.bf16.msra.mxu1 %v491_v3 }
   0xc   :  { %457 = vmatprep.subr.bf16.mxu0 %v492_v6  ;;  %480 = vmatprep.subr.bf16.mxu1 %v492_v6 }
   0xf   :  { %458 = vmatpush3.bf16.msra.mxu0 %v492_v6  ;;  %485 = vmatpush3.bf16.msra.mxu1 %v492_v6 }
  0x10   :  { %459 = vmatprep.subr.bf16.mxu0 %v493_v7  ;;  %481 = vmatprep.subr.bf16.mxu1 %v493_v7 }
  0x13   :  { %460 = vmatpush3.bf16.msra.mxu0 %v493_v7  ;;  %486 = vmatpush3.bf16.msra.mxu1 %v493_v7 }
  0x16   :  { %462 = vmatmul.mubr.msk.bf16.vlgmr.msra.gmra.mxu0 %vm110_vm1, %v496_v8  ;;  %470 = vmatmul.mubr.msk.bf16.vlgmr.msra.gmra.mxu1 %vm110_vm1, %v497_v9 }
  0x17   :  { %465 = vmatprep.mubr.msk.bf16.mxu0 %vm110_vm1, %v498_v10  ;;  %473 = vmatprep.mubr.msk.bf16.mxu1 %vm110_vm1, %v499_v11 }
  0x1e   :  { %466 = vmatmul.mubr.msk.bf16.gmra.mxu0 %vm110_vm1, %v500_v12  ;;  %474 = vmatmul.mubr.msk.bf16.gmra.mxu1 %vm110_vm1, %v501_v13 }
  0xd6   :  { %v463_v15 = vpop.f32.mrf.mxu0  ;;  %v471_v17 = vpop.f32.mrf.mxu1 }
  0xd7   :  { %v245_v18 = vmul.f32 %v463_v15, %v577_v14  ;;  %v253_v19 = vmul.f32 %v471_v17, %v577_v14 }
  0xd8   :  { %v173_v20 = vpop.f32.mrf.mxu0  ;;  %v205_v21 = vpop.f32.mrf.mxu1 }
  0xd9   :  { %v268_v22 = vadd.f32 %v582_v16, %v245_v18  ;;  %v276_v23 = vadd.f32 %v582_v16, %v253_v19  ;;  %v243_v24 = vmul.f32 %v577_v14, %v173_v20  ;;  %v251_v25 = vmul.f32 %v577_v14, %v205_v21 }
  0xda   :  { %v464_v26 = vpop.f32.mrf.mxu0  ;;  %v472_v27 = vpop.f32.mrf.mxu1 }
  0xdb   :  { %v284_v28 = vmax.f32 %v268_v22, 0.0  ;;  %v292_v29 = vmax.f32 %v276_v23, 0.0  ;;  %v266_v30 = vadd.f32 %v582_v16, %v243_v24  ;;  %v274_v31 = vadd.f32 %v582_v16, %v251_v25 }
  0xdc   :  { %v246_v32 = vmul.f32 %v464_v26, %v577_v14  ;;  %v254_v33 = vmul.f32 %v472_v27, %v577_v14  ;;  %v176_v34 = vpop.f32.mrf.mxu0  ;;  %v208_v35 = vpop.f32.mrf.mxu1 }
  0xdd   :  { %v424_v36 = vpack.c.bf16 %v284_v28, %v284_v28  ;;  %v432_v37 = vpack.c.bf16 %v292_v29, %v292_v29  ;;  %v282_v38 = vmax.f32 %v266_v30, 0.0  ;;  %v290_v39 = vmax.f32 %v274_v31, 0.0 }
  0xde   :  { %v269_v40 = vadd.f32 %v582_v16, %v246_v32  ;;  %v277_v41 = vadd.f32 %v582_v16, %v254_v33  ;;  %v244_v42 = vmul.f32 %v577_v14, %v176_v34  ;;  %v252_v43 = vmul.f32 %v577_v14, %v208_v35  ;;  %v467_v44 = vpop.f32.mrf.mxu0  ;;  %v475_v45 = vpop.f32.mrf.mxu1 }
  0xdf   :  { %365 = vst.msk [vmem:[%s684_s4 + $0x8] sm:$0xf] %vm362_vm2, %v424_v36  ;;  %373 = vst.msk [vmem:[%s684_s4 + $0x28] sm:$0xf] %vm362_vm2, %v432_v37  ;;  %v422_v46 = vpack.c.bf16 %v282_v38, %v282_v38  ;;  %v430_v47 = vpack.c.bf16 %v290_v39, %v290_v39  ;;  %v249_v48 = vmul.f32 %v467_v44, %v577_v14 }
  0xe0   :  { %v257_v49 = vmul.f32 %v475_v45, %v577_v14  ;;  %v285_v50 = vmax.f32 %v269_v40, 0.0  ;;  %v293_v51 = vmax.f32 %v277_v41, 0.0  ;;  %v267_v52 = vadd.f32 %v582_v16, %v244_v42  ;;  %v189_v54 = vpop.f32.mrf.mxu0  ;;  %v221_v55 = vpop.f32.mrf.mxu1 }
  0xe1   :  { %v275_v53 = vadd.f32 %v582_v16, %v252_v43  ;;  %363 = vst.msk [vmem:[%s684_s4] sm:$0xf] %vm362_vm2, %v422_v46  ;;  %371 = vst.msk [vmem:[%s684_s4 + $0x20] sm:$0xf] %vm362_vm2, %v430_v47  ;;  %v272_v56 = vadd.f32 %v582_v16, %v249_v48  ;;  %v247_v58 = vmul.f32 %v577_v14, %v189_v54 }
  0xe2   :  { %v280_v57 = vadd.f32 %v582_v16, %v257_v49  ;;  %v255_v59 = vmul.f32 %v577_v14, %v221_v55  ;;  %v425_v60 = vpack.c.bf16 %v285_v50, %v285_v50  ;;  %v433_v61 = vpack.c.bf16 %v293_v51, %v293_v51  ;;  %v468_v0 = vpop.f32.mrf.mxu0  ;;  %v476_v1 = vpop.f32.mrf.mxu1 }
  0xe3   :  { %v283_v62 = vmax.f32 %v267_v52, 0.0  ;;  %v291_v63 = vmax.f32 %v275_v53, 0.0  ;;  %v288_v2 = vmax.f32 %v272_v56, 0.0  ;;  %v270_v4 = vadd.f32 %v582_v16, %v247_v58 }
  0xe4   :  { %v296_v3 = vmax.f32 %v280_v57, 0.0  ;;  %v278_v5 = vadd.f32 %v582_v16, %v255_v59  ;;  %366 = vst.msk [vmem:[%s684_s4 + $0xc] sm:$0xf] %vm362_vm2, %v425_v60  ;;  %374 = vst.msk [vmem:[%s684_s4 + $0x2c] sm:$0xf] %vm362_vm2, %v433_v61  ;;  %v250_v8 = vmul.f32 %v468_v0, %v577_v14  ;;  %v258_v9 = vmul.f32 %v476_v1, %v577_v14  ;;  %v192_v10 = vpop.f32.mrf.mxu0  ;;  %v224_v11 = vpop.f32.mrf.mxu1 }
  0xe5   :  { %v423_v6 = vpack.c.bf16 %v283_v62, %v283_v62  ;;  %v431_v7 = vpack.c.bf16 %v291_v63, %v291_v63  ;;  %v428_v12 = vpack.c.bf16 %v288_v2, %v288_v2  ;;  %v286_v15 = vmax.f32 %v270_v4, 0.0 }
  0xe6   :  { %v436_v13 = vpack.c.bf16 %v296_v3, %v296_v3  ;;  %v294_v17 = vmax.f32 %v278_v5, 0.0  ;;  %v273_v18 = vadd.f32 %v582_v16, %v250_v8  ;;  %v281_v19 = vadd.f32 %v582_v16, %v258_v9 }
  0xe7   :  { %364 = vst.msk [vmem:[%s684_s4 + $0x4] sm:$0xf] %vm362_vm2, %v423_v6  ;;  %372 = vst.msk [vmem:[%s684_s4 + $0x24] sm:$0xf] %vm362_vm2, %v431_v7  ;;  %v248_v20 = vmul.f32 %v577_v14, %v192_v10  ;;  %v256_v21 = vmul.f32 %v577_v14, %v224_v11  ;;  %v426_v22 = vpack.c.bf16 %v286_v15, %v286_v15 }
  0xe8   :  { %369 = vst.msk [vmem:[%s684_s4 + $0x18] sm:$0xf] %vm362_vm2, %v428_v12  ;;  %377 = vst.msk [vmem:[%s684_s4 + $0x38] sm:$0xf] %vm362_vm2, %v436_v13  ;;  %v434_v23 = vpack.c.bf16 %v294_v17, %v294_v17  ;;  %v289_v24 = vmax.f32 %v273_v18, 0.0  ;;  %v297_v25 = vmax.f32 %v281_v19, 0.0 }
  0xe9   :  { %v271_v26 = vadd.f32 %v582_v16, %v248_v20  ;;  %v279_v27 = vadd.f32 %v582_v16, %v256_v21  ;;  %367 = vst.msk [vmem:[%s684_s4 + $0x10] sm:$0xf] %vm362_vm2, %v426_v22 }
  0xea   :  { %375 = vst.msk [vmem:[%s684_s4 + $0x30] sm:$0xf] %vm362_vm2, %v434_v23  ;;  %v429_v14 = vpack.c.bf16 %v289_v24, %v289_v24  ;;  %v437_v28 = vpack.c.bf16 %v297_v25, %v297_v25 }
  0xeb   :  { %v287_v29 = vmax.f32 %v271_v26, 0.0  ;;  %v295_v30 = vmax.f32 %v279_v27, 0.0 }
  0xec   :  { %370 = vst.msk [vmem:[%s684_s4 + $0x1c] sm:$0xf] %vm362_vm2, %v429_v14  ;;  %378 = vst.msk [vmem:[%s684_s4 + $0x3c] sm:$0xf] %vm362_vm2, %v437_v28 }
  0xed   :  { %v427_v16 = vpack.c.bf16 %v287_v29, %v287_v29  ;;  %v435_v31 = vpack.c.bf16 %v295_v30, %v295_v30 }
  0xef   :  { %368 = vst.msk [vmem:[%s684_s4 + $0x14] sm:$0xf] %vm362_vm2, %v427_v16  ;;  %376 = vst.msk [vmem:[%s684_s4 + $0x34] sm:$0xf] %vm362_vm2, %v435_v31 }

// kernel: _lambda_.62
= control target key start
LH: loop header
LB: loop body
LE: loop exit
PB: predicated region body
PF: predicated region fallthrough
CT: control target
= control target key end

     0   :  { %vm100_vm0 = vcmask 1043456   ;;  %vm75_vm1 = vcmask 64512   ;;  %vm311_vm2 = vcmask 257024   ;;  %s587_s1 = inlined_call_operand.vmem [shape: bf16[8,32], index: 1, kind: input, shape index: {}]   ;;  %s588_s0 = inlined_call_operand.vmem [shape: bf16[128,8], index: 0, kind: input, shape index: {}]   ;;  %s589_s2 = inlined_call_operand.vmem [shape: f32[1,32], index: 2, kind: input, shape index: {}]   ;;  %s590_s3 = inlined_call_operand.vmem [shape: f32[1,32], index: 3, kind: input, shape index: {}]   ;;  %s591_s4 = inlined_call_operand.vmem [shape: bf16[128,32], index: 4, kind: output, shape index: {}]  }
   0x1   :  { %v34_v0 = vld [vmem:[%s587_s1] sm:$0xf]  ;;  %v415_v4 = vld [vmem:[%s588_s0 + $0x8] sm:$0xff]   ;;  %v417_v6 = vld [vmem:[%s588_s0 + $0x10] sm:$0xff]  }
   0x2   :  { %411 = vmatprep.subr.msk.bf16.mxu0 %vm100_vm0, %v34_v0  ;;  %412 = vmatprep.subr.msk.bf16.mxu1 %vm100_vm0, %v34_v0  ;;  %v102_v1 = vsel %vm100_vm0, %v34_v0, 0  ;;  %v413_v2 = vld [vmem:[%s588_s0] sm:$0xff]   ;;  %v416_v5 = vld [vmem:[%s588_s0 + $0x28] sm:$0xff]   ;;  %v418_v7 = vld [vmem:[%s588_s0 + $0x30] sm:$0xff]  }
   0x3   :  { %392 = vmatpush3.bf16.msra.mxu0 %v102_v1  ;;  %410 = vmatpush3.bf16.msra.mxu1 %v102_v1  ;;  %v414_v3 = vld [vmem:[%s588_s0 + $0x20] sm:$0xff]   ;;  %v419_v8 = vld [vmem:[%s588_s0 + $0x18] sm:$0xff]  }
   0x4   :  { %393 = vmatprep.mubr.msk.bf16.mxu0 %vm75_vm1, %v413_v2  ;;  %401 = vmatprep.mubr.msk.bf16.mxu1 %vm75_vm1, %v414_v3  ;;  %v420_v9 = vld [vmem:[%s588_s0 + $0x38] sm:$0xff]   ;;  %v484_v10 = vld [vmem:[%s589_s2] ss:$0 sm:$0xff] }
   0x5   :  { %v489_v12 = vld [vmem:[%s590_s3] ss:$0 sm:$0xff] }
   0x6   :  { %394 = vmatmul.mubr.msk.bf16.vlgmr.msra.gmra.mxu0 %vm75_vm1, %v415_v4  ;;  %402 = vmatmul.mubr.msk.bf16.vlgmr.msra.gmra.mxu1 %vm75_vm1, %v416_v5 }
   0x7   :  { %397 = vmatprep.mubr.msk.bf16.mxu0 %vm75_vm1, %v417_v6  ;;  %405 = vmatprep.mubr.msk.bf16.mxu1 %vm75_vm1, %v418_v7 }
   0xe   :  { %398 = vmatmul.mubr.msk.bf16.gmra.mxu0 %vm75_vm1, %v419_v8  ;;  %406 = vmatmul.mubr.msk.bf16.gmra.mxu1 %vm75_vm1, %v420_v9 }
  0xc6   :  { %v395_v11 = vpop.f32.mrf.mxu0  ;;  %v403_v14 = vpop.f32.mrf.mxu1 }
  0xc7   :  { %v210_v13 = vmul.f32 %v395_v11, %v484_v10  ;;  %v218_v15 = vmul.f32 %v403_v14, %v484_v10 }
  0xc8   :  { %v138_v16 = vpop.f32.mrf.mxu0  ;;  %v170_v19 = vpop.f32.mrf.mxu1 }
  0xc9   :  { %v233_v17 = vadd.f32 %v489_v12, %v210_v13  ;;  %v208_v18 = vmul.f32 %v484_v10, %v138_v16  ;;  %v241_v20 = vadd.f32 %v489_v12, %v218_v15  ;;  %v216_v21 = vmul.f32 %v484_v10, %v170_v19 }
  0xca   :  { %v396_v22 = vpop.f32.mrf.mxu0  ;;  %v404_v26 = vpop.f32.mrf.mxu1 }
  0xcb   :  { %v368_v23 = vpack.c.bf16 %v233_v17, %v233_v17  ;;  %v231_v24 = vadd.f32 %v489_v12, %v208_v18  ;;  %v211_v25 = vmul.f32 %v396_v22, %v484_v10  ;;  %v376_v27 = vpack.c.bf16 %v241_v20, %v241_v20 }
  0xcc   :  { %v239_v28 = vadd.f32 %v489_v12, %v216_v21  ;;  %v219_v29 = vmul.f32 %v404_v26, %v484_v10  ;;  %v141_v30 = vpop.f32.mrf.mxu0  ;;  %v173_v34 = vpop.f32.mrf.mxu1 }
  0xcd   :  { %314 = vst.msk [vmem:[%s591_s4 + $0x8] sm:$0xf] %vm311_vm2, %v368_v23  ;;  %v366_v31 = vpack.c.bf16 %v231_v24, %v231_v24  ;;  %v234_v32 = vadd.f32 %v489_v12, %v211_v25  ;;  %v209_v33 = vmul.f32 %v484_v10, %v141_v30  ;;  %322 = vst.msk [vmem:[%s591_s4 + $0x28] sm:$0xf] %vm311_vm2, %v376_v27 }
  0xce   :  { %v374_v35 = vpack.c.bf16 %v239_v28, %v239_v28  ;;  %v242_v36 = vadd.f32 %v489_v12, %v219_v29  ;;  %v217_v37 = vmul.f32 %v484_v10, %v173_v34  ;;  %v399_v38 = vpop.f32.mrf.mxu0  ;;  %v407_v42 = vpop.f32.mrf.mxu1 }
  0xcf   :  { %312 = vst.msk [vmem:[%s591_s4] sm:$0xf] %vm311_vm2, %v366_v31  ;;  %v369_v39 = vpack.c.bf16 %v234_v32, %v234_v32  ;;  %v232_v40 = vadd.f32 %v489_v12, %v209_v33  ;;  %v214_v41 = vmul.f32 %v399_v38, %v484_v10  ;;  %v222_v45 = vmul.f32 %v407_v42, %v484_v10 }
  0xd0   :  { %320 = vst.msk [vmem:[%s591_s4 + $0x20] sm:$0xf] %vm311_vm2, %v374_v35  ;;  %v377_v43 = vpack.c.bf16 %v242_v36, %v242_v36  ;;  %v240_v44 = vadd.f32 %v489_v12, %v217_v37  ;;  %v154_v46 = vpop.f32.mrf.mxu0  ;;  %v186_v50 = vpop.f32.mrf.mxu1 }
  0xd1   :  { %315 = vst.msk [vmem:[%s591_s4 + $0xc] sm:$0xf] %vm311_vm2, %v369_v39  ;;  %v367_v47 = vpack.c.bf16 %v232_v40, %v232_v40  ;;  %v237_v48 = vadd.f32 %v489_v12, %v214_v41  ;;  %v212_v49 = vmul.f32 %v484_v10, %v154_v46  ;;  %v245_v52 = vadd.f32 %v489_v12, %v222_v45 }
  0xd2   :  { %323 = vst.msk [vmem:[%s591_s4 + $0x2c] sm:$0xf] %vm311_vm2, %v377_v43  ;;  %v375_v51 = vpack.c.bf16 %v240_v44, %v240_v44  ;;  %v220_v53 = vmul.f32 %v484_v10, %v186_v50  ;;  %v400_v54 = vpop.f32.mrf.mxu0  ;;  %v408_v58 = vpop.f32.mrf.mxu1 }
  0xd3   :  { %313 = vst.msk [vmem:[%s591_s4 + $0x4] sm:$0xf] %vm311_vm2, %v367_v47  ;;  %v372_v55 = vpack.c.bf16 %v237_v48, %v237_v48  ;;  %v235_v56 = vadd.f32 %v489_v12, %v212_v49  ;;  %v215_v57 = vmul.f32 %v400_v54, %v484_v10  ;;  %v380_v59 = vpack.c.bf16 %v245_v52, %v245_v52 }
  0xd4   :  { %321 = vst.msk [vmem:[%s591_s4 + $0x24] sm:$0xf] %vm311_vm2, %v375_v51  ;;  %v243_v60 = vadd.f32 %v489_v12, %v220_v53  ;;  %v223_v61 = vmul.f32 %v408_v58, %v484_v10  ;;  %v157_v62 = vpop.f32.mrf.mxu0  ;;  %v189_v2 = vpop.f32.mrf.mxu1 }
  0xd5   :  { %318 = vst.msk [vmem:[%s591_s4 + $0x18] sm:$0xf] %vm311_vm2, %v372_v55  ;;  %v370_v63 = vpack.c.bf16 %v235_v56, %v235_v56  ;;  %v238_v0 = vadd.f32 %v489_v12, %v215_v57  ;;  %v213_v1 = vmul.f32 %v484_v10, %v157_v62  ;;  %326 = vst.msk [vmem:[%s591_s4 + $0x38] sm:$0xf] %vm311_vm2, %v380_v59 }
  0xd6   :  { %v378_v3 = vpack.c.bf16 %v243_v60, %v243_v60  ;;  %v246_v4 = vadd.f32 %v489_v12, %v223_v61  ;;  %v221_v5 = vmul.f32 %v484_v10, %v189_v2 }
  0xd7   :  { %316 = vst.msk [vmem:[%s591_s4 + $0x10] sm:$0xf] %vm311_vm2, %v370_v63  ;;  %v373_v6 = vpack.c.bf16 %v238_v0, %v238_v0  ;;  %v236_v7 = vadd.f32 %v489_v12, %v213_v1 }
  0xd8   :  { %324 = vst.msk [vmem:[%s591_s4 + $0x30] sm:$0xf] %vm311_vm2, %v378_v3  ;;  %v381_v8 = vpack.c.bf16 %v246_v4, %v246_v4  ;;  %v244_v9 = vadd.f32 %v489_v12, %v221_v5 }
  0xd9   :  { %319 = vst.msk [vmem:[%s591_s4 + $0x1c] sm:$0xf] %vm311_vm2, %v373_v6  ;;  %v371_v10 = vpack.c.bf16 %v236_v7, %v236_v7 }
  0xda   :  { %327 = vst.msk [vmem:[%s591_s4 + $0x3c] sm:$0xf] %vm311_vm2, %v381_v8  ;;  %v379_v11 = vpack.c.bf16 %v244_v9, %v244_v9 }
  0xdb   :  { %317 = vst.msk [vmem:[%s591_s4 + $0x14] sm:$0xf] %vm311_vm2, %v371_v10 }
  0xdc   :  { %325 = vst.msk [vmem:[%s591_s4 + $0x34] sm:$0xf] %vm311_vm2, %v379_v11 }

// kernel: _lambda_.64
= control target key start
LH: loop header
LB: loop body
LE: loop exit
PB: predicated region body
PF: predicated region fallthrough
CT: control target
= control target key end

     0   :  { %vm90_vm0 = vcmask 261120   ;;  %vm338_vm1 = vcmask 60416   ;;  %s624_s1 = inlined_call_operand.vmem [shape: bf16[32,8], index: 1, kind: input, shape index: {}]   ;;  %s625_s0 = inlined_call_operand.vmem [shape: bf16[128,32], index: 0, kind: input, shape index: {}]   ;;  %s626_s2 = inlined_call_operand.vmem [shape: f32[1,8], index: 2, kind: input, shape index: {}]   ;;  %s627_s3 = inlined_call_operand.vmem [shape: f32[1,8], index: 3, kind: input, shape index: {}]   ;;  %s628_s4 = inlined_call_operand.vmem [shape: bf16[128,8], index: 4, kind: output, shape index: {}]  }
   0x1   :  { %v445_v0 = vld [vmem:[%s624_s1 + $0x8] sm:$0xff]   ;;  %v446_v1 = vld [vmem:[%s624_s1] sm:$0xff]   ;;  %v451_v6 = vld [vmem:[%s625_s0 + $0x10] sm:$0xff]  }
   0x2   :  { %421 = vmatprep.subr.bf16.mxu0 %v445_v0  ;;  %441 = vmatprep.subr.bf16.mxu1 %v445_v0  ;;  %v447_v2 = vld [vmem:[%s625_s0] sm:$0xff]   ;;  %v449_v4 = vld [vmem:[%s625_s0 + $0x8] sm:$0xff]   ;;  %v452_v7 = vld [vmem:[%s625_s0 + $0x30] sm:$0xff]  }
   0x3   :  { %422 = vmatpush3.bf16.msra.mxu0 %v445_v0  ;;  %443 = vmatpush3.bf16.msra.mxu1 %v445_v0  ;;  %v448_v3 = vld [vmem:[%s625_s0 + $0x20] sm:$0xff]   ;;  %v450_v5 = vld [vmem:[%s625_s0 + $0x28] sm:$0xff]   ;;  %v453_v8 = vld [vmem:[%s625_s0 + $0x18] sm:$0xff]  }
   0x4   :  { %423 = vmatprep.subr.bf16.mxu0 %v446_v1  ;;  %442 = vmatprep.subr.bf16.mxu1 %v446_v1  ;;  %v454_v9 = vld [vmem:[%s625_s0 + $0x38] sm:$0xff]   ;;  %v521_v10 = vld [vmem:[%s626_s2] ss:$0 sm:$0xff] }
   0x5   :  { %425 = vmatprep.mubr.msk.bf16.mxu0 %vm90_vm0, %v447_v2  ;;  %433 = vmatprep.mubr.msk.bf16.mxu1 %vm90_vm0, %v448_v3  ;;  %v526_v12 = vld [vmem:[%s627_s3] ss:$0 sm:$0xff] }
   0x7   :  { %424 = vmatpush3.bf16.msra.mxu0 %v446_v1  ;;  %444 = vmatpush3.bf16.msra.mxu1 %v446_v1 }
   0xa   :  { %426 = vmatmul.mubr.msk.bf16.vlgmr.msra.gmra.mxu0 %vm90_vm0, %v449_v4  ;;  %434 = vmatmul.mubr.msk.bf16.vlgmr.msra.gmra.mxu1 %vm90_vm0, %v450_v5 }
   0xb   :  { %429 = vmatprep.mubr.msk.bf16.mxu0 %vm90_vm0, %v451_v6  ;;  %437 = vmatprep.mubr.msk.bf16.mxu1 %vm90_vm0, %v452_v7 }
  0x12   :  { %430 = vmatmul.mubr.msk.bf16.gmra.mxu0 %vm90_vm0, %v453_v8  ;;  %438 = vmatmul.mubr.msk.bf16.gmra.mxu1 %vm90_vm0, %v454_v9 }
  0xca   :  { %v427_v11 = vpop.f32.mrf.mxu0  ;;  %v435_v13 = vpop.f32.mrf.mxu1 }
  0xcb   :  { %v221_v14 = vmul.f32 %v427_v11, %v521_v10  ;;  %v229_v15 = vmul.f32 %v435_v13, %v521_v10 }
  0xcc   :  { %v149_v16 = vpop.f32.mrf.mxu0  ;;  %v181_v17 = vpop.f32.mrf.mxu1 }
  0xcd   :  { %v244_v18 = vadd.f32 %v526_v12, %v221_v14  ;;  %v252_v19 = vadd.f32 %v526_v12, %v229_v15  ;;  %v219_v20 = vmul.f32 %v521_v10, %v149_v16  ;;  %v227_v21 = vmul.f32 %v521_v10, %v181_v17 }
  0xce   :  { %v428_v22 = vpop.f32.mrf.mxu0  ;;  %v436_v23 = vpop.f32.mrf.mxu1 }
  0xcf   :  { %v260_v24 = vmax.f32 %v244_v18, 0.0  ;;  %v268_v25 = vmax.f32 %v252_v19, 0.0  ;;  %v242_v26 = vadd.f32 %v526_v12, %v219_v20  ;;  %v250_v27 = vadd.f32 %v526_v12, %v227_v21 }
  0xd0   :  { %v222_v28 = vmul.f32 %v428_v22, %v521_v10  ;;  %v230_v29 = vmul.f32 %v436_v23, %v521_v10  ;;  %v152_v30 = vpop.f32.mrf.mxu0  ;;  %v184_v31 = vpop.f32.mrf.mxu1 }
  0xd1   :  { %v397_v32 = vpack.c.bf16 %v260_v24, %v260_v24  ;;  %v405_v33 = vpack.c.bf16 %v268_v25, %v268_v25  ;;  %v258_v34 = vmax.f32 %v242_v26, 0.0  ;;  %v266_v35 = vmax.f32 %v250_v27, 0.0 }
  0xd2   :  { %v245_v36 = vadd.f32 %v526_v12, %v222_v28  ;;  %v253_v37 = vadd.f32 %v526_v12, %v230_v29  ;;  %v220_v38 = vmul.f32 %v521_v10, %v152_v30  ;;  %v228_v39 = vmul.f32 %v521_v10, %v184_v31  ;;  %v431_v40 = vpop.f32.mrf.mxu0  ;;  %v439_v41 = vpop.f32.mrf.mxu1 }
  0xd3   :  { %341 = vst.msk [vmem:[%s628_s4 + $0x8] sm:$0xf] %vm338_vm1, %v397_v32  ;;  %349 = vst.msk [vmem:[%s628_s4 + $0x28] sm:$0xf] %vm338_vm1, %v405_v33  ;;  %v395_v42 = vpack.c.bf16 %v258_v34, %v258_v34  ;;  %v403_v43 = vpack.c.bf16 %v266_v35, %v266_v35  ;;  %v225_v44 = vmul.f32 %v431_v40, %v521_v10 }
  0xd4   :  { %v233_v45 = vmul.f32 %v439_v41, %v521_v10  ;;  %v261_v46 = vmax.f32 %v245_v36, 0.0  ;;  %v269_v47 = vmax.f32 %v253_v37, 0.0  ;;  %v243_v48 = vadd.f32 %v526_v12, %v220_v38  ;;  %v165_v50 = vpop.f32.mrf.mxu0  ;;  %v197_v51 = vpop.f32.mrf.mxu1 }
  0xd5   :  { %v251_v49 = vadd.f32 %v526_v12, %v228_v39  ;;  %339 = vst.msk [vmem:[%s628_s4] sm:$0xf] %vm338_vm1, %v395_v42  ;;  %347 = vst.msk [vmem:[%s628_s4 + $0x20] sm:$0xf] %vm338_vm1, %v403_v43  ;;  %v248_v52 = vadd.f32 %v526_v12, %v225_v44  ;;  %v223_v54 = vmul.f32 %v521_v10, %v165_v50 }
  0xd6   :  { %v256_v53 = vadd.f32 %v526_v12, %v233_v45  ;;  %v231_v55 = vmul.f32 %v521_v10, %v197_v51  ;;  %v398_v56 = vpack.c.bf16 %v261_v46, %v261_v46  ;;  %v406_v57 = vpack.c.bf16 %v269_v47, %v269_v47  ;;  %v432_v60 = vpop.f32.mrf.mxu0  ;;  %v440_v61 = vpop.f32.mrf.mxu1 }
  0xd7   :  { %v259_v58 = vmax.f32 %v243_v48, 0.0  ;;  %v267_v59 = vmax.f32 %v251_v49, 0.0  ;;  %v264_v62 = vmax.f32 %v248_v52, 0.0  ;;  %v246_v0 = vadd.f32 %v526_v12, %v223_v54 }
  0xd8   :  { %v272_v63 = vmax.f32 %v256_v53, 0.0  ;;  %v254_v1 = vadd.f32 %v526_v12, %v231_v55  ;;  %342 = vst.msk [vmem:[%s628_s4 + $0xc] sm:$0xf] %vm338_vm1, %v398_v56  ;;  %350 = vst.msk [vmem:[%s628_s4 + $0x2c] sm:$0xf] %vm338_vm1, %v406_v57  ;;  %v226_v4 = vmul.f32 %v432_v60, %v521_v10  ;;  %v234_v5 = vmul.f32 %v440_v61, %v521_v10  ;;  %v168_v6 = vpop.f32.mrf.mxu0  ;;  %v200_v7 = vpop.f32.mrf.mxu1 }
  0xd9   :  { %v396_v2 = vpack.c.bf16 %v259_v58, %v259_v58  ;;  %v404_v3 = vpack.c.bf16 %v267_v59, %v267_v59  ;;  %v401_v8 = vpack.c.bf16 %v264_v62, %v264_v62  ;;  %v262_v11 = vmax.f32 %v246_v0, 0.0 }
  0xda   :  { %v409_v9 = vpack.c.bf16 %v272_v63, %v272_v63  ;;  %v270_v13 = vmax.f32 %v254_v1, 0.0  ;;  %v249_v14 = vadd.f32 %v526_v12, %v226_v4  ;;  %v257_v15 = vadd.f32 %v526_v12, %v234_v5 }
  0xdb   :  { %340 = vst.msk [vmem:[%s628_s4 + $0x4] sm:$0xf] %vm338_vm1, %v396_v2  ;;  %348 = vst.msk [vmem:[%s628_s4 + $0x24] sm:$0xf] %vm338_vm1, %v404_v3  ;;  %v224_v16 = vmul.f32 %v521_v10, %v168_v6  ;;  %v232_v17 = vmul.f32 %v521_v10, %v200_v7  ;;  %v399_v18 = vpack.c.bf16 %v262_v11, %v262_v11 }
  0xdc   :  { %345 = vst.msk [vmem:[%s628_s4 + $0x18] sm:$0xf] %vm338_vm1, %v401_v8  ;;  %353 = vst.msk [vmem:[%s628_s4 + $0x38] sm:$0xf] %vm338_vm1, %v409_v9  ;;  %v407_v19 = vpack.c.bf16 %v270_v13, %v270_v13  ;;  %v265_v20 = vmax.f32 %v249_v14, 0.0  ;;  %v273_v21 = vmax.f32 %v257_v15, 0.0 }
  0xdd   :  { %v247_v22 = vadd.f32 %v526_v12, %v224_v16  ;;  %v255_v23 = vadd.f32 %v526_v12, %v232_v17  ;;  %343 = vst.msk [vmem:[%s628_s4 + $0x10] sm:$0xf] %vm338_vm1, %v399_v18 }
  0xde   :  { %351 = vst.msk [vmem:[%s628_s4 + $0x30] sm:$0xf] %vm338_vm1, %v407_v19  ;;  %v402_v10 = vpack.c.bf16 %v265_v20, %v265_v20  ;;  %v410_v24 = vpack.c.bf16 %v273_v21, %v273_v21 }
  0xdf   :  { %v263_v25 = vmax.f32 %v247_v22, 0.0  ;;  %v271_v26 = vmax.f32 %v255_v23, 0.0 }
  0xe0   :  { %346 = vst.msk [vmem:[%s628_s4 + $0x1c] sm:$0xf] %vm338_vm1, %v402_v10  ;;  %354 = vst.msk [vmem:[%s628_s4 + $0x3c] sm:$0xf] %vm338_vm1, %v410_v24 }
  0xe1   :  { %v400_v12 = vpack.c.bf16 %v263_v25, %v263_v25  ;;  %v408_v27 = vpack.c.bf16 %v271_v26, %v271_v26 }
  0xe3   :  { %344 = vst.msk [vmem:[%s628_s4 + $0x14] sm:$0xf] %vm338_vm1, %v400_v12  ;;  %352 = vst.msk [vmem:[%s628_s4 + $0x34] sm:$0xf] %vm338_vm1, %v408_v27 }

// kernel: _lambda_.63
= control target key start
LH: loop header
LB: loop body
LE: loop exit
PB: predicated region body
PF: predicated region fallthrough
CT: control target
= control target key end

     0   :  { %vm103_vm0 = vcmask 1043456   ;;  %vm78_vm1 = vcmask 64512   ;;  %vm378_vm2 = vcmask 257024   ;;  %s766_s1 = inlined_call_operand.vmem [shape: bf16[8,32], index: 1, kind: input, shape index: {}]   ;;  %s767_s0 = inlined_call_operand.vmem [shape: bf16[128,8], index: 0, kind: input, shape index: {}]   ;;  %s768_s4 = inlined_call_operand.vmem [shape: bf16[128,32], index: 4, kind: input, shape index: {}]   ;;  %s769_s2 = inlined_call_operand.vmem [shape: f32[1,32], index: 2, kind: input, shape index: {}]   ;;  %s770_s3 = inlined_call_operand.vmem [shape: f32[1,32], index: 3, kind: input, shape index: {}]   ;;  %s771_s5 = inlined_call_operand.vmem [shape: bf16[128,32], index: 5, kind: output, shape index: {}]  }
   0x1   :  { %v37_v0 = vld [vmem:[%s766_s1] sm:$0xf]  ;;  %v521_v4 = vld [vmem:[%s767_s0 + $0x8] sm:$0xff]   ;;  %v523_v6 = vld [vmem:[%s767_s0 + $0x10] sm:$0xff]  }
   0x2   :  { %517 = vmatprep.subr.msk.bf16.mxu0 %vm103_vm0, %v37_v0  ;;  %518 = vmatprep.subr.msk.bf16.mxu1 %vm103_vm0, %v37_v0  ;;  %v105_v1 = vsel %vm103_vm0, %v37_v0, 0  ;;  %v519_v2 = vld [vmem:[%s767_s0] sm:$0xff]   ;;  %v522_v5 = vld [vmem:[%s767_s0 + $0x28] sm:$0xff]   ;;  %v524_v7 = vld [vmem:[%s767_s0 + $0x30] sm:$0xff]  }
   0x3   :  { %498 = vmatpush3.bf16.msra.mxu0 %v105_v1  ;;  %516 = vmatpush3.bf16.msra.mxu1 %v105_v1  ;;  %v520_v3 = vld [vmem:[%s767_s0 + $0x20] sm:$0xff]   ;;  %v525_v8 = vld [vmem:[%s767_s0 + $0x18] sm:$0xff]   ;;  %v481_v10 = vld [vmem:[%s768_s4 + $0x8] sm:$0xff]  }
   0x4   :  { %499 = vmatprep.mubr.msk.bf16.mxu0 %vm78_vm1, %v519_v2  ;;  %507 = vmatprep.mubr.msk.bf16.mxu1 %vm78_vm1, %v520_v3  ;;  %v526_v9 = vld [vmem:[%s767_s0 + $0x38] sm:$0xff]   ;;  %v598_v11 = vld [vmem:[%s768_s4 + $0x28] sm:$0xff]   ;;  %v603_v12 = vld [vmem:[%s768_s4] sm:$0xff]   ;;  %v455_v15 = vunpack.c.l.bf16 %v481_v10  ;;  %v456_v23 = vunpack.c.h.bf16 %v481_v10 }
   0x5   :  { %v608_v13 = vld [vmem:[%s768_s4 + $0x20] sm:$0xff]   ;;  %v618_v16 = vld [vmem:[%s768_s4 + $0x18] sm:$0xff]   ;;  %v471_v20 = vunpack.c.l.bf16 %v598_v11  ;;  %v451_v21 = vunpack.c.l.bf16 %v603_v12  ;;  %v636_v24 = vld [vmem:[%s768_s4 + $0x10] sm:$0xff]   ;;  %v472_v28 = vunpack.c.h.bf16 %v598_v11  ;;  %v452_v29 = vunpack.c.h.bf16 %v603_v12 }
   0x6   :  { %500 = vmatmul.mubr.msk.bf16.vlgmr.msra.gmra.mxu0 %vm78_vm1, %v521_v4  ;;  %508 = vmatmul.mubr.msk.bf16.vlgmr.msra.gmra.mxu1 %vm78_vm1, %v522_v5  ;;  %v613_v14 = vld [vmem:[%s769_s2] ss:$0 sm:$0xff]  ;;  %v623_v17 = vld [vmem:[%s768_s4 + $0x38] sm:$0xff]   ;;  %v467_v22 = vunpack.c.l.bf16 %v608_v13  ;;  %v641_v25 = vld [vmem:[%s768_s4 + $0x30] sm:$0xff]   ;;  %v468_v32 = vunpack.c.h.bf16 %v608_v13  ;;  %v463_v33 = vunpack.c.l.bf16 %v618_v16  ;;  %v459_v38 = vunpack.c.l.bf16 %v636_v24 }
   0x7   :  { %503 = vmatprep.mubr.msk.bf16.mxu0 %vm78_vm1, %v523_v6  ;;  %511 = vmatprep.mubr.msk.bf16.mxu1 %vm78_vm1, %v524_v7  ;;  %v628_v19 = vld [vmem:[%s770_s3] ss:$0 sm:$0xff]  ;;  %v479_v34 = vunpack.c.l.bf16 %v623_v17  ;;  %v475_v39 = vunpack.c.l.bf16 %v641_v25  ;;  %v464_v43 = vunpack.c.h.bf16 %v618_v16  ;;  %v480_v44 = vunpack.c.h.bf16 %v623_v17 }
   0x8   :  { %v460_v49 = vunpack.c.h.bf16 %v636_v24  ;;  %v476_v54 = vunpack.c.h.bf16 %v641_v25 }
   0xe   :  { %504 = vmatmul.mubr.msk.bf16.gmra.mxu0 %vm78_vm1, %v525_v8  ;;  %512 = vmatmul.mubr.msk.bf16.gmra.mxu1 %vm78_vm1, %v526_v9 }
  0xc6   :  { %v501_v18 = vpop.f32.mrf.mxu0  ;;  %v509_v27 = vpop.f32.mrf.mxu1 }
  0xc7   :  { %v213_v26 = vmul.f32 %v501_v18, %v613_v14  ;;  %v221_v30 = vmul.f32 %v509_v27, %v613_v14 }
  0xc8   :  { %v141_v31 = vpop.f32.mrf.mxu0  ;;  %v173_v37 = vpop.f32.mrf.mxu1 }
  0xc9   :  { %v236_v35 = vadd.f32 %v628_v19, %v213_v26  ;;  %v211_v36 = vmul.f32 %v613_v14, %v141_v31  ;;  %v244_v40 = vadd.f32 %v628_v19, %v221_v30  ;;  %v219_v41 = vmul.f32 %v613_v14, %v173_v37 }
  0xca   :  { %v502_v42 = vpop.f32.mrf.mxu0  ;;  %v510_v48 = vpop.f32.mrf.mxu1 }
  0xcb   :  { %v284_v45 = vadd.f32 %v455_v15, %v236_v35  ;;  %v234_v46 = vadd.f32 %v628_v19, %v211_v36  ;;  %v214_v47 = vmul.f32 %v502_v42, %v613_v14  ;;  %v292_v50 = vadd.f32 %v471_v20, %v244_v40 }
  0xcc   :  { %v242_v51 = vadd.f32 %v628_v19, %v219_v41  ;;  %v222_v52 = vmul.f32 %v510_v48, %v613_v14  ;;  %v144_v53 = vpop.f32.mrf.mxu0  ;;  %v176_v59 = vpop.f32.mrf.mxu1 }
  0xcd   :  { %v300_v55 = vmax.f32 %v284_v45, 0.0  ;;  %v282_v56 = vadd.f32 %v451_v21, %v234_v46  ;;  %v237_v57 = vadd.f32 %v628_v19, %v214_v47  ;;  %v212_v58 = vmul.f32 %v613_v14, %v144_v53 }
  0xce   :  { %v308_v60 = vmax.f32 %v292_v50, 0.0  ;;  %v290_v61 = vadd.f32 %v467_v22, %v242_v51  ;;  %v245_v62 = vadd.f32 %v628_v19, %v222_v52  ;;  %v220_v63 = vmul.f32 %v613_v14, %v176_v59  ;;  %v505_v0 = vpop.f32.mrf.mxu0  ;;  %v513_v5 = vpop.f32.mrf.mxu1 }
  0xcf   :  { %v435_v1 = vpack.c.bf16 %v300_v55, %v300_v55  ;;  %v298_v2 = vmax.f32 %v282_v56, 0.0  ;;  %v285_v3 = vadd.f32 %v456_v23, %v237_v57  ;;  %v235_v4 = vadd.f32 %v628_v19, %v212_v58 }
  0xd0   :  { %v443_v6 = vpack.c.bf16 %v308_v60, %v308_v60  ;;  %v306_v7 = vmax.f32 %v290_v61, 0.0  ;;  %v293_v8 = vadd.f32 %v472_v28, %v245_v62  ;;  %v243_v9 = vadd.f32 %v628_v19, %v220_v63  ;;  %v157_v10 = vpop.f32.mrf.mxu0  ;;  %v189_v18 = vpop.f32.mrf.mxu1 }
  0xd1   :  { %381 = vst.msk [vmem:[%s771_s5 + $0x8] sm:$0xf] %vm378_vm2, %v435_v1  ;;  %v433_v11 = vpack.c.bf16 %v298_v2, %v298_v2  ;;  %v301_v12 = vmax.f32 %v285_v3, 0.0  ;;  %v283_v13 = vadd.f32 %v452_v29, %v235_v4  ;;  %v217_v15 = vmul.f32 %v505_v0, %v613_v14 }
  0xd2   :  { %389 = vst.msk [vmem:[%s771_s5 + $0x28] sm:$0xf] %vm378_vm2, %v443_v6  ;;  %v441_v20 = vpack.c.bf16 %v306_v7, %v306_v7  ;;  %v309_v21 = vmax.f32 %v293_v8, 0.0  ;;  %v291_v22 = vadd.f32 %v468_v32, %v243_v9  ;;  %v225_v23 = vmul.f32 %v513_v5, %v613_v14  ;;  %v506_v26 = vpop.f32.mrf.mxu0  ;;  %v514_v31 = vpop.f32.mrf.mxu1 }
  0xd3   :  { %379 = vst.msk [vmem:[%s771_s5] sm:$0xf] %vm378_vm2, %v433_v11  ;;  %v436_v27 = vpack.c.bf16 %v301_v12, %v301_v12  ;;  %v299_v28 = vmax.f32 %v283_v13, 0.0  ;;  %v240_v29 = vadd.f32 %v628_v19, %v217_v15  ;;  %v215_v30 = vmul.f32 %v613_v14, %v157_v10 }
  0xd4   :  { %387 = vst.msk [vmem:[%s771_s5 + $0x20] sm:$0xf] %vm378_vm2, %v441_v20  ;;  %v444_v32 = vpack.c.bf16 %v309_v21, %v309_v21  ;;  %v307_v35 = vmax.f32 %v291_v22, 0.0  ;;  %v248_v36 = vadd.f32 %v628_v19, %v225_v23  ;;  %v223_v37 = vmul.f32 %v613_v14, %v189_v18  ;;  %v160_v40 = vpop.f32.mrf.mxu0  ;;  %v192_v47 = vpop.f32.mrf.mxu1 }
  0xd5   :  { %382 = vst.msk [vmem:[%s771_s5 + $0xc] sm:$0xf] %vm378_vm2, %v436_v27  ;;  %v434_v41 = vpack.c.bf16 %v299_v28, %v299_v28  ;;  %v288_v42 = vadd.f32 %v463_v33, %v240_v29  ;;  %v238_v45 = vadd.f32 %v628_v19, %v215_v30  ;;  %v218_v46 = vmul.f32 %v506_v26, %v613_v14 }
  0xd6   :  { %390 = vst.msk [vmem:[%s771_s5 + $0x2c] sm:$0xf] %vm378_vm2, %v444_v32  ;;  %v442_v48 = vpack.c.bf16 %v307_v35, %v307_v35  ;;  %v296_v50 = vadd.f32 %v479_v34, %v248_v36  ;;  %v246_v51 = vadd.f32 %v628_v19, %v223_v37  ;;  %v226_v52 = vmul.f32 %v514_v31, %v613_v14 }
  0xd7   :  { %380 = vst.msk [vmem:[%s771_s5 + $0x4] sm:$0xf] %vm378_vm2, %v434_v41  ;;  %v304_v33 = vmax.f32 %v288_v42, 0.0  ;;  %v286_v53 = vadd.f32 %v459_v38, %v238_v45  ;;  %v241_v55 = vadd.f32 %v628_v19, %v218_v46  ;;  %v216_v56 = vmul.f32 %v613_v14, %v160_v40 }
  0xd8   :  { %388 = vst.msk [vmem:[%s771_s5 + $0x24] sm:$0xf] %vm378_vm2, %v442_v48  ;;  %v312_v34 = vmax.f32 %v296_v50, 0.0  ;;  %v294_v57 = vadd.f32 %v475_v39, %v246_v51  ;;  %v249_v58 = vadd.f32 %v628_v19, %v226_v52  ;;  %v224_v59 = vmul.f32 %v613_v14, %v192_v47 }
  0xd9   :  { %v439_v60 = vpack.c.bf16 %v304_v33, %v304_v33  ;;  %v302_v61 = vmax.f32 %v286_v53, 0.0  ;;  %v289_v38 = vadd.f32 %v464_v43, %v241_v55  ;;  %v239_v62 = vadd.f32 %v628_v19, %v216_v56 }
  0xda   :  { %v447_v63 = vpack.c.bf16 %v312_v34, %v312_v34  ;;  %v310_v0 = vmax.f32 %v294_v57, 0.0  ;;  %v297_v1 = vadd.f32 %v480_v44, %v249_v58  ;;  %v247_v2 = vadd.f32 %v628_v19, %v224_v59 }
  0xdb   :  { %385 = vst.msk [vmem:[%s771_s5 + $0x18] sm:$0xf] %vm378_vm2, %v439_v60  ;;  %v437_v14 = vpack.c.bf16 %v302_v61, %v302_v61  ;;  %v305_v39 = vmax.f32 %v289_v38, 0.0  ;;  %v287_v16 = vadd.f32 %v460_v49, %v239_v62 }
  0xdc   :  { %393 = vst.msk [vmem:[%s771_s5 + $0x38] sm:$0xf] %vm378_vm2, %v447_v63  ;;  %v445_v43 = vpack.c.bf16 %v310_v0, %v310_v0  ;;  %v313_v17 = vmax.f32 %v297_v1, 0.0  ;;  %v295_v19 = vadd.f32 %v476_v54, %v247_v2 }
  0xdd   :  { %383 = vst.msk [vmem:[%s771_s5 + $0x10] sm:$0xf] %vm378_vm2, %v437_v14  ;;  %v440_v44 = vpack.c.bf16 %v305_v39, %v305_v39  ;;  %v303_v3 = vmax.f32 %v287_v16, 0.0 }
  0xde   :  { %391 = vst.msk [vmem:[%s771_s5 + $0x30] sm:$0xf] %vm378_vm2, %v445_v43  ;;  %v448_v24 = vpack.c.bf16 %v313_v17, %v313_v17  ;;  %v311_v49 = vmax.f32 %v295_v19, 0.0 }
  0xdf   :  { %386 = vst.msk [vmem:[%s771_s5 + $0x1c] sm:$0xf] %vm378_vm2, %v440_v44  ;;  %v438_v25 = vpack.c.bf16 %v303_v3, %v303_v3 }
  0xe0   :  { %394 = vst.msk [vmem:[%s771_s5 + $0x3c] sm:$0xf] %vm378_vm2, %v448_v24  ;;  %v446_v54 = vpack.c.bf16 %v311_v49, %v311_v49 }
  0xe1   :  { %384 = vst.msk [vmem:[%s771_s5 + $0x14] sm:$0xf] %vm378_vm2, %v438_v25 }
  0xe2   :  { %392 = vst.msk [vmem:[%s771_s5 + $0x34] sm:$0xf] %vm378_vm2, %v446_v54 }

// kernel: _lambda_.70
= control target key start
LH: loop header
LB: loop body
LE: loop exit
PB: predicated region body
PF: predicated region fallthrough
CT: control target
= control target key end

     0   :  { %vm90_vm0 = vcmask 261120   ;;  %vm338_vm1 = vcmask 125952   ;;  %s624_s1 = inlined_call_operand.vmem [shape: bf16[32,16], index: 1, kind: input, shape index: {}]   ;;  %s625_s0 = inlined_call_operand.vmem [shape: bf16[128,32], index: 0, kind: input, shape index: {}]   ;;  %s626_s2 = inlined_call_operand.vmem [shape: f32[1,16], index: 2, kind: input, shape index: {}]   ;;  %s627_s3 = inlined_call_operand.vmem [shape: f32[1,16], index: 3, kind: input, shape index: {}]   ;;  %s628_s4 = inlined_call_operand.vmem [shape: bf16[128,16], index: 4, kind: output, shape index: {}]  }
   0x1   :  { %v445_v0 = vld [vmem:[%s624_s1 + $0x8] sm:$0xff]   ;;  %v446_v1 = vld [vmem:[%s624_s1] sm:$0xff]   ;;  %v451_v6 = vld [vmem:[%s625_s0 + $0x10] sm:$0xff]  }
   0x2   :  { %421 = vmatprep.subr.bf16.mxu0 %v445_v0  ;;  %441 = vmatprep.subr.bf16.mxu1 %v445_v0  ;;  %v447_v2 = vld [vmem:[%s625_s0] sm:$0xff]   ;;  %v449_v4 = vld [vmem:[%s625_s0 + $0x8] sm:$0xff]   ;;  %v452_v7 = vld [vmem:[%s625_s0 + $0x30] sm:$0xff]  }
   0x3   :  { %422 = vmatpush3.bf16.msra.mxu0 %v445_v0  ;;  %443 = vmatpush3.bf16.msra.mxu1 %v445_v0  ;;  %v448_v3 = vld [vmem:[%s625_s0 + $0x20] sm:$0xff]   ;;  %v450_v5 = vld [vmem:[%s625_s0 + $0x28] sm:$0xff]   ;;  %v453_v8 = vld [vmem:[%s625_s0 + $0x18] sm:$0xff]  }
   0x4   :  { %423 = vmatprep.subr.bf16.mxu0 %v446_v1  ;;  %442 = vmatprep.subr.bf16.mxu1 %v446_v1  ;;  %v454_v9 = vld [vmem:[%s625_s0 + $0x38] sm:$0xff]   ;;  %v521_v10 = vld [vmem:[%s626_s2] ss:$0 sm:$0xff] }
   0x5   :  { %425 = vmatprep.mubr.msk.bf16.mxu0 %vm90_vm0, %v447_v2  ;;  %433 = vmatprep.mubr.msk.bf16.mxu1 %vm90_vm0, %v448_v3  ;;  %v526_v12 = vld [vmem:[%s627_s3] ss:$0 sm:$0xff] }
   0x7   :  { %424 = vmatpush3.bf16.msra.mxu0 %v446_v1  ;;  %444 = vmatpush3.bf16.msra.mxu1 %v446_v1 }
   0xa   :  { %426 = vmatmul.mubr.msk.bf16.vlgmr.msra.gmra.mxu0 %vm90_vm0, %v449_v4  ;;  %434 = vmatmul.mubr.msk.bf16.vlgmr.msra.gmra.mxu1 %vm90_vm0, %v450_v5 }
   0xb   :  { %429 = vmatprep.mubr.msk.bf16.mxu0 %vm90_vm0, %v451_v6  ;;  %437 = vmatprep.mubr.msk.bf16.mxu1 %vm90_vm0, %v452_v7 }
  0x12   :  { %430 = vmatmul.mubr.msk.bf16.gmra.mxu0 %vm90_vm0, %v453_v8  ;;  %438 = vmatmul.mubr.msk.bf16.gmra.mxu1 %vm90_vm0, %v454_v9 }
  0xca   :  { %v427_v11 = vpop.f32.mrf.mxu0  ;;  %v435_v13 = vpop.f32.mrf.mxu1 }
  0xcb   :  { %v221_v14 = vmul.f32 %v427_v11, %v521_v10  ;;  %v229_v15 = vmul.f32 %v435_v13, %v521_v10 }
  0xcc   :  { %v149_v16 = vpop.f32.mrf.mxu0  ;;  %v181_v17 = vpop.f32.mrf.mxu1 }
  0xcd   :  { %v244_v18 = vadd.f32 %v526_v12, %v221_v14  ;;  %v252_v19 = vadd.f32 %v526_v12, %v229_v15  ;;  %v219_v20 = vmul.f32 %v521_v10, %v149_v16  ;;  %v227_v21 = vmul.f32 %v521_v10, %v181_v17 }
  0xce   :  { %v428_v22 = vpop.f32.mrf.mxu0  ;;  %v436_v23 = vpop.f32.mrf.mxu1 }
  0xcf   :  { %v260_v24 = vmax.f32 %v244_v18, 0.0  ;;  %v268_v25 = vmax.f32 %v252_v19, 0.0  ;;  %v242_v26 = vadd.f32 %v526_v12, %v219_v20  ;;  %v250_v27 = vadd.f32 %v526_v12, %v227_v21 }
  0xd0   :  { %v222_v28 = vmul.f32 %v428_v22, %v521_v10  ;;  %v230_v29 = vmul.f32 %v436_v23, %v521_v10  ;;  %v152_v30 = vpop.f32.mrf.mxu0  ;;  %v184_v31 = vpop.f32.mrf.mxu1 }
  0xd1   :  { %v397_v32 = vpack.c.bf16 %v260_v24, %v260_v24  ;;  %v405_v33 = vpack.c.bf16 %v268_v25, %v268_v25  ;;  %v258_v34 = vmax.f32 %v242_v26, 0.0  ;;  %v266_v35 = vmax.f32 %v250_v27, 0.0 }
  0xd2   :  { %v245_v36 = vadd.f32 %v526_v12, %v222_v28  ;;  %v253_v37 = vadd.f32 %v526_v12, %v230_v29  ;;  %v220_v38 = vmul.f32 %v521_v10, %v152_v30  ;;  %v228_v39 = vmul.f32 %v521_v10, %v184_v31  ;;  %v431_v40 = vpop.f32.mrf.mxu0  ;;  %v439_v41 = vpop.f32.mrf.mxu1 }
  0xd3   :  { %341 = vst.msk [vmem:[%s628_s4 + $0x8] sm:$0xf] %vm338_vm1, %v397_v32  ;;  %349 = vst.msk [vmem:[%s628_s4 + $0x28] sm:$0xf] %vm338_vm1, %v405_v33  ;;  %v395_v42 = vpack.c.bf16 %v258_v34, %v258_v34  ;;  %v403_v43 = vpack.c.bf16 %v266_v35, %v266_v35  ;;  %v225_v44 = vmul.f32 %v431_v40, %v521_v10 }
  0xd4   :  { %v233_v45 = vmul.f32 %v439_v41, %v521_v10  ;;  %v261_v46 = vmax.f32 %v245_v36, 0.0  ;;  %v269_v47 = vmax.f32 %v253_v37, 0.0  ;;  %v243_v48 = vadd.f32 %v526_v12, %v220_v38  ;;  %v165_v50 = vpop.f32.mrf.mxu0  ;;  %v197_v51 = vpop.f32.mrf.mxu1 }
  0xd5   :  { %v251_v49 = vadd.f32 %v526_v12, %v228_v39  ;;  %339 = vst.msk [vmem:[%s628_s4] sm:$0xf] %vm338_vm1, %v395_v42  ;;  %347 = vst.msk [vmem:[%s628_s4 + $0x20] sm:$0xf] %vm338_vm1, %v403_v43  ;;  %v248_v52 = vadd.f32 %v526_v12, %v225_v44  ;;  %v223_v54 = vmul.f32 %v521_v10, %v165_v50 }
  0xd6   :  { %v256_v53 = vadd.f32 %v526_v12, %v233_v45  ;;  %v231_v55 = vmul.f32 %v521_v10, %v197_v51  ;;  %v398_v56 = vpack.c.bf16 %v261_v46, %v261_v46  ;;  %v406_v57 = vpack.c.bf16 %v269_v47, %v269_v47  ;;  %v432_v60 = vpop.f32.mrf.mxu0  ;;  %v440_v61 = vpop.f32.mrf.mxu1 }
  0xd7   :  { %v259_v58 = vmax.f32 %v243_v48, 0.0  ;;  %v267_v59 = vmax.f32 %v251_v49, 0.0  ;;  %v264_v62 = vmax.f32 %v248_v52, 0.0  ;;  %v246_v0 = vadd.f32 %v526_v12, %v223_v54 }
  0xd8   :  { %v272_v63 = vmax.f32 %v256_v53, 0.0  ;;  %v254_v1 = vadd.f32 %v526_v12, %v231_v55  ;;  %342 = vst.msk [vmem:[%s628_s4 + $0xc] sm:$0xf] %vm338_vm1, %v398_v56  ;;  %350 = vst.msk [vmem:[%s628_s4 + $0x2c] sm:$0xf] %vm338_vm1, %v406_v57  ;;  %v226_v4 = vmul.f32 %v432_v60, %v521_v10  ;;  %v234_v5 = vmul.f32 %v440_v61, %v521_v10  ;;  %v168_v6 = vpop.f32.mrf.mxu0  ;;  %v200_v7 = vpop.f32.mrf.mxu1 }
  0xd9   :  { %v396_v2 = vpack.c.bf16 %v259_v58, %v259_v58  ;;  %v404_v3 = vpack.c.bf16 %v267_v59, %v267_v59  ;;  %v401_v8 = vpack.c.bf16 %v264_v62, %v264_v62  ;;  %v262_v11 = vmax.f32 %v246_v0, 0.0 }
  0xda   :  { %v409_v9 = vpack.c.bf16 %v272_v63, %v272_v63  ;;  %v270_v13 = vmax.f32 %v254_v1, 0.0  ;;  %v249_v14 = vadd.f32 %v526_v12, %v226_v4  ;;  %v257_v15 = vadd.f32 %v526_v12, %v234_v5 }
  0xdb   :  { %340 = vst.msk [vmem:[%s628_s4 + $0x4] sm:$0xf] %vm338_vm1, %v396_v2  ;;  %348 = vst.msk [vmem:[%s628_s4 + $0x24] sm:$0xf] %vm338_vm1, %v404_v3  ;;  %v224_v16 = vmul.f32 %v521_v10, %v168_v6  ;;  %v232_v17 = vmul.f32 %v521_v10, %v200_v7  ;;  %v399_v18 = vpack.c.bf16 %v262_v11, %v262_v11 }
  0xdc   :  { %345 = vst.msk [vmem:[%s628_s4 + $0x18] sm:$0xf] %vm338_vm1, %v401_v8  ;;  %353 = vst.msk [vmem:[%s628_s4 + $0x38] sm:$0xf] %vm338_vm1, %v409_v9  ;;  %v407_v19 = vpack.c.bf16 %v270_v13, %v270_v13  ;;  %v265_v20 = vmax.f32 %v249_v14, 0.0  ;;  %v273_v21 = vmax.f32 %v257_v15, 0.0 }
  0xdd   :  { %v247_v22 = vadd.f32 %v526_v12, %v224_v16  ;;  %v255_v23 = vadd.f32 %v526_v12, %v232_v17  ;;  %343 = vst.msk [vmem:[%s628_s4 + $0x10] sm:$0xf] %vm338_vm1, %v399_v18 }
  0xde   :  { %351 = vst.msk [vmem:[%s628_s4 + $0x30] sm:$0xf] %vm338_vm1, %v407_v19  ;;  %v402_v10 = vpack.c.bf16 %v265_v20, %v265_v20  ;;  %v410_v24 = vpack.c.bf16 %v273_v21, %v273_v21 }
  0xdf   :  { %v263_v25 = vmax.f32 %v247_v22, 0.0  ;;  %v271_v26 = vmax.f32 %v255_v23, 0.0 }
  0xe0   :  { %346 = vst.msk [vmem:[%s628_s4 + $0x1c] sm:$0xf] %vm338_vm1, %v402_v10  ;;  %354 = vst.msk [vmem:[%s628_s4 + $0x3c] sm:$0xf] %vm338_vm1, %v410_v24 }
  0xe1   :  { %v400_v12 = vpack.c.bf16 %v263_v25, %v263_v25  ;;  %v408_v27 = vpack.c.bf16 %v271_v26, %v271_v26 }
  0xe3   :  { %344 = vst.msk [vmem:[%s628_s4 + $0x14] sm:$0xf] %vm338_vm1, %v400_v12  ;;  %352 = vst.msk [vmem:[%s628_s4 + $0x34] sm:$0xf] %vm338_vm1, %v408_v27 }

// kernel: _lambda_.71
= control target key start
LH: loop header
LB: loop body
LE: loop exit
PB: predicated region body
PF: predicated region fallthrough
CT: control target
= control target key end

     0   :  { %9 = vsyncpa [#allocation3], 0  ;;  %s435_s0 = inlined_call_operand.vmem [shape: bf16[32,144], index: 0, kind: input, shape index: {}]   ;;  %s436_s1 = inlined_call_operand.vmem [shape: bf16[144,16], index: 1, kind: input, shape index: {}]   ;;  %s437_s2 = inlined_call_operand.hbm [shape: f32[1,16], index: 2, kind: input, shape index: {}]   ;;  %s438_s3 = inlined_call_operand.hbm [shape: f32[1,16], index: 3, kind: input, shape index: {}]   ;;  %s439_s4 = inlined_call_operand.vmem [shape: bf16[32,16], index: 4, kind: output, shape index: {}]  }
   0x1   :  { %10 = vsyncpa [#allocation5], 0  ;;  %s350_s15 = smov [#allocation2]   ;;  %s351_s17 = smov [#allocation4]  }
   0x2   :  { %s21_s16 = sshll.u32 %s350_s15, 4  ;;  %s31_s18 = sshll.u32 %s351_s17, 4  ;;  %s22_s16 = int_to_ptr.vmem [resolvable:$true] %s21_s16  ;;  %s32_s18 = int_to_ptr.vmem [resolvable:$true] %s31_s18 }
   0x3   :  { %s314_s19 = scalar_lea.vmem %s22_s16, 16  ;;  %s318_s20 = scalar_lea.vmem %s22_s16, 32 }
   0x4   :  { %p315_p0 = scmp.ne.s32.totalorder %s22_s16, %s314_s19  ;;  %p319_p1 = scmp.lt.s32.totalorder %s22_s16, %s22_s16 }
   0x5   :  { %p320_p2 = scmp.lt.s32.totalorder %s318_s20, %s314_s19 }
   0x7   :  { %p321_p3 = por %p320_p2, %p319_p1 }
   0x9   :  { %p322_p4 = pnand %p321_p3, %p315_p0 }
   0xb   :  { %325 = shalt.err (!%p322_p4)
}
   0xc   :  { %24 = dma.hbm_to_vmem [thread:$0]  %s437_s2, 16, %s22_s16, [#allocation3]  }
   0xd   :  { %s334_s23 = scalar_lea.vmem %s32_s18, 16  ;;  %s338_s24 = scalar_lea.vmem %s32_s18, 32 }
   0xe   :  { %p335_p5 = scmp.ne.s32.totalorder %s32_s18, %s334_s23  ;;  %p339_p6 = scmp.lt.s32.totalorder %s32_s18, %s32_s18 }
   0xf   :  { %p340_p7 = scmp.lt.s32.totalorder %s338_s24, %s334_s23 }
  0x11   :  { %p341_p8 = por %p340_p7, %p339_p6 }
  0x13   :  { %p342_p9 = pnand %p341_p8, %p335_p5 }
  0x15   :  { %345 = shalt.err (!%p342_p9)
}
  0x16   :  { %34 = dma.hbm_to_vmem [thread:$0]  %s438_s3, 16, %s32_s18, [#allocation5]  }
  0x17   :  { %346 = dma.done.wait [#allocation3], 16  }
  0x18   :  { %347 = vsyncadd [#allocation3], 4294967280 }
  0x19   :  { %348 = dma.done.wait [#allocation5], 16  }
  0x1a   :  { %349 = vsyncadd [#allocation5], 4294967280  ;;  %v352_v0 = vmov 0   ;;  %v291_v1 = vld [vmem:[%s436_s1 + $0x38] sm:$0xff]   ;;  %v292_v2 = vld [vmem:[%s436_s1 + $0x30] sm:$0xff]   ;;  %vm136_vm0 = vcmask 130048  }
  0x1b   :  { %143 = vmatprep.subr.bf16.mxu0 %v352_v0  ;;  %270 = vmatprep.subr.bf16.mxu1 %v352_v0  ;;  %v293_v3 = vld [vmem:[%s436_s1 + $0x28] sm:$0xff]   ;;  %v294_v4 = vld [vmem:[%s436_s1 + $0x20] sm:$0xff]   ;;  %v305_v6 = vld [vmem:[%s435_s0 + $0x14] ss:$8 sps:$4 sm:$0xff]   ;;  %vm234_vm1 = vcmask 125952  }
  0x1c   :  { %144 = vmatpush1.bf16.msra.mxu0 %v291_v1  ;;  %279 = vmatpush1.bf16.msra.mxu1 %v291_v1  ;;  %v302_v5 = vld [vmem:[%s435_s0 + $0x4] ss:$8 sps:$4 sm:$0xff]   ;;  %v295_v7 = vld [vmem:[%s436_s1 + $0x18] sm:$0xff]   ;;  %v296_v8 = vld [vmem:[%s436_s1 + $0x10] sm:$0xff]  }
  0x1d   :  { %145 = vmatprep.subr.bf16.mxu0 %v352_v0  ;;  %271 = vmatprep.subr.bf16.mxu1 %v352_v0  ;;  %v297_v9 = vld [vmem:[%s436_s1 + $0x8] sm:$0xff]   ;;  %v298_v10 = vld [vmem:[%s436_s1] sm:$0xff]   ;;  %v303_v13 = vld [vmem:[%s435_s0 + $0x10] ss:$8 sps:$4 sm:$0xff]  }
  0x1e   :  { %258 = vmatprep.mubr.msk.bf16.mxu0 %vm136_vm0, %v302_v5  ;;  %259 = vmatprep.mubr.msk.bf16.mxu1 %vm136_vm0, %v305_v6  ;;  %v299_v11 = vld [vmem:[%s436_s1 + $0x40] sm:$0xff]  }
  0x1f   :  { %v300_v12 = vld [vmem:[%s435_s0] ss:$8 sps:$4 sm:$0xff]  }
  0x20   :  { %146 = vmatpush1.bf16.msra.mxu0 %v292_v2  ;;  %280 = vmatpush1.bf16.msra.mxu1 %v292_v2  ;;  %v260_v14 = vld [vmem:[#allocation2] ss:$0 sm:$0xff]  ;;  %v261_v16 = vld [vmem:[#allocation4] ss:$0 sm:$0xff] }
  0x21   :  { %147 = vmatprep.subr.bf16.mxu0 %v352_v0  ;;  %272 = vmatprep.subr.bf16.mxu1 %v352_v0 }
  0x24   :  { %148 = vmatpush1.bf16.msra.mxu0 %v293_v3  ;;  %281 = vmatpush1.bf16.msra.mxu1 %v293_v3 }
  0x25   :  { %149 = vmatprep.subr.bf16.mxu0 %v352_v0  ;;  %273 = vmatprep.subr.bf16.mxu1 %v352_v0 }
  0x28   :  { %150 = vmatpush1.bf16.msra.mxu0 %v294_v4  ;;  %282 = vmatpush1.bf16.msra.mxu1 %v294_v4 }
  0x29   :  { %151 = vmatprep.subr.bf16.mxu0 %v352_v0  ;;  %274 = vmatprep.subr.bf16.mxu1 %v352_v0 }
  0x2c   :  { %152 = vmatpush1.bf16.msra.mxu0 %v295_v7  ;;  %283 = vmatpush1.bf16.msra.mxu1 %v295_v7 }
  0x2d   :  { %153 = vmatprep.subr.bf16.mxu0 %v352_v0  ;;  %275 = vmatprep.subr.bf16.mxu1 %v352_v0 }
  0x30   :  { %154 = vmatpush1.bf16.msra.mxu0 %v296_v8  ;;  %284 = vmatpush1.bf16.msra.mxu1 %v296_v8 }
  0x31   :  { %155 = vmatprep.subr.bf16.mxu0 %v352_v0  ;;  %276 = vmatprep.subr.bf16.mxu1 %v352_v0 }
  0x34   :  { %156 = vmatpush1.bf16.msra.mxu0 %v297_v9  ;;  %285 = vmatpush1.bf16.msra.mxu1 %v297_v9 }
  0x35   :  { %157 = vmatprep.subr.bf16.mxu0 %v352_v0  ;;  %277 = vmatprep.subr.bf16.mxu1 %v352_v0 }
  0x38   :  { %158 = vmatpush1.bf16.msra.mxu0 %v298_v10  ;;  %286 = vmatpush1.bf16.msra.mxu1 %v298_v10 }
  0x39   :  { %173 = vmatprep.subr.bf16.mxu0 %v352_v0  ;;  %278 = vmatprep.subr.bf16.mxu1 %v352_v0 }
  0x3c   :  { %174 = vmatpush2.bf16.msra.mxu0 %v299_v11  ;;  %287 = vmatpush2.bf16.msra.mxu1 %v299_v11 }
  0x3f   :  { %176 = vmatmul.mubr.bf16.vlgmr.msra.gmra.mxu0 %v300_v12  ;;  %184 = vmatmul.mubr.bf16.vlgmr.msra.gmra.mxu1 %v303_v13 }
  0xff   :  { %v177_v15 = vpop.f32.mrf.mxu0  ;;  %v185_v17 = vpop.f32.mrf.mxu1 }
 0x100   :  { %v199_v18 = vmul.f32 %v260_v14, %v177_v15  ;;  %v201_v19 = vmul.f32 %v260_v14, %v185_v17 }
 0x101   :  { %v179_v20 = vpop.f32.mrf.mxu0  ;;  %v187_v21 = vpop.f32.mrf.mxu1 }
 0x102   :  { %v210_v22 = vadd.f32 %v261_v16, %v199_v18  ;;  %v212_v23 = vadd.f32 %v261_v16, %v201_v19 }
 0x103   :  { %v180_v24 = vpop.f32.mrf.mxu0  ;;  %v188_v25 = vpop.f32.mrf.mxu1 }
 0x104   :  { %v214_v26 = vmax.f32 %v210_v22, 0.0  ;;  %v216_v27 = vmax.f32 %v212_v23, 0.0  ;;  %v200_v28 = vmul.f32 %v260_v14, %v180_v24  ;;  %v202_v29 = vmul.f32 %v260_v14, %v188_v25 }
 0x105   :  { %v182_v30 = vpop.f32.mrf.mxu0  ;;  %v190_v31 = vpop.f32.mrf.mxu1 }
 0x106   :  { %v266_v32 = vpack.c.bf16 %v214_v26, %v214_v26  ;;  %v268_v33 = vpack.c.bf16 %v216_v27, %v216_v27  ;;  %v211_v34 = vadd.f32 %v261_v16, %v200_v28  ;;  %v213_v35 = vadd.f32 %v261_v16, %v202_v29 }
 0x108   :  { %235 = vst.msk [vmem:[%s439_s4] sm:$0xf] %vm234_vm1, %v266_v32  ;;  %237 = vst.msk [vmem:[%s439_s4 + $0x8] sm:$0xf] %vm234_vm1, %v268_v33  ;;  %v215_v36 = vmax.f32 %v211_v34, 0.0  ;;  %v217_v37 = vmax.f32 %v213_v35, 0.0 }
 0x10a   :  { %v267_v38 = vpack.c.bf16 %v215_v36, %v215_v36  ;;  %v269_v39 = vpack.c.bf16 %v217_v37, %v217_v37 }
 0x10c   :  { %236 = vst.msk [vmem:[%s439_s4 + $0x4] sm:$0xf] %vm234_vm1, %v267_v38  ;;  %238 = vst.msk [vmem:[%s439_s4 + $0xc] sm:$0xf] %vm234_vm1, %v269_v39 }
 0x10d   :  { %243 = vsyncpa [#allocation3], 1 }
 0x10e   :  { %244 = vsyncpa [#allocation5], 1 }

// kernel: _lambda_.73
= control target key start
LH: loop header
LB: loop body
LE: loop exit
PB: predicated region body
PF: predicated region fallthrough
CT: control target
= control target key end

     0   :  { %vm43_vm0 = vcmask 130048   ;;  %vm153_vm1 = vcmask 519168   ;;  %s261_s1 = inlined_call_operand.vmem [shape: bf16[16,64], index: 1, kind: input, shape index: {}]   ;;  %s262_s0 = inlined_call_operand.vmem [shape: bf16[32,16], index: 0, kind: input, shape index: {}]   ;;  %s263_s2 = inlined_call_operand.vmem [shape: f32[1,64], index: 2, kind: input, shape index: {}]   ;;  %s264_s4 = inlined_call_operand.vmem [shape: bf16[32,64], index: 4, kind: input, shape index: {}]   ;;  %s265_s3 = inlined_call_operand.vmem [shape: f32[1,64], index: 3, kind: input, shape index: {}]   ;;  %s266_s5 = inlined_call_operand.vmem [shape: bf16[32,64], index: 5, kind: output, shape index: {}]  }
   0x1   :  { %v195_v0 = vld [vmem:[%s261_s1] sm:$0xff]   ;;  %v197_v2 = vld [vmem:[%s262_s0 + $0x8] sm:$0xff]  }
   0x2   :  { %v196_v1 = vld [vmem:[%s262_s0] sm:$0xff]   ;;  %189 = vmatprep.subr.bf16.mxu0 %v195_v0  ;;  %v185_v4 = vld [vmem:[%s264_s4 + $0x8] sm:$0xff]  }
   0x3   :  { %190 = vmatpush3.bf16.msra.mxu0 %v195_v0  ;;  %191 = vmatprep.mubr.msk.bf16.mxu0 %vm43_vm0, %v196_v1  ;;  %v167_v3 = vld [vmem:[%s263_s2] ss:$0 sm:$0xff]  ;;  %v183_v9 = vunpack.c.l.bf16 %v185_v4  ;;  %v184_v18 = vunpack.c.h.bf16 %v185_v4 }
   0x4   :  { %v168_v6 = vld [vmem:[%s265_s3] ss:$0 sm:$0xff] }
   0x5   :  { %v178_v7 = vld [vmem:[%s264_s4] sm:$0xff]  }
   0x6   :  { %192 = vmatmul.mubr.msk.bf16.vlgmr.msra.gmra.mxu0 %vm43_vm0, %v197_v2  ;;  %v179_v13 = vunpack.c.l.bf16 %v178_v7  ;;  %v180_v20 = vunpack.c.h.bf16 %v178_v7 }
  0xc6   :  { %v193_v5 = vpop.f32.mrf.mxu0 }
  0xc7   :  { %v108_v8 = vmul.f32 %v193_v5, %v167_v3 }
  0xc8   :  { %v84_v10 = vpop.f32.mrf.mxu0 }
  0xc9   :  { %v119_v11 = vadd.f32 %v168_v6, %v108_v8  ;;  %v106_v12 = vmul.f32 %v167_v3, %v84_v10 }
  0xca   :  { %v194_v14 = vpop.f32.mrf.mxu0 }
  0xcb   :  { %v131_v15 = vadd.f32 %v183_v9, %v119_v11  ;;  %v117_v16 = vadd.f32 %v168_v6, %v106_v12  ;;  %v109_v17 = vmul.f32 %v194_v14, %v167_v3 }
  0xcc   :  { %v87_v19 = vpop.f32.mrf.mxu0 }
  0xcd   :  { %v135_v21 = vmax.f32 %v131_v15, 0.0  ;;  %v129_v22 = vadd.f32 %v179_v13, %v117_v16  ;;  %v120_v23 = vadd.f32 %v168_v6, %v109_v17  ;;  %v107_v24 = vmul.f32 %v167_v3, %v87_v19 }
  0xcf   :  { %v175_v25 = vpack.c.bf16 %v135_v21, %v135_v21  ;;  %v133_v26 = vmax.f32 %v129_v22, 0.0  ;;  %v132_v27 = vadd.f32 %v184_v18, %v120_v23  ;;  %v118_v28 = vadd.f32 %v168_v6, %v107_v24 }
  0xd1   :  { %156 = vst.msk [vmem:[%s266_s5 + $0x8] sm:$0xf] %vm153_vm1, %v175_v25  ;;  %v173_v29 = vpack.c.bf16 %v133_v26, %v133_v26  ;;  %v136_v30 = vmax.f32 %v132_v27, 0.0  ;;  %v130_v31 = vadd.f32 %v180_v20, %v118_v28 }
  0xd3   :  { %154 = vst.msk [vmem:[%s266_s5] sm:$0xf] %vm153_vm1, %v173_v29  ;;  %v176_v32 = vpack.c.bf16 %v136_v30, %v136_v30  ;;  %v134_v33 = vmax.f32 %v130_v31, 0.0 }
  0xd5   :  { %157 = vst.msk [vmem:[%s266_s5 + $0xc] sm:$0xf] %vm153_vm1, %v176_v32  ;;  %v174_v34 = vpack.c.bf16 %v134_v33, %v134_v33 }
  0xd7   :  { %155 = vst.msk [vmem:[%s266_s5 + $0x4] sm:$0xf] %vm153_vm1, %v174_v34 }

// kernel: _lambda_.72
= control target key start
LH: loop header
LB: loop body
LE: loop exit
PB: predicated region body
PF: predicated region fallthrough
CT: control target
= control target key end

     0   :  { %vm48_vm0 = vcmask 261120   ;;  %vm142_vm1 = vcmask 519168   ;;  %s238_s1 = inlined_call_operand.vmem [shape: bf16[32,64], index: 1, kind: input, shape index: {}]   ;;  %s239_s0 = inlined_call_operand.vmem [shape: bf16[32,32], index: 0, kind: input, shape index: {}]   ;;  %s240_s2 = inlined_call_operand.vmem [shape: f32[1,64], index: 2, kind: input, shape index: {}]   ;;  %s241_s3 = inlined_call_operand.vmem [shape: f32[1,64], index: 3, kind: input, shape index: {}]   ;;  %s242_s4 = inlined_call_operand.vmem [shape: bf16[32,64], index: 4, kind: output, shape index: {}]  }
   0x1   :  { %v179_v0 = vld [vmem:[%s238_s1 + $0x8] sm:$0xff]   ;;  %v180_v1 = vld [vmem:[%s238_s1] sm:$0xff]  }
   0x2   :  { %171 = vmatprep.subr.bf16.mxu0 %v179_v0  ;;  %v181_v2 = vld [vmem:[%s239_s0] sm:$0xff]   ;;  %v182_v3 = vld [vmem:[%s239_s0 + $0x8] sm:$0xff]  }
   0x3   :  { %172 = vmatpush3.bf16.msra.mxu0 %v179_v0  ;;  %175 = vmatprep.mubr.msk.bf16.mxu0 %vm48_vm0, %v181_v2  ;;  %v157_v4 = vld [vmem:[%s240_s2] ss:$0 sm:$0xff] }
   0x4   :  { %173 = vmatprep.subr.bf16.mxu0 %v180_v1  ;;  %v158_v6 = vld [vmem:[%s241_s3] ss:$0 sm:$0xff] }
   0x7   :  { %174 = vmatpush3.bf16.msra.mxu0 %v180_v1 }
   0xa   :  { %176 = vmatmul.mubr.msk.bf16.vlgmr.msra.gmra.mxu0 %vm48_vm0, %v182_v3 }
  0xca   :  { %v177_v5 = vpop.f32.mrf.mxu0 }
  0xcb   :  { %v113_v7 = vmul.f32 %v177_v5, %v157_v4 }
  0xcc   :  { %v89_v8 = vpop.f32.mrf.mxu0 }
  0xcd   :  { %v124_v9 = vadd.f32 %v158_v6, %v113_v7  ;;  %v111_v10 = vmul.f32 %v157_v4, %v89_v8 }
  0xce   :  { %v178_v11 = vpop.f32.mrf.mxu0 }
  0xcf   :  { %v165_v12 = vpack.c.bf16 %v124_v9, %v124_v9  ;;  %v122_v13 = vadd.f32 %v158_v6, %v111_v10  ;;  %v114_v14 = vmul.f32 %v178_v11, %v157_v4 }
  0xd0   :  { %v92_v15 = vpop.f32.mrf.mxu0 }
  0xd1   :  { %145 = vst.msk [vmem:[%s242_s4 + $0x8] sm:$0xf] %vm142_vm1, %v165_v12  ;;  %v163_v16 = vpack.c.bf16 %v122_v13, %v122_v13  ;;  %v125_v17 = vadd.f32 %v158_v6, %v114_v14  ;;  %v112_v18 = vmul.f32 %v157_v4, %v92_v15 }
  0xd3   :  { %143 = vst.msk [vmem:[%s242_s4] sm:$0xf] %vm142_vm1, %v163_v16  ;;  %v166_v19 = vpack.c.bf16 %v125_v17, %v125_v17  ;;  %v123_v20 = vadd.f32 %v158_v6, %v112_v18 }
  0xd5   :  { %146 = vst.msk [vmem:[%s242_s4 + $0xc] sm:$0xf] %vm142_vm1, %v166_v19  ;;  %v164_v21 = vpack.c.bf16 %v123_v20, %v123_v20 }
  0xd7   :  { %144 = vst.msk [vmem:[%s242_s4 + $0x4] sm:$0xf] %vm142_vm1, %v164_v21 }

// kernel: _lambda_.74
= control target key start
LH: loop header
LB: loop body
LE: loop exit
PB: predicated region body
PF: predicated region fallthrough
CT: control target
= control target key end

     0   :  { %vm64_vm0 = vcmask 523264   ;;  %vm162_vm1 = vcmask 125952   ;;  %s274_s1 = inlined_call_operand.vmem [shape: bf16[64,16], index: 1, kind: input, shape index: {}]   ;;  %s275_s0 = inlined_call_operand.vmem [shape: bf16[32,64], index: 0, kind: input, shape index: {}]   ;;  %s276_s2 = inlined_call_operand.vmem [shape: f32[1,16], index: 2, kind: input, shape index: {}]   ;;  %s277_s3 = inlined_call_operand.vmem [shape: f32[1,16], index: 3, kind: input, shape index: {}]   ;;  %s278_s4 = inlined_call_operand.vmem [shape: bf16[32,16], index: 4, kind: output, shape index: {}]  }
   0x1   :  { %v207_v0 = vld [vmem:[%s274_s1 + $0x18] sm:$0xff]   ;;  %v208_v1 = vld [vmem:[%s274_s1 + $0x10] sm:$0xff]   ;;  %v209_v2 = vld [vmem:[%s274_s1 + $0x8] sm:$0xff]  }
   0x2   :  { %195 = vmatprep.subr.bf16.mxu0 %v207_v0  ;;  %v211_v3 = vld [vmem:[%s275_s0] sm:$0xff]   ;;  %v212_v5 = vld [vmem:[%s275_s0 + $0x8] sm:$0xff]  }
   0x3   :  { %196 = vmatpush3.bf16.msra.mxu0 %v207_v0  ;;  %203 = vmatprep.mubr.msk.bf16.mxu0 %vm64_vm0, %v211_v3  ;;  %v210_v4 = vld [vmem:[%s274_s1] sm:$0xff]  }
   0x4   :  { %197 = vmatprep.subr.bf16.mxu0 %v208_v1  ;;  %v179_v6 = vld [vmem:[%s276_s2] ss:$0 sm:$0xff] }
   0x5   :  { %v180_v8 = vld [vmem:[%s277_s3] ss:$0 sm:$0xff] }
   0x7   :  { %198 = vmatpush3.bf16.msra.mxu0 %v208_v1 }
   0x8   :  { %199 = vmatprep.subr.bf16.mxu0 %v209_v2 }
   0xb   :  { %200 = vmatpush3.bf16.msra.mxu0 %v209_v2 }
   0xc   :  { %201 = vmatprep.subr.bf16.mxu0 %v210_v4 }
   0xf   :  { %202 = vmatpush3.bf16.msra.mxu0 %v210_v4 }
  0x12   :  { %204 = vmatmul.mubr.msk.bf16.vlgmr.msra.gmra.mxu0 %vm64_vm0, %v212_v5 }
  0xd2   :  { %v205_v7 = vpop.f32.mrf.mxu0 }
  0xd3   :  { %v129_v9 = vmul.f32 %v205_v7, %v179_v6 }
  0xd4   :  { %v105_v10 = vpop.f32.mrf.mxu0 }
  0xd5   :  { %v140_v11 = vadd.f32 %v180_v8, %v129_v9  ;;  %v127_v12 = vmul.f32 %v179_v6, %v105_v10 }
  0xd6   :  { %v206_v13 = vpop.f32.mrf.mxu0 }
  0xd7   :  { %v144_v14 = vmax.f32 %v140_v11, 0.0  ;;  %v138_v15 = vadd.f32 %v180_v8, %v127_v12  ;;  %v130_v16 = vmul.f32 %v206_v13, %v179_v6 }
  0xd8   :  { %v108_v17 = vpop.f32.mrf.mxu0 }
  0xd9   :  { %v187_v18 = vpack.c.bf16 %v144_v14, %v144_v14  ;;  %v142_v19 = vmax.f32 %v138_v15, 0.0  ;;  %v141_v20 = vadd.f32 %v180_v8, %v130_v16  ;;  %v128_v21 = vmul.f32 %v179_v6, %v108_v17 }
  0xdb   :  { %165 = vst.msk [vmem:[%s278_s4 + $0x8] sm:$0xf] %vm162_vm1, %v187_v18  ;;  %v185_v22 = vpack.c.bf16 %v142_v19, %v142_v19  ;;  %v145_v23 = vmax.f32 %v141_v20, 0.0  ;;  %v139_v24 = vadd.f32 %v180_v8, %v128_v21 }
  0xdd   :  { %163 = vst.msk [vmem:[%s278_s4] sm:$0xf] %vm162_vm1, %v185_v22  ;;  %v188_v25 = vpack.c.bf16 %v145_v23, %v145_v23  ;;  %v143_v26 = vmax.f32 %v139_v24, 0.0 }
  0xdf   :  { %166 = vst.msk [vmem:[%s278_s4 + $0xc] sm:$0xf] %vm162_vm1, %v188_v25  ;;  %v186_v27 = vpack.c.bf16 %v143_v26, %v143_v26 }
  0xe1   :  { %164 = vst.msk [vmem:[%s278_s4 + $0x4] sm:$0xf] %vm162_vm1, %v186_v27 }

// kernel: _lambda_.82
= control target key start
LH: loop header
LB: loop body
LE: loop exit
PB: predicated region body
PF: predicated region fallthrough
CT: control target
= control target key end

     0   :  { %10 = vsyncpa [#allocation3], 0  ;;  %s335_s0 = inlined_call_operand.vmem [shape: bf16[32,16], index: 0, kind: input, shape index: {}]   ;;  %s336_s1 = inlined_call_operand.vmem [shape: bf16[16,64], index: 1, kind: input, shape index: {}]   ;;  %s337_s2 = inlined_call_operand.hbm [shape: f32[1,64], index: 2, kind: input, shape index: {}]   ;;  %s338_s3 = inlined_call_operand.hbm [shape: f32[1,64], index: 3, kind: input, shape index: {}]   ;;  %s339_s4 = inlined_call_operand.vmem [shape: bf16[32,64], index: 4, kind: input, shape index: {}]   ;;  %s340_s5 = inlined_call_operand.vmem [shape: bf16[32,64], index: 5, kind: output, shape index: {}]  }
   0x1   :  { %11 = vsyncpa [#allocation5], 0  ;;  %s270_s18 = smov [#allocation2]   ;;  %s271_s20 = smov [#allocation4]  }
   0x2   :  { %s22_s19 = sshll.u32 %s270_s18, 4  ;;  %s32_s21 = sshll.u32 %s271_s20, 4  ;;  %s23_s19 = int_to_ptr.vmem [resolvable:$true] %s22_s19  ;;  %s33_s21 = int_to_ptr.vmem [resolvable:$true] %s32_s21 }
   0x3   :  { %s234_s22 = scalar_lea.vmem %s23_s19, 16  ;;  %s238_s23 = scalar_lea.vmem %s23_s19, 32 }
   0x4   :  { %p235_p0 = scmp.ne.s32.totalorder %s23_s19, %s234_s22  ;;  %p239_p1 = scmp.lt.s32.totalorder %s23_s19, %s23_s19 }
   0x5   :  { %p240_p2 = scmp.lt.s32.totalorder %s238_s23, %s234_s22 }
   0x7   :  { %p241_p3 = por %p240_p2, %p239_p1 }
   0x9   :  { %p242_p4 = pnand %p241_p3, %p235_p0 }
   0xb   :  { %245 = shalt.err (!%p242_p4)
}
   0xc   :  { %25 = dma.hbm_to_vmem [thread:$0]  %s337_s2, 16, %s23_s19, [#allocation3]  }
   0xd   :  { %s254_s26 = scalar_lea.vmem %s33_s21, 16  ;;  %s258_s27 = scalar_lea.vmem %s33_s21, 32 }
   0xe   :  { %p255_p5 = scmp.ne.s32.totalorder %s33_s21, %s254_s26  ;;  %p259_p6 = scmp.lt.s32.totalorder %s33_s21, %s33_s21 }
   0xf   :  { %p260_p7 = scmp.lt.s32.totalorder %s258_s27, %s254_s26 }
  0x11   :  { %p261_p8 = por %p260_p7, %p259_p6 }
  0x13   :  { %p262_p9 = pnand %p261_p8, %p255_p5 }
  0x15   :  { %265 = shalt.err (!%p262_p9)
}
  0x16   :  { %35 = dma.hbm_to_vmem [thread:$0]  %s338_s3, 16, %s33_s21, [#allocation5]  }
  0x17   :  { %266 = dma.done.wait [#allocation3], 16  }
  0x18   :  { %267 = vsyncadd [#allocation3], 4294967280 }
  0x19   :  { %268 = dma.done.wait [#allocation5], 16  }
  0x1a   :  { %269 = vsyncadd [#allocation5], 4294967280  ;;  %v223_v0 = vld [vmem:[%s336_s1] sm:$0xff]   ;;  %vm67_vm0 = vcmask 130048   ;;  %v225_v2 = vld [vmem:[%s335_s0 + $0x8] sm:$0xff]   ;;  %vm177_vm1 = vcmask 519168  }
  0x1b   :  { %v224_v1 = vld [vmem:[%s335_s0] sm:$0xff]   ;;  %215 = vmatprep.subr.bf16.mxu0 %v223_v0  ;;  %v211_v4 = vld [vmem:[%s339_s4 + $0x8] sm:$0xff]  }
  0x1c   :  { %216 = vmatpush3.bf16.msra.mxu0 %v223_v0  ;;  %217 = vmatprep.mubr.msk.bf16.mxu0 %vm67_vm0, %v224_v1  ;;  %v193_v3 = vld [vmem:[#allocation2] ss:$0 sm:$0xff]  ;;  %v194_v6 = vld [vmem:[#allocation4] ss:$0 sm:$0xff]  ;;  %v209_v9 = vunpack.c.l.bf16 %v211_v4  ;;  %v210_v18 = vunpack.c.h.bf16 %v211_v4 }
  0x1d   :  { %v204_v7 = vld [vmem:[%s339_s4] sm:$0xff]  }
  0x1e   :  { %v205_v13 = vunpack.c.l.bf16 %v204_v7  ;;  %v206_v20 = vunpack.c.h.bf16 %v204_v7 }
  0x1f   :  { %218 = vmatmul.mubr.msk.bf16.vlgmr.msra.gmra.mxu0 %vm67_vm0, %v225_v2 }
  0xdf   :  { %v219_v5 = vpop.f32.mrf.mxu0 }
  0xe0   :  { %v132_v8 = vmul.f32 %v219_v5, %v193_v3 }
  0xe1   :  { %v108_v10 = vpop.f32.mrf.mxu0 }
  0xe2   :  { %v143_v11 = vadd.f32 %v194_v6, %v132_v8  ;;  %v130_v12 = vmul.f32 %v193_v3, %v108_v10 }
  0xe3   :  { %v220_v14 = vpop.f32.mrf.mxu0 }
  0xe4   :  { %v155_v15 = vadd.f32 %v209_v9, %v143_v11  ;;  %v141_v16 = vadd.f32 %v194_v6, %v130_v12  ;;  %v133_v17 = vmul.f32 %v220_v14, %v193_v3 }
  0xe5   :  { %v111_v19 = vpop.f32.mrf.mxu0 }
  0xe6   :  { %v159_v21 = vmax.f32 %v155_v15, 0.0  ;;  %v153_v22 = vadd.f32 %v205_v13, %v141_v16  ;;  %v144_v23 = vadd.f32 %v194_v6, %v133_v17  ;;  %v131_v24 = vmul.f32 %v193_v3, %v111_v19 }
  0xe8   :  { %v201_v25 = vpack.c.bf16 %v159_v21, %v159_v21  ;;  %v157_v26 = vmax.f32 %v153_v22, 0.0  ;;  %v156_v27 = vadd.f32 %v210_v18, %v144_v23  ;;  %v142_v28 = vadd.f32 %v194_v6, %v131_v24 }
  0xea   :  { %180 = vst.msk [vmem:[%s340_s5 + $0x8] sm:$0xf] %vm177_vm1, %v201_v25  ;;  %v199_v29 = vpack.c.bf16 %v157_v26, %v157_v26  ;;  %v160_v30 = vmax.f32 %v156_v27, 0.0  ;;  %v154_v31 = vadd.f32 %v206_v20, %v142_v28 }
  0xec   :  { %178 = vst.msk [vmem:[%s340_s5] sm:$0xf] %vm177_vm1, %v199_v29  ;;  %v202_v32 = vpack.c.bf16 %v160_v30, %v160_v30  ;;  %v158_v33 = vmax.f32 %v154_v31, 0.0 }
  0xee   :  { %181 = vst.msk [vmem:[%s340_s5 + $0xc] sm:$0xf] %vm177_vm1, %v202_v32  ;;  %v200_v34 = vpack.c.bf16 %v158_v33, %v158_v33 }
  0xf0   :  { %179 = vst.msk [vmem:[%s340_s5 + $0x4] sm:$0xf] %vm177_vm1, %v200_v34 }
  0xf1   :  { %186 = vsyncpa [#allocation3], 1 }
  0xf2   :  { %187 = vsyncpa [#allocation5], 1 }

// kernel: _lambda_.83
= control target key start
LH: loop header
LB: loop body
LE: loop exit
PB: predicated region body
PF: predicated region fallthrough
CT: control target
= control target key end

     0   :  { %9 = vsyncpa [#allocation3], 0  ;;  %s348_s0 = inlined_call_operand.vmem [shape: bf16[32,64], index: 0, kind: input, shape index: {}]   ;;  %s349_s1 = inlined_call_operand.vmem [shape: bf16[64,32], index: 1, kind: input, shape index: {}]   ;;  %s350_s2 = inlined_call_operand.hbm [shape: f32[1,32], index: 2, kind: input, shape index: {}]   ;;  %s351_s3 = inlined_call_operand.hbm [shape: f32[1,32], index: 3, kind: input, shape index: {}]   ;;  %s352_s4 = inlined_call_operand.vmem [shape: bf16[32,32], index: 4, kind: output, shape index: {}]  }
   0x1   :  { %10 = vsyncpa [#allocation5], 0  ;;  %s285_s15 = smov [#allocation2]   ;;  %s286_s17 = smov [#allocation4]  }
   0x2   :  { %s21_s16 = sshll.u32 %s285_s15, 4  ;;  %s31_s18 = sshll.u32 %s286_s17, 4  ;;  %s22_s16 = int_to_ptr.vmem [resolvable:$true] %s21_s16  ;;  %s32_s18 = int_to_ptr.vmem [resolvable:$true] %s31_s18 }
   0x3   :  { %s249_s19 = scalar_lea.vmem %s22_s16, 16  ;;  %s253_s20 = scalar_lea.vmem %s22_s16, 32 }
   0x4   :  { %p250_p0 = scmp.ne.s32.totalorder %s22_s16, %s249_s19  ;;  %p254_p1 = scmp.lt.s32.totalorder %s22_s16, %s22_s16 }
   0x5   :  { %p255_p2 = scmp.lt.s32.totalorder %s253_s20, %s249_s19 }
   0x7   :  { %p256_p3 = por %p255_p2, %p254_p1 }
   0x9   :  { %p257_p4 = pnand %p256_p3, %p250_p0 }
   0xb   :  { %260 = shalt.err (!%p257_p4)
}
   0xc   :  { %24 = dma.hbm_to_vmem [thread:$0]  %s350_s2, 16, %s22_s16, [#allocation3]  }
   0xd   :  { %s269_s23 = scalar_lea.vmem %s32_s18, 16  ;;  %s273_s24 = scalar_lea.vmem %s32_s18, 32 }
   0xe   :  { %p270_p5 = scmp.ne.s32.totalorder %s32_s18, %s269_s23  ;;  %p274_p6 = scmp.lt.s32.totalorder %s32_s18, %s32_s18 }
   0xf   :  { %p275_p7 = scmp.lt.s32.totalorder %s273_s24, %s269_s23 }
  0x11   :  { %p276_p8 = por %p275_p7, %p274_p6 }
  0x13   :  { %p277_p9 = pnand %p276_p8, %p270_p5 }
  0x15   :  { %280 = shalt.err (!%p277_p9)
}
  0x16   :  { %34 = dma.hbm_to_vmem [thread:$0]  %s351_s3, 16, %s32_s18, [#allocation5]  }
  0x17   :  { %281 = dma.done.wait [#allocation3], 16  }
  0x18   :  { %282 = vsyncadd [#allocation3], 4294967280 }
  0x19   :  { %283 = dma.done.wait [#allocation5], 16  }
  0x1a   :  { %284 = vsyncadd [#allocation5], 4294967280  ;;  %v235_v0 = vld [vmem:[%s349_s1 + $0x18] sm:$0xff]   ;;  %v236_v1 = vld [vmem:[%s349_s1 + $0x10] sm:$0xff]   ;;  %vm88_vm0 = vcmask 523264   ;;  %vm186_vm1 = vcmask 257024  }
  0x1b   :  { %221 = vmatprep.subr.bf16.mxu0 %v235_v0  ;;  %v237_v2 = vld [vmem:[%s349_s1 + $0x8] sm:$0xff]   ;;  %v239_v3 = vld [vmem:[%s348_s0] sm:$0xff]  }
  0x1c   :  { %222 = vmatpush3.bf16.msra.mxu0 %v235_v0  ;;  %229 = vmatprep.mubr.msk.bf16.mxu0 %vm88_vm0, %v239_v3  ;;  %v238_v4 = vld [vmem:[%s349_s1] sm:$0xff]   ;;  %v240_v5 = vld [vmem:[%s348_s0 + $0x8] sm:$0xff]  }
  0x1d   :  { %223 = vmatprep.subr.bf16.mxu0 %v236_v1  ;;  %v205_v6 = vld [vmem:[#allocation2] ss:$0 sm:$0xff]  ;;  %v206_v8 = vld [vmem:[#allocation4] ss:$0 sm:$0xff] }
  0x20   :  { %224 = vmatpush3.bf16.msra.mxu0 %v236_v1 }
  0x21   :  { %225 = vmatprep.subr.bf16.mxu0 %v237_v2 }
  0x24   :  { %226 = vmatpush3.bf16.msra.mxu0 %v237_v2 }
  0x25   :  { %227 = vmatprep.subr.bf16.mxu0 %v238_v4 }
  0x28   :  { %228 = vmatpush3.bf16.msra.mxu0 %v238_v4 }
  0x2b   :  { %230 = vmatmul.mubr.msk.bf16.vlgmr.msra.gmra.mxu0 %vm88_vm0, %v240_v5 }
  0xeb   :  { %v231_v7 = vpop.f32.mrf.mxu0 }
  0xec   :  { %v153_v9 = vmul.f32 %v231_v7, %v205_v6 }
  0xed   :  { %v129_v10 = vpop.f32.mrf.mxu0 }
  0xee   :  { %v164_v11 = vadd.f32 %v206_v8, %v153_v9  ;;  %v151_v12 = vmul.f32 %v205_v6, %v129_v10 }
  0xef   :  { %v232_v13 = vpop.f32.mrf.mxu0 }
  0xf0   :  { %v168_v14 = vmax.f32 %v164_v11, 0.0  ;;  %v162_v15 = vadd.f32 %v206_v8, %v151_v12  ;;  %v154_v16 = vmul.f32 %v232_v13, %v205_v6 }
  0xf1   :  { %v132_v17 = vpop.f32.mrf.mxu0 }
  0xf2   :  { %v213_v18 = vpack.c.bf16 %v168_v14, %v168_v14  ;;  %v166_v19 = vmax.f32 %v162_v15, 0.0  ;;  %v165_v20 = vadd.f32 %v206_v8, %v154_v16  ;;  %v152_v21 = vmul.f32 %v205_v6, %v132_v17 }
  0xf4   :  { %189 = vst.msk [vmem:[%s352_s4 + $0x8] sm:$0xf] %vm186_vm1, %v213_v18  ;;  %v211_v22 = vpack.c.bf16 %v166_v19, %v166_v19  ;;  %v169_v23 = vmax.f32 %v165_v20, 0.0  ;;  %v163_v24 = vadd.f32 %v206_v8, %v152_v21 }
  0xf6   :  { %187 = vst.msk [vmem:[%s352_s4] sm:$0xf] %vm186_vm1, %v211_v22  ;;  %v214_v25 = vpack.c.bf16 %v169_v23, %v169_v23  ;;  %v167_v26 = vmax.f32 %v163_v24, 0.0 }
  0xf8   :  { %190 = vst.msk [vmem:[%s352_s4 + $0xc] sm:$0xf] %vm186_vm1, %v214_v25  ;;  %v212_v27 = vpack.c.bf16 %v167_v26, %v167_v26 }
  0xfa   :  { %188 = vst.msk [vmem:[%s352_s4 + $0x4] sm:$0xf] %vm186_vm1, %v212_v27 }
  0xfb   :  { %195 = vsyncpa [#allocation3], 1 }
  0xfc   :  { %196 = vsyncpa [#allocation5], 1 }

// kernel: _lambda_.75
= control target key start
LH: loop header
LB: loop body
LE: loop exit
PB: predicated region body
PF: predicated region fallthrough
CT: control target
= control target key end

     0   :  { %v278_v0 = vmov 0   ;;  %vm112_vm0 = vcmask 130048   ;;  %vm210_vm1 = vcmask 125952   ;;  %s361_s1 = inlined_call_operand.vmem [shape: bf16[144,16], index: 1, kind: input, shape index: {}]   ;;  %s362_s0 = inlined_call_operand.vmem [shape: bf16[32,144], index: 0, kind: input, shape index: {}]   ;;  %s363_s2 = inlined_call_operand.vmem [shape: f32[1,16], index: 2, kind: input, shape index: {}]   ;;  %s364_s3 = inlined_call_operand.vmem [shape: f32[1,16], index: 3, kind: input, shape index: {}]   ;;  %s365_s4 = inlined_call_operand.vmem [shape: bf16[32,16], index: 4, kind: output, shape index: {}]  }
   0x1   :  { %119 = vmatprep.subr.bf16.mxu0 %v278_v0  ;;  %244 = vmatprep.subr.bf16.mxu1 %v278_v0  ;;  %v263_v1 = vld [vmem:[%s361_s1 + $0x38] sm:$0xff]   ;;  %v264_v2 = vld [vmem:[%s361_s1 + $0x30] sm:$0xff]   ;;  %v265_v3 = vld [vmem:[%s361_s1 + $0x28] sm:$0xff]  }
   0x2   :  { %120 = vmatpush1.bf16.msra.mxu0 %v263_v1  ;;  %253 = vmatpush1.bf16.msra.mxu1 %v263_v1  ;;  %v266_v4 = vld [vmem:[%s361_s1 + $0x20] sm:$0xff]   ;;  %v277_v6 = vld [vmem:[%s362_s0 + $0x14] ss:$8 sps:$4 sm:$0xff]   ;;  %v269_v9 = vld [vmem:[%s361_s1 + $0x8] sm:$0xff]  }
   0x3   :  { %121 = vmatprep.subr.bf16.mxu0 %v278_v0  ;;  %245 = vmatprep.subr.bf16.mxu1 %v278_v0  ;;  %v274_v5 = vld [vmem:[%s362_s0 + $0x4] ss:$8 sps:$4 sm:$0xff]   ;;  %v267_v7 = vld [vmem:[%s361_s1 + $0x18] sm:$0xff]   ;;  %v268_v8 = vld [vmem:[%s361_s1 + $0x10] sm:$0xff]  }
   0x4   :  { %232 = vmatprep.mubr.msk.bf16.mxu0 %vm112_vm0, %v274_v5  ;;  %233 = vmatprep.mubr.msk.bf16.mxu1 %vm112_vm0, %v277_v6  ;;  %v270_v10 = vld [vmem:[%s361_s1] sm:$0xff]   ;;  %v275_v13 = vld [vmem:[%s362_s0 + $0x10] ss:$8 sps:$4 sm:$0xff]  }
   0x5   :  { %v271_v11 = vld [vmem:[%s361_s1 + $0x40] sm:$0xff]  }
   0x6   :  { %122 = vmatpush1.bf16.msra.mxu0 %v264_v2  ;;  %254 = vmatpush1.bf16.msra.mxu1 %v264_v2  ;;  %v272_v12 = vld [vmem:[%s362_s0] ss:$8 sps:$4 sm:$0xff]  }
   0x7   :  { %123 = vmatprep.subr.bf16.mxu0 %v278_v0  ;;  %246 = vmatprep.subr.bf16.mxu1 %v278_v0  ;;  %v234_v14 = vld [vmem:[%s363_s2] ss:$0 sm:$0xff] }
   0x8   :  { %v235_v16 = vld [vmem:[%s364_s3] ss:$0 sm:$0xff] }
   0xa   :  { %124 = vmatpush1.bf16.msra.mxu0 %v265_v3  ;;  %255 = vmatpush1.bf16.msra.mxu1 %v265_v3 }
   0xb   :  { %125 = vmatprep.subr.bf16.mxu0 %v278_v0  ;;  %247 = vmatprep.subr.bf16.mxu1 %v278_v0 }
   0xe   :  { %126 = vmatpush1.bf16.msra.mxu0 %v266_v4  ;;  %256 = vmatpush1.bf16.msra.mxu1 %v266_v4 }
   0xf   :  { %127 = vmatprep.subr.bf16.mxu0 %v278_v0  ;;  %248 = vmatprep.subr.bf16.mxu1 %v278_v0 }
  0x12   :  { %128 = vmatpush1.bf16.msra.mxu0 %v267_v7  ;;  %257 = vmatpush1.bf16.msra.mxu1 %v267_v7 }
  0x13   :  { %129 = vmatprep.subr.bf16.mxu0 %v278_v0  ;;  %249 = vmatprep.subr.bf16.mxu1 %v278_v0 }
  0x16   :  { %130 = vmatpush1.bf16.msra.mxu0 %v268_v8  ;;  %258 = vmatpush1.bf16.msra.mxu1 %v268_v8 }
  0x17   :  { %131 = vmatprep.subr.bf16.mxu0 %v278_v0  ;;  %250 = vmatprep.subr.bf16.mxu1 %v278_v0 }
  0x1a   :  { %132 = vmatpush1.bf16.msra.mxu0 %v269_v9  ;;  %259 = vmatpush1.bf16.msra.mxu1 %v269_v9 }
  0x1b   :  { %133 = vmatprep.subr.bf16.mxu0 %v278_v0  ;;  %251 = vmatprep.subr.bf16.mxu1 %v278_v0 }
  0x1e   :  { %134 = vmatpush1.bf16.msra.mxu0 %v270_v10  ;;  %260 = vmatpush1.bf16.msra.mxu1 %v270_v10 }
  0x1f   :  { %149 = vmatprep.subr.bf16.mxu0 %v278_v0  ;;  %252 = vmatprep.subr.bf16.mxu1 %v278_v0 }
  0x22   :  { %150 = vmatpush2.bf16.msra.mxu0 %v271_v11  ;;  %261 = vmatpush2.bf16.msra.mxu1 %v271_v11 }
  0x25   :  { %152 = vmatmul.mubr.bf16.vlgmr.msra.gmra.mxu0 %v272_v12  ;;  %160 = vmatmul.mubr.bf16.vlgmr.msra.gmra.mxu1 %v275_v13 }
  0xe5   :  { %v153_v15 = vpop.f32.mrf.mxu0  ;;  %v161_v17 = vpop.f32.mrf.mxu1 }
  0xe6   :  { %v175_v18 = vmul.f32 %v234_v14, %v153_v15  ;;  %v177_v19 = vmul.f32 %v234_v14, %v161_v17 }
  0xe7   :  { %v155_v20 = vpop.f32.mrf.mxu0  ;;  %v163_v21 = vpop.f32.mrf.mxu1 }
  0xe8   :  { %v186_v22 = vadd.f32 %v235_v16, %v175_v18  ;;  %v188_v23 = vadd.f32 %v235_v16, %v177_v19 }
  0xe9   :  { %v156_v24 = vpop.f32.mrf.mxu0  ;;  %v164_v25 = vpop.f32.mrf.mxu1 }
  0xea   :  { %v190_v26 = vmax.f32 %v186_v22, 0.0  ;;  %v192_v27 = vmax.f32 %v188_v23, 0.0  ;;  %v176_v28 = vmul.f32 %v234_v14, %v156_v24  ;;  %v178_v29 = vmul.f32 %v234_v14, %v164_v25 }
  0xeb   :  { %v158_v30 = vpop.f32.mrf.mxu0  ;;  %v166_v31 = vpop.f32.mrf.mxu1 }
  0xec   :  { %v240_v32 = vpack.c.bf16 %v190_v26, %v190_v26  ;;  %v242_v33 = vpack.c.bf16 %v192_v27, %v192_v27  ;;  %v187_v34 = vadd.f32 %v235_v16, %v176_v28  ;;  %v189_v35 = vadd.f32 %v235_v16, %v178_v29 }
  0xee   :  { %211 = vst.msk [vmem:[%s365_s4] sm:$0xf] %vm210_vm1, %v240_v32  ;;  %213 = vst.msk [vmem:[%s365_s4 + $0x8] sm:$0xf] %vm210_vm1, %v242_v33  ;;  %v191_v36 = vmax.f32 %v187_v34, 0.0  ;;  %v193_v37 = vmax.f32 %v189_v35, 0.0 }
  0xf0   :  { %v241_v38 = vpack.c.bf16 %v191_v36, %v191_v36  ;;  %v243_v39 = vpack.c.bf16 %v193_v37, %v193_v37 }
  0xf2   :  { %212 = vst.msk [vmem:[%s365_s4 + $0x4] sm:$0xf] %vm210_vm1, %v241_v38  ;;  %214 = vst.msk [vmem:[%s365_s4 + $0xc] sm:$0xf] %vm210_vm1, %v243_v39 }

// kernel: _lambda_.85
= control target key start
LH: loop header
LB: loop body
LE: loop exit
PB: predicated region body
PF: predicated region fallthrough
CT: control target
= control target key end

     0   :  { %9 = vsyncpa [#allocation3], 0  ;;  %s272_s0 = inlined_call_operand.vmem [shape: bf16[8,64], index: 0, kind: input, shape index: {}]   ;;  %s273_s1 = inlined_call_operand.vmem [shape: bf16[64,128], index: 1, kind: input, shape index: {}]   ;;  %s274_s2 = inlined_call_operand.hbm [shape: f32[1,128], index: 2, kind: input, shape index: {}]   ;;  %s275_s3 = inlined_call_operand.hbm [shape: f32[1,128], index: 3, kind: input, shape index: {}]   ;;  %s276_s4 = inlined_call_operand.vmem [shape: bf16[8,128], index: 4, kind: output, shape index: {}]  }
   0x1   :  { %10 = vsyncpa [#allocation5], 0  ;;  %s219_s15 = smov [#allocation2]   ;;  %s220_s17 = smov [#allocation4]  }
   0x2   :  { %s21_s16 = sshll.u32 %s219_s15, 4  ;;  %s31_s18 = sshll.u32 %s220_s17, 4  ;;  %s22_s16 = int_to_ptr.vmem [resolvable:$true] %s21_s16  ;;  %s32_s18 = int_to_ptr.vmem [resolvable:$true] %s31_s18 }
   0x3   :  { %s183_s19 = scalar_lea.vmem %s22_s16, 16  ;;  %s187_s20 = scalar_lea.vmem %s22_s16, 32 }
   0x4   :  { %p184_p0 = scmp.ne.s32.totalorder %s22_s16, %s183_s19  ;;  %p188_p1 = scmp.lt.s32.totalorder %s22_s16, %s22_s16 }
   0x5   :  { %p189_p2 = scmp.lt.s32.totalorder %s187_s20, %s183_s19 }
   0x7   :  { %p190_p3 = por %p189_p2, %p188_p1 }
   0x9   :  { %p191_p4 = pnand %p190_p3, %p184_p0 }
   0xb   :  { %194 = shalt.err (!%p191_p4)
}
   0xc   :  { %24 = dma.hbm_to_vmem [thread:$0]  %s274_s2, 16, %s22_s16, [#allocation3]  }
   0xd   :  { %s203_s23 = scalar_lea.vmem %s32_s18, 16  ;;  %s207_s24 = scalar_lea.vmem %s32_s18, 32 }
   0xe   :  { %p204_p5 = scmp.ne.s32.totalorder %s32_s18, %s203_s23  ;;  %p208_p6 = scmp.lt.s32.totalorder %s32_s18, %s32_s18 }
   0xf   :  { %p209_p7 = scmp.lt.s32.totalorder %s207_s24, %s203_s23 }
  0x11   :  { %p210_p8 = por %p209_p7, %p208_p6 }
  0x13   :  { %p211_p9 = pnand %p210_p8, %p204_p5 }
  0x15   :  { %214 = shalt.err (!%p211_p9)
}
  0x16   :  { %34 = dma.hbm_to_vmem [thread:$0]  %s275_s3, 16, %s32_s18, [#allocation5]  }
  0x17   :  { %215 = dma.done.wait [#allocation3], 16  }
  0x18   :  { %216 = vsyncadd [#allocation3], 4294967280 }
  0x19   :  { %217 = dma.done.wait [#allocation5], 16  }
  0x1a   :  { %218 = vsyncadd [#allocation5], 4294967280  ;;  %v221_v0 = vmov 0.0   ;;  %vm222_vm0 = vmmov 0   ;;  %v171_v1 = vld [vmem:[%s273_s1 + $0x18] sm:$0xff]   ;;  %v172_v2 = vld [vmem:[%s273_s1 + $0x10] sm:$0xff]  }
  0x1b   :  { %155 = vmatprep.subr.bf16.mxu0 %v221_v0  ;;  %163 = vmatprep.mubr.msk.bf16.mxu0 %vm222_vm0, %v221_v0  ;;  %v173_v3 = vld [vmem:[%s273_s1 + $0x8] sm:$0xff]   ;;  %v174_v4 = vld [vmem:[%s273_s1] sm:$0xff]   ;;  %vm75_vm1 = vcmask 523264  }
  0x1c   :  { %156 = vmatpush3.bf16.msra.mxu0 %v171_v1  ;;  %v42_v5 = vld [vmem:[%s272_s0] sm:$0xf] }
  0x1d   :  { %157 = vmatprep.subr.bf16.mxu0 %v221_v0  ;;  %v148_v6 = vld [vmem:[#allocation2] ss:$0 sm:$0xff]  ;;  %v149_v8 = vld [vmem:[#allocation4] ss:$0 sm:$0xff] }
  0x20   :  { %158 = vmatpush3.bf16.msra.mxu0 %v172_v2 }
  0x21   :  { %159 = vmatprep.subr.bf16.mxu0 %v221_v0 }
  0x24   :  { %160 = vmatpush3.bf16.msra.mxu0 %v173_v3 }
  0x25   :  { %161 = vmatprep.subr.bf16.mxu0 %v221_v0 }
  0x28   :  { %162 = vmatpush3.bf16.msra.mxu0 %v174_v4 }
  0x2b   :  { %164 = vmatmul.mubr.msk.bf16.vlgmr.msra.gmra.mxu0 %vm75_vm1, %v42_v5 }
  0xeb   :  { %v113_v7 = vpop.f32.mrf.mxu0 }
  0xec   :  { %v126_v9 = vmul.f32 %v148_v6, %v113_v7 }
  0xed   :  { %v165_v10 = vpop.f32.mrf.mxu0 }
  0xee   :  { %v134_v11 = vadd.f32 %v149_v8, %v126_v9 }
  0xef   :  { %v116_v12 = vpop.f32.mrf.mxu0 }
  0xf0   :  { %v135_v13 = vpack.c.bf16 %v134_v11, %v134_v11 }
  0xf1   :  { %v166_v14 = vpop.f32.mrf.mxu0 }
  0xf2   :  { %136 = vst [vmem:[%s276_s4] sm:$0xf] %v135_v13 }
  0xf3   :  { %141 = vsyncpa [#allocation3], 1 }
  0xf4   :  { %142 = vsyncpa [#allocation5], 1 }

// kernel: _lambda_.86
= control target key start
LH: loop header
LB: loop body
LE: loop exit
PB: predicated region body
PF: predicated region fallthrough
CT: control target
= control target key end

     0   :  { %10 = vsyncpa [#allocation3], 0  ;;  %s255_s0 = inlined_call_operand.vmem [shape: bf16[8,32], index: 0, kind: input, shape index: {}]   ;;  %s256_s1 = inlined_call_operand.vmem [shape: bf16[32,128], index: 1, kind: input, shape index: {}]   ;;  %s257_s2 = inlined_call_operand.hbm [shape: f32[1,128], index: 2, kind: input, shape index: {}]   ;;  %s258_s3 = inlined_call_operand.hbm [shape: f32[1,128], index: 3, kind: input, shape index: {}]   ;;  %s259_s4 = inlined_call_operand.vmem [shape: bf16[8,128], index: 4, kind: input, shape index: {}]   ;;  %s260_s5 = inlined_call_operand.vmem [shape: bf16[8,128], index: 5, kind: output, shape index: {}]  }
   0x1   :  { %11 = vsyncpa [#allocation5], 0  ;;  %s200_s18 = smov [#allocation2]   ;;  %s201_s20 = smov [#allocation4]  }
   0x2   :  { %s22_s19 = sshll.u32 %s200_s18, 4  ;;  %s32_s21 = sshll.u32 %s201_s20, 4  ;;  %s23_s19 = int_to_ptr.vmem [resolvable:$true] %s22_s19  ;;  %s33_s21 = int_to_ptr.vmem [resolvable:$true] %s32_s21 }
   0x3   :  { %s164_s22 = scalar_lea.vmem %s23_s19, 16  ;;  %s168_s23 = scalar_lea.vmem %s23_s19, 32 }
   0x4   :  { %p165_p0 = scmp.ne.s32.totalorder %s23_s19, %s164_s22  ;;  %p169_p1 = scmp.lt.s32.totalorder %s23_s19, %s23_s19 }
   0x5   :  { %p170_p2 = scmp.lt.s32.totalorder %s168_s23, %s164_s22 }
   0x7   :  { %p171_p3 = por %p170_p2, %p169_p1 }
   0x9   :  { %p172_p4 = pnand %p171_p3, %p165_p0 }
   0xb   :  { %175 = shalt.err (!%p172_p4)
}
   0xc   :  { %25 = dma.hbm_to_vmem [thread:$0]  %s257_s2, 16, %s23_s19, [#allocation3]  }
   0xd   :  { %s184_s26 = scalar_lea.vmem %s33_s21, 16  ;;  %s188_s27 = scalar_lea.vmem %s33_s21, 32 }
   0xe   :  { %p185_p5 = scmp.ne.s32.totalorder %s33_s21, %s184_s26  ;;  %p189_p6 = scmp.lt.s32.totalorder %s33_s21, %s33_s21 }
   0xf   :  { %p190_p7 = scmp.lt.s32.totalorder %s188_s27, %s184_s26 }
  0x11   :  { %p191_p8 = por %p190_p7, %p189_p6 }
  0x13   :  { %p192_p9 = pnand %p191_p8, %p185_p5 }
  0x15   :  { %195 = shalt.err (!%p192_p9)
}
  0x16   :  { %35 = dma.hbm_to_vmem [thread:$0]  %s258_s3, 16, %s33_s21, [#allocation5]  }
  0x17   :  { %196 = dma.done.wait [#allocation3], 16  }
  0x18   :  { %197 = vsyncadd [#allocation3], 4294967280 }
  0x19   :  { %198 = dma.done.wait [#allocation5], 16  }
  0x1a   :  { %199 = vsyncadd [#allocation5], 4294967280  ;;  %v202_v0 = vmov 0.0   ;;  %vm203_vm0 = vmmov 0   ;;  %v154_v1 = vld [vmem:[%s256_s1 + $0x8] sm:$0xff]   ;;  %v155_v2 = vld [vmem:[%s256_s1] sm:$0xff]  }
  0x1b   :  { %142 = vmatprep.subr.bf16.mxu0 %v202_v0  ;;  %146 = vmatprep.mubr.msk.bf16.mxu0 %vm203_vm0, %v202_v0  ;;  %v45_v3 = vld [vmem:[%s255_s0] sm:$0xf]  ;;  %vm62_vm1 = vcmask 261120  }
  0x1c   :  { %143 = vmatpush3.bf16.msra.mxu0 %v154_v1  ;;  %v137_v4 = vld [vmem:[#allocation2] ss:$0 sm:$0xff]  ;;  %v138_v7 = vld [vmem:[#allocation4] ss:$0 sm:$0xff] }
  0x1d   :  { %144 = vmatprep.subr.bf16.mxu0 %v202_v0  ;;  %v122_v5 = vld [vmem:[%s259_s4] sm:$0xf] }
  0x1e   :  { %v123_v9 = vunpack.c.l.bf16 %v122_v5 }
  0x20   :  { %145 = vmatpush3.bf16.msra.mxu0 %v155_v2 }
  0x23   :  { %147 = vmatmul.mubr.msk.bf16.vlgmr.msra.gmra.mxu0 %vm62_vm1, %v45_v3 }
  0xe3   :  { %v100_v6 = vpop.f32.mrf.mxu0 }
  0xe4   :  { %v113_v8 = vmul.f32 %v137_v4, %v100_v6 }
  0xe5   :  { %v148_v10 = vpop.f32.mrf.mxu0 }
  0xe6   :  { %v121_v11 = vadd.f32 %v138_v7, %v113_v8 }
  0xe7   :  { %v103_v12 = vpop.f32.mrf.mxu0 }
  0xe8   :  { %v124_v13 = vadd.f32 %v123_v9, %v121_v11 }
  0xe9   :  { %v149_v14 = vpop.f32.mrf.mxu0 }
  0xea   :  { %v125_v15 = vmax.f32 %v124_v13, 0.0 }
  0xec   :  { %v126_v16 = vpack.c.bf16 %v125_v15, %v125_v15 }
  0xee   :  { %127 = vst [vmem:[%s260_s5] sm:$0xf] %v126_v16 }
  0xef   :  { %132 = vsyncpa [#allocation3], 1 }
  0xf0   :  { %133 = vsyncpa [#allocation5], 1 }

// kernel: _lambda_.84
= control target key start
LH: loop header
LB: loop body
LE: loop exit
PB: predicated region body
PF: predicated region fallthrough
CT: control target
= control target key end

     0   :  { %9 = vsyncpa [#allocation3], 0  ;;  %s532_s0 = inlined_call_operand.vmem [shape: bf16[8,288], index: 0, kind: input, shape index: {}]   ;;  %s533_s1 = inlined_call_operand.vmem [shape: bf16[288,32], index: 1, kind: input, shape index: {}]   ;;  %s534_s2 = inlined_call_operand.hbm [shape: f32[1,32], index: 2, kind: input, shape index: {}]   ;;  %s535_s3 = inlined_call_operand.hbm [shape: f32[1,32], index: 3, kind: input, shape index: {}]   ;;  %s536_s4 = inlined_call_operand.vmem [shape: bf16[8,32], index: 4, kind: output, shape index: {}]  }
   0x1   :  { %10 = vsyncpa [#allocation5], 0  ;;  %s434_s15 = smov [#allocation2]   ;;  %s435_s17 = smov [#allocation4]  }
   0x2   :  { %s21_s16 = sshll.u32 %s434_s15, 4  ;;  %s31_s18 = sshll.u32 %s435_s17, 4  ;;  %s22_s16 = int_to_ptr.vmem [resolvable:$true] %s21_s16  ;;  %s32_s18 = int_to_ptr.vmem [resolvable:$true] %s31_s18 }
   0x3   :  { %s398_s19 = scalar_lea.vmem %s22_s16, 16  ;;  %s402_s20 = scalar_lea.vmem %s22_s16, 32 }
   0x4   :  { %p399_p0 = scmp.ne.s32.totalorder %s22_s16, %s398_s19  ;;  %p403_p1 = scmp.lt.s32.totalorder %s22_s16, %s22_s16 }
   0x5   :  { %p404_p2 = scmp.lt.s32.totalorder %s402_s20, %s398_s19 }
   0x7   :  { %p405_p3 = por %p404_p2, %p403_p1 }
   0x9   :  { %p406_p4 = pnand %p405_p3, %p399_p0 }
   0xb   :  { %409 = shalt.err (!%p406_p4)
}
   0xc   :  { %24 = dma.hbm_to_vmem [thread:$0]  %s534_s2, 16, %s22_s16, [#allocation3]  }
   0xd   :  { %s418_s23 = scalar_lea.vmem %s32_s18, 16  ;;  %s422_s24 = scalar_lea.vmem %s32_s18, 32 }
   0xe   :  { %p419_p5 = scmp.ne.s32.totalorder %s32_s18, %s418_s23  ;;  %p423_p6 = scmp.lt.s32.totalorder %s32_s18, %s32_s18 }
   0xf   :  { %p424_p7 = scmp.lt.s32.totalorder %s422_s24, %s418_s23 }
  0x11   :  { %p425_p8 = por %p424_p7, %p423_p6 }
  0x13   :  { %p426_p9 = pnand %p425_p8, %p419_p5 }
  0x15   :  { %429 = shalt.err (!%p426_p9)
}
  0x16   :  { %34 = dma.hbm_to_vmem [thread:$0]  %s535_s3, 16, %s32_s18, [#allocation5]  }
  0x17   :  { %430 = dma.done.wait [#allocation3], 16  }
  0x18   :  { %431 = vsyncadd [#allocation3], 4294967280 }
  0x19   :  { %432 = dma.done.wait [#allocation5], 16  }
  0x1a   :  { %433 = vsyncadd [#allocation5], 4294967280  ;;  %v436_v0 = vmov 0.0   ;;  %vm437_vm0 = vmmov 0   ;;  %v369_v1 = vld [vmem:[%s533_s1 + $0x78] sm:$0xff]   ;;  %v371_v3 = vld [vmem:[%s533_s1 + $0x70] sm:$0xff]  }
  0x1b   :  { %357 = vmatprep.subr.bf16.mxu1 %v436_v0  ;;  %361 = vmatprep.mubr.msk.bf16.mxu1 %vm437_vm0, %v436_v0  ;;  %v370_v2 = vld [vmem:[%s533_s1 + $0x38] sm:$0xff]   ;;  %v372_v4 = vld [vmem:[%s533_s1 + $0x30] sm:$0xff]   ;;  %v373_v5 = vld [vmem:[%s533_s1 + $0x68] sm:$0xff]   ;;  %vm198_vm1 = vcmask 261120   ;;  %vm300_vm2 = vcmask 257024  }
  0x1c   :  { %332 = vmatprep.subr.bf16.mxu0 %v369_v1  ;;  %v374_v6 = vld [vmem:[%s533_s1 + $0x28] sm:$0xff]   ;;  %v375_v7 = vld [vmem:[%s533_s1 + $0x60] sm:$0xff]   ;;  %v377_v9 = vld [vmem:[%s533_s1 + $0x58] sm:$0xff]  }
  0x1d   :  { %333 = vmatpush3.bf16.msra.mxu0 %v370_v2  ;;  %v376_v8 = vld [vmem:[%s533_s1 + $0x20] sm:$0xff]   ;;  %v381_v10 = vld [vmem:[%s533_s1 + $0x88] sm:$0xff]   ;;  %v378_v11 = vld [vmem:[%s533_s1 + $0x18] sm:$0xff]  }
  0x1e   :  { %334 = vmatprep.subr.bf16.mxu0 %v371_v3  ;;  %358 = vmatpush3.bf16.msra.mxu1 %v381_v10  ;;  %v384_v12 = vld [vmem:[%s533_s1 + $0x80] sm:$0xff]   ;;  %v379_v13 = vld [vmem:[%s533_s1 + $0x50] sm:$0xff]   ;;  %v387_v14 = vld [vmem:[%s532_s0 + $0x8] ss:$0 sps:$4 sm:$0xff]  }
  0x1f   :  { %359 = vmatprep.subr.bf16.mxu1 %v436_v0  ;;  %v42_v15 = vld [vmem:[%s532_s0] sm:$0xff]  ;;  %v380_v16 = vld [vmem:[%s533_s1 + $0x10] sm:$0xff]   ;;  %v382_v18 = vld [vmem:[%s533_s1 + $0x48] sm:$0xff]  }
  0x20   :  { %v309_v17 = vcombine.high %v42_v15, %v42_v15  ;;  %v383_v19 = vld [vmem:[%s533_s1 + $0x8] sm:$0xff]   ;;  %v385_v20 = vld [vmem:[%s533_s1 + $0x40] sm:$0xff]   ;;  %v308_v22 = vcombine.low %v42_v15, %v42_v15 }
  0x21   :  { %335 = vmatpush3.bf16.msra.mxu0 %v372_v4  ;;  %v386_v21 = vld [vmem:[%s533_s1] sm:$0xff]  }
  0x22   :  { %336 = vmatprep.subr.bf16.mxu0 %v373_v5  ;;  %360 = vmatpush3.bf16.msra.mxu1 %v384_v12  ;;  %v330_v30 = vld [vmem:[#allocation2] ss:$0 sm:$0xff]  ;;  %v331_v33 = vld [vmem:[#allocation4] ss:$0 sm:$0xff] }
  0x23   :  { %234 = vmatprep.mubr.bf16.mxu0 %v309_v17 }
  0x25   :  { %337 = vmatpush3.bf16.msra.mxu0 %v374_v6  ;;  %362 = vmatmul.mubr.msk.bf16.vlgmr.msra.gmra.mxu1 %vm198_vm1, %v387_v14 }
  0x26   :  { %338 = vmatprep.subr.bf16.mxu0 %v375_v7 }
  0x29   :  { %339 = vmatpush3.bf16.msra.mxu0 %v376_v8 }
  0x2a   :  { %340 = vmatprep.subr.bf16.mxu0 %v377_v9 }
  0x2d   :  { %341 = vmatpush3.bf16.msra.mxu0 %v378_v11 }
  0x2e   :  { %342 = vmatprep.subr.bf16.mxu0 %v379_v13 }
  0x31   :  { %343 = vmatpush3.bf16.msra.mxu0 %v380_v16 }
  0x32   :  { %344 = vmatprep.subr.bf16.mxu0 %v382_v18 }
  0x35   :  { %345 = vmatpush3.bf16.msra.mxu0 %v383_v19 }
  0x36   :  { %346 = vmatprep.subr.bf16.mxu0 %v385_v20 }
  0x39   :  { %347 = vmatpush3.bf16.msra.mxu0 %v386_v21 }
  0x3c   :  { %235 = vmatmul.mubr.bf16.vlgmr.msra.gmra.mxu0 %v308_v22 }
  0xe5   :  { %v276_v23 = vpop.f32.mrf.mxu1 }
  0xe7   :  { %v363_v24 = vpop.f32.mrf.mxu1 }
  0xe9   :  { %v279_v25 = vpop.f32.mrf.mxu1 }
  0xeb   :  { %v364_v26 = vpop.f32.mrf.mxu1 }
  0xfc   :  { %v348_v27 = vpop.f32.mrf.mxu0 }
  0xfe   :  { %v349_v28 = vpop.f32.mrf.mxu0 }
  0xff   :  { %v350_v29 = vadd.f32 %v349_v28, %v348_v27 }
 0x100   :  { %v351_v31 = vpop.f32.mrf.mxu0 }
 0x101   :  { %v277_v32 = vadd.f32 %v350_v29, %v276_v23 }
 0x102   :  { %v352_v34 = vpop.f32.mrf.mxu0 }
 0x103   :  { %v289_v35 = vmul.f32 %v330_v30, %v277_v32 }
 0x105   :  { %v297_v36 = vadd.f32 %v331_v33, %v289_v35 }
 0x107   :  { %v298_v37 = vmax.f32 %v297_v36, 0.0 }
 0x109   :  { %v299_v38 = vpack.c.bf16 %v298_v37, %v298_v37 }
 0x10b   :  { %301 = vst.msk [vmem:[%s536_s4] sm:$0xf] %vm300_vm2, %v299_v38 }
 0x10c   :  { %306 = vsyncpa [#allocation3], 1 }
 0x10d   :  { %307 = vsyncpa [#allocation5], 1 }

// kernel: _lambda_.87
= control target key start
LH: loop header
LB: loop body
LE: loop exit
PB: predicated region body
PF: predicated region fallthrough
CT: control target
= control target key end

     0   :  { %9 = vsyncpa [#allocation3], 0  ;;  %s333_s0 = inlined_call_operand.vmem [shape: bf16[8,128], index: 0, kind: input, shape index: {}]   ;;  %s334_s1 = inlined_call_operand.vmem [shape: bf16[128,32], index: 1, kind: input, shape index: {}]   ;;  %s335_s2 = inlined_call_operand.hbm [shape: f32[1,32], index: 2, kind: input, shape index: {}]   ;;  %s336_s3 = inlined_call_operand.hbm [shape: f32[1,32], index: 3, kind: input, shape index: {}]   ;;  %s337_s4 = inlined_call_operand.vmem [shape: bf16[8,32], index: 4, kind: output, shape index: {}]  }
   0x1   :  { %10 = vsyncpa [#allocation5], 0  ;;  %s268_s15 = smov [#allocation2]   ;;  %s269_s17 = smov [#allocation4]  }
   0x2   :  { %s21_s16 = sshll.u32 %s268_s15, 4  ;;  %s31_s18 = sshll.u32 %s269_s17, 4  ;;  %s22_s16 = int_to_ptr.vmem [resolvable:$true] %s21_s16  ;;  %s32_s18 = int_to_ptr.vmem [resolvable:$true] %s31_s18 }
   0x3   :  { %s232_s19 = scalar_lea.vmem %s22_s16, 16  ;;  %s236_s20 = scalar_lea.vmem %s22_s16, 32 }
   0x4   :  { %p233_p0 = scmp.ne.s32.totalorder %s22_s16, %s232_s19  ;;  %p237_p1 = scmp.lt.s32.totalorder %s22_s16, %s22_s16 }
   0x5   :  { %p238_p2 = scmp.lt.s32.totalorder %s236_s20, %s232_s19 }
   0x7   :  { %p239_p3 = por %p238_p2, %p237_p1 }
   0x9   :  { %p240_p4 = pnand %p239_p3, %p233_p0 }
   0xb   :  { %243 = shalt.err (!%p240_p4)
}
   0xc   :  { %24 = dma.hbm_to_vmem [thread:$0]  %s335_s2, 16, %s22_s16, [#allocation3]  }
   0xd   :  { %s252_s23 = scalar_lea.vmem %s32_s18, 16  ;;  %s256_s24 = scalar_lea.vmem %s32_s18, 32 }
   0xe   :  { %p253_p5 = scmp.ne.s32.totalorder %s32_s18, %s252_s23  ;;  %p257_p6 = scmp.lt.s32.totalorder %s32_s18, %s32_s18 }
   0xf   :  { %p258_p7 = scmp.lt.s32.totalorder %s256_s24, %s252_s23 }
  0x11   :  { %p259_p8 = por %p258_p7, %p257_p6 }
  0x13   :  { %p260_p9 = pnand %p259_p8, %p253_p5 }
  0x15   :  { %263 = shalt.err (!%p260_p9)
}
  0x16   :  { %34 = dma.hbm_to_vmem [thread:$0]  %s336_s3, 16, %s32_s18, [#allocation5]  }
  0x17   :  { %264 = dma.done.wait [#allocation3], 16  }
  0x18   :  { %265 = vsyncadd [#allocation3], 4294967280 }
  0x19   :  { %266 = dma.done.wait [#allocation5], 16  }
  0x1a   :  { %267 = vsyncadd [#allocation5], 4294967280  ;;  %v270_v0 = vmov 0.0   ;;  %vm271_vm0 = vmmov 0   ;;  %v216_v1 = vld [vmem:[%s334_s1 + $0x38] sm:$0xff]   ;;  %v217_v2 = vld [vmem:[%s334_s1 + $0x30] sm:$0xff]  }
  0x1b   :  { %192 = vmatprep.subr.bf16.mxu0 %v270_v0  ;;  %208 = vmatprep.mubr.msk.bf16.mxu0 %vm271_vm0, %v270_v0  ;;  %v218_v3 = vld [vmem:[%s334_s1 + $0x28] sm:$0xff]   ;;  %v219_v4 = vld [vmem:[%s334_s1 + $0x20] sm:$0xff]   ;;  %v220_v5 = vld [vmem:[%s334_s1 + $0x18] sm:$0xff]   ;;  %vm165_vm1 = vcmask 257024  }
  0x1c   :  { %193 = vmatpush3.bf16.msra.mxu0 %v216_v1  ;;  %v221_v6 = vld [vmem:[%s334_s1 + $0x10] sm:$0xff]   ;;  %v222_v7 = vld [vmem:[%s334_s1 + $0x8] sm:$0xff]   ;;  %v223_v8 = vld [vmem:[%s334_s1] sm:$0xff]  }
  0x1d   :  { %194 = vmatprep.subr.bf16.mxu0 %v270_v0  ;;  %v42_v9 = vld [vmem:[%s333_s0] sm:$0xf] }
  0x1e   :  { %v181_v10 = vld [vmem:[#allocation2] ss:$0 sm:$0xff]  ;;  %v182_v12 = vld [vmem:[#allocation4] ss:$0 sm:$0xff] }
  0x20   :  { %195 = vmatpush3.bf16.msra.mxu0 %v217_v2 }
  0x21   :  { %196 = vmatprep.subr.bf16.mxu0 %v270_v0 }
  0x24   :  { %197 = vmatpush3.bf16.msra.mxu0 %v218_v3 }
  0x25   :  { %198 = vmatprep.subr.bf16.mxu0 %v270_v0 }
  0x28   :  { %199 = vmatpush3.bf16.msra.mxu0 %v219_v4 }
  0x29   :  { %200 = vmatprep.subr.bf16.mxu0 %v270_v0 }
  0x2c   :  { %201 = vmatpush3.bf16.msra.mxu0 %v220_v5 }
  0x2d   :  { %202 = vmatprep.subr.bf16.mxu0 %v270_v0 }
  0x30   :  { %203 = vmatpush3.bf16.msra.mxu0 %v221_v6 }
  0x31   :  { %204 = vmatprep.subr.bf16.mxu0 %v270_v0 }
  0x34   :  { %205 = vmatpush3.bf16.msra.mxu0 %v222_v7 }
  0x35   :  { %206 = vmatprep.subr.bf16.mxu0 %v270_v0 }
  0x38   :  { %207 = vmatpush3.bf16.msra.mxu0 %v223_v8 }
  0x3b   :  { %209 = vmatmul.mubr.bf16.vlgmr.msra.gmra.mxu0 %v42_v9 }
  0xfb   :  { %v141_v11 = vpop.f32.mrf.mxu0 }
  0xfc   :  { %v154_v13 = vmul.f32 %v181_v10, %v141_v11 }
  0xfd   :  { %v210_v14 = vpop.f32.mrf.mxu0 }
  0xfe   :  { %v162_v15 = vadd.f32 %v182_v12, %v154_v13 }
  0xff   :  { %v144_v16 = vpop.f32.mrf.mxu0 }
 0x100   :  { %v163_v17 = vmax.f32 %v162_v15, 0.0 }
 0x101   :  { %v211_v18 = vpop.f32.mrf.mxu0 }
 0x102   :  { %v164_v19 = vpack.c.bf16 %v163_v17, %v163_v17 }
 0x104   :  { %166 = vst.msk [vmem:[%s337_s4] sm:$0xf] %vm165_vm1, %v164_v19 }
 0x105   :  { %171 = vsyncpa [#allocation3], 1 }
 0x106   :  { %172 = vsyncpa [#allocation5], 1 }

// kernel: _lambda_.101
= control target key start
LH: loop header
LB: loop body
LE: loop exit
PB: predicated region body
PF: predicated region fallthrough
CT: control target
= control target key end

     0   :  { %10 = vsyncpa [#allocation3], 0  ;;  %s164_s18 = smov [#allocation2]   ;;  %s218_s0 = inlined_call_operand.vmem [shape: bf16[8,32], index: 0, kind: input, shape index: {}]   ;;  %s219_s1 = inlined_call_operand.vmem [shape: bf16[32,128], index: 1, kind: input, shape index: {}]   ;;  %s220_s2 = inlined_call_operand.hbm [shape: f32[1,128], index: 2, kind: input, shape index: {}]   ;;  %s221_s3 = inlined_call_operand.vmem [shape: f32[1,128], index: 3, kind: input, shape index: {}]   ;;  %s222_s4 = inlined_call_operand.vmem [shape: bf16[8,128], index: 4, kind: input, shape index: {}]   ;;  %s223_s5 = inlined_call_operand.vmem [shape: bf16[8,128], index: 5, kind: output, shape index: {}]  }
   0x1   :  { %s21_s19 = sshll.u32 %s164_s18, 4  ;;  %s22_s19 = int_to_ptr.vmem [resolvable:$true] %s21_s19 }
   0x2   :  { %s150_s20 = scalar_lea.vmem %s22_s19, 16  ;;  %s154_s21 = scalar_lea.vmem %s22_s19, 32 }
   0x3   :  { %p151_p0 = scmp.ne.s32.totalorder %s22_s19, %s150_s20  ;;  %p155_p1 = scmp.lt.s32.totalorder %s22_s19, %s22_s19 }
   0x4   :  { %p156_p2 = scmp.lt.s32.totalorder %s154_s21, %s150_s20 }
   0x6   :  { %p157_p3 = por %p156_p2, %p155_p1 }
   0x8   :  { %p158_p4 = pnand %p157_p3, %p151_p0 }
   0xa   :  { %161 = shalt.err (!%p158_p4)
}
   0xb   :  { %24 = dma.hbm_to_vmem [thread:$0]  %s220_s2, 16, %s22_s19, [#allocation3]  }
   0xc   :  { %162 = dma.done.wait [#allocation3], 16  }
   0xd   :  { %163 = vsyncadd [#allocation3], 4294967280  ;;  %v165_v0 = vmov 0.0   ;;  %vm166_vm0 = vmmov 0   ;;  %v140_v1 = vld [vmem:[%s219_s1 + $0x8] sm:$0xff]   ;;  %v141_v2 = vld [vmem:[%s219_s1] sm:$0xff]  }
   0xe   :  { %129 = vmatprep.subr.bf16.mxu0 %v165_v0  ;;  %133 = vmatprep.mubr.msk.bf16.mxu0 %vm166_vm0, %v165_v0  ;;  %v33_v3 = vld [vmem:[%s218_s0] sm:$0xf]  ;;  %vm50_vm1 = vcmask 261120  }
   0xf   :  { %130 = vmatpush3.bf16.msra.mxu0 %v140_v1  ;;  %v124_v4 = vld [vmem:[#allocation2] ss:$0 sm:$0xff] }
  0x10   :  { %131 = vmatprep.subr.bf16.mxu0 %v165_v0  ;;  %v110_v5 = vld [vmem:[%s222_s4] sm:$0xf] }
  0x11   :  { %v125_v7 = vld [vmem:[%s221_s3] ss:$0 sm:$0xff]  ;;  %v111_v9 = vunpack.c.l.bf16 %v110_v5 }
  0x13   :  { %132 = vmatpush3.bf16.msra.mxu0 %v141_v2 }
  0x16   :  { %134 = vmatmul.mubr.msk.bf16.vlgmr.msra.gmra.mxu0 %vm50_vm1, %v33_v3 }
  0xd6   :  { %v88_v6 = vpop.f32.mrf.mxu0 }
  0xd7   :  { %v101_v8 = vmul.f32 %v124_v4, %v88_v6 }
  0xd8   :  { %v135_v10 = vpop.f32.mrf.mxu0 }
  0xd9   :  { %v109_v11 = vadd.f32 %v125_v7, %v101_v8 }
  0xda   :  { %v91_v12 = vpop.f32.mrf.mxu0 }
  0xdb   :  { %v112_v13 = vadd.f32 %v111_v9, %v109_v11 }
  0xdc   :  { %v136_v14 = vpop.f32.mrf.mxu0 }
  0xdd   :  { %v113_v15 = vmax.f32 %v112_v13, 0.0 }
  0xdf   :  { %v114_v16 = vpack.c.bf16 %v113_v15, %v113_v15 }
  0xe1   :  { %115 = vst [vmem:[%s223_s5] sm:$0xf] %v114_v16 }
  0xe2   :  { %120 = vsyncpa [#allocation3], 1 }

// kernel: _lambda_.102
= control target key start
LH: loop header
LB: loop body
LE: loop exit
PB: predicated region body
PF: predicated region fallthrough
CT: control target
= control target key end

     0   :  { %v196_v0 = vmov 0.0   ;;  %vm197_vm0 = vmmov 0   ;;  %vm141_vm1 = vcmask 519168   ;;  %s259_s1 = inlined_call_operand.vmem [shape: bf16[128,64], index: 1, kind: input, shape index: {}]   ;;  %s260_s0 = inlined_call_operand.vmem [shape: bf16[8,128], index: 0, kind: input, shape index: {}]   ;;  %s261_s2 = inlined_call_operand.vmem [shape: f32[1,64], index: 2, kind: input, shape index: {}]   ;;  %s262_s3 = inlined_call_operand.vmem [shape: f32[1,64], index: 3, kind: input, shape index: {}]   ;;  %s263_s4 = inlined_call_operand.vmem [shape: bf16[8,64], index: 4, kind: output, shape index: {}]  }
   0x1   :  { %166 = vmatprep.subr.bf16.mxu0 %v196_v0  ;;  %v188_v1 = vld [vmem:[%s259_s1 + $0x38] sm:$0xff]   ;;  %182 = vmatprep.mubr.msk.bf16.mxu0 %vm197_vm0, %v196_v0  ;;  %v189_v2 = vld [vmem:[%s259_s1 + $0x30] sm:$0xff]   ;;  %v190_v3 = vld [vmem:[%s259_s1 + $0x28] sm:$0xff]  }
   0x2   :  { %167 = vmatpush3.bf16.msra.mxu0 %v188_v1  ;;  %v191_v4 = vld [vmem:[%s259_s1 + $0x20] sm:$0xff]   ;;  %v192_v5 = vld [vmem:[%s259_s1 + $0x18] sm:$0xff]   ;;  %v193_v6 = vld [vmem:[%s259_s1 + $0x10] sm:$0xff]  }
   0x3   :  { %168 = vmatprep.subr.bf16.mxu0 %v196_v0  ;;  %v194_v7 = vld [vmem:[%s259_s1 + $0x8] sm:$0xff]   ;;  %v195_v8 = vld [vmem:[%s259_s1] sm:$0xff]  }
   0x4   :  { %v18_v9 = vld [vmem:[%s260_s0] sm:$0xf] }
   0x5   :  { %v155_v10 = vld [vmem:[%s261_s2] ss:$0 sm:$0xff] }
   0x6   :  { %169 = vmatpush3.bf16.msra.mxu0 %v189_v2  ;;  %v156_v12 = vld [vmem:[%s262_s3] ss:$0 sm:$0xff] }
   0x7   :  { %170 = vmatprep.subr.bf16.mxu0 %v196_v0 }
   0xa   :  { %171 = vmatpush3.bf16.msra.mxu0 %v190_v3 }
   0xb   :  { %172 = vmatprep.subr.bf16.mxu0 %v196_v0 }
   0xe   :  { %173 = vmatpush3.bf16.msra.mxu0 %v191_v4 }
   0xf   :  { %174 = vmatprep.subr.bf16.mxu0 %v196_v0 }
  0x12   :  { %175 = vmatpush3.bf16.msra.mxu0 %v192_v5 }
  0x13   :  { %176 = vmatprep.subr.bf16.mxu0 %v196_v0 }
  0x16   :  { %177 = vmatpush3.bf16.msra.mxu0 %v193_v6 }
  0x17   :  { %178 = vmatprep.subr.bf16.mxu0 %v196_v0 }
  0x1a   :  { %179 = vmatpush3.bf16.msra.mxu0 %v194_v7 }
  0x1b   :  { %180 = vmatprep.subr.bf16.mxu0 %v196_v0 }
  0x1e   :  { %181 = vmatpush3.bf16.msra.mxu0 %v195_v8 }
  0x21   :  { %183 = vmatmul.mubr.bf16.vlgmr.msra.gmra.mxu0 %v18_v9 }
  0xe1   :  { %v117_v11 = vpop.f32.mrf.mxu0 }
  0xe2   :  { %v130_v13 = vmul.f32 %v155_v10, %v117_v11 }
  0xe3   :  { %v184_v14 = vpop.f32.mrf.mxu0 }
  0xe4   :  { %v138_v15 = vadd.f32 %v156_v12, %v130_v13 }
  0xe5   :  { %v120_v16 = vpop.f32.mrf.mxu0 }
  0xe6   :  { %v139_v17 = vmax.f32 %v138_v15, 0.0 }
  0xe7   :  { %v185_v18 = vpop.f32.mrf.mxu0 }
  0xe8   :  { %v140_v19 = vpack.c.bf16 %v139_v17, %v139_v17 }
  0xea   :  { %142 = vst.msk [vmem:[%s263_s4] sm:$0xf] %vm141_vm1, %v140_v19 }

// kernel: _lambda_.104
= control target key start
LH: loop header
LB: loop body
LE: loop exit
PB: predicated region body
PF: predicated region fallthrough
CT: control target
= control target key end

     0   :  { %v253_v1 = vmov 0   ;;  %v158_v18 = vlaneseq  ;;  %v254_v24 = vmov 1966171168   ;;  %s340_s1 = inlined_call_operand.vmem [shape: bf16[128,256], index: 1, kind: input, shape index: {}]   ;;  %s341_s0 = inlined_call_operand.vmem [shape: bf16[2,128], index: 0, kind: input, shape index: {}]   ;;  %s342_s2 = inlined_call_operand.vmem [shape: f32[1,256], index: 2, kind: input, shape index: {}]   ;;  %s343_s3 = inlined_call_operand.vmem [shape: f32[1,256], index: 3, kind: input, shape index: {}]   ;;  %s344_s4 = inlined_call_operand.vmem [shape: bf16[2,256], index: 4, kind: output, shape index: {}]  }
   0x1   :  { %v229_v0 = vld [vmem:[%s340_s1 + $0x74] ss:$8 sps:$4 sm:$0xff]   ;;  %147 = vmatprep.mubr.bf16.mxu0 %v253_v1  ;;  %v231_v2 = vld [vmem:[%s340_s1 + $0x70] ss:$8 sps:$4 sm:$0xff]   ;;  %v232_v3 = vld [vmem:[%s340_s1 + $0x64] ss:$8 sps:$4 sm:$0xff]   ;;  %v190_v25 = vunpack.c.l.s4 %v254_v24 }
   0x2   :  { %115 = vmatprep.subr.bf16.mxu0 %v229_v0  ;;  %v234_v4 = vld [vmem:[%s340_s1 + $0x60] ss:$8 sps:$4 sm:$0xff]   ;;  %v235_v5 = vld [vmem:[%s340_s1 + $0x54] ss:$8 sps:$4 sm:$0xff]   ;;  %v237_v6 = vld [vmem:[%s340_s1 + $0x50] ss:$8 sps:$4 sm:$0xff]  }
   0x3   :  { %116 = vmatpush1.bf16.msra.mxu0 %v231_v2  ;;  %v238_v7 = vld [vmem:[%s340_s1 + $0x44] ss:$8 sps:$4 sm:$0xff]   ;;  %v240_v8 = vld [vmem:[%s340_s1 + $0x40] ss:$8 sps:$4 sm:$0xff]   ;;  %v241_v9 = vld [vmem:[%s340_s1 + $0x34] ss:$8 sps:$4 sm:$0xff]   ;;  %v191_v32 = vunpack.c.0.s8 %v190_v25 }
   0x4   :  { %117 = vmatprep.subr.bf16.mxu0 %v232_v3  ;;  %v243_v10 = vld [vmem:[%s340_s1 + $0x30] ss:$8 sps:$4 sm:$0xff]   ;;  %v244_v11 = vld [vmem:[%s340_s1 + $0x24] ss:$8 sps:$4 sm:$0xff]   ;;  %v246_v12 = vld [vmem:[%s340_s1 + $0x20] ss:$8 sps:$4 sm:$0xff]  }
   0x5   :  { %v247_v13 = vld [vmem:[%s340_s1 + $0x14] ss:$8 sps:$4 sm:$0xff]   ;;  %v249_v14 = vld [vmem:[%s340_s1 + $0x10] ss:$8 sps:$4 sm:$0xff]   ;;  %v250_v15 = vld [vmem:[%s340_s1 + $0x4] ss:$8 sps:$4 sm:$0xff]  }
   0x6   :  { %v252_v16 = vld [vmem:[%s340_s1] ss:$8 sps:$4 sm:$0xff]   ;;  %v159_v19 = vshrl.u32 %v158_v18, 7 }
   0x7   :  { %118 = vmatpush1.bf16.msra.mxu0 %v234_v4  ;;  %v18_v17 = vld [vmem:[%s341_s0] sm:$0x1] }
   0x8   :  { %119 = vmatprep.subr.bf16.mxu0 %v235_v5  ;;  %v160_v20 = vsub.s32 0, %v159_v19  ;;  %v156_v21 = vld [vmem:[%s342_s2] sm:$0x3]  ;;  %v164_v22 = vsub.s32 1, %v159_v19  ;;  %v194_v38 = vsub.s32 %v191_v32, %v159_v19 }
   0x9   :  { %v170_v26 = vld [vmem:[%s343_s3] sm:$0x3] }
   0xa   :  { %v161_v23 = vrot.slane %v156_v21, %v160_v20  ;;  %v165_v27 = vrot.slane %v156_v21, %v164_v22  ;;  %v175_v30 = vrot.slane %v170_v26, %v160_v20  ;;  %v179_v31 = vrot.slane %v170_v26, %v164_v22 }
   0xb   :  { %120 = vmatpush1.bf16.msra.mxu0 %v237_v6 }
   0xc   :  { %121 = vmatprep.subr.bf16.mxu0 %v238_v7 }
   0xf   :  { %122 = vmatpush1.bf16.msra.mxu0 %v240_v8 }
  0x10   :  { %123 = vmatprep.subr.bf16.mxu0 %v241_v9 }
  0x13   :  { %124 = vmatpush1.bf16.msra.mxu0 %v243_v10 }
  0x14   :  { %125 = vmatprep.subr.bf16.mxu0 %v244_v11 }
  0x17   :  { %126 = vmatpush1.bf16.msra.mxu0 %v246_v12 }
  0x18   :  { %127 = vmatprep.subr.bf16.mxu0 %v247_v13 }
  0x1b   :  { %128 = vmatpush1.bf16.msra.mxu0 %v249_v14 }
  0x1c   :  { %129 = vmatprep.subr.bf16.mxu0 %v250_v15 }
  0x1f   :  { %130 = vmatpush1.bf16.msra.mxu0 %v252_v16 }
  0x22   :  { %148 = vmatmul.mubr.bf16.vlgmr.msra.gmra.mxu0 %v18_v17 }
  0xe2   :  { %v149_v28 = vpop.f32.mrf.mxu0 }
  0xe3   :  { %v168_v29 = vmul.f32 %v161_v23, %v149_v28 }
  0xe4   :  { %v151_v33 = vpop.f32.mrf.mxu0 }
  0xe5   :  { %v169_v34 = vmul.f32 %v165_v27, %v151_v33  ;;  %v182_v36 = vadd.f32 %v175_v30, %v168_v29 }
  0xe6   :  { %v153_v35 = vpop.f32.mrf.mxu0 }
  0xe7   :  { %v183_v37 = vadd.f32 %v179_v31, %v169_v34 }
  0xe8   :  { %v154_v39 = vpop.f32.mrf.mxu0 }
  0xe9   :  { %v225_v40 = vpack.c.bf16 %v183_v37, %v182_v36 }
  0xeb   :  { %v195_v41 = vrot.slane %v225_v40, %v194_v38 }
  0xed   :  { %226 = vst.sshfl [vmem:[%s344_s4] sm:$0x5 pattern:$0x73625140] %v195_v41 }

// kernel: _lambda_.105
= control target key start
LH: loop header
LB: loop body
LE: loop exit
PB: predicated region body
PF: predicated region fallthrough
CT: control target
= control target key end

     0   :  { %v211_v1 = vmov 0   ;;  %vm70_vm0 = vcmask 523264   ;;  %v117_v10 = vlaneseq  ;;  %v212_v11 = vmov 1983009808   ;;  %s283_s1 = inlined_call_operand.vmem [shape: bf16[64,256], index: 1, kind: input, shape index: {}]   ;;  %s284_s0 = inlined_call_operand.vmem [shape: bf16[2,64], index: 0, kind: input, shape index: {}]   ;;  %s285_s4 = inlined_call_operand.vmem [shape: bf16[2,256], index: 4, kind: input, shape index: {}]   ;;  %s286_s2 = inlined_call_operand.vmem [shape: f32[1,256], index: 2, kind: input, shape index: {}]   ;;  %s287_s3 = inlined_call_operand.vmem [shape: f32[1,256], index: 3, kind: input, shape index: {}]   ;;  %s288_s5 = inlined_call_operand.vmem [shape: bf16[2,256], index: 5, kind: output, shape index: {}]  }
   0x1   :  { %v199_v0 = vld [vmem:[%s283_s1 + $0x34] ss:$8 sps:$4 sm:$0xff]   ;;  %106 = vmatprep.mubr.bf16.mxu0 %v211_v1  ;;  %v201_v2 = vld [vmem:[%s283_s1 + $0x30] ss:$8 sps:$4 sm:$0xff]   ;;  %v202_v3 = vld [vmem:[%s283_s1 + $0x24] ss:$8 sps:$4 sm:$0xff]   ;;  %v147_v12 = vunpack.c.l.s4 %v212_v11 }
   0x2   :  { %82 = vmatprep.subr.bf16.mxu0 %v199_v0  ;;  %v204_v4 = vld [vmem:[%s283_s1 + $0x20] ss:$8 sps:$4 sm:$0xff]   ;;  %v205_v5 = vld [vmem:[%s283_s1 + $0x14] ss:$8 sps:$4 sm:$0xff]   ;;  %v207_v6 = vld [vmem:[%s283_s1 + $0x10] ss:$8 sps:$4 sm:$0xff]  }
   0x3   :  { %83 = vmatpush1.bf16.msra.mxu0 %v201_v2  ;;  %v208_v7 = vld [vmem:[%s283_s1 + $0x4] ss:$8 sps:$4 sm:$0xff]   ;;  %v210_v8 = vld [vmem:[%s283_s1] ss:$8 sps:$4 sm:$0xff]   ;;  %v118_v13 = vshrl.u32 %v117_v10, 7  ;;  %v148_v14 = vunpack.c.0.s8 %v147_v12 }
   0x4   :  { %84 = vmatprep.subr.bf16.mxu0 %v202_v3  ;;  %v21_v9 = vld [vmem:[%s284_s0] sm:$0x1]  ;;  %v213_v29 = vmov 1966171168  }
   0x5   :  { %v143_v15 = vld [vmem:[%s285_s4] sm:$0x3]  ;;  %v119_v16 = vsub.s32 0, %v118_v13  ;;  %v151_v19 = vsub.s32 %v148_v14, %v118_v13  ;;  %v123_v20 = vsub.s32 1, %v118_v13  ;;  %v166_v30 = vunpack.c.l.s4 %v213_v29 }
   0x6   :  { %v115_v17 = vld [vmem:[%s286_s2] sm:$0x3]  ;;  %v144_v18 = vunpack.c.l.bf16 %v143_v15 }
   0x7   :  { %85 = vmatpush1.bf16.msra.mxu0 %v204_v4  ;;  %v129_v21 = vld [vmem:[%s287_s3] sm:$0x3]  ;;  %v120_v22 = vrot.slane %v115_v17, %v119_v16  ;;  %v124_v25 = vrot.slane %v115_v17, %v123_v20  ;;  %v167_v38 = vunpack.c.0.s8 %v166_v30 }
   0x8   :  { %86 = vmatprep.subr.bf16.mxu0 %v205_v5  ;;  %v134_v23 = vrot.slane %v129_v21, %v119_v16  ;;  %v152_v24 = vrot.slane %v144_v18, %v151_v19  ;;  %v138_v28 = vrot.slane %v129_v21, %v123_v20 }
   0x9   :  { %v170_v43 = vsub.s32 %v167_v38, %v118_v13 }
   0xa   :  { %v153_v34 = vcombine.high %v152_v24, %v152_v24 }
   0xb   :  { %87 = vmatpush1.bf16.msra.mxu0 %v207_v6 }
   0xc   :  { %88 = vmatprep.subr.bf16.mxu0 %v208_v7 }
   0xf   :  { %89 = vmatpush1.bf16.msra.mxu0 %v210_v8 }
  0x12   :  { %193 = vmatmul.mubr.msk.bf16.vlgmr.msra.gmra.mxu0 %vm70_vm0, %v21_v9 }
  0xd2   :  { %v108_v26 = vpop.f32.mrf.mxu0 }
  0xd3   :  { %v127_v27 = vmul.f32 %v120_v22, %v108_v26 }
  0xd4   :  { %v110_v31 = vpop.f32.mrf.mxu0 }
  0xd5   :  { %v141_v32 = vadd.f32 %v134_v23, %v127_v27  ;;  %v128_v33 = vmul.f32 %v124_v25, %v110_v31 }
  0xd6   :  { %v112_v35 = vpop.f32.mrf.mxu0 }
  0xd7   :  { %v156_v36 = vadd.f32 %v152_v24, %v141_v32  ;;  %v142_v37 = vadd.f32 %v138_v28, %v128_v33 }
  0xd8   :  { %v113_v39 = vpop.f32.mrf.mxu0 }
  0xd9   :  { %v157_v40 = vadd.f32 %v153_v34, %v142_v37  ;;  %v158_v41 = vmax.f32 %v156_v36, 0.0 }
  0xdb   :  { %v159_v42 = vmax.f32 %v157_v40, 0.0 }
  0xdd   :  { %v194_v44 = vpack.c.bf16 %v159_v42, %v158_v41 }
  0xdf   :  { %v171_v45 = vrot.slane %v194_v44, %v170_v43 }
  0xe1   :  { %195 = vst.sshfl [vmem:[%s288_s5] sm:$0x5 pattern:$0x73625140] %v171_v45 }

// kernel: _lambda_.103
= control target key start
LH: loop header
LB: loop body
LE: loop exit
PB: predicated region body
PF: predicated region fallthrough
CT: control target
= control target key end

     0   :  { %9 = vsyncpa [#allocation3], 0  ;;  %s861_s0 = inlined_call_operand.vmem [shape: bf16[2,576], index: 0, kind: input, shape index: {}]   ;;  %s862_s1 = inlined_call_operand.vmem [shape: bf16[576,64], index: 1, kind: input, shape index: {}]   ;;  %s863_s2 = inlined_call_operand.hbm [shape: f32[1,64], index: 2, kind: input, shape index: {}]   ;;  %s864_s3 = inlined_call_operand.hbm [shape: f32[1,64], index: 3, kind: input, shape index: {}]   ;;  %s865_s4 = inlined_call_operand.vmem [shape: bf16[2,64], index: 4, kind: output, shape index: {}]  }
   0x1   :  { %10 = vsyncpa [#allocation5], 0  ;;  %s711_s15 = smov [#allocation2]   ;;  %s712_s17 = smov [#allocation4]  }
   0x2   :  { %s21_s16 = sshll.u32 %s711_s15, 4  ;;  %s31_s18 = sshll.u32 %s712_s17, 4  ;;  %s22_s16 = int_to_ptr.vmem [resolvable:$true] %s21_s16  ;;  %s32_s18 = int_to_ptr.vmem [resolvable:$true] %s31_s18 }
   0x3   :  { %s675_s19 = scalar_lea.vmem %s22_s16, 16  ;;  %s679_s20 = scalar_lea.vmem %s22_s16, 32 }
   0x4   :  { %p676_p0 = scmp.ne.s32.totalorder %s22_s16, %s675_s19  ;;  %p680_p1 = scmp.lt.s32.totalorder %s22_s16, %s22_s16 }
   0x5   :  { %p681_p2 = scmp.lt.s32.totalorder %s679_s20, %s675_s19 }
   0x7   :  { %p682_p3 = por %p681_p2, %p680_p1 }
   0x9   :  { %p683_p4 = pnand %p682_p3, %p676_p0 }
   0xb   :  { %686 = shalt.err (!%p683_p4)
}
   0xc   :  { %24 = dma.hbm_to_vmem [thread:$0]  %s863_s2, 16, %s22_s16, [#allocation3]  }
   0xd   :  { %s695_s23 = scalar_lea.vmem %s32_s18, 16  ;;  %s699_s24 = scalar_lea.vmem %s32_s18, 32 }
   0xe   :  { %p696_p5 = scmp.ne.s32.totalorder %s32_s18, %s695_s23  ;;  %p700_p6 = scmp.lt.s32.totalorder %s32_s18, %s32_s18 }
   0xf   :  { %p701_p7 = scmp.lt.s32.totalorder %s699_s24, %s695_s23 }
  0x11   :  { %p702_p8 = por %p701_p7, %p700_p6 }
  0x13   :  { %p703_p9 = pnand %p702_p8, %p696_p5 }
  0x15   :  { %706 = shalt.err (!%p703_p9)
}
  0x16   :  { %34 = dma.hbm_to_vmem [thread:$0]  %s864_s3, 16, %s32_s18, [#allocation5]  }
  0x17   :  { %707 = dma.done.wait [#allocation3], 16  }
  0x18   :  { %708 = vsyncadd [#allocation3], 4294967280 }
  0x19   :  { %709 = dma.done.wait [#allocation5], 16  }
  0x1a   :  { %710 = vsyncadd [#allocation5], 4294967280  ;;  %v630_v0 = vld [vmem:[%s862_s1 + $0x78] sm:$0xff]   ;;  %v634_v4 = vld [vmem:[%s862_s1 + $0x70] sm:$0xff]   ;;  %v713_v22 = vmov 1966171168   ;;  %v120_v24 = vlaneseq }
  0x1b   :  { %v631_v1 = vld [vmem:[%s862_s1 + $0xf8] sm:$0xff]   ;;  %564 = vmatprep.subr.bf16.mxu0 %v630_v0  ;;  %v635_v5 = vld [vmem:[%s862_s1 + $0xf0] sm:$0xff]   ;;  %v638_v8 = vld [vmem:[%s862_s1 + $0x68] sm:$0xff]   ;;  %v118_v23 = vunpack.c.l.s4 %v713_v22  ;;  %v714_v40 = vmov 0.0   ;;  %vm715_vm0 = vmmov 0   ;;  %vm375_vm1 = vcmask 523264  }
  0x1c   :  { %v632_v2 = vld [vmem:[%s862_s1 + $0x38] sm:$0xff]   ;;  %586 = vmatprep.subr.bf16.mxu1 %v631_v1  ;;  %v636_v6 = vld [vmem:[%s862_s1 + $0x30] sm:$0xff]   ;;  %v639_v9 = vld [vmem:[%s862_s1 + $0xe8] sm:$0xff]   ;;  %v121_v30 = vshrl.u32 %v120_v24, 7  ;;  %vm517_vm2 = vcmask 516096  }
  0x1d   :  { %v633_v3 = vld [vmem:[%s862_s1 + $0xb8] sm:$0xff]   ;;  %565 = vmatpush3.bf16.msra.mxu0 %v632_v2  ;;  %v637_v7 = vld [vmem:[%s862_s1 + $0xb0] sm:$0xff]   ;;  %v640_v10 = vld [vmem:[%s862_s1 + $0x28] sm:$0xff]   ;;  %v119_v29 = vunpack.c.0.s8 %v118_v23 }
  0x1e   :  { %587 = vmatpush3.bf16.msra.mxu1 %v633_v3  ;;  %566 = vmatprep.subr.bf16.mxu0 %v634_v4  ;;  %v641_v11 = vld [vmem:[%s862_s1 + $0xa8] sm:$0xff]   ;;  %v642_v12 = vld [vmem:[%s862_s1 + $0x60] sm:$0xff]   ;;  %v646_v16 = vld [vmem:[%s862_s1 + $0x58] sm:$0xff]  }
  0x1f   :  { %588 = vmatprep.subr.bf16.mxu1 %v635_v5  ;;  %v643_v13 = vld [vmem:[%s862_s1 + $0xe0] sm:$0xff]   ;;  %v647_v17 = vld [vmem:[%s862_s1 + $0xd8] sm:$0xff]   ;;  %v650_v20 = vld [vmem:[%s862_s1 + $0x50] sm:$0xff]   ;;  %v122_v35 = vsub.s32 %v119_v29, %v121_v30 }
  0x20   :  { %v644_v14 = vld [vmem:[%s862_s1 + $0x20] sm:$0xff]   ;;  %v648_v18 = vld [vmem:[%s862_s1 + $0x18] sm:$0xff]   ;;  %v651_v21 = vld [vmem:[%s862_s1 + $0xd0] sm:$0xff]  }
  0x21   :  { %567 = vmatpush3.bf16.msra.mxu0 %v636_v6  ;;  %v645_v15 = vld [vmem:[%s862_s1 + $0xa0] sm:$0xff]   ;;  %v649_v19 = vld [vmem:[%s862_s1 + $0x98] sm:$0xff]   ;;  %v652_v25 = vld [vmem:[%s862_s1 + $0x10] sm:$0xff]  }
  0x22   :  { %589 = vmatpush3.bf16.msra.mxu1 %v637_v7  ;;  %568 = vmatprep.subr.bf16.mxu0 %v638_v8  ;;  %v653_v26 = vld [vmem:[%s862_s1 + $0x90] sm:$0xff]   ;;  %v654_v27 = vld [vmem:[%s862_s1 + $0x48] sm:$0xff]   ;;  %v658_v33 = vld [vmem:[%s862_s1 + $0x40] sm:$0xff]  }
  0x23   :  { %590 = vmatprep.subr.bf16.mxu1 %v639_v9  ;;  %v655_v28 = vld [vmem:[%s862_s1 + $0xc8] sm:$0xff]   ;;  %v659_v34 = vld [vmem:[%s862_s1 + $0xc0] sm:$0xff]   ;;  %v663_v44 = vld [vmem:[%s862_s1 + $0x118] sm:$0xff]  }
  0x24   :  { %v656_v31 = vld [vmem:[%s862_s1 + $0x8] sm:$0xff]   ;;  %v660_v36 = vld [vmem:[%s862_s1] sm:$0xff]   ;;  %v664_v47 = vld [vmem:[%s862_s1 + $0x110] sm:$0xff]  }
  0x25   :  { %569 = vmatpush3.bf16.msra.mxu0 %v640_v10  ;;  %v657_v32 = vld [vmem:[%s862_s1 + $0x88] sm:$0xff]   ;;  %v661_v37 = vld [vmem:[%s862_s1 + $0x80] sm:$0xff]  }
  0x26   :  { %591 = vmatpush3.bf16.msra.mxu1 %v641_v11  ;;  %570 = vmatprep.subr.bf16.mxu0 %v642_v12  ;;  %v42_v38 = vld [vmem:[%s861_s0] sm:$0x1f]  ;;  %v665_v49 = vld [vmem:[%s862_s1 + $0x108] sm:$0xff]  }
  0x27   :  { %592 = vmatprep.subr.bf16.mxu1 %v643_v13  ;;  %v123_v39 = vrot.slane %v42_v38, %v122_v35  ;;  %v116_v48 = vcombine.high %v42_v38, %v42_v38  ;;  %v666_v51 = vld [vmem:[%s862_s1 + $0x100] sm:$0xff]  }
  0x28   :  { %v562_v1 = vld [vmem:[#allocation2] ss:$0 sm:$0xff]  ;;  %v563_v3 = vld [vmem:[#allocation4] ss:$0 sm:$0xff] }
  0x29   :  { %571 = vmatpush3.bf16.msra.mxu0 %v644_v14  ;;  %v131_v41 = vcombine.high %v123_v39, %v123_v39  ;;  %v138_v42 = vrot.slane %v123_v39, %v122_v35  ;;  %v130_v50 = vrot.slane %v116_v48, %v122_v35 }
  0x2a   :  { %593 = vmatpush3.bf16.msra.mxu1 %v645_v15  ;;  %572 = vmatprep.subr.bf16.mxu0 %v646_v16 }
  0x2b   :  { %594 = vmatprep.subr.bf16.mxu1 %v647_v17  ;;  %v152_v43 = vrot.slane %v131_v41, %v122_v35  ;;  %v153_v45 = vcombine.high %v138_v42, %v138_v42  ;;  %v145_v52 = vrot.slane %v130_v50, %v122_v35 }
  0x2d   :  { %573 = vmatpush3.bf16.msra.mxu0 %v648_v18  ;;  %411 = vmatprep.mubr.bf16.mxu0 %v152_v43  ;;  %v154_v46 = vcombine.high %v152_v43, %v152_v43 }
  0x2e   :  { %595 = vmatpush3.bf16.msra.mxu1 %v649_v19  ;;  %574 = vmatprep.subr.bf16.mxu0 %v650_v20 }
  0x2f   :  { %596 = vmatprep.subr.bf16.mxu1 %v651_v21  ;;  %451 = vmatprep.mubr.bf16.mxu1 %v154_v46 }
  0x31   :  { %575 = vmatpush3.bf16.msra.mxu0 %v652_v25 }
  0x32   :  { %597 = vmatpush3.bf16.msra.mxu1 %v653_v26  ;;  %576 = vmatprep.subr.bf16.mxu0 %v654_v27 }
  0x33   :  { %598 = vmatprep.subr.bf16.mxu1 %v655_v28 }
  0x35   :  { %577 = vmatpush3.bf16.msra.mxu0 %v656_v31 }
  0x36   :  { %599 = vmatpush3.bf16.msra.mxu1 %v657_v32  ;;  %578 = vmatprep.subr.bf16.mxu0 %v658_v33 }
  0x37   :  { %600 = vmatprep.subr.bf16.mxu1 %v659_v34 }
  0x39   :  { %579 = vmatpush3.bf16.msra.mxu0 %v660_v36 }
  0x3a   :  { %601 = vmatpush3.bf16.msra.mxu1 %v661_v37  ;;  %613 = vmatprep.subr.bf16.mxu0 %v714_v40 }
  0x3c   :  { %412 = vmatmul.mubr.bf16.vlgmr.msra.gmra.mxu0 %v138_v42 }
  0x3d   :  { %614 = vmatpush3.bf16.msra.mxu0 %v663_v44  ;;  %452 = vmatmul.mubr.bf16.vlgmr.msra.gmra.mxu1 %v153_v45 }
  0x3e   :  { %615 = vmatprep.subr.bf16.mxu0 %v714_v40  ;;  %621 = vmatprep.mubr.msk.bf16.mxu0 %vm715_vm0, %v714_v40 }
  0x41   :  { %616 = vmatpush3.bf16.msra.mxu0 %v664_v47 }
  0x42   :  { %617 = vmatprep.subr.bf16.mxu0 %v714_v40 }
  0x45   :  { %618 = vmatpush3.bf16.msra.mxu0 %v665_v49 }
  0x46   :  { %619 = vmatprep.subr.bf16.mxu0 %v714_v40 }
  0x49   :  { %620 = vmatpush3.bf16.msra.mxu0 %v666_v51 }
  0x4c   :  { %622 = vmatmul.mubr.msk.bf16.vlgmr.msra.gmra.mxu0 %vm375_vm1, %v145_v52 }
  0xfc   :  { %v580_v53 = vpop.f32.mrf.mxu0 }
  0xfd   :  { %v602_v54 = vpop.f32.mrf.mxu1 }
  0xfe   :  { %v581_v55 = vpop.f32.mrf.mxu0 }
  0xff   :  { %v603_v56 = vpop.f32.mrf.mxu1  ;;  %v582_v61 = vadd.f32 %v581_v55, %v580_v53 }
 0x100   :  { %v583_v57 = vpop.f32.mrf.mxu0  ;;  %v604_v62 = vadd.f32 %v603_v56, %v602_v54 }
 0x101   :  { %v605_v59 = vpop.f32.mrf.mxu1 }
 0x102   :  { %v584_v58 = vpop.f32.mrf.mxu0  ;;  %v454_v63 = vadd.f32 %v604_v62, %v582_v61 }
 0x103   :  { %v606_v60 = vpop.f32.mrf.mxu1 }
 0x10c   :  { %v493_v0 = vpop.f32.mrf.mxu0 }
 0x10d   :  { %v494_v2 = vadd.f32 %v493_v0, %v454_v63 }
 0x10e   :  { %v623_v4 = vpop.f32.mrf.mxu0 }
 0x10f   :  { %v506_v5 = vmul.f32 %v562_v1, %v494_v2 }
 0x110   :  { %v496_v6 = vpop.f32.mrf.mxu0 }
 0x111   :  { %v514_v7 = vadd.f32 %v563_v3, %v506_v5 }
 0x112   :  { %v624_v8 = vpop.f32.mrf.mxu0 }
 0x113   :  { %v515_v9 = vmax.f32 %v514_v7, 0.0 }
 0x115   :  { %v516_v10 = vpack.c.bf16 %v515_v9, %v515_v9 }
 0x117   :  { %518 = vst.msk [vmem:[%s865_s4] sm:$0x1] %vm517_vm2, %v516_v10 }
 0x118   :  { %523 = vsyncpa [#allocation3], 1 }
 0x119   :  { %524 = vsyncpa [#allocation5], 1 }

// kernel: _lambda_.112
= control target key start
LH: loop header
LB: loop body
LE: loop exit
PB: predicated region body
PF: predicated region fallthrough
CT: control target
= control target key end

     0   :  { %v65_v9 = vlaneseq  ;;  %v334_v13 = vmov 1966171168   ;;  %vm232_vm0 = vcmask 516096   ;;  %s425_s0 = inlined_call_operand.vmem [shape: bf16[2,1,1,9,64], index: 0, kind: input, shape index: {}, may-alias: {0,5}]   ;;  %s426_s1 = inlined_call_operand.vmem [shape: bf16[2,256], index: 1, kind: input, shape index: {}]   ;;  %s427_s2 = inlined_call_operand.vmem [shape: bf16[256,64], index: 2, kind: input, shape index: {}]   ;;  %s428_s3 = inlined_call_operand.vmem [shape: f32[1,64], index: 3, kind: input, shape index: {}]   ;;  %s429_s4 = inlined_call_operand.vmem [shape: f32[1,64], index: 4, kind: input, shape index: {}]   ;;  %s430_s5 = inlined_call_operand.vmem [shape: bf16[2,1,1,9,64], index: 5, kind: output, shape index: {}, may-alias: {0,5}]  }
   0x1   :  { %v318_v0 = vld [vmem:[%s427_s2 + $0x78] sm:$0xff]   ;;  %v320_v2 = vld [vmem:[%s427_s2 + $0x70] sm:$0xff]   ;;  %v322_v4 = vld [vmem:[%s427_s2 + $0x68] sm:$0xff]   ;;  %v63_v14 = vunpack.c.l.s4 %v334_v13 }
   0x2   :  { %v319_v1 = vld [vmem:[%s427_s2 + $0x38] sm:$0xff]   ;;  %295 = vmatprep.subr.bf16.mxu0 %v318_v0  ;;  %v321_v3 = vld [vmem:[%s427_s2 + $0x30] sm:$0xff]   ;;  %v323_v5 = vld [vmem:[%s427_s2 + $0x28] sm:$0xff]   ;;  %v66_v15 = vshrl.u32 %v65_v9, 7 }
   0x3   :  { %296 = vmatpush3.bf16.msra.mxu0 %v319_v1  ;;  %v324_v6 = vld [vmem:[%s427_s2 + $0x60] sm:$0xff]   ;;  %v326_v8 = vld [vmem:[%s427_s2 + $0x58] sm:$0xff]   ;;  %v328_v11 = vld [vmem:[%s427_s2 + $0x50] sm:$0xff]   ;;  %v64_v18 = vunpack.c.0.s8 %v63_v14 }
   0x4   :  { %297 = vmatprep.subr.bf16.mxu0 %v320_v2  ;;  %v325_v7 = vld [vmem:[%s427_s2 + $0x20] sm:$0xff]   ;;  %v327_v10 = vld [vmem:[%s427_s2 + $0x18] sm:$0xff]   ;;  %v329_v16 = vld [vmem:[%s427_s2 + $0x10] sm:$0xff]  }
   0x5   :  { %v275_v12 = vld.sshfl [vmem:[%s426_s1] sm:$0x11 pattern:$0x75316420]  ;;  %v330_v19 = vld [vmem:[%s427_s2 + $0x48] sm:$0xff]   ;;  %v67_v20 = vsub.s32 %v64_v18, %v66_v15 }
   0x6   :  { %v61_v17 = vcombine.high %v275_v12, %v275_v12  ;;  %v331_v21 = vld [vmem:[%s427_s2 + $0x8] sm:$0xff]   ;;  %v332_v23 = vld [vmem:[%s427_s2 + $0x40] sm:$0xff]  }
   0x7   :  { %298 = vmatpush3.bf16.msra.mxu0 %v321_v3  ;;  %v333_v24 = vld [vmem:[%s427_s2] sm:$0xff]   ;;  %v68_v25 = vrot.slane %v275_v12, %v67_v20 }
   0x8   :  { %299 = vmatprep.subr.bf16.mxu0 %v322_v4  ;;  %v75_v22 = vrot.slane %v61_v17, %v67_v20  ;;  %v292_v28 = vld [vmem:[%s428_s3] ss:$0 sm:$0xff] }
   0x9   :  { %v293_v30 = vld [vmem:[%s429_s4] ss:$0 sm:$0xff] }
   0xa   :  { %206 = vmatprep.mubr.bf16.mxu0 %v75_v22 }
   0xb   :  { %300 = vmatpush3.bf16.msra.mxu0 %v323_v5 }
   0xc   :  { %301 = vmatprep.subr.bf16.mxu0 %v324_v6 }
   0xf   :  { %302 = vmatpush3.bf16.msra.mxu0 %v325_v7 }
  0x10   :  { %303 = vmatprep.subr.bf16.mxu0 %v326_v8 }
  0x13   :  { %304 = vmatpush3.bf16.msra.mxu0 %v327_v10 }
  0x14   :  { %305 = vmatprep.subr.bf16.mxu0 %v328_v11 }
  0x17   :  { %306 = vmatpush3.bf16.msra.mxu0 %v329_v16 }
  0x18   :  { %307 = vmatprep.subr.bf16.mxu0 %v330_v19 }
  0x1b   :  { %308 = vmatpush3.bf16.msra.mxu0 %v331_v21 }
  0x1c   :  { %309 = vmatprep.subr.bf16.mxu0 %v332_v23 }
  0x1f   :  { %310 = vmatpush3.bf16.msra.mxu0 %v333_v24 }
  0x22   :  { %207 = vmatmul.mubr.bf16.vlgmr.msra.gmra.mxu0 %v68_v25 }
  0xe2   :  { %v311_v26 = vpop.f32.mrf.mxu0 }
  0xe4   :  { %v312_v27 = vpop.f32.mrf.mxu0 }
  0xe5   :  { %v313_v29 = vadd.f32 %v312_v27, %v311_v26 }
  0xe6   :  { %v314_v31 = vpop.f32.mrf.mxu0 }
  0xe7   :  { %v221_v32 = vmul.f32 %v313_v29, %v292_v28 }
  0xe8   :  { %v315_v33 = vpop.f32.mrf.mxu0 }
  0xe9   :  { %v229_v34 = vadd.f32 %v293_v30, %v221_v32 }
  0xeb   :  { %v230_v35 = vmax.f32 %v229_v34, 0.0 }
  0xed   :  { %v231_v36 = vpack.c.bf16 %v230_v35, %v230_v35 }
  0xef   :  { %233 = vst.msk [vmem:[#allocation2] sm:$0x1] %vm232_vm0, %v231_v36 }
  0xf6   :  { %v252_v37 = vld [vmem:[#allocation2] sm:$0x1] }
  0xf7   :  { %294 = vst [vmem:[%s430_s5 + $0x4] sm:$0x1] %v252_v37 }

// kernel: _lambda_.110
= control target key start
LH: loop header
LB: loop body
LE: loop exit
PB: predicated region body
PF: predicated region fallthrough
CT: control target
= control target key end

     0   :  { %vm21_vm0 = vcmask 1041409   ;;  %vm23_vm1 = vcmask 1043459   ;;  %vm25_vm2 = vcmask 1045509   ;;  %vm27_vm3 = vcmask 1047559   ;;  %s54_s0 = inlined_call_operand.vmem [shape: bf16[2,1,256], index: 0, kind: input, shape index: {}]   ;;  %s55_s1 = inlined_call_operand.vmem [shape: f32[2,256], index: 1, kind: output, shape index: {}]  }
   0x1   :  { %v8_v0 = vld [vmem:[%s54_s0] sm:$0x3]  ;;  %v9_v1 = vld [vmem:[%s54_s0 + $0x2] sm:$0x3] }
   0x2   :  { %v10_v2 = vunpack.c.l.bf16 %v8_v0  ;;  %v11_v3 = vunpack.c.l.bf16 %v9_v1 }
   0x4   :  { %v20_v4 = vrot.slane %v11_v3, 7 }
   0x6   :  { %v22_v5 = vsel %vm21_vm0, %v20_v4, %v10_v2 }
   0x7   :  { %v24_v6 = vsel %vm23_vm1, %v20_v4, %v22_v5 }
   0x8   :  { %v26_v7 = vsel %vm25_vm2, %v20_v4, %v24_v6 }
   0x9   :  { %v28_v8 = vsel %vm27_vm3, %v20_v4, %v26_v7 }
   0xa   :  { %30 = vst [vmem:[%s55_s1] sm:$0xf] %v28_v8 }

// kernel: _lambda_.106
= control target key start
LH: loop header
LB: loop body
LE: loop exit
PB: predicated region body
PF: predicated region fallthrough
CT: control target
= control target key end

     0   :  { %v639_v22 = vmov 1966171168   ;;  %v96_v24 = vlaneseq  ;;  %v640_v40 = vmov 0.0   ;;  %vm641_vm0 = vmmov 0   ;;  %s787_s1 = inlined_call_operand.vmem [shape: bf16[576,64], index: 1, kind: input, shape index: {}]   ;;  %s788_s0 = inlined_call_operand.vmem [shape: bf16[2,576], index: 0, kind: input, shape index: {}]   ;;  %s789_s2 = inlined_call_operand.vmem [shape: f32[1,64], index: 2, kind: input, shape index: {}]   ;;  %s790_s3 = inlined_call_operand.vmem [shape: f32[1,64], index: 3, kind: input, shape index: {}]   ;;  %s791_s4 = inlined_call_operand.vmem [shape: bf16[2,64], index: 4, kind: output, shape index: {}]  }
   0x1   :  { %v602_v0 = vld [vmem:[%s787_s1 + $0x78] sm:$0xff]   ;;  %v606_v4 = vld [vmem:[%s787_s1 + $0x70] sm:$0xff]   ;;  %v610_v8 = vld [vmem:[%s787_s1 + $0x68] sm:$0xff]   ;;  %v94_v23 = vunpack.c.l.s4 %v639_v22  ;;  %vm351_vm1 = vcmask 523264   ;;  %vm493_vm2 = vcmask 516096  }
   0x2   :  { %v603_v1 = vld [vmem:[%s787_s1 + $0xf8] sm:$0xff]   ;;  %538 = vmatprep.subr.bf16.mxu0 %v602_v0  ;;  %v607_v5 = vld [vmem:[%s787_s1 + $0xf0] sm:$0xff]   ;;  %v611_v9 = vld [vmem:[%s787_s1 + $0xe8] sm:$0xff]   ;;  %v97_v30 = vshrl.u32 %v96_v24, 7 }
   0x3   :  { %v604_v2 = vld [vmem:[%s787_s1 + $0x38] sm:$0xff]   ;;  %560 = vmatprep.subr.bf16.mxu1 %v603_v1  ;;  %v608_v6 = vld [vmem:[%s787_s1 + $0x30] sm:$0xff]   ;;  %v612_v10 = vld [vmem:[%s787_s1 + $0x28] sm:$0xff]   ;;  %v95_v29 = vunpack.c.0.s8 %v94_v23 }
   0x4   :  { %v605_v3 = vld [vmem:[%s787_s1 + $0xb8] sm:$0xff]   ;;  %539 = vmatpush3.bf16.msra.mxu0 %v604_v2  ;;  %v609_v7 = vld [vmem:[%s787_s1 + $0xb0] sm:$0xff]   ;;  %v613_v11 = vld [vmem:[%s787_s1 + $0xa8] sm:$0xff]  }
   0x5   :  { %561 = vmatpush3.bf16.msra.mxu1 %v605_v3  ;;  %540 = vmatprep.subr.bf16.mxu0 %v606_v4  ;;  %v614_v12 = vld [vmem:[%s787_s1 + $0x60] sm:$0xff]   ;;  %v618_v16 = vld [vmem:[%s787_s1 + $0x58] sm:$0xff]   ;;  %v622_v20 = vld [vmem:[%s787_s1 + $0x50] sm:$0xff]   ;;  %v98_v35 = vsub.s32 %v95_v29, %v97_v30 }
   0x6   :  { %562 = vmatprep.subr.bf16.mxu1 %v607_v5  ;;  %v615_v13 = vld [vmem:[%s787_s1 + $0xe0] sm:$0xff]   ;;  %v619_v17 = vld [vmem:[%s787_s1 + $0xd8] sm:$0xff]   ;;  %v623_v21 = vld [vmem:[%s787_s1 + $0xd0] sm:$0xff]  }
   0x7   :  { %v616_v14 = vld [vmem:[%s787_s1 + $0x20] sm:$0xff]   ;;  %v620_v18 = vld [vmem:[%s787_s1 + $0x18] sm:$0xff]   ;;  %v624_v25 = vld [vmem:[%s787_s1 + $0x10] sm:$0xff]  }
   0x8   :  { %541 = vmatpush3.bf16.msra.mxu0 %v608_v6  ;;  %v617_v15 = vld [vmem:[%s787_s1 + $0xa0] sm:$0xff]   ;;  %v621_v19 = vld [vmem:[%s787_s1 + $0x98] sm:$0xff]   ;;  %v625_v26 = vld [vmem:[%s787_s1 + $0x90] sm:$0xff]  }
   0x9   :  { %563 = vmatpush3.bf16.msra.mxu1 %v609_v7  ;;  %542 = vmatprep.subr.bf16.mxu0 %v610_v8  ;;  %v626_v27 = vld [vmem:[%s787_s1 + $0x48] sm:$0xff]   ;;  %v630_v33 = vld [vmem:[%s787_s1 + $0x40] sm:$0xff]   ;;  %v635_v44 = vld [vmem:[%s787_s1 + $0x118] sm:$0xff]  }
   0xa   :  { %564 = vmatprep.subr.bf16.mxu1 %v611_v9  ;;  %v627_v28 = vld [vmem:[%s787_s1 + $0xc8] sm:$0xff]   ;;  %v631_v34 = vld [vmem:[%s787_s1 + $0xc0] sm:$0xff]   ;;  %v636_v47 = vld [vmem:[%s787_s1 + $0x110] sm:$0xff]  }
   0xb   :  { %v628_v31 = vld [vmem:[%s787_s1 + $0x8] sm:$0xff]   ;;  %v632_v36 = vld [vmem:[%s787_s1] sm:$0xff]  }
   0xc   :  { %543 = vmatpush3.bf16.msra.mxu0 %v612_v10  ;;  %v629_v32 = vld [vmem:[%s787_s1 + $0x88] sm:$0xff]   ;;  %v633_v37 = vld [vmem:[%s787_s1 + $0x80] sm:$0xff]  }
   0xd   :  { %565 = vmatpush3.bf16.msra.mxu1 %v613_v11  ;;  %544 = vmatprep.subr.bf16.mxu0 %v614_v12  ;;  %v18_v38 = vld [vmem:[%s788_s0] sm:$0x1f]  ;;  %v637_v49 = vld [vmem:[%s787_s1 + $0x108] sm:$0xff]  }
   0xe   :  { %566 = vmatprep.subr.bf16.mxu1 %v615_v13  ;;  %v99_v39 = vrot.slane %v18_v38, %v98_v35  ;;  %v92_v48 = vcombine.high %v18_v38, %v18_v38  ;;  %v638_v51 = vld [vmem:[%s787_s1 + $0x100] sm:$0xff]  }
   0xf   :  { %v536_v1 = vld [vmem:[%s789_s2] ss:$0 sm:$0xff] }
  0x10   :  { %545 = vmatpush3.bf16.msra.mxu0 %v616_v14  ;;  %v107_v41 = vcombine.high %v99_v39, %v99_v39  ;;  %v114_v42 = vrot.slane %v99_v39, %v98_v35  ;;  %v106_v50 = vrot.slane %v92_v48, %v98_v35  ;;  %v537_v3 = vld [vmem:[%s790_s3] ss:$0 sm:$0xff] }
  0x11   :  { %567 = vmatpush3.bf16.msra.mxu1 %v617_v15  ;;  %546 = vmatprep.subr.bf16.mxu0 %v618_v16 }
  0x12   :  { %568 = vmatprep.subr.bf16.mxu1 %v619_v17  ;;  %v128_v43 = vrot.slane %v107_v41, %v98_v35  ;;  %v129_v45 = vcombine.high %v114_v42, %v114_v42  ;;  %v121_v52 = vrot.slane %v106_v50, %v98_v35 }
  0x14   :  { %547 = vmatpush3.bf16.msra.mxu0 %v620_v18  ;;  %387 = vmatprep.mubr.bf16.mxu0 %v128_v43  ;;  %v130_v46 = vcombine.high %v128_v43, %v128_v43 }
  0x15   :  { %569 = vmatpush3.bf16.msra.mxu1 %v621_v19  ;;  %548 = vmatprep.subr.bf16.mxu0 %v622_v20 }
  0x16   :  { %570 = vmatprep.subr.bf16.mxu1 %v623_v21  ;;  %427 = vmatprep.mubr.bf16.mxu1 %v130_v46 }
  0x18   :  { %549 = vmatpush3.bf16.msra.mxu0 %v624_v25 }
  0x19   :  { %571 = vmatpush3.bf16.msra.mxu1 %v625_v26  ;;  %550 = vmatprep.subr.bf16.mxu0 %v626_v27 }
  0x1a   :  { %572 = vmatprep.subr.bf16.mxu1 %v627_v28 }
  0x1c   :  { %551 = vmatpush3.bf16.msra.mxu0 %v628_v31 }
  0x1d   :  { %573 = vmatpush3.bf16.msra.mxu1 %v629_v32  ;;  %552 = vmatprep.subr.bf16.mxu0 %v630_v33 }
  0x1e   :  { %574 = vmatprep.subr.bf16.mxu1 %v631_v34 }
  0x20   :  { %553 = vmatpush3.bf16.msra.mxu0 %v632_v36 }
  0x21   :  { %575 = vmatpush3.bf16.msra.mxu1 %v633_v37  ;;  %587 = vmatprep.subr.bf16.mxu0 %v640_v40 }
  0x23   :  { %388 = vmatmul.mubr.bf16.vlgmr.msra.gmra.mxu0 %v114_v42 }
  0x24   :  { %588 = vmatpush3.bf16.msra.mxu0 %v635_v44  ;;  %428 = vmatmul.mubr.bf16.vlgmr.msra.gmra.mxu1 %v129_v45 }
  0x25   :  { %589 = vmatprep.subr.bf16.mxu0 %v640_v40  ;;  %595 = vmatprep.mubr.msk.bf16.mxu0 %vm641_vm0, %v640_v40 }
  0x28   :  { %590 = vmatpush3.bf16.msra.mxu0 %v636_v47 }
  0x29   :  { %591 = vmatprep.subr.bf16.mxu0 %v640_v40 }
  0x2c   :  { %592 = vmatpush3.bf16.msra.mxu0 %v637_v49 }
  0x2d   :  { %593 = vmatprep.subr.bf16.mxu0 %v640_v40 }
  0x30   :  { %594 = vmatpush3.bf16.msra.mxu0 %v638_v51 }
  0x33   :  { %596 = vmatmul.mubr.msk.bf16.vlgmr.msra.gmra.mxu0 %vm351_vm1, %v121_v52 }
  0xe3   :  { %v554_v53 = vpop.f32.mrf.mxu0 }
  0xe4   :  { %v576_v54 = vpop.f32.mrf.mxu1 }
  0xe5   :  { %v555_v55 = vpop.f32.mrf.mxu0 }
  0xe6   :  { %v577_v56 = vpop.f32.mrf.mxu1  ;;  %v556_v61 = vadd.f32 %v555_v55, %v554_v53 }
  0xe7   :  { %v557_v57 = vpop.f32.mrf.mxu0  ;;  %v578_v62 = vadd.f32 %v577_v56, %v576_v54 }
  0xe8   :  { %v579_v59 = vpop.f32.mrf.mxu1 }
  0xe9   :  { %v558_v58 = vpop.f32.mrf.mxu0  ;;  %v430_v63 = vadd.f32 %v578_v62, %v556_v61 }
  0xea   :  { %v580_v60 = vpop.f32.mrf.mxu1 }
  0xf3   :  { %v469_v0 = vpop.f32.mrf.mxu0 }
  0xf4   :  { %v470_v2 = vadd.f32 %v469_v0, %v430_v63 }
  0xf5   :  { %v597_v4 = vpop.f32.mrf.mxu0 }
  0xf6   :  { %v482_v5 = vmul.f32 %v536_v1, %v470_v2 }
  0xf7   :  { %v472_v6 = vpop.f32.mrf.mxu0 }
  0xf8   :  { %v490_v7 = vadd.f32 %v537_v3, %v482_v5 }
  0xf9   :  { %v598_v8 = vpop.f32.mrf.mxu0 }
  0xfa   :  { %v491_v9 = vmax.f32 %v490_v7, 0.0 }
  0xfc   :  { %v492_v10 = vpack.c.bf16 %v491_v9, %v491_v9 }
  0xfe   :  { %494 = vst.msk [vmem:[%s791_s4] sm:$0x1] %vm493_vm2, %v492_v10 }

// kernel: _lambda_.111
= control target key start
LH: loop header
LB: loop body
LE: loop exit
PB: predicated region body
PF: predicated region fallthrough
CT: control target
= control target key end

     0   :  { %v64_v9 = vlaneseq  ;;  %v326_v13 = vmov 1966171168   ;;  %s413_s0 = inlined_call_operand.vmem [shape: bf16[2,256], index: 0, kind: input, shape index: {}]   ;;  %s414_s1 = inlined_call_operand.vmem [shape: bf16[256,32], index: 1, kind: input, shape index: {}]   ;;  %s415_s2 = inlined_call_operand.vmem [shape: f32[1,32], index: 2, kind: input, shape index: {}]   ;;  %s416_s3 = inlined_call_operand.vmem [shape: f32[1,32], index: 3, kind: input, shape index: {}]   ;;  %s417_s4 = inlined_call_operand.hbm [shape: f32[2,32], index: 4, kind: output, shape index: {}]  }
   0x1   :  { %v288_v0 = vld [vmem:[%s414_s1 + $0x78] sm:$0xff]   ;;  %v290_v2 = vld [vmem:[%s414_s1 + $0x70] sm:$0xff]   ;;  %v292_v4 = vld [vmem:[%s414_s1 + $0x68] sm:$0xff]   ;;  %v62_v14 = vunpack.c.l.s4 %v326_v13 }
   0x2   :  { %v289_v1 = vld [vmem:[%s414_s1 + $0x38] sm:$0xff]   ;;  %264 = vmatprep.subr.bf16.mxu0 %v288_v0  ;;  %v291_v3 = vld [vmem:[%s414_s1 + $0x30] sm:$0xff]   ;;  %v293_v5 = vld [vmem:[%s414_s1 + $0x28] sm:$0xff]   ;;  %v65_v15 = vshrl.u32 %v64_v9, 7 }
   0x3   :  { %265 = vmatpush3.bf16.msra.mxu0 %v289_v1  ;;  %v294_v6 = vld [vmem:[%s414_s1 + $0x60] sm:$0xff]   ;;  %v296_v8 = vld [vmem:[%s414_s1 + $0x58] sm:$0xff]   ;;  %v298_v11 = vld [vmem:[%s414_s1 + $0x50] sm:$0xff]  }
   0x4   :  { %266 = vmatprep.subr.bf16.mxu0 %v290_v2  ;;  %v295_v7 = vld [vmem:[%s414_s1 + $0x20] sm:$0xff]   ;;  %v297_v10 = vld [vmem:[%s414_s1 + $0x18] sm:$0xff]  }
   0x5   :  { %v245_v12 = vld.sshfl [vmem:[%s413_s0] sm:$0x11 pattern:$0x75316420] }
   0x7   :  { %267 = vmatpush3.bf16.msra.mxu0 %v291_v3 }
   0x8   :  { %268 = vmatprep.subr.bf16.mxu0 %v292_v4 }
   0xb   :  { %269 = vmatpush3.bf16.msra.mxu0 %v293_v5 }
   0xc   :  { %270 = vmatprep.subr.bf16.mxu0 %v294_v6 }
   0xf   :  { %271 = vmatpush3.bf16.msra.mxu0 %v295_v7 }
  0x10   :  { %272 = vmatprep.subr.bf16.mxu0 %v296_v8 }
  0x11   :  { %9 = vsyncpa [#allocation3], 0  ;;  %v299_v16 = vld [vmem:[%s414_s1 + $0x10] sm:$0xff]   ;;  %v60_v17 = vcombine.high %v245_v12, %v245_v12  ;;  %v63_v18 = vunpack.c.0.s8 %v62_v14  ;;  %v300_v19 = vld [vmem:[%s414_s1 + $0x48] sm:$0xff]   ;;  %s327_s26 = smov [#allocation2]   ;;  %vm229_vm0 = vcmask 254976  }
  0x12   :  { %v301_v21 = vld [vmem:[%s414_s1 + $0x8] sm:$0xff]   ;;  %v302_v23 = vld [vmem:[%s414_s1 + $0x40] sm:$0xff]   ;;  %s237_s27 = sshll.u32 %s327_s26, 4  ;;  %s238_s27 = int_to_ptr.vmem [resolvable:$true] %s237_s27 }
  0x13   :  { %273 = vmatpush3.bf16.msra.mxu0 %v297_v10  ;;  %v66_v20 = vsub.s32 %v63_v18, %v65_v15  ;;  %v303_v24 = vld [vmem:[%s414_s1] sm:$0xff]   ;;  %s304_s1 = scalar_lea.vmem %s238_s27, 32  ;;  %p309_p1 = scmp.lt.s32.totalorder %s238_s27, %s238_s27 }
  0x14   :  { %274 = vmatprep.subr.bf16.mxu0 %v298_v11  ;;  %v262_v28 = vld [vmem:[%s415_s2] ss:$0 sm:$0xff]  ;;  %p305_p0 = scmp.ne.s32.totalorder %s238_s27, %s304_s1  ;;  %p310_p2 = scmp.lt.s32.totalorder %s304_s1, %s304_s1 }
  0x15   :  { %v74_v22 = vrot.slane %v60_v17, %v66_v20  ;;  %v67_v25 = vrot.slane %v245_v12, %v66_v20  ;;  %v263_v31 = vld [vmem:[%s416_s3] ss:$0 sm:$0xff] }
  0x16   :  { %p311_p3 = por %p310_p2, %p309_p1 }
  0x17   :  { %275 = vmatpush3.bf16.msra.mxu0 %v299_v16  ;;  %205 = vmatprep.mubr.bf16.mxu0 %v74_v22 }
  0x18   :  { %276 = vmatprep.subr.bf16.mxu0 %v300_v19  ;;  %p312_p4 = pnand %p311_p3, %p305_p0 }
  0x1b   :  { %277 = vmatpush3.bf16.msra.mxu0 %v301_v21 }
  0x1c   :  { %278 = vmatprep.subr.bf16.mxu0 %v302_v23 }
  0x1f   :  { %279 = vmatpush3.bf16.msra.mxu0 %v303_v24 }
  0x22   :  { %206 = vmatmul.mubr.bf16.vlgmr.msra.gmra.mxu0 %v67_v25 }
  0xe2   :  { %v280_v26 = vpop.f32.mrf.mxu0 }
  0xe4   :  { %v281_v27 = vpop.f32.mrf.mxu0 }
  0xe5   :  { %v282_v29 = vadd.f32 %v281_v27, %v280_v26 }
  0xe6   :  { %v283_v30 = vpop.f32.mrf.mxu0 }
  0xe7   :  { %v220_v32 = vmul.f32 %v282_v29, %v262_v28 }
  0xe8   :  { %v284_v33 = vpop.f32.mrf.mxu0 }
  0xe9   :  { %v228_v34 = vadd.f32 %v263_v31, %v220_v32 }
  0xeb   :  { %230 = vst.msk [vmem:[#allocation2] sm:$0x3] %vm229_vm0, %v228_v34 }
  0xec   :  { %315 = shalt.err (!%p312_p4)
}
  0xed   :  { %240 = dma.vmem_to_hbm [thread:$0]  %s238_s27, 32, %s417_s4, [#allocation3]  }
  0xee   :  { %324 = dma.done.wait [#allocation3], 32  }
  0xef   :  { %325 = vsyncadd [#allocation3], 4294967264 }
  0xf0   :  { %244 = vsyncpa [#allocation3], 1 }

</bundles_post_ra>
